<compile_context>
chip_gen: v5e
topology: v5e:2x2
jax: 0.10.0
libtpu: 0.0.40
codegen_flags: <defaults>
</compile_context>

<pallas_src>
import jax
import jax.numpy as jnp
from jax import lax
from jax.experimental import pallas as pl
from jax.experimental.pallas import tpu as pltpu


LANE = 128


def _rup(n, m=LANE):
    return ((n + m - 1) // m) * m


# --------------------------------------------------------------------------- #
# Kernel 1: fused encoder conv + SED/ASC branch conv + pools + heads
# --------------------------------------------------------------------------- #
def fused_encoder_branch_kernel(xp_ref, we_ref, be_ref, wb_ref, bb_ref,
                                wx_ref, bx_ref, aw1_ref, ab1_ref,
                                aw2_ref, ab2_ref,
                                gx_ref, asc_ref,
                                encp_scr):
    """One batch element.  All channel dims are pre-padded (zero rows/cols) to
    multiples of 128 lanes in the wrapper, so results are exact and every
    matmul / store is lane dense.

    xp_ref  : (F+2, T+2, Cin)  zero-padded raw input (f32)
    we_ref  : (9, Cin, Fe)     encoder conv taps (tap = dh*3+dw, BN folded, bf16)
    be_ref  : (1, Fe)          encoder bias (f32)
    wb_ref  : (9, Fe, C)       fused SED|ASC branch conv taps (BN folded, bf16)
    bb_ref  : (1, C)
    wx_ref  : (C, 3*Hp)        GRU input projection (ASC rows zero, bf16)
    bx_ref  : (1, 3*Hp)        b_i{r,z,n} with b_h{r,z} folded in
    aw1_ref : (C, A1)          ASC fc1 (SED rows zero, bf16)
    ab1_ref : (1, A1)
    aw2_ref : (A1, Acls)       bf16
    ab2_ref : (1, Acls)
    gx_ref  : (T, 3*Hp)        out: GRU pre-activations (input part)
    asc_ref : (1, Acls)        out: ASC logits
    encp_scr: (F+2, T+2, Fe)   f32 VMEM scratch: halo-padded encoder activation
    """
    Fp2, Tp2, _ = xp_ref.shape
    F, T = Fp2 - 2, Tp2 - 2
    Fe = we_ref.shape[-1]
    C = wb_ref.shape[-1]

    # ---- encoder conv3x3 "same" + BN + ReLU: 9 shifted slab matmuls --------
    xp = xp_ref[...].astype(jnp.bfloat16)
    we = we_ref[...]
    acc = jnp.zeros((F * T, Fe), jnp.float32)
    for dh in range(3):
        for dw in range(3):
            slab = xp[dh:dh + F, dw:dw + T, :].reshape(F * T, -1)
            acc = acc + jnp.dot(slab, we[dh * 3 + dw],
                                preferred_element_type=jnp.float32)
    enc = jnp.maximum(acc + be_ref[...], 0.0)                      # (F*T, Fe)

    # Halo-pad the encoder activation entirely in VMEM (never hits HBM).
    encp_scr[...] = jnp.zeros(encp_scr.shape, encp_scr.dtype)
    encp_scr[1:F + 1, 1:T + 1, :] = enc.reshape(F, T, Fe)
    encp = encp_scr[...].astype(jnp.bfloat16)                      # (F+2, T+2, Fe)

    # ---- fused SED|ASC branch conv3x3 + BN + ReLU ---------------------------
    wb = wb_ref[...]
    acc2 = jnp.zeros((F * T, C), jnp.float32)
    for dh in range(3):
        for dw in range(3):
            slab = encp[dh:dh + F, dw:dw + T, :].reshape(F * T, Fe)
            acc2 = acc2 + jnp.dot(slab, wb[dh * 3 + dw],
                                  preferred_element_type=jnp.float32)
    y = jnp.maximum(acc2 + bb_ref[...], 0.0).reshape(F, T, C)      # >= 0

    # ---- pools (VMEM only) ---------------------------------------------------
    mx = jnp.max(y, axis=0)                                        # (T, C) SED freq max-pool
    pool = jnp.mean(y.reshape(F * T, C), axis=0, keepdims=True)    # (1, C) ASC global avg

    # ---- GRU input projection (hoisted out of the recurrence) ---------------
    gx = jnp.dot(mx.astype(jnp.bfloat16), wx_ref[...],
                 preferred_element_type=jnp.float32) + bx_ref[...]
    gx_ref[...] = gx.astype(gx_ref.dtype)

    # ---- ASC head ------------------------------------------------------------
    h1 = jnp.maximum(
        jnp.dot(pool.astype(jnp.bfloat16), aw1_ref[...],
                preferred_element_type=jnp.float32) + ab1_ref[...], 0.0)
    asc = jnp.dot(h1.astype(jnp.bfloat16), aw2_ref[...],
                  preferred_element_type=jnp.float32) + ab2_ref[...]
    asc_ref[...] = asc.astype(asc_ref.dtype)


# --------------------------------------------------------------------------- #
# Kernel 2: GRU recurrence (PyTorch semantics) + SED classifier epilogue
# --------------------------------------------------------------------------- #
def gru_sed_kernel(gx_ref, wh_ref, bhn_ref, wo_ref, bo_ref, o_ref, hbuf):
    """gx_ref : (T, B, 3*Hp)  x_t @ W_i* + b_i* (+ b_h{r,z}); gate g at lanes
                              [g*Hp, (g+1)*Hp) with Hp a multiple of 128.
    wh_ref : (Hp, 3*Hp)       fused recurrent weights [W_hr | W_hz | W_hn]
    bhn_ref: (1, Hp)          b_hn (stays inside r * (.) per PyTorch GRU)
    wo_ref : (Hp, Cs)         SED classifier weights / bias
    bo_ref : (1, Cs)
    o_ref  : (T, B, Cs)       sigmoid(SED logits)
    hbuf   : (T, B, Hp)       VMEM scratch holding every h_t for the epilogue
    """
    T, B, Hp = hbuf.shape
    wh = wh_ref[...]
    bhn = bhn_ref[...]

    def step(t, h):
        g = gx_ref[t]                                               # (B, 3Hp)
        hh = jnp.dot(h, wh, preferred_element_type=jnp.float32)     # (B, 3Hp)
        r = jax.nn.sigmoid(g[:, :Hp] + hh[:, :Hp])
        z = jax.nn.sigmoid(g[:, Hp:2 * Hp] + hh[:, Hp:2 * Hp])
        n = jnp.tanh(g[:, 2 * Hp:] + r * (hh[:, 2 * Hp:] + bhn))
        h_new = (1.0 - z) * n + z * h
        hbuf[t] = h_new                                             # off critical path
        return h_new

    lax.fori_loop(0, T, step, jnp.zeros((B, Hp), jnp.float32), unroll=True)

    # Classifier epilogue: one dense matmul + sigmoid + one lane-dense store.
    hs = hbuf[...].reshape(T * B, Hp)
    logits = jnp.dot(hs, wo_ref[...], preferred_element_type=jnp.float32) + bo_ref[...]
    o_ref[...] = jax.nn.sigmoid(logits).reshape(T, B, -1).astype(o_ref.dtype)


# --------------------------------------------------------------------------- #
# Wrapper-side weight preparation helpers
# --------------------------------------------------------------------------- #
def fold_bn(w, b, bn, eps=1e-5):
    """Fold eval-mode BatchNorm into conv weights/bias (over out-channels)."""
    gamma, beta, mean, var = bn
    s = gamma / jnp.sqrt(var + eps)
    return w * s, (b - mean) * s + beta


def _embed(small, shape, row0=0, col0=0):
    """Zero-pad a small 2D matrix into a larger (row, col) f32 matrix."""
    out = jnp.zeros(shape, jnp.float32)
    return out.at[row0:row0 + small.shape[0], col0:col0 + small.shape[1]].set(small)


def _pad_taps(w, in_pad, out_pad):
    """(9, cin, cout) tap-major conv weights -> zero-padded (9, in_pad, out_pad)."""
    out = jnp.zeros((w.shape[0], in_pad, out_pad), jnp.float32)
    return out.at[:, :w.shape[1], :w.shape[2]].set(w)


# --------------------------------------------------------------------------- #
# MSHE_A forward
# --------------------------------------------------------------------------- #
def mshe_a_forward(x_nchw, p):
    # NCHW -> NHWC (B, F, T, C); dropout is identity at inference.
    x = jnp.transpose(x_nchw, (0, 2, 3, 1)).astype(jnp.float32)
    B, F, T, Cin = x.shape

    Fe = p["enc_b"].shape[-1]
    Fs = p["sed_cb"].shape[-1]
    Fa = p["asc_cb"].shape[-1]
    H = p["gru_wh"].shape[0]
    Cs = p["sed_fw"].shape[-1]
    A1 = p["asc_w1"].shape[-1]
    Acls = p["asc_w2"].shape[-1]

    C = Fs + Fa
    Fe_p, C_p, H_p = _rup(Fe), _rup(C), _rup(H)
    Cs_p, A1_p, Acls_p = _rup(Cs), _rup(A1), _rup(Acls)

    # ---- fold BN, fuse SED|ASC branch, lane-pad everything (zero pads -> exact)
    we, be = fold_bn(p["enc_w"], p["enc_b"], p["enc_bn"])
    sw, sb = fold_bn(p["sed_cw"], p["sed_cb"], p["sed_bn"])
    aw, ab = fold_bn(p["asc_cw"], p["asc_cb"], p["asc_bn"])

    we_p = _pad_taps(we, Cin, Fe_p).astype(jnp.bfloat16)
    be_p = _embed(be, (1, Fe_p))
    wb_p = _pad_taps(jnp.concatenate([sw, aw], axis=-1), Fe_p, C_p).astype(jnp.bfloat16)
    bb_p = _embed(jnp.concatenate([sb, ab], axis=-1), (1, C_p))

    # GRU input projection: per-gate blocks at 128-lane boundaries, ASC rows zero;
    # b_h{r,z} folded in here, b_hn kept separate (PyTorch GRU semantics).
    wx, bx, bh = p["gru_wx"], p["gru_bx"], p["gru_bh"]
    wx_p = jnp.concatenate(
        [_embed(wx[:, g * H:(g + 1) * H], (C_p, H_p)) for g in range(3)],
        axis=1).astype(jnp.bfloat16)                                # (C_p, 3*H_p)
    bx_eff = jnp.concatenate(
        [_embed(bx[:, :H] + bh[:, :H], (1, H_p)),
         _embed(bx[:, H:2 * H] + bh[:, H:2 * H], (1, H_p)),
         _embed(bx[:, 2 * H:], (1, H_p))], axis=1)                  # (1, 3*H_p)

    aw1_p = _embed(p["asc_w1"], (C_p, A1_p), row0=Fs).astype(jnp.bfloat16)
    ab1_p = _embed(p["asc_b1"], (1, A1_p))
    aw2_p = _embed(p["asc_w2"], (A1_p, Acls_p)).astype(jnp.bfloat16)
    ab2_p = _embed(p["asc_b2"], (1, Acls_p))

    xp = jnp.pad(x, ((0, 0), (1, 1), (1, 1), (0, 0)))               # tiny raw input

    # ---- fused encoder + branch kernel (grid over batch, parallel) ----------
    gx, asc = pl.pallas_call(
        fused_encoder_branch_kernel,
        out_shape=(jax.ShapeDtypeStruct((T, B * 3 * H_p), jnp.float32),
                   jax.ShapeDtypeStruct((B, 1, Acls_p), jnp.float32)),
        grid=(B,),
        in_specs=[
            pl.BlockSpec((None, F + 2, T + 2, Cin), lambda b: (b, 0, 0, 0)),
            pl.BlockSpec((9, Cin, Fe_p), lambda b: (0, 0, 0)),
            pl.BlockSpec((1, Fe_p), lambda b: (0, 0)),
            pl.BlockSpec((9, Fe_p, C_p), lambda b: (0, 0, 0)),
            pl.BlockSpec((1, C_p), lambda b: (0, 0)),
            pl.BlockSpec((C_p, 3 * H_p), lambda b: (0, 0)),
            pl.BlockSpec((1, 3 * H_p), lambda b: (0, 0)),
            pl.BlockSpec((C_p, A1_p), lambda b: (0, 0)),
            pl.BlockSpec((1, A1_p), lambda b: (0, 0)),
            pl.BlockSpec((A1_p, Acls_p), lambda b: (0, 0)),
            pl.BlockSpec((1, Acls_p), lambda b: (0, 0)),
        ],
        out_specs=(pl.BlockSpec((T, 3 * H_p), lambda b: (0, b)),
                   pl.BlockSpec((None, 1, Acls_p), lambda b: (b, 0, 0))),
        scratch_shapes=[pltpu.VMEM((F + 2, T + 2, Fe_p), jnp.float32)],
        compiler_params=pltpu.CompilerParams(
            dimension_semantics=("parallel",),
            vmem_limit_bytes=32 * 1024 * 1024),
    )(xp, we_p, be_p, wb_p, bb_p, wx_p, bx_eff, aw1_p, ab1_p, aw2_p, ab2_p)

    asc_out = asc.reshape(B, Acls_p)[:, :Acls]

    # ---- GRU recurrence + SED classifier -------------------------------------
    wh = p["gru_wh"]
    wh_p = jnp.concatenate(
        [_embed(wh[:, g * H:(g + 1) * H], (H_p, H_p)) for g in range(3)], axis=1)
    bhn_p = _embed(bh[:, 2 * H:], (1, H_p))
    wo_p = _embed(p["sed_fw"], (H_p, Cs_p))
    bo_p = _embed(p["sed_fb"], (1, Cs_p))

    gx3 = gx.reshape(T, B, 3 * H_p)     # free metadata reshape (splits lane dim)

    vmem = pl.BlockSpec(memory_space=pltpu.MemorySpace.VMEM)
    sed_tbc = pl.pallas_call(
        gru_sed_kernel,
        out_shape=jax.ShapeDtypeStruct((T, B, Cs_p), jnp.float32),
        in_specs=[vmem] * 5,
        out_specs=vmem,
        scratch_shapes=[pltpu.VMEM((T, B, H_p), jnp.float32)],
    )(gx3, wh_p, bhn_p, wo_p, bo_p)

    sed_out = jnp.transpose(sed_tbc, (1, 0, 2))[:, :, :Cs]          # (B, T, Cs)
    return sed_out, asc_out


# --------------------------------------------------------------------------- #
# Parameter init (tap-major conv weights: tap = dh*3 + dw)
# --------------------------------------------------------------------------- #
def init_conv(key, cin, cout, scale=0.1):
    kw, kb = jax.random.split(key)
    w = scale * jax.random.normal(kw, (9, cin, cout), jnp.float32)
    b = scale * jax.random.normal(kb, (1, cout), jnp.float32)
    return w, b


def init_linear(key, fan_in, fan_out, scale=0.1):
    kw, kb = jax.random.split(key)
    w = scale * jax.random.normal(kw, (fan_in, fan_out), jnp.float32)
    b = scale * jax.random.normal(kb, (1, fan_out), jnp.float32)
    return w, b


def init_bn(key, c):
    k1, k2, k3 = jax.random.split(key, 3)
    gamma = 1.0 + 0.1 * jax.random.normal(k1, (c,), jnp.float32)
    beta = 0.1 * jax.random.normal(k2, (c,), jnp.float32)
    mean = 0.1 * jax.random.normal(k3, (c,), jnp.float32)
    var = jnp.ones((c,), jnp.float32)
    return gamma, beta, mean, var


def make_params(args, key):
    ks = jax.random.split(key, 12)
    p = {}
    # Encoder_Layers
    p["enc_w"], p["enc_b"] = init_conv(ks[0], args["channel"], args["encoder_filter"])
    p["enc_bn"] = init_bn(ks[1], args["encoder_filter"])
    # SED_CRNN
    p["sed_cw"], p["sed_cb"] = init_conv(ks[2], args["encoder_filter"], args["sed_filter"])
    p["sed_bn"] = init_bn(ks[3], args["sed_filter"])
    H = args["sed_rnn_dim"]
    p["gru_wx"], p["gru_bx"] = init_linear(ks[4], args["sed_filter"], 3 * H)
    p["gru_wh"], p["gru_bh"] = init_linear(ks[5], H, 3 * H)
    p["sed_fw"], p["sed_fb"] = init_linear(ks[6], H, args["sed_class"])
    # ASC_CNN
    p["asc_cw"], p["asc_cb"] = init_conv(ks[7], args["encoder_filter"], args["asc_filter"])
    p["asc_bn"] = init_bn(ks[8], args["asc_filter"])
    p["asc_w1"], p["asc_b1"] = init_linear(ks[9], args["asc_filter"], args["asc_fc"])
    p["asc_w2"], p["asc_b2"] = init_linear(ks[10], args["asc_fc"], args["asc_class"])
    return p


# --------------------------------------------------------------------------- #
if __name__ == "__main__":
    args = {
        "channel": 4,
        "encoder_filter": 8,
        "sed_filter": 16,
        "sed_rnn_dim": 16,
        "sed_class": 5,
        "asc_filter": 16,
        "asc_fc": 32,
        "asc_class": 3,
        "dropout": 0.2,  # identity at inference
    }

    key = jax.random.PRNGKey(0)
    k_x, k_p = jax.random.split(key)
    x = jax.random.normal(k_x, (2, args["channel"], 16, 16), jnp.float32)  # NCHW
    params = make_params(args, k_p)

    sed_out, asc_out = jax.jit(mshe_a_forward)(x, params)
    jax.block_until_ready((sed_out, asc_out))

    assert sed_out.shape == (2, 16, args["sed_class"])
    assert asc_out.shape == (2, args["asc_class"])
    print("KERNEL_OK")
</pallas_src>

<mosaic_0001>
module attributes {stable_mosaic.version = 11 : i64} {
  func.func @fused_encoder_branch_kernel(%arg0: i32, %arg1: memref<1x18x18x4xf32, #tpu.memory_space<vmem>>, %arg2: memref<9x4x128xbf16, #tpu.memory_space<vmem>>, %arg3: memref<1x128xf32, #tpu.memory_space<vmem>>, %arg4: memref<9x128x128xbf16, #tpu.memory_space<vmem>>, %arg5: memref<1x128xf32, #tpu.memory_space<vmem>>, %arg6: memref<128x384xbf16, #tpu.memory_space<vmem>>, %arg7: memref<1x384xf32, #tpu.memory_space<vmem>>, %arg8: memref<128x128xbf16, #tpu.memory_space<vmem>>, %arg9: memref<1x128xf32, #tpu.memory_space<vmem>>, %arg10: memref<128x128xbf16, #tpu.memory_space<vmem>>, %arg11: memref<1x128xf32, #tpu.memory_space<vmem>>, %arg12: memref<16x384xf32, #tpu.memory_space<vmem>>, %arg13: memref<1x1x128xf32, #tpu.memory_space<vmem>>, %arg14: memref<18x18x128xf32, #tpu.memory_space<vmem>>) attributes {dimension_semantics = [#tpu.dimension_semantics<parallel>], iteration_bounds = array<i64: 2>, scalar_prefetch = 0 : i64, scratch_operands = 1 : i64, tpu.core_type = #tpu.core_type<tc>, window_params = [{transform_indices = @transform_0, window_bounds = array<i64: 1, 18, 18, 4>}, {pipeline_mode = #tpu.pipeline_mode<synchronous>, transform_indices = @transform_1, window_bounds = array<i64: 9, 4, 128>}, {pipeline_mode = #tpu.pipeline_mode<synchronous>, transform_indices = @transform_2, window_bounds = array<i64: 1, 128>}, {pipeline_mode = #tpu.pipeline_mode<synchronous>, transform_indices = @transform_3, window_bounds = array<i64: 9, 128, 128>}, {pipeline_mode = #tpu.pipeline_mode<synchronous>, transform_indices = @transform_4, window_bounds = array<i64: 1, 128>}, {pipeline_mode = #tpu.pipeline_mode<synchronous>, transform_indices = @transform_5, window_bounds = array<i64: 128, 384>}, {pipeline_mode = #tpu.pipeline_mode<synchronous>, transform_indices = @transform_6, window_bounds = array<i64: 1, 384>}, {pipeline_mode = #tpu.pipeline_mode<synchronous>, transform_indices = @transform_7, window_bounds = array<i64: 128, 128>}, {pipeline_mode = #tpu.pipeline_mode<synchronous>, transform_indices = @transform_8, window_bounds = array<i64: 1, 128>}, {pipeline_mode = #tpu.pipeline_mode<synchronous>, transform_indices = @transform_9, window_bounds = array<i64: 128, 128>}, {pipeline_mode = #tpu.pipeline_mode<synchronous>, transform_indices = @transform_10, window_bounds = array<i64: 1, 128>}, {transform_indices = @transform_11, window_bounds = array<i64: 16, 384>}, {transform_indices = @transform_12, window_bounds = array<i64: 1, 1, 128>}]} {
    %c0 = arith.constant 0 : index
    %c0_0 = arith.constant 0 : index
    %c0_1 = arith.constant 0 : index
    %c0_2 = arith.constant 0 : index
    %0 = vector.load %arg1[%c0, %c0_0, %c0_1, %c0_2] : memref<1x18x18x4xf32, #tpu.memory_space<vmem>>, vector<1x18x18x4xf32>
    %1 = vector.shape_cast %0 : vector<1x18x18x4xf32> to vector<18x18x4xf32>
    %2 = arith.truncf %1 : vector<18x18x4xf32> to vector<18x18x4xbf16>
    %c0_3 = arith.constant 0 : index
    %c0_4 = arith.constant 0 : index
    %c0_5 = arith.constant 0 : index
    %3 = vector.load %arg2[%c0_3, %c0_4, %c0_5] : memref<9x4x128xbf16, #tpu.memory_space<vmem>>, vector<9x4x128xbf16>
    %cst = arith.constant 0.000000e+00 : f32
    %4 = vector.broadcast %cst : f32 to vector<256x128xf32>
    %5 = vector.extract_strided_slice %2 {offsets = [0, 0, 0], sizes = [16, 16, 4], strides = [1, 1, 1]} : vector<18x18x4xbf16> to vector<16x16x4xbf16>
    %6 = vector.shape_cast %5 : vector<16x16x4xbf16> to vector<256x4xbf16>
    %7 = vector.extract_strided_slice %3 {offsets = [0, 0, 0], sizes = [1, 4, 128], strides = [1, 1, 1]} : vector<9x4x128xbf16> to vector<1x4x128xbf16>
    %8 = vector.shape_cast %7 : vector<1x4x128xbf16> to vector<4x128xbf16>
    %cst_6 = arith.constant dense<0.000000e+00> : vector<256x128xf32>
    %9 = tpu.matmul %6, %8, %cst_6 {dimension_numbers = #tpu.dot_dimension_numbers<[1], [0], [0], [1], [0, 0, 1, 1], [], []>} : vector<256x4xbf16>, vector<4x128xbf16>, vector<256x128xf32> -> vector<256x128xf32>
    %10 = arith.addf %4, %9 : vector<256x128xf32>
    %11 = vector.extract_strided_slice %2 {offsets = [0, 1, 0], sizes = [16, 16, 4], strides = [1, 1, 1]} : vector<18x18x4xbf16> to vector<16x16x4xbf16>
    %12 = vector.shape_cast %11 : vector<16x16x4xbf16> to vector<256x4xbf16>
    %13 = vector.extract_strided_slice %3 {offsets = [1, 0, 0], sizes = [1, 4, 128], strides = [1, 1, 1]} : vector<9x4x128xbf16> to vector<1x4x128xbf16>
    %14 = vector.shape_cast %13 : vector<1x4x128xbf16> to vector<4x128xbf16>
    %cst_7 = arith.constant dense<0.000000e+00> : vector<256x128xf32>
    %15 = tpu.matmul %12, %14, %cst_7 {dimension_numbers = #tpu.dot_dimension_numbers<[1], [0], [0], [1], [0, 0, 1, 1], [], []>} : vector<256x4xbf16>, vector<4x128xbf16>, vector<256x128xf32> -> vector<256x128xf32>
    %16 = arith.addf %10, %15 : vector<256x128xf32>
    %17 = vector.extract_strided_slice %2 {offsets = [0, 2, 0], sizes = [16, 16, 4], strides = [1, 1, 1]} : vector<18x18x4xbf16> to vector<16x16x4xbf16>
    %18 = vector.shape_cast %17 : vector<16x16x4xbf16> to vector<256x4xbf16>
    %19 = vector.extract_strided_slice %3 {offsets = [2, 0, 0], sizes = [1, 4, 128], strides = [1, 1, 1]} : vector<9x4x128xbf16> to vector<1x4x128xbf16>
    %20 = vector.shape_cast %19 : vector<1x4x128xbf16> to vector<4x128xbf16>
    %cst_8 = arith.constant dense<0.000000e+00> : vector<256x128xf32>
    %21 = tpu.matmul %18, %20, %cst_8 {dimension_numbers = #tpu.dot_dimension_numbers<[1], [0], [0], [1], [0, 0, 1, 1], [], []>} : vector<256x4xbf16>, vector<4x128xbf16>, vector<256x128xf32> -> vector<256x128xf32>
    %22 = arith.addf %16, %21 : vector<256x128xf32>
    %23 = vector.extract_strided_slice %2 {offsets = [1, 0, 0], sizes = [16, 16, 4], strides = [1, 1, 1]} : vector<18x18x4xbf16> to vector<16x16x4xbf16>
    %24 = vector.shape_cast %23 : vector<16x16x4xbf16> to vector<256x4xbf16>
    %25 = vector.extract_strided_slice %3 {offsets = [3, 0, 0], sizes = [1, 4, 128], strides = [1, 1, 1]} : vector<9x4x128xbf16> to vector<1x4x128xbf16>
    %26 = vector.shape_cast %25 : vector<1x4x128xbf16> to vector<4x128xbf16>
    %cst_9 = arith.constant dense<0.000000e+00> : vector<256x128xf32>
    %27 = tpu.matmul %24, %26, %cst_9 {dimension_numbers = #tpu.dot_dimension_numbers<[1], [0], [0], [1], [0, 0, 1, 1], [], []>} : vector<256x4xbf16>, vector<4x128xbf16>, vector<256x128xf32> -> vector<256x128xf32>
    %28 = arith.addf %22, %27 : vector<256x128xf32>
    %29 = vector.extract_strided_slice %2 {offsets = [1, 1, 0], sizes = [16, 16, 4], strides = [1, 1, 1]} : vector<18x18x4xbf16> to vector<16x16x4xbf16>
    %30 = vector.shape_cast %29 : vector<16x16x4xbf16> to vector<256x4xbf16>
    %31 = vector.extract_strided_slice %3 {offsets = [4, 0, 0], sizes = [1, 4, 128], strides = [1, 1, 1]} : vector<9x4x128xbf16> to vector<1x4x128xbf16>
    %32 = vector.shape_cast %31 : vector<1x4x128xbf16> to vector<4x128xbf16>
    %cst_10 = arith.constant dense<0.000000e+00> : vector<256x128xf32>
    %33 = tpu.matmul %30, %32, %cst_10 {dimension_numbers = #tpu.dot_dimension_numbers<[1], [0], [0], [1], [0, 0, 1, 1], [], []>} : vector<256x4xbf16>, vector<4x128xbf16>, vector<256x128xf32> -> vector<256x128xf32>
    %34 = arith.addf %28, %33 : vector<256x128xf32>
    %35 = vector.extract_strided_slice %2 {offsets = [1, 2, 0], sizes = [16, 16, 4], strides = [1, 1, 1]} : vector<18x18x4xbf16> to vector<16x16x4xbf16>
    %36 = vector.shape_cast %35 : vector<16x16x4xbf16> to vector<256x4xbf16>
    %37 = vector.extract_strided_slice %3 {offsets = [5, 0, 0], sizes = [1, 4, 128], strides = [1, 1, 1]} : vector<9x4x128xbf16> to vector<1x4x128xbf16>
    %38 = vector.shape_cast %37 : vector<1x4x128xbf16> to vector<4x128xbf16>
    %cst_11 = arith.constant dense<0.000000e+00> : vector<256x128xf32>
    %39 = tpu.matmul %36, %38, %cst_11 {dimension_numbers = #tpu.dot_dimension_numbers<[1], [0], [0], [1], [0, 0, 1, 1], [], []>} : vector<256x4xbf16>, vector<4x128xbf16>, vector<256x128xf32> -> vector<256x128xf32>
    %40 = arith.addf %34, %39 : vector<256x128xf32>
    %41 = vector.extract_strided_slice %2 {offsets = [2, 0, 0], sizes = [16, 16, 4], strides = [1, 1, 1]} : vector<18x18x4xbf16> to vector<16x16x4xbf16>
    %42 = vector.shape_cast %41 : vector<16x16x4xbf16> to vector<256x4xbf16>
    %43 = vector.extract_strided_slice %3 {offsets = [6, 0, 0], sizes = [1, 4, 128], strides = [1, 1, 1]} : vector<9x4x128xbf16> to vector<1x4x128xbf16>
    %44 = vector.shape_cast %43 : vector<1x4x128xbf16> to vector<4x128xbf16>
    %cst_12 = arith.constant dense<0.000000e+00> : vector<256x128xf32>
    %45 = tpu.matmul %42, %44, %cst_12 {dimension_numbers = #tpu.dot_dimension_numbers<[1], [0], [0], [1], [0, 0, 1, 1], [], []>} : vector<256x4xbf16>, vector<4x128xbf16>, vector<256x128xf32> -> vector<256x128xf32>
    %46 = arith.addf %40, %45 : vector<256x128xf32>
    %47 = vector.extract_strided_slice %2 {offsets = [2, 1, 0], sizes = [16, 16, 4], strides = [1, 1, 1]} : vector<18x18x4xbf16> to vector<16x16x4xbf16>
    %48 = vector.shape_cast %47 : vector<16x16x4xbf16> to vector<256x4xbf16>
    %49 = vector.extract_strided_slice %3 {offsets = [7, 0, 0], sizes = [1, 4, 128], strides = [1, 1, 1]} : vector<9x4x128xbf16> to vector<1x4x128xbf16>
    %50 = vector.shape_cast %49 : vector<1x4x128xbf16> to vector<4x128xbf16>
    %cst_13 = arith.constant dense<0.000000e+00> : vector<256x128xf32>
    %51 = tpu.matmul %48, %50, %cst_13 {dimension_numbers = #tpu.dot_dimension_numbers<[1], [0], [0], [1], [0, 0, 1, 1], [], []>} : vector<256x4xbf16>, vector<4x128xbf16>, vector<256x128xf32> -> vector<256x128xf32>
    %52 = arith.addf %46, %51 : vector<256x128xf32>
    %53 = vector.extract_strided_slice %2 {offsets = [2, 2, 0], sizes = [16, 16, 4], strides = [1, 1, 1]} : vector<18x18x4xbf16> to vector<16x16x4xbf16>
    %54 = vector.shape_cast %53 : vector<16x16x4xbf16> to vector<256x4xbf16>
    %55 = vector.extract_strided_slice %3 {offsets = [8, 0, 0], sizes = [1, 4, 128], strides = [1, 1, 1]} : vector<9x4x128xbf16> to vector<1x4x128xbf16>
    %56 = vector.shape_cast %55 : vector<1x4x128xbf16> to vector<4x128xbf16>
    %cst_14 = arith.constant dense<0.000000e+00> : vector<256x128xf32>
    %57 = tpu.matmul %54, %56, %cst_14 {dimension_numbers = #tpu.dot_dimension_numbers<[1], [0], [0], [1], [0, 0, 1, 1], [], []>} : vector<256x4xbf16>, vector<4x128xbf16>, vector<256x128xf32> -> vector<256x128xf32>
    %58 = arith.addf %52, %57 : vector<256x128xf32>
    %c0_15 = arith.constant 0 : index
    %c0_16 = arith.constant 0 : index
    %59 = vector.load %arg3[%c0_15, %c0_16] : memref<1x128xf32, #tpu.memory_space<vmem>>, vector<1x128xf32>
    %60 = vector.broadcast %59 : vector<1x128xf32> to vector<256x128xf32>
    %61 = arith.addf %58, %60 : vector<256x128xf32>
    %cst_17 = arith.constant 0.000000e+00 : f32
    %62 = vector.broadcast %cst_17 : f32 to vector<256x128xf32>
    %63 = arith.maximumf %61, %62 : vector<256x128xf32>
    %cst_18 = arith.constant 0.000000e+00 : f32
    %64 = vector.broadcast %cst_18 : f32 to vector<18x18x128xf32>
    %c0_19 = arith.constant 0 : index
    %c0_20 = arith.constant 0 : index
    %c0_21 = arith.constant 0 : index
    %65 = vector.load %arg14[%c0_19, %c0_20, %c0_21] : memref<18x18x128xf32, #tpu.memory_space<vmem>>, vector<18x18x128xf32>
    tpu.vector_store %arg14[%c0_19, %c0_20, %c0_21], %64 {strides = array<i32>} : memref<18x18x128xf32, #tpu.memory_space<vmem>>, vector<18x18x128xf32>,
    %66 = vector.shape_cast %63 : vector<256x128xf32> to vector<16x16x128xf32>
    %c1 = arith.constant 1 : index
    %c1_22 = arith.constant 1 : index
    %c0_23 = arith.constant 0 : index
    %67 = vector.load %arg14[%c1, %c1_22, %c0_23] : memref<18x18x128xf32, #tpu.memory_space<vmem>>, vector<16x16x128xf32>
    tpu.vector_store %arg14[%c1, %c1_22, %c0_23], %66 {strides = array<i32>} : memref<18x18x128xf32, #tpu.memory_space<vmem>>, vector<16x16x128xf32>,
    %c0_24 = arith.constant 0 : index
    %c0_25 = arith.constant 0 : index
    %c0_26 = arith.constant 0 : index
    %68 = vector.load %arg14[%c0_24, %c0_25, %c0_26] : memref<18x18x128xf32, #tpu.memory_space<vmem>>, vector<18x18x128xf32>
    %69 = arith.truncf %68 : vector<18x18x128xf32> to vector<18x18x128xbf16>
    %c0_27 = arith.constant 0 : index
    %c0_28 = arith.constant 0 : index
    %c0_29 = arith.constant 0 : index
    %70 = vector.load %arg4[%c0_27, %c0_28, %c0_29] : memref<9x128x128xbf16, #tpu.memory_space<vmem>>, vector<9x128x128xbf16>
    %cst_30 = arith.constant 0.000000e+00 : f32
    %71 = vector.broadcast %cst_30 : f32 to vector<256x128xf32>
    %72 = vector.extract_strided_slice %69 {offsets = [0, 0, 0], sizes = [16, 16, 128], strides = [1, 1, 1]} : vector<18x18x128xbf16> to vector<16x16x128xbf16>
    %73 = vector.shape_cast %72 : vector<16x16x128xbf16> to vector<256x128xbf16>
    %74 = vector.extract_strided_slice %70 {offsets = [0, 0, 0], sizes = [1, 128, 128], strides = [1, 1, 1]} : vector<9x128x128xbf16> to vector<1x128x128xbf16>
    %75 = vector.shape_cast %74 : vector<1x128x128xbf16> to vector<128x128xbf16>
    %cst_31 = arith.constant dense<0.000000e+00> : vector<256x128xf32>
    %76 = tpu.matmul %73, %75, %cst_31 {dimension_numbers = #tpu.dot_dimension_numbers<[1], [0], [0], [1], [0, 0, 1, 1], [], []>} : vector<256x128xbf16>, vector<128x128xbf16>, vector<256x128xf32> -> vector<256x128xf32>
    %77 = arith.addf %71, %76 : vector<256x128xf32>
    %78 = vector.extract_strided_slice %69 {offsets = [0, 1, 0], sizes = [16, 16, 128], strides = [1, 1, 1]} : vector<18x18x128xbf16> to vector<16x16x128xbf16>
    %79 = vector.shape_cast %78 : vector<16x16x128xbf16> to vector<256x128xbf16>
    %80 = vector.extract_strided_slice %70 {offsets = [1, 0, 0], sizes = [1, 128, 128], strides = [1, 1, 1]} : vector<9x128x128xbf16> to vector<1x128x128xbf16>
    %81 = vector.shape_cast %80 : vector<1x128x128xbf16> to vector<128x128xbf16>
    %cst_32 = arith.constant dense<0.000000e+00> : vector<256x128xf32>
    %82 = tpu.matmul %79, %81, %cst_32 {dimension_numbers = #tpu.dot_dimension_numbers<[1], [0], [0], [1], [0, 0, 1, 1], [], []>} : vector<256x128xbf16>, vector<128x128xbf16>, vector<256x128xf32> -> vector<256x128xf32>
    %83 = arith.addf %77, %82 : vector<256x128xf32>
    %84 = vector.extract_strided_slice %69 {offsets = [0, 2, 0], sizes = [16, 16, 128], strides = [1, 1, 1]} : vector<18x18x128xbf16> to vector<16x16x128xbf16>
    %85 = vector.shape_cast %84 : vector<16x16x128xbf16> to vector<256x128xbf16>
    %86 = vector.extract_strided_slice %70 {offsets = [2, 0, 0], sizes = [1, 128, 128], strides = [1, 1, 1]} : vector<9x128x128xbf16> to vector<1x128x128xbf16>
    %87 = vector.shape_cast %86 : vector<1x128x128xbf16> to vector<128x128xbf16>
    %cst_33 = arith.constant dense<0.000000e+00> : vector<256x128xf32>
    %88 = tpu.matmul %85, %87, %cst_33 {dimension_numbers = #tpu.dot_dimension_numbers<[1], [0], [0], [1], [0, 0, 1, 1], [], []>} : vector<256x128xbf16>, vector<128x128xbf16>, vector<256x128xf32> -> vector<256x128xf32>
    %89 = arith.addf %83, %88 : vector<256x128xf32>
    %90 = vector.extract_strided_slice %69 {offsets = [1, 0, 0], sizes = [16, 16, 128], strides = [1, 1, 1]} : vector<18x18x128xbf16> to vector<16x16x128xbf16>
    %91 = vector.shape_cast %90 : vector<16x16x128xbf16> to vector<256x128xbf16>
    %92 = vector.extract_strided_slice %70 {offsets = [3, 0, 0], sizes = [1, 128, 128], strides = [1, 1, 1]} : vector<9x128x128xbf16> to vector<1x128x128xbf16>
    %93 = vector.shape_cast %92 : vector<1x128x128xbf16> to vector<128x128xbf16>
    %cst_34 = arith.constant dense<0.000000e+00> : vector<256x128xf32>
    %94 = tpu.matmul %91, %93, %cst_34 {dimension_numbers = #tpu.dot_dimension_numbers<[1], [0], [0], [1], [0, 0, 1, 1], [], []>} : vector<256x128xbf16>, vector<128x128xbf16>, vector<256x128xf32> -> vector<256x128xf32>
    %95 = arith.addf %89, %94 : vector<256x128xf32>
    %96 = vector.extract_strided_slice %69 {offsets = [1, 1, 0], sizes = [16, 16, 128], strides = [1, 1, 1]} : vector<18x18x128xbf16> to vector<16x16x128xbf16>
    %97 = vector.shape_cast %96 : vector<16x16x128xbf16> to vector<256x128xbf16>
    %98 = vector.extract_strided_slice %70 {offsets = [4, 0, 0], sizes = [1, 128, 128], strides = [1, 1, 1]} : vector<9x128x128xbf16> to vector<1x128x128xbf16>
    %99 = vector.shape_cast %98 : vector<1x128x128xbf16> to vector<128x128xbf16>
    %cst_35 = arith.constant dense<0.000000e+00> : vector<256x128xf32>
    %100 = tpu.matmul %97, %99, %cst_35 {dimension_numbers = #tpu.dot_dimension_numbers<[1], [0], [0], [1], [0, 0, 1, 1], [], []>} : vector<256x128xbf16>, vector<128x128xbf16>, vector<256x128xf32> -> vector<256x128xf32>
    %101 = arith.addf %95, %100 : vector<256x128xf32>
    %102 = vector.extract_strided_slice %69 {offsets = [1, 2, 0], sizes = [16, 16, 128], strides = [1, 1, 1]} : vector<18x18x128xbf16> to vector<16x16x128xbf16>
    %103 = vector.shape_cast %102 : vector<16x16x128xbf16> to vector<256x128xbf16>
    %104 = vector.extract_strided_slice %70 {offsets = [5, 0, 0], sizes = [1, 128, 128], strides = [1, 1, 1]} : vector<9x128x128xbf16> to vector<1x128x128xbf16>
    %105 = vector.shape_cast %104 : vector<1x128x128xbf16> to vector<128x128xbf16>
    %cst_36 = arith.constant dense<0.000000e+00> : vector<256x128xf32>
    %106 = tpu.matmul %103, %105, %cst_36 {dimension_numbers = #tpu.dot_dimension_numbers<[1], [0], [0], [1], [0, 0, 1, 1], [], []>} : vector<256x128xbf16>, vector<128x128xbf16>, vector<256x128xf32> -> vector<256x128xf32>
    %107 = arith.addf %101, %106 : vector<256x128xf32>
    %108 = vector.extract_strided_slice %69 {offsets = [2, 0, 0], sizes = [16, 16, 128], strides = [1, 1, 1]} : vector<18x18x128xbf16> to vector<16x16x128xbf16>
    %109 = vector.shape_cast %108 : vector<16x16x128xbf16> to vector<256x128xbf16>
    %110 = vector.extract_strided_slice %70 {offsets = [6, 0, 0], sizes = [1, 128, 128], strides = [1, 1, 1]} : vector<9x128x128xbf16> to vector<1x128x128xbf16>
    %111 = vector.shape_cast %110 : vector<1x128x128xbf16> to vector<128x128xbf16>
    %cst_37 = arith.constant dense<0.000000e+00> : vector<256x128xf32>
    %112 = tpu.matmul %109, %111, %cst_37 {dimension_numbers = #tpu.dot_dimension_numbers<[1], [0], [0], [1], [0, 0, 1, 1], [], []>} : vector<256x128xbf16>, vector<128x128xbf16>, vector<256x128xf32> -> vector<256x128xf32>
    %113 = arith.addf %107, %112 : vector<256x128xf32>
    %114 = vector.extract_strided_slice %69 {offsets = [2, 1, 0], sizes = [16, 16, 128], strides = [1, 1, 1]} : vector<18x18x128xbf16> to vector<16x16x128xbf16>
    %115 = vector.shape_cast %114 : vector<16x16x128xbf16> to vector<256x128xbf16>
    %116 = vector.extract_strided_slice %70 {offsets = [7, 0, 0], sizes = [1, 128, 128], strides = [1, 1, 1]} : vector<9x128x128xbf16> to vector<1x128x128xbf16>
    %117 = vector.shape_cast %116 : vector<1x128x128xbf16> to vector<128x128xbf16>
    %cst_38 = arith.constant dense<0.000000e+00> : vector<256x128xf32>
    %118 = tpu.matmul %115, %117, %cst_38 {dimension_numbers = #tpu.dot_dimension_numbers<[1], [0], [0], [1], [0, 0, 1, 1], [], []>} : vector<256x128xbf16>, vector<128x128xbf16>, vector<256x128xf32> -> vector<256x128xf32>
    %119 = arith.addf %113, %118 : vector<256x128xf32>
    %120 = vector.extract_strided_slice %69 {offsets = [2, 2, 0], sizes = [16, 16, 128], strides = [1, 1, 1]} : vector<18x18x128xbf16> to vector<16x16x128xbf16>
    %121 = vector.shape_cast %120 : vector<16x16x128xbf16> to vector<256x128xbf16>
    %122 = vector.extract_strided_slice %70 {offsets = [8, 0, 0], sizes = [1, 128, 128], strides = [1, 1, 1]} : vector<9x128x128xbf16> to vector<1x128x128xbf16>
    %123 = vector.shape_cast %122 : vector<1x128x128xbf16> to vector<128x128xbf16>
    %cst_39 = arith.constant dense<0.000000e+00> : vector<256x128xf32>
    %124 = tpu.matmul %121, %123, %cst_39 {dimension_numbers = #tpu.dot_dimension_numbers<[1], [0], [0], [1], [0, 0, 1, 1], [], []>} : vector<256x128xbf16>, vector<128x128xbf16>, vector<256x128xf32> -> vector<256x128xf32>
    %125 = arith.addf %119, %124 : vector<256x128xf32>
    %c0_40 = arith.constant 0 : index
    %c0_41 = arith.constant 0 : index
    %126 = vector.load %arg5[%c0_40, %c0_41] : memref<1x128xf32, #tpu.memory_space<vmem>>, vector<1x128xf32>
    %127 = vector.broadcast %126 : vector<1x128xf32> to vector<256x128xf32>
    %128 = arith.addf %125, %127 : vector<256x128xf32>
    %cst_42 = arith.constant 0.000000e+00 : f32
    %129 = vector.broadcast %cst_42 : f32 to vector<256x128xf32>
    %130 = arith.maximumf %128, %129 : vector<256x128xf32>
    %131 = vector.shape_cast %130 : vector<256x128xf32> to vector<16x16x128xf32>
    %cst_43 = arith.constant dense<0xFF800000> : vector<16x128xf32>
    %132 = vector.multi_reduction <maximumf>, %131, %cst_43 [0] : vector<16x16x128xf32> to vector<16x128xf32>
    %133 = vector.shape_cast %131 : vector<16x16x128xf32> to vector<256x128xf32>
    %cst_44 = arith.constant dense<0.000000e+00> : vector<128xf32>
    %134 = vector.multi_reduction <add>, %133, %cst_44 [0] : vector<256x128xf32> to vector<128xf32>
    %135 = vector.shape_cast %134 : vector<128xf32> to vector<1x128xf32>
    %cst_45 = arith.constant 2.560000e+02 : f32
    %136 = vector.broadcast %cst_45 : f32 to vector<1x128xf32>
    %137 = arith.divf %135, %136 : vector<1x128xf32>
    %138 = arith.truncf %132 : vector<16x128xf32> to vector<16x128xbf16>
    %c0_46 = arith.constant 0 : index
    %c0_47 = arith.constant 0 : index
    %139 = vector.load %arg6[%c0_46, %c0_47] : memref<128x384xbf16, #tpu.memory_space<vmem>>, vector<128x384xbf16>
    %cst_48 = arith.constant dense<0.000000e+00> : vector<16x384xf32>
    %140 = tpu.matmul %138, %139, %cst_48 {dimension_numbers = #tpu.dot_dimension_numbers<[1], [0], [0], [1], [0, 0, 1, 1], [], []>} : vector<16x128xbf16>, vector<128x384xbf16>, vector<16x384xf32> -> vector<16x384xf32>
    %c0_49 = arith.constant 0 : index
    %c0_50 = arith.constant 0 : index
    %141 = vector.load %arg7[%c0_49, %c0_50] : memref<1x384xf32, #tpu.memory_space<vmem>>, vector<1x384xf32>
    %142 = vector.broadcast %141 : vector<1x384xf32> to vector<16x384xf32>
    %143 = arith.addf %140, %142 : vector<16x384xf32>
    %c0_51 = arith.constant 0 : index
    %c0_52 = arith.constant 0 : index
    %144 = vector.load %arg12[%c0_51, %c0_52] : memref<16x384xf32, #tpu.memory_space<vmem>>, vector<16x384xf32>
    tpu.vector_store %arg12[%c0_51, %c0_52], %143 {strides = array<i32>} : memref<16x384xf32, #tpu.memory_space<vmem>>, vector<16x384xf32>,
    %145 = arith.truncf %137 : vector<1x128xf32> to vector<1x128xbf16>
    %c0_53 = arith.constant 0 : index
    %c0_54 = arith.constant 0 : index
    %146 = vector.load %arg8[%c0_53, %c0_54] : memref<128x128xbf16, #tpu.memory_space<vmem>>, vector<128x128xbf16>
    %cst_55 = arith.constant dense<0.000000e+00> : vector<1x128xf32>
    %147 = tpu.matmul %145, %146, %cst_55 {dimension_numbers = #tpu.dot_dimension_numbers<[1], [0], [0], [1], [0, 0, 1, 1], [], []>} : vector<1x128xbf16>, vector<128x128xbf16>, vector<1x128xf32> -> vector<1x128xf32>
    %c0_56 = arith.constant 0 : index
    %c0_57 = arith.constant 0 : index
    %148 = vector.load %arg9[%c0_56, %c0_57] : memref<1x128xf32, #tpu.memory_space<vmem>>, vector<1x128xf32>
    %149 = arith.addf %147, %148 : vector<1x128xf32>
    %cst_58 = arith.constant 0.000000e+00 : f32
    %150 = vector.broadcast %cst_58 : f32 to vector<1x128xf32>
    %151 = arith.maximumf %149, %150 : vector<1x128xf32>
    %152 = arith.truncf %151 : vector<1x128xf32> to vector<1x128xbf16>
    %c0_59 = arith.constant 0 : index
    %c0_60 = arith.constant 0 : index
    %153 = vector.load %arg10[%c0_59, %c0_60] : memref<128x128xbf16, #tpu.memory_space<vmem>>, vector<128x128xbf16>
    %cst_61 = arith.constant dense<0.000000e+00> : vector<1x128xf32>
    %154 = tpu.matmul %152, %153, %cst_61 {dimension_numbers = #tpu.dot_dimension_numbers<[1], [0], [0], [1], [0, 0, 1, 1], [], []>} : vector<1x128xbf16>, vector<128x128xbf16>, vector<1x128xf32> -> vector<1x128xf32>
    %c0_62 = arith.constant 0 : index
    %c0_63 = arith.constant 0 : index
    %155 = vector.load %arg11[%c0_62, %c0_63] : memref<1x128xf32, #tpu.memory_space<vmem>>, vector<1x128xf32>
    %156 = arith.addf %154, %155 : vector<1x128xf32>
    %c0_64 = arith.constant 0 : index
    %c0_65 = arith.constant 0 : index
    %c0_66 = arith.constant 0 : index
    %157 = vector.load %arg13[%c0_64, %c0_65, %c0_66] : memref<1x1x128xf32, #tpu.memory_space<vmem>>, vector<1x1x128xf32>
    %158 = vector.shape_cast %157 : vector<1x1x128xf32> to vector<1x128xf32>
    %159 = vector.shape_cast %156 : vector<1x128xf32> to vector<1x1x128xf32>
    tpu.vector_store %arg13[%c0_64, %c0_65, %c0_66], %159 {strides = array<i32>} : memref<1x1x128xf32, #tpu.memory_space<vmem>>, vector<1x1x128xf32>,
    return
  }
  func.func @transform_0(%arg0: i32) -> (i32, i32, i32, i32) {
    %c0_i32 = arith.constant 0 : i32
    %c0_i32_0 = arith.constant 0 : i32
    %c0_i32_1 = arith.constant 0 : i32
    %c0_i32_2 = arith.constant 0 : i32
    return %arg0, %c0_i32, %c0_i32_0, %c0_i32_1 : i32, i32, i32, i32
  }
  func.func @transform_1(%arg0: i32) -> (i32, i32, i32) {
    %c0_i32 = arith.constant 0 : i32
    %c0_i32_0 = arith.constant 0 : i32
    %c0_i32_1 = arith.constant 0 : i32
    %c0_i32_2 = arith.constant 0 : i32
    return %c0_i32, %c0_i32_0, %c0_i32_1 : i32, i32, i32
  }
  func.func @transform_2(%arg0: i32) -> (i32, i32) {
    %c0_i32 = arith.constant 0 : i32
    %c0_i32_0 = arith.constant 0 : i32
    %c0_i32_1 = arith.constant 0 : i32
    return %c0_i32, %c0_i32_0 : i32, i32
  }
  func.func @transform_3(%arg0: i32) -> (i32, i32, i32) {
    %c0_i32 = arith.constant 0 : i32
    %c0_i32_0 = arith.constant 0 : i32
    %c0_i32_1 = arith.constant 0 : i32
    %c0_i32_2 = arith.constant 0 : i32
    return %c0_i32, %c0_i32_0, %c0_i32_1 : i32, i32, i32
  }
  func.func @transform_4(%arg0: i32) -> (i32, i32) {
    %c0_i32 = arith.constant 0 : i32
    %c0_i32_0 = arith.constant 0 : i32
    %c0_i32_1 = arith.constant 0 : i32
    return %c0_i32, %c0_i32_0 : i32, i32
  }
  func.func @transform_5(%arg0: i32) -> (i32, i32) {
    %c0_i32 = arith.constant 0 : i32
    %c0_i32_0 = arith.constant 0 : i32
    %c0_i32_1 = arith.constant 0 : i32
    return %c0_i32, %c0_i32_0 : i32, i32
  }
  func.func @transform_6(%arg0: i32) -> (i32, i32) {
    %c0_i32 = arith.constant 0 : i32
    %c0_i32_0 = arith.constant 0 : i32
    %c0_i32_1 = arith.constant 0 : i32
    return %c0_i32, %c0_i32_0 : i32, i32
  }
  func.func @transform_7(%arg0: i32) -> (i32, i32) {
    %c0_i32 = arith.constant 0 : i32
    %c0_i32_0 = arith.constant 0 : i32
    %c0_i32_1 = arith.constant 0 : i32
    return %c0_i32, %c0_i32_0 : i32, i32
  }
  func.func @transform_8(%arg0: i32) -> (i32, i32) {
    %c0_i32 = arith.constant 0 : i32
    %c0_i32_0 = arith.constant 0 : i32
    %c0_i32_1 = arith.constant 0 : i32
    return %c0_i32, %c0_i32_0 : i32, i32
  }
  func.func @transform_9(%arg0: i32) -> (i32, i32) {
    %c0_i32 = arith.constant 0 : i32
    %c0_i32_0 = arith.constant 0 : i32
    %c0_i32_1 = arith.constant 0 : i32
    return %c0_i32, %c0_i32_0 : i32, i32
  }
  func.func @transform_10(%arg0: i32) -> (i32, i32) {
    %c0_i32 = arith.constant 0 : i32
    %c0_i32_0 = arith.constant 0 : i32
    %c0_i32_1 = arith.constant 0 : i32
    return %c0_i32, %c0_i32_0 : i32, i32
  }
  func.func @transform_11(%arg0: i32) -> (i32, i32) {
    %c0_i32 = arith.constant 0 : i32
    %c0_i32_0 = arith.constant 0 : i32
    return %c0_i32, %arg0 : i32, i32
  }
  func.func @transform_12(%arg0: i32) -> (i32, i32, i32) {
    %c0_i32 = arith.constant 0 : i32
    %c0_i32_0 = arith.constant 0 : i32
    %c0_i32_1 = arith.constant 0 : i32
    return %arg0, %c0_i32, %c0_i32_0 : i32, i32, i32
  }
}

module attributes {stable_mosaic.version = 11 : i64} {
  func.func @gru_sed_kernel(%arg0: memref<16x2x384xf32, #tpu.memory_space<vmem>>, %arg1: memref<128x384xf32, #tpu.memory_space<vmem>>, %arg2: memref<1x128xf32, #tpu.memory_space<vmem>>, %arg3: memref<128x128xf32, #tpu.memory_space<vmem>>, %arg4: memref<1x128xf32, #tpu.memory_space<vmem>>, %arg5: memref<16x2x128xf32, #tpu.memory_space<vmem>>, %arg6: memref<16x2x128xf32, #tpu.memory_space<vmem>>) attributes {dimension_semantics = [], scalar_prefetch = 0 : i64, scratch_operands = 1 : i64, tpu.core_type = #tpu.core_type<tc>} {
    %c0 = arith.constant 0 : index
    %c0_0 = arith.constant 0 : index
    %0 = vector.load %arg1[%c0, %c0_0] : memref<128x384xf32, #tpu.memory_space<vmem>>, vector<128x384xf32>
    %c0_1 = arith.constant 0 : index
    %c0_2 = arith.constant 0 : index
    %1 = vector.load %arg2[%c0_1, %c0_2] : memref<1x128xf32, #tpu.memory_space<vmem>>, vector<1x128xf32>
    %cst = arith.constant 0.000000e+00 : f32
    %2 = vector.broadcast %cst : f32 to vector<2x128xf32>
    %c0_i32 = arith.constant 0 : i32
    %3 = arith.index_cast %c0_i32 : i32 to index
    %c0_3 = arith.constant 0 : index
    %c0_4 = arith.constant 0 : index
    %4 = vector.load %arg0[%3, %c0_3, %c0_4] : memref<16x2x384xf32, #tpu.memory_space<vmem>>, vector<1x2x384xf32>
    %5 = vector.shape_cast %4 : vector<1x2x384xf32> to vector<2x384xf32>
    %cst_5 = arith.constant dense<0.000000e+00> : vector<2x384xf32>
    %6 = tpu.matmul %2, %0, %cst_5 {dimension_numbers = #tpu.dot_dimension_numbers<[1], [0], [0], [1], [0, 0, 1, 1], [], []>} : vector<2x128xf32>, vector<128x384xf32>, vector<2x384xf32> -> vector<2x384xf32>
    %7 = vector.extract_strided_slice %5 {offsets = [0, 0], sizes = [2, 128], strides = [1, 1]} : vector<2x384xf32> to vector<2x128xf32>
    %8 = vector.extract_strided_slice %6 {offsets = [0, 0], sizes = [2, 128], strides = [1, 1]} : vector<2x384xf32> to vector<2x128xf32>
    %9 = arith.addf %7, %8 : vector<2x128xf32>
    %10 = arith.negf %9 : vector<2x128xf32>
    %11 = math.exp %10 : vector<2x128xf32>
    %cst_6 = arith.constant 1.000000e+00 : f32
    %12 = vector.broadcast %cst_6 : f32 to vector<2x128xf32>
    %13 = arith.addf %12, %11 : vector<2x128xf32>
    %14 = arith.divf %12, %13 : vector<2x128xf32>
    %15 = vector.extract_strided_slice %5 {offsets = [0, 128], sizes = [2, 128], strides = [1, 1]} : vector<2x384xf32> to vector<2x128xf32>
    %16 = vector.extract_strided_slice %6 {offsets = [0, 128], sizes = [2, 128], strides = [1, 1]} : vector<2x384xf32> to vector<2x128xf32>
    %17 = arith.addf %15, %16 : vector<2x128xf32>
    %18 = arith.negf %17 : vector<2x128xf32>
    %19 = math.exp %18 : vector<2x128xf32>
    %cst_7 = arith.constant 1.000000e+00 : f32
    %20 = vector.broadcast %cst_7 : f32 to vector<2x128xf32>
    %21 = arith.addf %20, %19 : vector<2x128xf32>
    %22 = arith.divf %20, %21 : vector<2x128xf32>
    %23 = vector.extract_strided_slice %5 {offsets = [0, 256], sizes = [2, 128], strides = [1, 1]} : vector<2x384xf32> to vector<2x128xf32>
    %24 = vector.extract_strided_slice %6 {offsets = [0, 256], sizes = [2, 128], strides = [1, 1]} : vector<2x384xf32> to vector<2x128xf32>
    %25 = vector.broadcast %1 : vector<1x128xf32> to vector<2x128xf32>
    %26 = arith.addf %24, %25 : vector<2x128xf32>
    %27 = arith.mulf %14, %26 : vector<2x128xf32>
    %28 = arith.addf %23, %27 : vector<2x128xf32>
    %29 = math.tanh %28 : vector<2x128xf32>
    %cst_8 = arith.constant 1.000000e+00 : f32
    %30 = vector.broadcast %cst_8 : f32 to vector<2x128xf32>
    %31 = arith.subf %30, %22 : vector<2x128xf32>
    %32 = arith.mulf %31, %29 : vector<2x128xf32>
    %33 = arith.mulf %22, %2 : vector<2x128xf32>
    %34 = arith.addf %32, %33 : vector<2x128xf32>
    %35 = arith.index_cast %c0_i32 : i32 to index
    %c0_9 = arith.constant 0 : index
    %c0_10 = arith.constant 0 : index
    %36 = vector.load %arg6[%35, %c0_9, %c0_10] : memref<16x2x128xf32, #tpu.memory_space<vmem>>, vector<1x2x128xf32>
    %37 = vector.shape_cast %36 : vector<1x2x128xf32> to vector<2x128xf32>
    %38 = vector.shape_cast %34 : vector<2x128xf32> to vector<1x2x128xf32>
    tpu.vector_store %arg6[%35, %c0_9, %c0_10], %38 {strides = array<i32>} : memref<16x2x128xf32, #tpu.memory_space<vmem>>, vector<1x2x128xf32>,
    %c1_i32 = arith.constant 1 : i32
    %39 = arith.index_cast %c1_i32 : i32 to index
    %c0_11 = arith.constant 0 : index
    %c0_12 = arith.constant 0 : index
    %40 = vector.load %arg0[%39, %c0_11, %c0_12] : memref<16x2x384xf32, #tpu.memory_space<vmem>>, vector<1x2x384xf32>
    %41 = vector.shape_cast %40 : vector<1x2x384xf32> to vector<2x384xf32>
    %cst_13 = arith.constant dense<0.000000e+00> : vector<2x384xf32>
    %42 = tpu.matmul %34, %0, %cst_13 {dimension_numbers = #tpu.dot_dimension_numbers<[1], [0], [0], [1], [0, 0, 1, 1], [], []>} : vector<2x128xf32>, vector<128x384xf32>, vector<2x384xf32> -> vector<2x384xf32>
    %43 = vector.extract_strided_slice %41 {offsets = [0, 0], sizes = [2, 128], strides = [1, 1]} : vector<2x384xf32> to vector<2x128xf32>
    %44 = vector.extract_strided_slice %42 {offsets = [0, 0], sizes = [2, 128], strides = [1, 1]} : vector<2x384xf32> to vector<2x128xf32>
    %45 = arith.addf %43, %44 : vector<2x128xf32>
    %46 = arith.negf %45 : vector<2x128xf32>
    %47 = math.exp %46 : vector<2x128xf32>
    %cst_14 = arith.constant 1.000000e+00 : f32
    %48 = vector.broadcast %cst_14 : f32 to vector<2x128xf32>
    %49 = arith.addf %48, %47 : vector<2x128xf32>
    %50 = arith.divf %48, %49 : vector<2x128xf32>
    %51 = vector.extract_strided_slice %41 {offsets = [0, 128], sizes = [2, 128], strides = [1, 1]} : vector<2x384xf32> to vector<2x128xf32>
    %52 = vector.extract_strided_slice %42 {offsets = [0, 128], sizes = [2, 128], strides = [1, 1]} : vector<2x384xf32> to vector<2x128xf32>
    %53 = arith.addf %51, %52 : vector<2x128xf32>
    %54 = arith.negf %53 : vector<2x128xf32>
    %55 = math.exp %54 : vector<2x128xf32>
    %cst_15 = arith.constant 1.000000e+00 : f32
    %56 = vector.broadcast %cst_15 : f32 to vector<2x128xf32>
    %57 = arith.addf %56, %55 : vector<2x128xf32>
    %58 = arith.divf %56, %57 : vector<2x128xf32>
    %59 = vector.extract_strided_slice %41 {offsets = [0, 256], sizes = [2, 128], strides = [1, 1]} : vector<2x384xf32> to vector<2x128xf32>
    %60 = vector.extract_strided_slice %42 {offsets = [0, 256], sizes = [2, 128], strides = [1, 1]} : vector<2x384xf32> to vector<2x128xf32>
    %61 = vector.broadcast %1 : vector<1x128xf32> to vector<2x128xf32>
    %62 = arith.addf %60, %61 : vector<2x128xf32>
    %63 = arith.mulf %50, %62 : vector<2x128xf32>
    %64 = arith.addf %59, %63 : vector<2x128xf32>
    %65 = math.tanh %64 : vector<2x128xf32>
    %cst_16 = arith.constant 1.000000e+00 : f32
    %66 = vector.broadcast %cst_16 : f32 to vector<2x128xf32>
    %67 = arith.subf %66, %58 : vector<2x128xf32>
    %68 = arith.mulf %67, %65 : vector<2x128xf32>
    %69 = arith.mulf %58, %34 : vector<2x128xf32>
    %70 = arith.addf %68, %69 : vector<2x128xf32>
    %71 = arith.index_cast %c1_i32 : i32 to index
    %c0_17 = arith.constant 0 : index
    %c0_18 = arith.constant 0 : index
    %72 = vector.load %arg6[%71, %c0_17, %c0_18] : memref<16x2x128xf32, #tpu.memory_space<vmem>>, vector<1x2x128xf32>
    %73 = vector.shape_cast %72 : vector<1x2x128xf32> to vector<2x128xf32>
    %74 = vector.shape_cast %70 : vector<2x128xf32> to vector<1x2x128xf32>
    tpu.vector_store %arg6[%71, %c0_17, %c0_18], %74 {strides = array<i32>} : memref<16x2x128xf32, #tpu.memory_space<vmem>>, vector<1x2x128xf32>,
    %c2_i32 = arith.constant 2 : i32
    %75 = arith.index_cast %c2_i32 : i32 to index
    %c0_19 = arith.constant 0 : index
    %c0_20 = arith.constant 0 : index
    %76 = vector.load %arg0[%75, %c0_19, %c0_20] : memref<16x2x384xf32, #tpu.memory_space<vmem>>, vector<1x2x384xf32>
    %77 = vector.shape_cast %76 : vector<1x2x384xf32> to vector<2x384xf32>
    %cst_21 = arith.constant dense<0.000000e+00> : vector<2x384xf32>
    %78 = tpu.matmul %70, %0, %cst_21 {dimension_numbers = #tpu.dot_dimension_numbers<[1], [0], [0], [1], [0, 0, 1, 1], [], []>} : vector<2x128xf32>, vector<128x384xf32>, vector<2x384xf32> -> vector<2x384xf32>
    %79 = vector.extract_strided_slice %77 {offsets = [0, 0], sizes = [2, 128], strides = [1, 1]} : vector<2x384xf32> to vector<2x128xf32>
    %80 = vector.extract_strided_slice %78 {offsets = [0, 0], sizes = [2, 128], strides = [1, 1]} : vector<2x384xf32> to vector<2x128xf32>
    %81 = arith.addf %79, %80 : vector<2x128xf32>
    %82 = arith.negf %81 : vector<2x128xf32>
    %83 = math.exp %82 : vector<2x128xf32>
    %cst_22 = arith.constant 1.000000e+00 : f32
    %84 = vector.broadcast %cst_22 : f32 to vector<2x128xf32>
    %85 = arith.addf %84, %83 : vector<2x128xf32>
    %86 = arith.divf %84, %85 : vector<2x128xf32>
    %87 = vector.extract_strided_slice %77 {offsets = [0, 128], sizes = [2, 128], strides = [1, 1]} : vector<2x384xf32> to vector<2x128xf32>
    %88 = vector.extract_strided_slice %78 {offsets = [0, 128], sizes = [2, 128], strides = [1, 1]} : vector<2x384xf32> to vector<2x128xf32>
    %89 = arith.addf %87, %88 : vector<2x128xf32>
    %90 = arith.negf %89 : vector<2x128xf32>
    %91 = math.exp %90 : vector<2x128xf32>
    %cst_23 = arith.constant 1.000000e+00 : f32
    %92 = vector.broadcast %cst_23 : f32 to vector<2x128xf32>
    %93 = arith.addf %92, %91 : vector<2x128xf32>
    %94 = arith.divf %92, %93 : vector<2x128xf32>
    %95 = vector.extract_strided_slice %77 {offsets = [0, 256], sizes = [2, 128], strides = [1, 1]} : vector<2x384xf32> to vector<2x128xf32>
    %96 = vector.extract_strided_slice %78 {offsets = [0, 256], sizes = [2, 128], strides = [1, 1]} : vector<2x384xf32> to vector<2x128xf32>
    %97 = vector.broadcast %1 : vector<1x128xf32> to vector<2x128xf32>
    %98 = arith.addf %96, %97 : vector<2x128xf32>
    %99 = arith.mulf %86, %98 : vector<2x128xf32>
    %100 = arith.addf %95, %99 : vector<2x128xf32>
    %101 = math.tanh %100 : vector<2x128xf32>
    %cst_24 = arith.constant 1.000000e+00 : f32
    %102 = vector.broadcast %cst_24 : f32 to vector<2x128xf32>
    %103 = arith.subf %102, %94 : vector<2x128xf32>
    %104 = arith.mulf %103, %101 : vector<2x128xf32>
    %105 = arith.mulf %94, %70 : vector<2x128xf32>
    %106 = arith.addf %104, %105 : vector<2x128xf32>
    %107 = arith.index_cast %c2_i32 : i32 to index
    %c0_25 = arith.constant 0 : index
    %c0_26 = arith.constant 0 : index
    %108 = vector.load %arg6[%107, %c0_25, %c0_26] : memref<16x2x128xf32, #tpu.memory_space<vmem>>, vector<1x2x128xf32>
    %109 = vector.shape_cast %108 : vector<1x2x128xf32> to vector<2x128xf32>
    %110 = vector.shape_cast %106 : vector<2x128xf32> to vector<1x2x128xf32>
    tpu.vector_store %arg6[%107, %c0_25, %c0_26], %110 {strides = array<i32>} : memref<16x2x128xf32, #tpu.memory_space<vmem>>, vector<1x2x128xf32>,
    %c3_i32 = arith.constant 3 : i32
    %111 = arith.index_cast %c3_i32 : i32 to index
    %c0_27 = arith.constant 0 : index
    %c0_28 = arith.constant 0 : index
    %112 = vector.load %arg0[%111, %c0_27, %c0_28] : memref<16x2x384xf32, #tpu.memory_space<vmem>>, vector<1x2x384xf32>
    %113 = vector.shape_cast %112 : vector<1x2x384xf32> to vector<2x384xf32>
    %cst_29 = arith.constant dense<0.000000e+00> : vector<2x384xf32>
    %114 = tpu.matmul %106, %0, %cst_29 {dimension_numbers = #tpu.dot_dimension_numbers<[1], [0], [0], [1], [0, 0, 1, 1], [], []>} : vector<2x128xf32>, vector<128x384xf32>, vector<2x384xf32> -> vector<2x384xf32>
    %115 = vector.extract_strided_slice %113 {offsets = [0, 0], sizes = [2, 128], strides = [1, 1]} : vector<2x384xf32> to vector<2x128xf32>
    %116 = vector.extract_strided_slice %114 {offsets = [0, 0], sizes = [2, 128], strides = [1, 1]} : vector<2x384xf32> to vector<2x128xf32>
    %117 = arith.addf %115, %116 : vector<2x128xf32>
    %118 = arith.negf %117 : vector<2x128xf32>
    %119 = math.exp %118 : vector<2x128xf32>
    %cst_30 = arith.constant 1.000000e+00 : f32
    %120 = vector.broadcast %cst_30 : f32 to vector<2x128xf32>
    %121 = arith.addf %120, %119 : vector<2x128xf32>
    %122 = arith.divf %120, %121 : vector<2x128xf32>
    %123 = vector.extract_strided_slice %113 {offsets = [0, 128], sizes = [2, 128], strides = [1, 1]} : vector<2x384xf32> to vector<2x128xf32>
    %124 = vector.extract_strided_slice %114 {offsets = [0, 128], sizes = [2, 128], strides = [1, 1]} : vector<2x384xf32> to vector<2x128xf32>
    %125 = arith.addf %123, %124 : vector<2x128xf32>
    %126 = arith.negf %125 : vector<2x128xf32>
    %127 = math.exp %126 : vector<2x128xf32>
    %cst_31 = arith.constant 1.000000e+00 : f32
    %128 = vector.broadcast %cst_31 : f32 to vector<2x128xf32>
    %129 = arith.addf %128, %127 : vector<2x128xf32>
    %130 = arith.divf %128, %129 : vector<2x128xf32>
    %131 = vector.extract_strided_slice %113 {offsets = [0, 256], sizes = [2, 128], strides = [1, 1]} : vector<2x384xf32> to vector<2x128xf32>
    %132 = vector.extract_strided_slice %114 {offsets = [0, 256], sizes = [2, 128], strides = [1, 1]} : vector<2x384xf32> to vector<2x128xf32>
    %133 = vector.broadcast %1 : vector<1x128xf32> to vector<2x128xf32>
    %134 = arith.addf %132, %133 : vector<2x128xf32>
    %135 = arith.mulf %122, %134 : vector<2x128xf32>
    %136 = arith.addf %131, %135 : vector<2x128xf32>
    %137 = math.tanh %136 : vector<2x128xf32>
    %cst_32 = arith.constant 1.000000e+00 : f32
    %138 = vector.broadcast %cst_32 : f32 to vector<2x128xf32>
    %139 = arith.subf %138, %130 : vector<2x128xf32>
    %140 = arith.mulf %139, %137 : vector<2x128xf32>
    %141 = arith.mulf %130, %106 : vector<2x128xf32>
    %142 = arith.addf %140, %141 : vector<2x128xf32>
    %143 = arith.index_cast %c3_i32 : i32 to index
    %c0_33 = arith.constant 0 : index
    %c0_34 = arith.constant 0 : index
    %144 = vector.load %arg6[%143, %c0_33, %c0_34] : memref<16x2x128xf32, #tpu.memory_space<vmem>>, vector<1x2x128xf32>
    %145 = vector.shape_cast %144 : vector<1x2x128xf32> to vector<2x128xf32>
    %146 = vector.shape_cast %142 : vector<2x128xf32> to vector<1x2x128xf32>
    tpu.vector_store %arg6[%143, %c0_33, %c0_34], %146 {strides = array<i32>} : memref<16x2x128xf32, #tpu.memory_space<vmem>>, vector<1x2x128xf32>,
    %c4_i32 = arith.constant 4 : i32
    %147 = arith.index_cast %c4_i32 : i32 to index
    %c0_35 = arith.constant 0 : index
    %c0_36 = arith.constant 0 : index
    %148 = vector.load %arg0[%147, %c0_35, %c0_36] : memref<16x2x384xf32, #tpu.memory_space<vmem>>, vector<1x2x384xf32>
    %149 = vector.shape_cast %148 : vector<1x2x384xf32> to vector<2x384xf32>
    %cst_37 = arith.constant dense<0.000000e+00> : vector<2x384xf32>
    %150 = tpu.matmul %142, %0, %cst_37 {dimension_numbers = #tpu.dot_dimension_numbers<[1], [0], [0], [1], [0, 0, 1, 1], [], []>} : vector<2x128xf32>, vector<128x384xf32>, vector<2x384xf32> -> vector<2x384xf32>
    %151 = vector.extract_strided_slice %149 {offsets = [0, 0], sizes = [2, 128], strides = [1, 1]} : vector<2x384xf32> to vector<2x128xf32>
    %152 = vector.extract_strided_slice %150 {offsets = [0, 0], sizes = [2, 128], strides = [1, 1]} : vector<2x384xf32> to vector<2x128xf32>
    %153 = arith.addf %151, %152 : vector<2x128xf32>
    %154 = arith.negf %153 : vector<2x128xf32>
    %155 = math.exp %154 : vector<2x128xf32>
    %cst_38 = arith.constant 1.000000e+00 : f32
    %156 = vector.broadcast %cst_38 : f32 to vector<2x128xf32>
    %157 = arith.addf %156, %155 : vector<2x128xf32>
    %158 = arith.divf %156, %157 : vector<2x128xf32>
    %159 = vector.extract_strided_slice %149 {offsets = [0, 128], sizes = [2, 128], strides = [1, 1]} : vector<2x384xf32> to vector<2x128xf32>
    %160 = vector.extract_strided_slice %150 {offsets = [0, 128], sizes = [2, 128], strides = [1, 1]} : vector<2x384xf32> to vector<2x128xf32>
    %161 = arith.addf %159, %160 : vector<2x128xf32>
    %162 = arith.negf %161 : vector<2x128xf32>
    %163 = math.exp %162 : vector<2x128xf32>
    %cst_39 = arith.constant 1.000000e+00 : f32
    %164 = vector.broadcast %cst_39 : f32 to vector<2x128xf32>
    %165 = arith.addf %164, %163 : vector<2x128xf32>
    %166 = arith.divf %164, %165 : vector<2x128xf32>
    %167 = vector.extract_strided_slice %149 {offsets = [0, 256], sizes = [2, 128], strides = [1, 1]} : vector<2x384xf32> to vector<2x128xf32>
    %168 = vector.extract_strided_slice %150 {offsets = [0, 256], sizes = [2, 128], strides = [1, 1]} : vector<2x384xf32> to vector<2x128xf32>
    %169 = vector.broadcast %1 : vector<1x128xf32> to vector<2x128xf32>
    %170 = arith.addf %168, %169 : vector<2x128xf32>
    %171 = arith.mulf %158, %170 : vector<2x128xf32>
    %172 = arith.addf %167, %171 : vector<2x128xf32>
    %173 = math.tanh %172 : vector<2x128xf32>
    %cst_40 = arith.constant 1.000000e+00 : f32
    %174 = vector.broadcast %cst_40 : f32 to vector<2x128xf32>
    %175 = arith.subf %174, %166 : vector<2x128xf32>
    %176 = arith.mulf %175, %173 : vector<2x128xf32>
    %177 = arith.mulf %166, %142 : vector<2x128xf32>
    %178 = arith.addf %176, %177 : vector<2x128xf32>
    %179 = arith.index_cast %c4_i32 : i32 to index
    %c0_41 = arith.constant 0 : index
    %c0_42 = arith.constant 0 : index
    %180 = vector.load %arg6[%179, %c0_41, %c0_42] : memref<16x2x128xf32, #tpu.memory_space<vmem>>, vector<1x2x128xf32>
    %181 = vector.shape_cast %180 : vector<1x2x128xf32> to vector<2x128xf32>
    %182 = vector.shape_cast %178 : vector<2x128xf32> to vector<1x2x128xf32>
    tpu.vector_store %arg6[%179, %c0_41, %c0_42], %182 {strides = array<i32>} : memref<16x2x128xf32, #tpu.memory_space<vmem>>, vector<1x2x128xf32>,
    %c5_i32 = arith.constant 5 : i32
    %183 = arith.index_cast %c5_i32 : i32 to index
    %c0_43 = arith.constant 0 : index
    %c0_44 = arith.constant 0 : index
    %184 = vector.load %arg0[%183, %c0_43, %c0_44] : memref<16x2x384xf32, #tpu.memory_space<vmem>>, vector<1x2x384xf32>
    %185 = vector.shape_cast %184 : vector<1x2x384xf32> to vector<2x384xf32>
    %cst_45 = arith.constant dense<0.000000e+00> : vector<2x384xf32>
    %186 = tpu.matmul %178, %0, %cst_45 {dimension_numbers = #tpu.dot_dimension_numbers<[1], [0], [0], [1], [0, 0, 1, 1], [], []>} : vector<2x128xf32>, vector<128x384xf32>, vector<2x384xf32> -> vector<2x384xf32>
    %187 = vector.extract_strided_slice %185 {offsets = [0, 0], sizes = [2, 128], strides = [1, 1]} : vector<2x384xf32> to vector<2x128xf32>
    %188 = vector.extract_strided_slice %186 {offsets = [0, 0], sizes = [2, 128], strides = [1, 1]} : vector<2x384xf32> to vector<2x128xf32>
    %189 = arith.addf %187, %188 : vector<2x128xf32>
    %190 = arith.negf %189 : vector<2x128xf32>
    %191 = math.exp %190 : vector<2x128xf32>
    %cst_46 = arith.constant 1.000000e+00 : f32
    %192 = vector.broadcast %cst_46 : f32 to vector<2x128xf32>
    %193 = arith.addf %192, %191 : vector<2x128xf32>
    %194 = arith.divf %192, %193 : vector<2x128xf32>
    %195 = vector.extract_strided_slice %185 {offsets = [0, 128], sizes = [2, 128], strides = [1, 1]} : vector<2x384xf32> to vector<2x128xf32>
    %196 = vector.extract_strided_slice %186 {offsets = [0, 128], sizes = [2, 128], strides = [1, 1]} : vector<2x384xf32> to vector<2x128xf32>
    %197 = arith.addf %195, %196 : vector<2x128xf32>
    %198 = arith.negf %197 : vector<2x128xf32>
    %199 = math.exp %198 : vector<2x128xf32>
    %cst_47 = arith.constant 1.000000e+00 : f32
    %200 = vector.broadcast %cst_47 : f32 to vector<2x128xf32>
    %201 = arith.addf %200, %199 : vector<2x128xf32>
    %202 = arith.divf %200, %201 : vector<2x128xf32>
    %203 = vector.extract_strided_slice %185 {offsets = [0, 256], sizes = [2, 128], strides = [1, 1]} : vector<2x384xf32> to vector<2x128xf32>
    %204 = vector.extract_strided_slice %186 {offsets = [0, 256], sizes = [2, 128], strides = [1, 1]} : vector<2x384xf32> to vector<2x128xf32>
    %205 = vector.broadcast %1 : vector<1x128xf32> to vector<2x128xf32>
    %206 = arith.addf %204, %205 : vector<2x128xf32>
    %207 = arith.mulf %194, %206 : vector<2x128xf32>
    %208 = arith.addf %203, %207 : vector<2x128xf32>
    %209 = math.tanh %208 : vector<2x128xf32>
    %cst_48 = arith.constant 1.000000e+00 : f32
    %210 = vector.broadcast %cst_48 : f32 to vector<2x128xf32>
    %211 = arith.subf %210, %202 : vector<2x128xf32>
    %212 = arith.mulf %211, %209 : vector<2x128xf32>
    %213 = arith.mulf %202, %178 : vector<2x128xf32>
    %214 = arith.addf %212, %213 : vector<2x128xf32>
    %215 = arith.index_cast %c5_i32 : i32 to index
    %c0_49 = arith.constant 0 : index
    %c0_50 = arith.constant 0 : index
    %216 = vector.load %arg6[%215, %c0_49, %c0_50] : memref<16x2x128xf32, #tpu.memory_space<vmem>>, vector<1x2x128xf32>
    %217 = vector.shape_cast %216 : vector<1x2x128xf32> to vector<2x128xf32>
    %218 = vector.shape_cast %214 : vector<2x128xf32> to vector<1x2x128xf32>
    tpu.vector_store %arg6[%215, %c0_49, %c0_50], %218 {strides = array<i32>} : memref<16x2x128xf32, #tpu.memory_space<vmem>>, vector<1x2x128xf32>,
    %c6_i32 = arith.constant 6 : i32
    %219 = arith.index_cast %c6_i32 : i32 to index
    %c0_51 = arith.constant 0 : index
    %c0_52 = arith.constant 0 : index
    %220 = vector.load %arg0[%219, %c0_51, %c0_52] : memref<16x2x384xf32, #tpu.memory_space<vmem>>, vector<1x2x384xf32>
    %221 = vector.shape_cast %220 : vector<1x2x384xf32> to vector<2x384xf32>
    %cst_53 = arith.constant dense<0.000000e+00> : vector<2x384xf32>
    %222 = tpu.matmul %214, %0, %cst_53 {dimension_numbers = #tpu.dot_dimension_numbers<[1], [0], [0], [1], [0, 0, 1, 1], [], []>} : vector<2x128xf32>, vector<128x384xf32>, vector<2x384xf32> -> vector<2x384xf32>
    %223 = vector.extract_strided_slice %221 {offsets = [0, 0], sizes = [2, 128], strides = [1, 1]} : vector<2x384xf32> to vector<2x128xf32>
    %224 = vector.extract_strided_slice %222 {offsets = [0, 0], sizes = [2, 128], strides = [1, 1]} : vector<2x384xf32> to vector<2x128xf32>
    %225 = arith.addf %223, %224 : vector<2x128xf32>
    %226 = arith.negf %225 : vector<2x128xf32>
    %227 = math.exp %226 : vector<2x128xf32>
    %cst_54 = arith.constant 1.000000e+00 : f32
    %228 = vector.broadcast %cst_54 : f32 to vector<2x128xf32>
    %229 = arith.addf %228, %227 : vector<2x128xf32>
    %230 = arith.divf %228, %229 : vector<2x128xf32>
    %231 = vector.extract_strided_slice %221 {offsets = [0, 128], sizes = [2, 128], strides = [1, 1]} : vector<2x384xf32> to vector<2x128xf32>
    %232 = vector.extract_strided_slice %222 {offsets = [0, 128], sizes = [2, 128], strides = [1, 1]} : vector<2x384xf32> to vector<2x128xf32>
    %233 = arith.addf %231, %232 : vector<2x128xf32>
    %234 = arith.negf %233 : vector<2x128xf32>
    %235 = math.exp %234 : vector<2x128xf32>
    %cst_55 = arith.constant 1.000000e+00 : f32
    %236 = vector.broadcast %cst_55 : f32 to vector<2x128xf32>
    %237 = arith.addf %236, %235 : vector<2x128xf32>
    %238 = arith.divf %236, %237 : vector<2x128xf32>
    %239 = vector.extract_strided_slice %221 {offsets = [0, 256], sizes = [2, 128], strides = [1, 1]} : vector<2x384xf32> to vector<2x128xf32>
    %240 = vector.extract_strided_slice %222 {offsets = [0, 256], sizes = [2, 128], strides = [1, 1]} : vector<2x384xf32> to vector<2x128xf32>
    %241 = vector.broadcast %1 : vector<1x128xf32> to vector<2x128xf32>
    %242 = arith.addf %240, %241 : vector<2x128xf32>
    %243 = arith.mulf %230, %242 : vector<2x128xf32>
    %244 = arith.addf %239, %243 : vector<2x128xf32>
    %245 = math.tanh %244 : vector<2x128xf32>
    %cst_56 = arith.constant 1.000000e+00 : f32
    %246 = vector.broadcast %cst_56 : f32 to vector<2x128xf32>
    %247 = arith.subf %246, %238 : vector<2x128xf32>
    %248 = arith.mulf %247, %245 : vector<2x128xf32>
    %249 = arith.mulf %238, %214 : vector<2x128xf32>
    %250 = arith.addf %248, %249 : vector<2x128xf32>
    %251 = arith.index_cast %c6_i32 : i32 to index
    %c0_57 = arith.constant 0 : index
    %c0_58 = arith.constant 0 : index
    %252 = vector.load %arg6[%251, %c0_57, %c0_58] : memref<16x2x128xf32, #tpu.memory_space<vmem>>, vector<1x2x128xf32>
    %253 = vector.shape_cast %252 : vector<1x2x128xf32> to vector<2x128xf32>
    %254 = vector.shape_cast %250 : vector<2x128xf32> to vector<1x2x128xf32>
    tpu.vector_store %arg6[%251, %c0_57, %c0_58], %254 {strides = array<i32>} : memref<16x2x128xf32, #tpu.memory_space<vmem>>, vector<1x2x128xf32>,
    %c7_i32 = arith.constant 7 : i32
    %255 = arith.index_cast %c7_i32 : i32 to index
    %c0_59 = arith.constant 0 : index
    %c0_60 = arith.constant 0 : index
    %256 = vector.load %arg0[%255, %c0_59, %c0_60] : memref<16x2x384xf32, #tpu.memory_space<vmem>>, vector<1x2x384xf32>
    %257 = vector.shape_cast %256 : vector<1x2x384xf32> to vector<2x384xf32>
    %cst_61 = arith.constant dense<0.000000e+00> : vector<2x384xf32>
    %258 = tpu.matmul %250, %0, %cst_61 {dimension_numbers = #tpu.dot_dimension_numbers<[1], [0], [0], [1], [0, 0, 1, 1], [], []>} : vector<2x128xf32>, vector<128x384xf32>, vector<2x384xf32> -> vector<2x384xf32>
    %259 = vector.extract_strided_slice %257 {offsets = [0, 0], sizes = [2, 128], strides = [1, 1]} : vector<2x384xf32> to vector<2x128xf32>
    %260 = vector.extract_strided_slice %258 {offsets = [0, 0], sizes = [2, 128], strides = [1, 1]} : vector<2x384xf32> to vector<2x128xf32>
    %261 = arith.addf %259, %260 : vector<2x128xf32>
    %262 = arith.negf %261 : vector<2x128xf32>
    %263 = math.exp %262 : vector<2x128xf32>
    %cst_62 = arith.constant 1.000000e+00 : f32
    %264 = vector.broadcast %cst_62 : f32 to vector<2x128xf32>
    %265 = arith.addf %264, %263 : vector<2x128xf32>
    %266 = arith.divf %264, %265 : vector<2x128xf32>
    %267 = vector.extract_strided_slice %257 {offsets = [0, 128], sizes = [2, 128], strides = [1, 1]} : vector<2x384xf32> to vector<2x128xf32>
    %268 = vector.extract_strided_slice %258 {offsets = [0, 128], sizes = [2, 128], strides = [1, 1]} : vector<2x384xf32> to vector<2x128xf32>
    %269 = arith.addf %267, %268 : vector<2x128xf32>
    %270 = arith.negf %269 : vector<2x128xf32>
    %271 = math.exp %270 : vector<2x128xf32>
    %cst_63 = arith.constant 1.000000e+00 : f32
    %272 = vector.broadcast %cst_63 : f32 to vector<2x128xf32>
    %273 = arith.addf %272, %271 : vector<2x128xf32>
    %274 = arith.divf %272, %273 : vector<2x128xf32>
    %275 = vector.extract_strided_slice %257 {offsets = [0, 256], sizes = [2, 128], strides = [1, 1]} : vector<2x384xf32> to vector<2x128xf32>
    %276 = vector.extract_strided_slice %258 {offsets = [0, 256], sizes = [2, 128], strides = [1, 1]} : vector<2x384xf32> to vector<2x128xf32>
    %277 = vector.broadcast %1 : vector<1x128xf32> to vector<2x128xf32>
    %278 = arith.addf %276, %277 : vector<2x128xf32>
    %279 = arith.mulf %266, %278 : vector<2x128xf32>
    %280 = arith.addf %275, %279 : vector<2x128xf32>
    %281 = math.tanh %280 : vector<2x128xf32>
    %cst_64 = arith.constant 1.000000e+00 : f32
    %282 = vector.broadcast %cst_64 : f32 to vector<2x128xf32>
    %283 = arith.subf %282, %274 : vector<2x128xf32>
    %284 = arith.mulf %283, %281 : vector<2x128xf32>
    %285 = arith.mulf %274, %250 : vector<2x128xf32>
    %286 = arith.addf %284, %285 : vector<2x128xf32>
    %287 = arith.index_cast %c7_i32 : i32 to index
    %c0_65 = arith.constant 0 : index
    %c0_66 = arith.constant 0 : index
    %288 = vector.load %arg6[%287, %c0_65, %c0_66] : memref<16x2x128xf32, #tpu.memory_space<vmem>>, vector<1x2x128xf32>
    %289 = vector.shape_cast %288 : vector<1x2x128xf32> to vector<2x128xf32>
    %290 = vector.shape_cast %286 : vector<2x128xf32> to vector<1x2x128xf32>
    tpu.vector_store %arg6[%287, %c0_65, %c0_66], %290 {strides = array<i32>} : memref<16x2x128xf32, #tpu.memory_space<vmem>>, vector<1x2x128xf32>,
    %c8_i32 = arith.constant 8 : i32
    %291 = arith.index_cast %c8_i32 : i32 to index
    %c0_67 = arith.constant 0 : index
    %c0_68 = arith.constant 0 : index
    %292 = vector.load %arg0[%291, %c0_67, %c0_68] : memref<16x2x384xf32, #tpu.memory_space<vmem>>, vector<1x2x384xf32>
    %293 = vector.shape_cast %292 : vector<1x2x384xf32> to vector<2x384xf32>
    %cst_69 = arith.constant dense<0.000000e+00> : vector<2x384xf32>
    %294 = tpu.matmul %286, %0, %cst_69 {dimension_numbers = #tpu.dot_dimension_numbers<[1], [0], [0], [1], [0, 0, 1, 1], [], []>} : vector<2x128xf32>, vector<128x384xf32>, vector<2x384xf32> -> vector<2x384xf32>
    %295 = vector.extract_strided_slice %293 {offsets = [0, 0], sizes = [2, 128], strides = [1, 1]} : vector<2x384xf32> to vector<2x128xf32>
    %296 = vector.extract_strided_slice %294 {offsets = [0, 0], sizes = [2, 128], strides = [1, 1]} : vector<2x384xf32> to vector<2x128xf32>
    %297 = arith.addf %295, %296 : vector<2x128xf32>
    %298 = arith.negf %297 : vector<2x128xf32>
    %299 = math.exp %298 : vector<2x128xf32>
    %cst_70 = arith.constant 1.000000e+00 : f32
    %300 = vector.broadcast %cst_70 : f32 to vector<2x128xf32>
    %301 = arith.addf %300, %299 : vector<2x128xf32>
    %302 = arith.divf %300, %301 : vector<2x128xf32>
    %303 = vector.extract_strided_slice %293 {offsets = [0, 128], sizes = [2, 128], strides = [1, 1]} : vector<2x384xf32> to vector<2x128xf32>
    %304 = vector.extract_strided_slice %294 {offsets = [0, 128], sizes = [2, 128], strides = [1, 1]} : vector<2x384xf32> to vector<2x128xf32>
    %305 = arith.addf %303, %304 : vector<2x128xf32>
    %306 = arith.negf %305 : vector<2x128xf32>
    %307 = math.exp %306 : vector<2x128xf32>
    %cst_71 = arith.constant 1.000000e+00 : f32
    %308 = vector.broadcast %cst_71 : f32 to vector<2x128xf32>
    %309 = arith.addf %308, %307 : vector<2x128xf32>
    %310 = arith.divf %308, %309 : vector<2x128xf32>
    %311 = vector.extract_strided_slice %293 {offsets = [0, 256], sizes = [2, 128], strides = [1, 1]} : vector<2x384xf32> to vector<2x128xf32>
    %312 = vector.extract_strided_slice %294 {offsets = [0, 256], sizes = [2, 128], strides = [1, 1]} : vector<2x384xf32> to vector<2x128xf32>
    %313 = vector.broadcast %1 : vector<1x128xf32> to vector<2x128xf32>
    %314 = arith.addf %312, %313 : vector<2x128xf32>
    %315 = arith.mulf %302, %314 : vector<2x128xf32>
    %316 = arith.addf %311, %315 : vector<2x128xf32>
    %317 = math.tanh %316 : vector<2x128xf32>
    %cst_72 = arith.constant 1.000000e+00 : f32
    %318 = vector.broadcast %cst_72 : f32 to vector<2x128xf32>
    %319 = arith.subf %318, %310 : vector<2x128xf32>
    %320 = arith.mulf %319, %317 : vector<2x128xf32>
    %321 = arith.mulf %310, %286 : vector<2x128xf32>
    %322 = arith.addf %320, %321 : vector<2x128xf32>
    %323 = arith.index_cast %c8_i32 : i32 to index
    %c0_73 = arith.constant 0 : index
    %c0_74 = arith.constant 0 : index
    %324 = vector.load %arg6[%323, %c0_73, %c0_74] : memref<16x2x128xf32, #tpu.memory_space<vmem>>, vector<1x2x128xf32>
    %325 = vector.shape_cast %324 : vector<1x2x128xf32> to vector<2x128xf32>
    %326 = vector.shape_cast %322 : vector<2x128xf32> to vector<1x2x128xf32>
    tpu.vector_store %arg6[%323, %c0_73, %c0_74], %326 {strides = array<i32>} : memref<16x2x128xf32, #tpu.memory_space<vmem>>, vector<1x2x128xf32>,
    %c9_i32 = arith.constant 9 : i32
    %327 = arith.index_cast %c9_i32 : i32 to index
    %c0_75 = arith.constant 0 : index
    %c0_76 = arith.constant 0 : index
    %328 = vector.load %arg0[%327, %c0_75, %c0_76] : memref<16x2x384xf32, #tpu.memory_space<vmem>>, vector<1x2x384xf32>
    %329 = vector.shape_cast %328 : vector<1x2x384xf32> to vector<2x384xf32>
    %cst_77 = arith.constant dense<0.000000e+00> : vector<2x384xf32>
    %330 = tpu.matmul %322, %0, %cst_77 {dimension_numbers = #tpu.dot_dimension_numbers<[1], [0], [0], [1], [0, 0, 1, 1], [], []>} : vector<2x128xf32>, vector<128x384xf32>, vector<2x384xf32> -> vector<2x384xf32>
    %331 = vector.extract_strided_slice %329 {offsets = [0, 0], sizes = [2, 128], strides = [1, 1]} : vector<2x384xf32> to vector<2x128xf32>
    %332 = vector.extract_strided_slice %330 {offsets = [0, 0], sizes = [2, 128], strides = [1, 1]} : vector<2x384xf32> to vector<2x128xf32>
    %333 = arith.addf %331, %332 : vector<2x128xf32>
    %334 = arith.negf %333 : vector<2x128xf32>
    %335 = math.exp %334 : vector<2x128xf32>
    %cst_78 = arith.constant 1.000000e+00 : f32
    %336 = vector.broadcast %cst_78 : f32 to vector<2x128xf32>
    %337 = arith.addf %336, %335 : vector<2x128xf32>
    %338 = arith.divf %336, %337 : vector<2x128xf32>
    %339 = vector.extract_strided_slice %329 {offsets = [0, 128], sizes = [2, 128], strides = [1, 1]} : vector<2x384xf32> to vector<2x128xf32>
    %340 = vector.extract_strided_slice %330 {offsets = [0, 128], sizes = [2, 128], strides = [1, 1]} : vector<2x384xf32> to vector<2x128xf32>
    %341 = arith.addf %339, %340 : vector<2x128xf32>
    %342 = arith.negf %341 : vector<2x128xf32>
    %343 = math.exp %342 : vector<2x128xf32>
    %cst_79 = arith.constant 1.000000e+00 : f32
    %344 = vector.broadcast %cst_79 : f32 to vector<2x128xf32>
    %345 = arith.addf %344, %343 : vector<2x128xf32>
    %346 = arith.divf %344, %345 : vector<2x128xf32>
    %347 = vector.extract_strided_slice %329 {offsets = [0, 256], sizes = [2, 128], strides = [1, 1]} : vector<2x384xf32> to vector<2x128xf32>
    %348 = vector.extract_strided_slice %330 {offsets = [0, 256], sizes = [2, 128], strides = [1, 1]} : vector<2x384xf32> to vector<2x128xf32>
    %349 = vector.broadcast %1 : vector<1x128xf32> to vector<2x128xf32>
    %350 = arith.addf %348, %349 : vector<2x128xf32>
    %351 = arith.mulf %338, %350 : vector<2x128xf32>
    %352 = arith.addf %347, %351 : vector<2x128xf32>
    %353 = math.tanh %352 : vector<2x128xf32>
    %cst_80 = arith.constant 1.000000e+00 : f32
    %354 = vector.broadcast %cst_80 : f32 to vector<2x128xf32>
    %355 = arith.subf %354, %346 : vector<2x128xf32>
    %356 = arith.mulf %355, %353 : vector<2x128xf32>
    %357 = arith.mulf %346, %322 : vector<2x128xf32>
    %358 = arith.addf %356, %357 : vector<2x128xf32>
    %359 = arith.index_cast %c9_i32 : i32 to index
    %c0_81 = arith.constant 0 : index
    %c0_82 = arith.constant 0 : index
    %360 = vector.load %arg6[%359, %c0_81, %c0_82] : memref<16x2x128xf32, #tpu.memory_space<vmem>>, vector<1x2x128xf32>
    %361 = vector.shape_cast %360 : vector<1x2x128xf32> to vector<2x128xf32>
    %362 = vector.shape_cast %358 : vector<2x128xf32> to vector<1x2x128xf32>
    tpu.vector_store %arg6[%359, %c0_81, %c0_82], %362 {strides = array<i32>} : memref<16x2x128xf32, #tpu.memory_space<vmem>>, vector<1x2x128xf32>,
    %c10_i32 = arith.constant 10 : i32
    %363 = arith.index_cast %c10_i32 : i32 to index
    %c0_83 = arith.constant 0 : index
    %c0_84 = arith.constant 0 : index
    %364 = vector.load %arg0[%363, %c0_83, %c0_84] : memref<16x2x384xf32, #tpu.memory_space<vmem>>, vector<1x2x384xf32>
    %365 = vector.shape_cast %364 : vector<1x2x384xf32> to vector<2x384xf32>
    %cst_85 = arith.constant dense<0.000000e+00> : vector<2x384xf32>
    %366 = tpu.matmul %358, %0, %cst_85 {dimension_numbers = #tpu.dot_dimension_numbers<[1], [0], [0], [1], [0, 0, 1, 1], [], []>} : vector<2x128xf32>, vector<128x384xf32>, vector<2x384xf32> -> vector<2x384xf32>
    %367 = vector.extract_strided_slice %365 {offsets = [0, 0], sizes = [2, 128], strides = [1, 1]} : vector<2x384xf32> to vector<2x128xf32>
    %368 = vector.extract_strided_slice %366 {offsets = [0, 0], sizes = [2, 128], strides = [1, 1]} : vector<2x384xf32> to vector<2x128xf32>
    %369 = arith.addf %367, %368 : vector<2x128xf32>
    %370 = arith.negf %369 : vector<2x128xf32>
    %371 = math.exp %370 : vector<2x128xf32>
    %cst_86 = arith.constant 1.000000e+00 : f32
    %372 = vector.broadcast %cst_86 : f32 to vector<2x128xf32>
    %373 = arith.addf %372, %371 : vector<2x128xf32>
    %374 = arith.divf %372, %373 : vector<2x128xf32>
    %375 = vector.extract_strided_slice %365 {offsets = [0, 128], sizes = [2, 128], strides = [1, 1]} : vector<2x384xf32> to vector<2x128xf32>
    %376 = vector.extract_strided_slice %366 {offsets = [0, 128], sizes = [2, 128], strides = [1, 1]} : vector<2x384xf32> to vector<2x128xf32>
    %377 = arith.addf %375, %376 : vector<2x128xf32>
    %378 = arith.negf %377 : vector<2x128xf32>
    %379 = math.exp %378 : vector<2x128xf32>
    %cst_87 = arith.constant 1.000000e+00 : f32
    %380 = vector.broadcast %cst_87 : f32 to vector<2x128xf32>
    %381 = arith.addf %380, %379 : vector<2x128xf32>
    %382 = arith.divf %380, %381 : vector<2x128xf32>
    %383 = vector.extract_strided_slice %365 {offsets = [0, 256], sizes = [2, 128], strides = [1, 1]} : vector<2x384xf32> to vector<2x128xf32>
    %384 = vector.extract_strided_slice %366 {offsets = [0, 256], sizes = [2, 128], strides = [1, 1]} : vector<2x384xf32> to vector<2x128xf32>
    %385 = vector.broadcast %1 : vector<1x128xf32> to vector<2x128xf32>
    %386 = arith.addf %384, %385 : vector<2x128xf32>
    %387 = arith.mulf %374, %386 : vector<2x128xf32>
    %388 = arith.addf %383, %387 : vector<2x128xf32>
    %389 = math.tanh %388 : vector<2x128xf32>
    %cst_88 = arith.constant 1.000000e+00 : f32
    %390 = vector.broadcast %cst_88 : f32 to vector<2x128xf32>
    %391 = arith.subf %390, %382 : vector<2x128xf32>
    %392 = arith.mulf %391, %389 : vector<2x128xf32>
    %393 = arith.mulf %382, %358 : vector<2x128xf32>
    %394 = arith.addf %392, %393 : vector<2x128xf32>
    %395 = arith.index_cast %c10_i32 : i32 to index
    %c0_89 = arith.constant 0 : index
    %c0_90 = arith.constant 0 : index
    %396 = vector.load %arg6[%395, %c0_89, %c0_90] : memref<16x2x128xf32, #tpu.memory_space<vmem>>, vector<1x2x128xf32>
    %397 = vector.shape_cast %396 : vector<1x2x128xf32> to vector<2x128xf32>
    %398 = vector.shape_cast %394 : vector<2x128xf32> to vector<1x2x128xf32>
    tpu.vector_store %arg6[%395, %c0_89, %c0_90], %398 {strides = array<i32>} : memref<16x2x128xf32, #tpu.memory_space<vmem>>, vector<1x2x128xf32>,
    %c11_i32 = arith.constant 11 : i32
    %399 = arith.index_cast %c11_i32 : i32 to index
    %c0_91 = arith.constant 0 : index
    %c0_92 = arith.constant 0 : index
    %400 = vector.load %arg0[%399, %c0_91, %c0_92] : memref<16x2x384xf32, #tpu.memory_space<vmem>>, vector<1x2x384xf32>
    %401 = vector.shape_cast %400 : vector<1x2x384xf32> to vector<2x384xf32>
    %cst_93 = arith.constant dense<0.000000e+00> : vector<2x384xf32>
    %402 = tpu.matmul %394, %0, %cst_93 {dimension_numbers = #tpu.dot_dimension_numbers<[1], [0], [0], [1], [0, 0, 1, 1], [], []>} : vector<2x128xf32>, vector<128x384xf32>, vector<2x384xf32> -> vector<2x384xf32>
    %403 = vector.extract_strided_slice %401 {offsets = [0, 0], sizes = [2, 128], strides = [1, 1]} : vector<2x384xf32> to vector<2x128xf32>
    %404 = vector.extract_strided_slice %402 {offsets = [0, 0], sizes = [2, 128], strides = [1, 1]} : vector<2x384xf32> to vector<2x128xf32>
    %405 = arith.addf %403, %404 : vector<2x128xf32>
    %406 = arith.negf %405 : vector<2x128xf32>
    %407 = math.exp %406 : vector<2x128xf32>
    %cst_94 = arith.constant 1.000000e+00 : f32
    %408 = vector.broadcast %cst_94 : f32 to vector<2x128xf32>
    %409 = arith.addf %408, %407 : vector<2x128xf32>
    %410 = arith.divf %408, %409 : vector<2x128xf32>
    %411 = vector.extract_strided_slice %401 {offsets = [0, 128], sizes = [2, 128], strides = [1, 1]} : vector<2x384xf32> to vector<2x128xf32>
    %412 = vector.extract_strided_slice %402 {offsets = [0, 128], sizes = [2, 128], strides = [1, 1]} : vector<2x384xf32> to vector<2x128xf32>
    %413 = arith.addf %411, %412 : vector<2x128xf32>
    %414 = arith.negf %413 : vector<2x128xf32>
    %415 = math.exp %414 : vector<2x128xf32>
    %cst_95 = arith.constant 1.000000e+00 : f32
    %416 = vector.broadcast %cst_95 : f32 to vector<2x128xf32>
    %417 = arith.addf %416, %415 : vector<2x128xf32>
    %418 = arith.divf %416, %417 : vector<2x128xf32>
    %419 = vector.extract_strided_slice %401 {offsets = [0, 256], sizes = [2, 128], strides = [1, 1]} : vector<2x384xf32> to vector<2x128xf32>
    %420 = vector.extract_strided_slice %402 {offsets = [0, 256], sizes = [2, 128], strides = [1, 1]} : vector<2x384xf32> to vector<2x128xf32>
    %421 = vector.broadcast %1 : vector<1x128xf32> to vector<2x128xf32>
    %422 = arith.addf %420, %421 : vector<2x128xf32>
    %423 = arith.mulf %410, %422 : vector<2x128xf32>
    %424 = arith.addf %419, %423 : vector<2x128xf32>
    %425 = math.tanh %424 : vector<2x128xf32>
    %cst_96 = arith.constant 1.000000e+00 : f32
    %426 = vector.broadcast %cst_96 : f32 to vector<2x128xf32>
    %427 = arith.subf %426, %418 : vector<2x128xf32>
    %428 = arith.mulf %427, %425 : vector<2x128xf32>
    %429 = arith.mulf %418, %394 : vector<2x128xf32>
    %430 = arith.addf %428, %429 : vector<2x128xf32>
    %431 = arith.index_cast %c11_i32 : i32 to index
    %c0_97 = arith.constant 0 : index
    %c0_98 = arith.constant 0 : index
    %432 = vector.load %arg6[%431, %c0_97, %c0_98] : memref<16x2x128xf32, #tpu.memory_space<vmem>>, vector<1x2x128xf32>
    %433 = vector.shape_cast %432 : vector<1x2x128xf32> to vector<2x128xf32>
    %434 = vector.shape_cast %430 : vector<2x128xf32> to vector<1x2x128xf32>
    tpu.vector_store %arg6[%431, %c0_97, %c0_98], %434 {strides = array<i32>} : memref<16x2x128xf32, #tpu.memory_space<vmem>>, vector<1x2x128xf32>,
    %c12_i32 = arith.constant 12 : i32
    %435 = arith.index_cast %c12_i32 : i32 to index
    %c0_99 = arith.constant 0 : index
    %c0_100 = arith.constant 0 : index
    %436 = vector.load %arg0[%435, %c0_99, %c0_100] : memref<16x2x384xf32, #tpu.memory_space<vmem>>, vector<1x2x384xf32>
    %437 = vector.shape_cast %436 : vector<1x2x384xf32> to vector<2x384xf32>
    %cst_101 = arith.constant dense<0.000000e+00> : vector<2x384xf32>
    %438 = tpu.matmul %430, %0, %cst_101 {dimension_numbers = #tpu.dot_dimension_numbers<[1], [0], [0], [1], [0, 0, 1, 1], [], []>} : vector<2x128xf32>, vector<128x384xf32>, vector<2x384xf32> -> vector<2x384xf32>
    %439 = vector.extract_strided_slice %437 {offsets = [0, 0], sizes = [2, 128], strides = [1, 1]} : vector<2x384xf32> to vector<2x128xf32>
    %440 = vector.extract_strided_slice %438 {offsets = [0, 0], sizes = [2, 128], strides = [1, 1]} : vector<2x384xf32> to vector<2x128xf32>
    %441 = arith.addf %439, %440 : vector<2x128xf32>
    %442 = arith.negf %441 : vector<2x128xf32>
    %443 = math.exp %442 : vector<2x128xf32>
    %cst_102 = arith.constant 1.000000e+00 : f32
    %444 = vector.broadcast %cst_102 : f32 to vector<2x128xf32>
    %445 = arith.addf %444, %443 : vector<2x128xf32>
    %446 = arith.divf %444, %445 : vector<2x128xf32>
    %447 = vector.extract_strided_slice %437 {offsets = [0, 128], sizes = [2, 128], strides = [1, 1]} : vector<2x384xf32> to vector<2x128xf32>
    %448 = vector.extract_strided_slice %438 {offsets = [0, 128], sizes = [2, 128], strides = [1, 1]} : vector<2x384xf32> to vector<2x128xf32>
    %449 = arith.addf %447, %448 : vector<2x128xf32>
    %450 = arith.negf %449 : vector<2x128xf32>
    %451 = math.exp %450 : vector<2x128xf32>
    %cst_103 = arith.constant 1.000000e+00 : f32
    %452 = vector.broadcast %cst_103 : f32 to vector<2x128xf32>
    %453 = arith.addf %452, %451 : vector<2x128xf32>
    %454 = arith.divf %452, %453 : vector<2x128xf32>
    %455 = vector.extract_strided_slice %437 {offsets = [0, 256], sizes = [2, 128], strides = [1, 1]} : vector<2x384xf32> to vector<2x128xf32>
    %456 = vector.extract_strided_slice %438 {offsets = [0, 256], sizes = [2, 128], strides = [1, 1]} : vector<2x384xf32> to vector<2x128xf32>
    %457 = vector.broadcast %1 : vector<1x128xf32> to vector<2x128xf32>
    %458 = arith.addf %456, %457 : vector<2x128xf32>
    %459 = arith.mulf %446, %458 : vector<2x128xf32>
    %460 = arith.addf %455, %459 : vector<2x128xf32>
    %461 = math.tanh %460 : vector<2x128xf32>
    %cst_104 = arith.constant 1.000000e+00 : f32
    %462 = vector.broadcast %cst_104 : f32 to vector<2x128xf32>
    %463 = arith.subf %462, %454 : vector<2x128xf32>
    %464 = arith.mulf %463, %461 : vector<2x128xf32>
    %465 = arith.mulf %454, %430 : vector<2x128xf32>
    %466 = arith.addf %464, %465 : vector<2x128xf32>
    %467 = arith.index_cast %c12_i32 : i32 to index
    %c0_105 = arith.constant 0 : index
    %c0_106 = arith.constant 0 : index
    %468 = vector.load %arg6[%467, %c0_105, %c0_106] : memref<16x2x128xf32, #tpu.memory_space<vmem>>, vector<1x2x128xf32>
    %469 = vector.shape_cast %468 : vector<1x2x128xf32> to vector<2x128xf32>
    %470 = vector.shape_cast %466 : vector<2x128xf32> to vector<1x2x128xf32>
    tpu.vector_store %arg6[%467, %c0_105, %c0_106], %470 {strides = array<i32>} : memref<16x2x128xf32, #tpu.memory_space<vmem>>, vector<1x2x128xf32>,
    %c13_i32 = arith.constant 13 : i32
    %471 = arith.index_cast %c13_i32 : i32 to index
    %c0_107 = arith.constant 0 : index
    %c0_108 = arith.constant 0 : index
    %472 = vector.load %arg0[%471, %c0_107, %c0_108] : memref<16x2x384xf32, #tpu.memory_space<vmem>>, vector<1x2x384xf32>
    %473 = vector.shape_cast %472 : vector<1x2x384xf32> to vector<2x384xf32>
    %cst_109 = arith.constant dense<0.000000e+00> : vector<2x384xf32>
    %474 = tpu.matmul %466, %0, %cst_109 {dimension_numbers = #tpu.dot_dimension_numbers<[1], [0], [0], [1], [0, 0, 1, 1], [], []>} : vector<2x128xf32>, vector<128x384xf32>, vector<2x384xf32> -> vector<2x384xf32>
    %475 = vector.extract_strided_slice %473 {offsets = [0, 0], sizes = [2, 128], strides = [1, 1]} : vector<2x384xf32> to vector<2x128xf32>
    %476 = vector.extract_strided_slice %474 {offsets = [0, 0], sizes = [2, 128], strides = [1, 1]} : vector<2x384xf32> to vector<2x128xf32>
    %477 = arith.addf %475, %476 : vector<2x128xf32>
    %478 = arith.negf %477 : vector<2x128xf32>
    %479 = math.exp %478 : vector<2x128xf32>
    %cst_110 = arith.constant 1.000000e+00 : f32
    %480 = vector.broadcast %cst_110 : f32 to vector<2x128xf32>
    %481 = arith.addf %480, %479 : vector<2x128xf32>
    %482 = arith.divf %480, %481 : vector<2x128xf32>
    %483 = vector.extract_strided_slice %473 {offsets = [0, 128], sizes = [2, 128], strides = [1, 1]} : vector<2x384xf32> to vector<2x128xf32>
    %484 = vector.extract_strided_slice %474 {offsets = [0, 128], sizes = [2, 128], strides = [1, 1]} : vector<2x384xf32> to vector<2x128xf32>
    %485 = arith.addf %483, %484 : vector<2x128xf32>
    %486 = arith.negf %485 : vector<2x128xf32>
    %487 = math.exp %486 : vector<2x128xf32>
    %cst_111 = arith.constant 1.000000e+00 : f32
    %488 = vector.broadcast %cst_111 : f32 to vector<2x128xf32>
    %489 = arith.addf %488, %487 : vector<2x128xf32>
    %490 = arith.divf %488, %489 : vector<2x128xf32>
    %491 = vector.extract_strided_slice %473 {offsets = [0, 256], sizes = [2, 128], strides = [1, 1]} : vector<2x384xf32> to vector<2x128xf32>
    %492 = vector.extract_strided_slice %474 {offsets = [0, 256], sizes = [2, 128], strides = [1, 1]} : vector<2x384xf32> to vector<2x128xf32>
    %493 = vector.broadcast %1 : vector<1x128xf32> to vector<2x128xf32>
    %494 = arith.addf %492, %493 : vector<2x128xf32>
    %495 = arith.mulf %482, %494 : vector<2x128xf32>
    %496 = arith.addf %491, %495 : vector<2x128xf32>
    %497 = math.tanh %496 : vector<2x128xf32>
    %cst_112 = arith.constant 1.000000e+00 : f32
    %498 = vector.broadcast %cst_112 : f32 to vector<2x128xf32>
    %499 = arith.subf %498, %490 : vector<2x128xf32>
    %500 = arith.mulf %499, %497 : vector<2x128xf32>
    %501 = arith.mulf %490, %466 : vector<2x128xf32>
    %502 = arith.addf %500, %501 : vector<2x128xf32>
    %503 = arith.index_cast %c13_i32 : i32 to index
    %c0_113 = arith.constant 0 : index
    %c0_114 = arith.constant 0 : index
    %504 = vector.load %arg6[%503, %c0_113, %c0_114] : memref<16x2x128xf32, #tpu.memory_space<vmem>>, vector<1x2x128xf32>
    %505 = vector.shape_cast %504 : vector<1x2x128xf32> to vector<2x128xf32>
    %506 = vector.shape_cast %502 : vector<2x128xf32> to vector<1x2x128xf32>
    tpu.vector_store %arg6[%503, %c0_113, %c0_114], %506 {strides = array<i32>} : memref<16x2x128xf32, #tpu.memory_space<vmem>>, vector<1x2x128xf32>,
    %c14_i32 = arith.constant 14 : i32
    %507 = arith.index_cast %c14_i32 : i32 to index
    %c0_115 = arith.constant 0 : index
    %c0_116 = arith.constant 0 : index
    %508 = vector.load %arg0[%507, %c0_115, %c0_116] : memref<16x2x384xf32, #tpu.memory_space<vmem>>, vector<1x2x384xf32>
    %509 = vector.shape_cast %508 : vector<1x2x384xf32> to vector<2x384xf32>
    %cst_117 = arith.constant dense<0.000000e+00> : vector<2x384xf32>
    %510 = tpu.matmul %502, %0, %cst_117 {dimension_numbers = #tpu.dot_dimension_numbers<[1], [0], [0], [1], [0, 0, 1, 1], [], []>} : vector<2x128xf32>, vector<128x384xf32>, vector<2x384xf32> -> vector<2x384xf32>
    %511 = vector.extract_strided_slice %509 {offsets = [0, 0], sizes = [2, 128], strides = [1, 1]} : vector<2x384xf32> to vector<2x128xf32>
    %512 = vector.extract_strided_slice %510 {offsets = [0, 0], sizes = [2, 128], strides = [1, 1]} : vector<2x384xf32> to vector<2x128xf32>
    %513 = arith.addf %511, %512 : vector<2x128xf32>
    %514 = arith.negf %513 : vector<2x128xf32>
    %515 = math.exp %514 : vector<2x128xf32>
    %cst_118 = arith.constant 1.000000e+00 : f32
    %516 = vector.broadcast %cst_118 : f32 to vector<2x128xf32>
    %517 = arith.addf %516, %515 : vector<2x128xf32>
    %518 = arith.divf %516, %517 : vector<2x128xf32>
    %519 = vector.extract_strided_slice %509 {offsets = [0, 128], sizes = [2, 128], strides = [1, 1]} : vector<2x384xf32> to vector<2x128xf32>
    %520 = vector.extract_strided_slice %510 {offsets = [0, 128], sizes = [2, 128], strides = [1, 1]} : vector<2x384xf32> to vector<2x128xf32>
    %521 = arith.addf %519, %520 : vector<2x128xf32>
    %522 = arith.negf %521 : vector<2x128xf32>
    %523 = math.exp %522 : vector<2x128xf32>
    %cst_119 = arith.constant 1.000000e+00 : f32
    %524 = vector.broadcast %cst_119 : f32 to vector<2x128xf32>
    %525 = arith.addf %524, %523 : vector<2x128xf32>
    %526 = arith.divf %524, %525 : vector<2x128xf32>
    %527 = vector.extract_strided_slice %509 {offsets = [0, 256], sizes = [2, 128], strides = [1, 1]} : vector<2x384xf32> to vector<2x128xf32>
    %528 = vector.extract_strided_slice %510 {offsets = [0, 256], sizes = [2, 128], strides = [1, 1]} : vector<2x384xf32> to vector<2x128xf32>
    %529 = vector.broadcast %1 : vector<1x128xf32> to vector<2x128xf32>
    %530 = arith.addf %528, %529 : vector<2x128xf32>
    %531 = arith.mulf %518, %530 : vector<2x128xf32>
    %532 = arith.addf %527, %531 : vector<2x128xf32>
    %533 = math.tanh %532 : vector<2x128xf32>
    %cst_120 = arith.constant 1.000000e+00 : f32
    %534 = vector.broadcast %cst_120 : f32 to vector<2x128xf32>
    %535 = arith.subf %534, %526 : vector<2x128xf32>
    %536 = arith.mulf %535, %533 : vector<2x128xf32>
    %537 = arith.mulf %526, %502 : vector<2x128xf32>
    %538 = arith.addf %536, %537 : vector<2x128xf32>
    %539 = arith.index_cast %c14_i32 : i32 to index
    %c0_121 = arith.constant 0 : index
    %c0_122 = arith.constant 0 : index
    %540 = vector.load %arg6[%539, %c0_121, %c0_122] : memref<16x2x128xf32, #tpu.memory_space<vmem>>, vector<1x2x128xf32>
    %541 = vector.shape_cast %540 : vector<1x2x128xf32> to vector<2x128xf32>
    %542 = vector.shape_cast %538 : vector<2x128xf32> to vector<1x2x128xf32>
    tpu.vector_store %arg6[%539, %c0_121, %c0_122], %542 {strides = array<i32>} : memref<16x2x128xf32, #tpu.memory_space<vmem>>, vector<1x2x128xf32>,
    %c15_i32 = arith.constant 15 : i32
    %543 = arith.index_cast %c15_i32 : i32 to index
    %c0_123 = arith.constant 0 : index
    %c0_124 = arith.constant 0 : index
    %544 = vector.load %arg0[%543, %c0_123, %c0_124] : memref<16x2x384xf32, #tpu.memory_space<vmem>>, vector<1x2x384xf32>
    %545 = vector.shape_cast %544 : vector<1x2x384xf32> to vector<2x384xf32>
    %cst_125 = arith.constant dense<0.000000e+00> : vector<2x384xf32>
    %546 = tpu.matmul %538, %0, %cst_125 {dimension_numbers = #tpu.dot_dimension_numbers<[1], [0], [0], [1], [0, 0, 1, 1], [], []>} : vector<2x128xf32>, vector<128x384xf32>, vector<2x384xf32> -> vector<2x384xf32>
    %547 = vector.extract_strided_slice %545 {offsets = [0, 0], sizes = [2, 128], strides = [1, 1]} : vector<2x384xf32> to vector<2x128xf32>
    %548 = vector.extract_strided_slice %546 {offsets = [0, 0], sizes = [2, 128], strides = [1, 1]} : vector<2x384xf32> to vector<2x128xf32>
    %549 = arith.addf %547, %548 : vector<2x128xf32>
    %550 = arith.negf %549 : vector<2x128xf32>
    %551 = math.exp %550 : vector<2x128xf32>
    %cst_126 = arith.constant 1.000000e+00 : f32
    %552 = vector.broadcast %cst_126 : f32 to vector<2x128xf32>
    %553 = arith.addf %552, %551 : vector<2x128xf32>
    %554 = arith.divf %552, %553 : vector<2x128xf32>
    %555 = vector.extract_strided_slice %545 {offsets = [0, 128], sizes = [2, 128], strides = [1, 1]} : vector<2x384xf32> to vector<2x128xf32>
    %556 = vector.extract_strided_slice %546 {offsets = [0, 128], sizes = [2, 128], strides = [1, 1]} : vector<2x384xf32> to vector<2x128xf32>
    %557 = arith.addf %555, %556 : vector<2x128xf32>
    %558 = arith.negf %557 : vector<2x128xf32>
    %559 = math.exp %558 : vector<2x128xf32>
    %cst_127 = arith.constant 1.000000e+00 : f32
    %560 = vector.broadcast %cst_127 : f32 to vector<2x128xf32>
    %561 = arith.addf %560, %559 : vector<2x128xf32>
    %562 = arith.divf %560, %561 : vector<2x128xf32>
    %563 = vector.extract_strided_slice %545 {offsets = [0, 256], sizes = [2, 128], strides = [1, 1]} : vector<2x384xf32> to vector<2x128xf32>
    %564 = vector.extract_strided_slice %546 {offsets = [0, 256], sizes = [2, 128], strides = [1, 1]} : vector<2x384xf32> to vector<2x128xf32>
    %565 = vector.broadcast %1 : vector<1x128xf32> to vector<2x128xf32>
    %566 = arith.addf %564, %565 : vector<2x128xf32>
    %567 = arith.mulf %554, %566 : vector<2x128xf32>
    %568 = arith.addf %563, %567 : vector<2x128xf32>
    %569 = math.tanh %568 : vector<2x128xf32>
    %cst_128 = arith.constant 1.000000e+00 : f32
    %570 = vector.broadcast %cst_128 : f32 to vector<2x128xf32>
    %571 = arith.subf %570, %562 : vector<2x128xf32>
    %572 = arith.mulf %571, %569 : vector<2x128xf32>
    %573 = arith.mulf %562, %538 : vector<2x128xf32>
    %574 = arith.addf %572, %573 : vector<2x128xf32>
    %575 = arith.index_cast %c15_i32 : i32 to index
    %c0_129 = arith.constant 0 : index
    %c0_130 = arith.constant 0 : index
    %576 = vector.load %arg6[%575, %c0_129, %c0_130] : memref<16x2x128xf32, #tpu.memory_space<vmem>>, vector<1x2x128xf32>
    %577 = vector.shape_cast %576 : vector<1x2x128xf32> to vector<2x128xf32>
    %578 = vector.shape_cast %574 : vector<2x128xf32> to vector<1x2x128xf32>
    tpu.vector_store %arg6[%575, %c0_129, %c0_130], %578 {strides = array<i32>} : memref<16x2x128xf32, #tpu.memory_space<vmem>>, vector<1x2x128xf32>,
    %c16_i32 = arith.constant 16 : i32
    %c0_131 = arith.constant 0 : index
    %c0_132 = arith.constant 0 : index
    %c0_133 = arith.constant 0 : index
    %579 = vector.load %arg6[%c0_131, %c0_132, %c0_133] : memref<16x2x128xf32, #tpu.memory_space<vmem>>, vector<16x2x128xf32>
    %580 = vector.shape_cast %579 : vector<16x2x128xf32> to vector<32x128xf32>
    %c0_134 = arith.constant 0 : index
    %c0_135 = arith.constant 0 : index
    %581 = vector.load %arg3[%c0_134, %c0_135] : memref<128x128xf32, #tpu.memory_space<vmem>>, vector<128x128xf32>
    %cst_136 = arith.constant dense<0.000000e+00> : vector<32x128xf32>
    %582 = tpu.matmul %580, %581, %cst_136 {dimension_numbers = #tpu.dot_dimension_numbers<[1], [0], [0], [1], [0, 0, 1, 1], [], []>} : vector<32x128xf32>, vector<128x128xf32>, vector<32x128xf32> -> vector<32x128xf32>
    %c0_137 = arith.constant 0 : index
    %c0_138 = arith.constant 0 : index
    %583 = vector.load %arg4[%c0_137, %c0_138] : memref<1x128xf32, #tpu.memory_space<vmem>>, vector<1x128xf32>
    %584 = vector.broadcast %583 : vector<1x128xf32> to vector<32x128xf32>
    %585 = arith.addf %582, %584 : vector<32x128xf32>
    %586 = arith.negf %585 : vector<32x128xf32>
    %587 = math.exp %586 : vector<32x128xf32>
    %cst_139 = arith.constant 1.000000e+00 : f32
    %588 = vector.broadcast %cst_139 : f32 to vector<32x128xf32>
    %589 = arith.addf %588, %587 : vector<32x128xf32>
    %590 = arith.divf %588, %589 : vector<32x128xf32>
    %591 = vector.shape_cast %590 : vector<32x128xf32> to vector<16x2x128xf32>
    %c0_140 = arith.constant 0 : index
    %c0_141 = arith.constant 0 : index
    %c0_142 = arith.constant 0 : index
    %592 = vector.load %arg5[%c0_140, %c0_141, %c0_142] : memref<16x2x128xf32, #tpu.memory_space<vmem>>, vector<16x2x128xf32>
    tpu.vector_store %arg5[%c0_140, %c0_141, %c0_142], %591 {strides = array<i32>} : memref<16x2x128xf32, #tpu.memory_space<vmem>>, vector<16x2x128xf32>,
    return
  }
}

</mosaic_0001>

<bundles_post_ra>
// kernel: mshe_a_forward.3
= control target key start
LH: loop header
LB: loop body
LE: loop exit
PB: predicated region body
PF: predicated region fallthrough
CT: control target
= control target key end

     0   :  { %v2507_v45 = vmov 0.0   ;;  %s4370_s1 = inlined_call_operand.vmem [shape: f32[128,384], index: 1, kind: input, shape index: {}]   ;;  %s4371_s2 = inlined_call_operand.vmem [shape: f32[1,128], index: 2, kind: input, shape index: {}]   ;;  %s4372_s0 = inlined_call_operand.vmem [shape: f32[16,2,384], index: 0, kind: input, shape index: {}]   ;;  %s4373_s3 = inlined_call_operand.vmem [shape: f32[128,128], index: 3, kind: input, shape index: {}]   ;;  %s4374_s4 = inlined_call_operand.vmem [shape: f32[1,128], index: 4, kind: input, shape index: {}]   ;;  %s4375_s5 = inlined_call_operand.vmem [shape: f32[16,2,128], index: 5, kind: output, shape index: {}]  }
   0x1   :  { %v2541_v0 = vld [vmem:[%s4370_s1 + $0x168] sm:$0xff]  ;;  %v2546_v1 = vld [vmem:[%s4370_s1 + $0x150] sm:$0xff]  ;;  %v2553_v2 = vld [vmem:[%s4370_s1 + $0x138] sm:$0xff] }
   0x2   :  { %70 = vmatpush.msra.mxu1 %v2541_v0  ;;  %189 = vmatpush.msra.mxu3 %v2541_v0  ;;  %v2560_v3 = vld [vmem:[%s4370_s1 + $0x120] sm:$0xff]  ;;  %v2566_v4 = vld [vmem:[%s4370_s1 + $0x170] sm:$0xff]  ;;  %v2571_v5 = vld [vmem:[%s4370_s1 + $0x178] sm:$0xff] }
   0x3   :  { %v2577_v6 = vld [vmem:[%s4370_s1 + $0x108] sm:$0xff]  ;;  %110 = vmatpush.msra.mxu2 %v2571_v5  ;;  %v2583_v7 = vld [vmem:[%s4370_s1 + $0x160] sm:$0xff]  ;;  %209 = vmatpush.msra.mxu0 %v2566_v4  ;;  %v2590_v8 = vld [vmem:[%s4370_s1 + $0x158] sm:$0xff] }
   0x4   :  { %71 = vmatpush.msra.mxu1 %v2546_v1  ;;  %190 = vmatpush.msra.mxu3 %v2546_v1  ;;  %v2595_v9 = vld [vmem:[%s4370_s1 + $0x148] sm:$0xff]  ;;  %v2601_v10 = vld [vmem:[%s4370_s1 + $0xf0] sm:$0xff]  ;;  %v2609_v11 = vld [vmem:[%s4370_s1 + $0x140] sm:$0xff] }
   0x5   :  { %111 = vmatpush.msra.mxu2 %v2583_v7  ;;  %210 = vmatpush.msra.mxu0 %v2590_v8  ;;  %v2614_v12 = vld [vmem:[%s4370_s1 + $0x130] sm:$0xff]  ;;  %v2620_v13 = vld [vmem:[%s4370_s1 + $0xd8] sm:$0xff]  ;;  %v2628_v14 = vld [vmem:[%s4370_s1 + $0x128] sm:$0xff] }
   0x6   :  { %72 = vmatpush.msra.mxu1 %v2553_v2  ;;  %191 = vmatpush.msra.mxu3 %v2553_v2  ;;  %v2633_v15 = vld [vmem:[%s4370_s1 + $0x118] sm:$0xff]  ;;  %v2639_v16 = vld [vmem:[%s4370_s1 + $0xc0] sm:$0xff]  ;;  %v2647_v17 = vld [vmem:[%s4370_s1 + $0x110] sm:$0xff] }
   0x7   :  { %112 = vmatpush.msra.mxu2 %v2595_v9  ;;  %211 = vmatpush.msra.mxu0 %v2609_v11  ;;  %v2652_v18 = vld [vmem:[%s4370_s1 + $0x100] sm:$0xff]  ;;  %v2658_v19 = vld [vmem:[%s4370_s1 + $0xa8] sm:$0xff]  ;;  %v2666_v20 = vld [vmem:[%s4370_s1 + $0xf8] sm:$0xff] }
   0x8   :  { %73 = vmatpush.msra.mxu1 %v2560_v3  ;;  %192 = vmatpush.msra.mxu3 %v2560_v3  ;;  %v2671_v21 = vld [vmem:[%s4370_s1 + $0xe8] sm:$0xff]  ;;  %v2677_v22 = vld [vmem:[%s4370_s1 + $0x90] sm:$0xff]  ;;  %v2685_v23 = vld [vmem:[%s4370_s1 + $0xe0] sm:$0xff] }
   0x9   :  { %113 = vmatpush.msra.mxu2 %v2614_v12  ;;  %212 = vmatpush.msra.mxu0 %v2628_v14  ;;  %v2690_v24 = vld [vmem:[%s4370_s1 + $0xd0] sm:$0xff]  ;;  %v2696_v25 = vld [vmem:[%s4370_s1 + $0x78] sm:$0xff]  ;;  %v2704_v26 = vld [vmem:[%s4370_s1 + $0xc8] sm:$0xff] }
   0xa   :  { %74 = vmatpush.msra.mxu1 %v2577_v6  ;;  %193 = vmatpush.msra.mxu3 %v2577_v6  ;;  %v2709_v27 = vld [vmem:[%s4370_s1 + $0xb8] sm:$0xff]  ;;  %v2715_v28 = vld [vmem:[%s4370_s1 + $0x60] sm:$0xff]  ;;  %v2723_v29 = vld [vmem:[%s4370_s1 + $0xb0] sm:$0xff] }
   0xb   :  { %114 = vmatpush.msra.mxu2 %v2633_v15  ;;  %213 = vmatpush.msra.mxu0 %v2647_v17  ;;  %v2728_v30 = vld [vmem:[%s4370_s1 + $0xa0] sm:$0xff]  ;;  %v2734_v31 = vld [vmem:[%s4370_s1 + $0x48] sm:$0xff]  ;;  %v2742_v32 = vld [vmem:[%s4370_s1 + $0x98] sm:$0xff] }
   0xc   :  { %75 = vmatpush.msra.mxu1 %v2601_v10  ;;  %194 = vmatpush.msra.mxu3 %v2601_v10  ;;  %v2747_v33 = vld [vmem:[%s4370_s1 + $0x88] sm:$0xff]  ;;  %v2753_v34 = vld [vmem:[%s4370_s1 + $0x30] sm:$0xff]  ;;  %v2761_v35 = vld [vmem:[%s4370_s1 + $0x80] sm:$0xff] }
   0xd   :  { %115 = vmatpush.msra.mxu2 %v2652_v18  ;;  %214 = vmatpush.msra.mxu0 %v2666_v20  ;;  %4430 = vst [vmem:[#allocation3_spill] sm:$0xff] %v2753_v34  ;;  %v2766_v36 = vld [vmem:[%s4370_s1 + $0x70] sm:$0xff]  ;;  %v2772_v37 = vld [vmem:[%s4370_s1 + $0x18] sm:$0xff]  ;;  %v2780_v38 = vld [vmem:[%s4370_s1 + $0x68] sm:$0xff] }
   0xe   :  { %76 = vmatpush.msra.mxu1 %v2620_v13  ;;  %195 = vmatpush.msra.mxu3 %v2620_v13  ;;  %4431 = vst [vmem:[#allocation4_spill] sm:$0xff] %v2772_v37  ;;  %v2785_v39 = vld [vmem:[%s4370_s1 + $0x58] sm:$0xff]  ;;  %v2791_v40 = vld [vmem:[%s4370_s1] sm:$0xff]  ;;  %v2799_v41 = vld [vmem:[%s4370_s1 + $0x50] sm:$0xff] }
   0xf   :  { %116 = vmatpush.msra.mxu2 %v2671_v21  ;;  %215 = vmatpush.msra.mxu0 %v2685_v23  ;;  %4432 = vst [vmem:[#allocation5_spill] sm:$0xff] %v2791_v40  ;;  %v2804_v42 = vld [vmem:[%s4370_s1 + $0x40] sm:$0xff]  ;;  %v2813_v43 = vld [vmem:[%s4370_s1 + $0x28] sm:$0xff]  ;;  %v2820_v44 = vld [vmem:[%s4370_s1 + $0x38] sm:$0xff] }
  0x10   :  { %77 = vmatpush.msra.mxu1 %v2639_v16  ;;  %196 = vmatpush.msra.mxu3 %v2639_v16  ;;  %4433 = vst [vmem:[#allocation6_spill] sm:$0xff] %v2804_v42  ;;  %v2827_v46 = vld [vmem:[%s4370_s1 + $0x10] sm:$0xff]  ;;  %v2834_v47 = vld [vmem:[%s4370_s1 + $0x20] sm:$0xff]  ;;  %v2843_v48 = vld [vmem:[%s4370_s1 + $0x8] sm:$0xff] }
  0x11   :  { %117 = vmatpush.msra.mxu2 %v2690_v24  ;;  %216 = vmatpush.msra.mxu0 %v2704_v26  ;;  %4434 = vst [vmem:[#allocation7_spill] sm:$0xff] %v2813_v43  ;;  %v69_v49 = vld [vmem:[%s4372_s0] sm:$0x3f] }
  0x12   :  { %78 = vmatpush.msra.mxu1 %v2658_v19  ;;  %197 = vmatpush.msra.mxu3 %v2658_v19  ;;  %4435 = vst [vmem:[#allocation8_spill] sm:$0xff] %v2820_v44  ;;  %v151_v57 = vrot.slane %v69_v49, 2 }
  0x13   :  { %118 = vmatpush.msra.mxu2 %v2709_v27  ;;  %217 = vmatpush.msra.mxu0 %v2723_v29  ;;  %4436 = vst [vmem:[#allocation9_spill] sm:$0xff] %v2827_v46 }
  0x14   :  { %79 = vmatpush.msra.mxu1 %v2677_v22  ;;  %198 = vmatpush.msra.mxu3 %v2677_v22  ;;  %4437 = vst [vmem:[#allocation10_spill] sm:$0xff] %v2834_v47 }
  0x15   :  { %119 = vmatpush.msra.mxu2 %v2728_v30  ;;  %218 = vmatpush.msra.mxu0 %v2742_v32  ;;  %4438 = vst [vmem:[#allocation11_spill] sm:$0xff] %v2843_v48 }
  0x16   :  { %80 = vmatpush.msra.mxu1 %v2696_v25  ;;  %199 = vmatpush.msra.mxu3 %v2696_v25 }
  0x17   :  { %120 = vmatpush.msra.mxu2 %v2747_v33  ;;  %219 = vmatpush.msra.mxu0 %v2761_v35 }
  0x18   :  { %81 = vmatpush.msra.mxu1 %v2715_v28  ;;  %200 = vmatpush.msra.mxu3 %v2715_v28 }
  0x19   :  { %121 = vmatpush.msra.mxu2 %v2766_v36  ;;  %220 = vmatpush.msra.mxu0 %v2780_v38 }
  0x1a   :  { %82 = vmatpush.msra.mxu1 %v2734_v31  ;;  %201 = vmatpush.msra.mxu3 %v2734_v31 }
  0x1b   :  { %122 = vmatpush.msra.mxu2 %v2785_v39  ;;  %221 = vmatpush.msra.mxu0 %v2799_v41 }
  0x1c   :  { %83 = vmatpush.msra.mxu1 %v2753_v34  ;;  %202 = vmatpush.msra.mxu3 %v2753_v34 }
  0x1d   :  { %123 = vmatpush.msra.mxu2 %v2804_v42  ;;  %222 = vmatpush.msra.mxu0 %v2820_v44 }
  0x1e   :  { %84 = vmatpush.msra.mxu1 %v2772_v37  ;;  %203 = vmatpush.msra.mxu3 %v2772_v37 }
  0x1f   :  { %124 = vmatpush.msra.mxu2 %v2813_v43  ;;  %223 = vmatpush.msra.mxu0 %v2834_v47 }
  0x20   :  { %85 = vmatpush.msra.mxu1 %v2791_v40  ;;  %204 = vmatpush.msra.mxu3 %v2791_v40 }
  0x21   :  { %86 = vmatmul.f32.vlgmr.msra.gmra.mxu1 %v2507_v45  ;;  %125 = vmatpush.msra.mxu2 %v2827_v46 }
  0x22   :  { %90 = vmatpush.msrb.mxu1 %v2566_v4  ;;  %326 = vmatpush.msrb.mxu3 %v2566_v4 }
  0x23   :  { %126 = vmatmul.f32.vlgmr.msra.gmra.mxu2 %v2507_v45  ;;  %224 = vmatpush.msra.mxu0 %v2843_v48 }
  0x24   :  { %91 = vmatpush.msrb.mxu1 %v2590_v8  ;;  %306 = vmatpush.msrb.mxu2 %v2541_v0 }
  0x25   :  { %346 = vmatpush.msrb.mxu0 %v2571_v5  ;;  %327 = vmatpush.msrb.mxu3 %v2590_v8 }
  0x26   :  { %92 = vmatpush.msrb.mxu1 %v2609_v11  ;;  %307 = vmatpush.msrb.mxu2 %v2546_v1 }
  0x27   :  { %347 = vmatpush.msrb.mxu0 %v2583_v7  ;;  %328 = vmatpush.msrb.mxu3 %v2609_v11 }
  0x28   :  { %93 = vmatpush.msrb.mxu1 %v2628_v14  ;;  %308 = vmatpush.msrb.mxu2 %v2553_v2 }
  0x29   :  { %348 = vmatpush.msrb.mxu0 %v2595_v9  ;;  %329 = vmatpush.msrb.mxu3 %v2628_v14 }
  0x2a   :  { %94 = vmatpush.msrb.mxu1 %v2647_v17  ;;  %309 = vmatpush.msrb.mxu2 %v2560_v3 }
  0x2b   :  { %349 = vmatpush.msrb.mxu0 %v2614_v12  ;;  %330 = vmatpush.msrb.mxu3 %v2647_v17 }
  0x2c   :  { %95 = vmatpush.msrb.mxu1 %v2666_v20  ;;  %310 = vmatpush.msrb.mxu2 %v2577_v6 }
  0x2d   :  { %350 = vmatpush.msrb.mxu0 %v2633_v15  ;;  %331 = vmatpush.msrb.mxu3 %v2666_v20 }
  0x2e   :  { %96 = vmatpush.msrb.mxu1 %v2685_v23  ;;  %311 = vmatpush.msrb.mxu2 %v2601_v10 }
  0x2f   :  { %351 = vmatpush.msrb.mxu0 %v2652_v18  ;;  %332 = vmatpush.msrb.mxu3 %v2685_v23 }
  0x30   :  { %97 = vmatpush.msrb.mxu1 %v2704_v26  ;;  %312 = vmatpush.msrb.mxu2 %v2620_v13 }
  0x31   :  { %352 = vmatpush.msrb.mxu0 %v2671_v21  ;;  %333 = vmatpush.msrb.mxu3 %v2704_v26 }
  0x32   :  { %98 = vmatpush.msrb.mxu1 %v2723_v29  ;;  %313 = vmatpush.msrb.mxu2 %v2639_v16 }
  0x33   :  { %353 = vmatpush.msrb.mxu0 %v2690_v24  ;;  %334 = vmatpush.msrb.mxu3 %v2723_v29 }
  0x34   :  { %99 = vmatpush.msrb.mxu1 %v2742_v32  ;;  %314 = vmatpush.msrb.mxu2 %v2658_v19 }
  0x35   :  { %354 = vmatpush.msrb.mxu0 %v2709_v27  ;;  %335 = vmatpush.msrb.mxu3 %v2742_v32 }
  0x36   :  { %100 = vmatpush.msrb.mxu1 %v2761_v35  ;;  %315 = vmatpush.msrb.mxu2 %v2677_v22 }
  0x37   :  { %355 = vmatpush.msrb.mxu0 %v2728_v30  ;;  %336 = vmatpush.msrb.mxu3 %v2761_v35 }
  0x38   :  { %101 = vmatpush.msrb.mxu1 %v2780_v38  ;;  %316 = vmatpush.msrb.mxu2 %v2696_v25 }
  0x39   :  { %356 = vmatpush.msrb.mxu0 %v2747_v33  ;;  %337 = vmatpush.msrb.mxu3 %v2780_v38 }
  0x3a   :  { %102 = vmatpush.msrb.mxu1 %v2799_v41  ;;  %317 = vmatpush.msrb.mxu2 %v2715_v28 }
  0x3b   :  { %357 = vmatpush.msrb.mxu0 %v2766_v36  ;;  %338 = vmatpush.msrb.mxu3 %v2799_v41 }
  0x3c   :  { %103 = vmatpush.msrb.mxu1 %v2820_v44  ;;  %318 = vmatpush.msrb.mxu2 %v2734_v31 }
  0x3d   :  { %358 = vmatpush.msrb.mxu0 %v2785_v39  ;;  %339 = vmatpush.msrb.mxu3 %v2820_v44 }
  0x3e   :  { %104 = vmatpush.msrb.mxu1 %v2834_v47  ;;  %319 = vmatpush.msrb.mxu2 %v2753_v34 }
  0x3f   :  { %359 = vmatpush.msrb.mxu0 %v2804_v42  ;;  %340 = vmatpush.msrb.mxu3 %v2834_v47 }
  0x40   :  { %105 = vmatpush.msrb.mxu1 %v2843_v48  ;;  %320 = vmatpush.msrb.mxu2 %v2772_v37 }
  0x41   :  { %106 = vmatmul.f32.vlgmr.msrb.gmra.mxu1 %v2507_v45  ;;  %360 = vmatpush.msrb.mxu0 %v2813_v43 }
  0x42   :  { %229 = vmatpush.msra.mxu1 %v2571_v5  ;;  %321 = vmatpush.msrb.mxu2 %v2791_v40 }
  0x43   :  { %341 = vmatpush.msrb.mxu3 %v2843_v48  ;;  %361 = vmatpush.msrb.mxu0 %v2827_v46 }
  0x44   :  { %230 = vmatpush.msra.mxu1 %v2583_v7  ;;  %443 = vmatpush.msra.mxu2 %v2566_v4 }
  0x46   :  { %231 = vmatpush.msra.mxu1 %v2595_v9  ;;  %444 = vmatpush.msra.mxu2 %v2590_v8 }
  0x48   :  { %232 = vmatpush.msra.mxu1 %v2614_v12  ;;  %445 = vmatpush.msra.mxu2 %v2609_v11 }
  0x4a   :  { %233 = vmatpush.msra.mxu1 %v2633_v15  ;;  %446 = vmatpush.msra.mxu2 %v2628_v14 }
  0x4c   :  { %234 = vmatpush.msra.mxu1 %v2652_v18  ;;  %447 = vmatpush.msra.mxu2 %v2647_v17 }
  0x4e   :  { %235 = vmatpush.msra.mxu1 %v2671_v21  ;;  %448 = vmatpush.msra.mxu2 %v2666_v20 }
  0x50   :  { %236 = vmatpush.msra.mxu1 %v2690_v24  ;;  %449 = vmatpush.msra.mxu2 %v2685_v23 }
  0x52   :  { %237 = vmatpush.msra.mxu1 %v2709_v27  ;;  %450 = vmatpush.msra.mxu2 %v2704_v26 }
  0x54   :  { %238 = vmatpush.msra.mxu1 %v2728_v30  ;;  %451 = vmatpush.msra.mxu2 %v2723_v29 }
  0x56   :  { %239 = vmatpush.msra.mxu1 %v2747_v33  ;;  %452 = vmatpush.msra.mxu2 %v2742_v32 }
  0x58   :  { %240 = vmatpush.msra.mxu1 %v2766_v36  ;;  %453 = vmatpush.msra.mxu2 %v2761_v35 }
  0x5a   :  { %241 = vmatpush.msra.mxu1 %v2785_v39  ;;  %454 = vmatpush.msra.mxu2 %v2780_v38 }
  0x5c   :  { %242 = vmatpush.msra.mxu1 %v2804_v42  ;;  %455 = vmatpush.msra.mxu2 %v2799_v41 }
  0x5e   :  { %243 = vmatpush.msra.mxu1 %v2813_v43  ;;  %456 = vmatpush.msra.mxu2 %v2820_v44 }
  0x60   :  { %244 = vmatpush.msra.mxu1 %v2827_v46  ;;  %457 = vmatpush.msra.mxu2 %v2834_v47 }
  0x62   :  { %423 = vmatpush.msrb.mxu1 %v2541_v0  ;;  %458 = vmatpush.msra.mxu2 %v2843_v48 }
  0x64   :  { %424 = vmatpush.msrb.mxu1 %v2546_v1 }
  0x66   :  { %425 = vmatpush.msrb.mxu1 %v2553_v2 }
  0x68   :  { %426 = vmatpush.msrb.mxu1 %v2560_v3 }
  0x6a   :  { %427 = vmatpush.msrb.mxu1 %v2577_v6 }
  0x6c   :  { %428 = vmatpush.msrb.mxu1 %v2601_v10 }
  0x6e   :  { %429 = vmatpush.msrb.mxu1 %v2620_v13 }
  0x70   :  { %430 = vmatpush.msrb.mxu1 %v2639_v16 }
  0x72   :  { %431 = vmatpush.msrb.mxu1 %v2658_v19 }
  0x74   :  { %432 = vmatpush.msrb.mxu1 %v2677_v22 }
  0x76   :  { %433 = vmatpush.msrb.mxu1 %v2696_v25 }
  0x78   :  { %434 = vmatpush.msrb.mxu1 %v2715_v28 }
  0x7a   :  { %435 = vmatpush.msrb.mxu1 %v2734_v31 }
  0x7c   :  { %436 = vmatpush.msrb.mxu1 %v2753_v34 }
  0x7e   :  { %437 = vmatpush.msrb.mxu1 %v2772_v37 }
  0x80   :  { %438 = vmatpush.msrb.mxu1 %v2791_v40 }
  0x9e   :  { %v87_v50 = vpop.f32.mrf.mxu1 }
  0x9f   :  { %v130_v51 = vadd.f32 %v87_v50, %v69_v49  ;;  %v2963_v50 = vld [vmem:[%s4371_s2] ss:$0 sm:$0xff] }
  0xa1   :  { %v2178_v52 = vmul.f32 -1.442695, %v130_v51 }
  0xa3   :  { %2232 = vpow2.f32 %v2178_v52 }
  0xa6   :  { %v127_v52 = vpop.f32.mrf.mxu2 }
  0xa9   :  { %v2233_v53 = vpop.eup %2232 }
  0xaa   :  { %v134_v54 = vadd.f32 1.0, %v2233_v53 }
  0xac   :  { %2234 = vrcp.f32 %v134_v54  ;;  %vm140_vm0 = vweird.f32 %v134_v54  ;;  %v146_v63 = vand.u32 2147483648, %v134_v54  ;;  %v144_v48 = vand.u32 2147483647, %v134_v54 }
  0xae   :  { %v147_v53 = vor.u32 1.1754944e-38, %v146_v63  ;;  %vm145_vm3 = vcmp.eq.f32.partialorder %v144_v48, 8.507059e+37 }
  0xb2   :  { %v2235_v55 = vpop.eup %2234 }
  0xb3   :  { %v136_v56 = vmul.f32 %v2235_v55, %v134_v54  ;;  %vm141_vm1 = vweird.f32 %v2235_v55 }
  0xb4   :  { %vm142_vm2 = vmor %vm140_vm0, %vm141_vm1 }
  0xb5   :  { %v137_v59 = vsub.f32 1.0, %v136_v56 }
  0xb7   :  { %v138_v62 = vmul.f32 %v2235_v55, %v137_v59  ;;  %v178_v59 = vrot.slane %v69_v49, 4 }
  0xb9   :  { %v139_v45 = vadd.f32 %v2235_v55, %v138_v62 }
  0xbb   :  { %v143_v56 = vsel %vm142_vm2, %v2235_v55, %v139_v45 }
  0xbe   :  { %v107_v58 = vpop.f32.mrf.mxu1 }
  0xbf   :  { %v153_v60 = vadd.f32 %v151_v57, %v107_v58  ;;  %v176_v57 = vadd.f32 %v2963_v50, %v127_v52  ;;  %v148_v58 = vsel %vm145_vm3, %v147_v53, %v143_v56  ;;  %v4444_v56 = vld [vmem:[#allocation5_spill] sm:$0xff] }
  0xc1   :  { %v2179_v61 = vmul.f32 -1.442695, %v153_v60  ;;  %v177_v60 = vmul.f32 %v176_v57, %v148_v58  ;;  %v4445_v57 = vld [vmem:[#allocation11_spill] sm:$0xff] }
  0xc2   :  { %v2180_v58 = vld [vmem:[%s4372_s0 + $0x6] sm:$0x3f] }
  0xc3   :  { %2236 = vpow2.f32 %v2179_v61  ;;  %v180_v62 = vadd.f32 %v178_v59, %v177_v60  ;;  %v270_v59 = vrot.slane %v2180_v58, 2 }
  0xc9   :  { %v2237_v51 = vpop.eup %2236 }
  0xca   :  { %v157_v40 = vadd.f32 1.0, %v2237_v51 }
  0xcc   :  { %2238 = vrcp.f32 %v157_v40  ;;  %v169_v47 = vand.u32 2147483648, %v157_v40  ;;  %v167_v43 = vand.u32 2147483647, %v157_v40  ;;  %vm163_vm5 = vweird.f32 %v157_v40 }
  0xcd   :  { %2240 = vtanh.f32 %v180_v62 }
  0xce   :  { %v170_v55 = vor.u32 1.1754944e-38, %v169_v47  ;;  %vm168_vm7 = vcmp.eq.f32.partialorder %v167_v43, 8.507059e+37  ;;  %v4440_v43 = vld [vmem:[#allocation7_spill] sm:$0xff]  ;;  %v4443_v47 = vld [vmem:[#allocation9_spill] sm:$0xff] }
  0xd2   :  { %v2239_v61 = vpop.eup %2238 }
  0xd3   :  { %v159_v54 = vmul.f32 %v2239_v61, %v157_v40  ;;  %vm164_vm4 = vweird.f32 %v2239_v61  ;;  %v2241_v51 = vpop.eup %2240  ;;  %v4439_v40 = vld [vmem:[#allocation8_spill] sm:$0xff] }
  0xd4   :  { %vm165_vm6 = vmor %vm163_vm5, %vm164_vm4 }
  0xd5   :  { %v160_v46 = vsub.f32 1.0, %v159_v54 }
  0xd7   :  { %v161_v37 = vmul.f32 %v2239_v61, %v160_v46  ;;  %v4442_v46 = vld [vmem:[#allocation10_spill] sm:$0xff] }
  0xd9   :  { %v162_v44 = vadd.f32 %v2239_v61, %v161_v37 }
  0xdb   :  { %v166_v48 = vsel %vm165_vm6, %v2239_v61, %v162_v44  ;;  %v4441_v44 = vld [vmem:[#allocation4_spill] sm:$0xff] }
  0xdc   :  { %v171_v63 = vsel %vm168_vm7, %v170_v55, %v166_v48 }
  0xdd   :  { %v182_v45 = vsub.f32 1.0, %v171_v63  ;;  %v184_v52 = vmul.f32 0.0, %v171_v63 }
  0xdf   :  { %v183_v49 = vmul.f32 %v2241_v51, %v182_v45 }
  0xe1   :  { %v2966_v53 = vadd.f32 %v184_v52, %v183_v49 }
  0xe3   :  { %186 = vst [vmem:[#allocation2] sm:$0x3] %v2966_v53  ;;  %205 = vmatmul.f32.vlgmr.msra.gmra.mxu3 %v2966_v53  ;;  %225 = vmatmul.f32.vlgmr.msra.gmra.mxu0 %v2966_v53 }
  0xe4   :  { %245 = vmatmul.f32.vlgmr.msra.gmra.mxu1 %v2966_v53  ;;  %463 = vmatpush.msra.mxu3 %v2571_v5 }
  0xe5   :  { %540 = vmatpush.msra.mxu0 %v2541_v0  ;;  %560 = vmatpush.msra.mxu1 %v2566_v4 }
  0xe6   :  { %464 = vmatpush.msra.mxu3 %v2583_v7 }
  0xe7   :  { %541 = vmatpush.msra.mxu0 %v2546_v1  ;;  %561 = vmatpush.msra.mxu1 %v2590_v8 }
  0xe8   :  { %465 = vmatpush.msra.mxu3 %v2595_v9 }
  0xe9   :  { %542 = vmatpush.msra.mxu0 %v2553_v2  ;;  %562 = vmatpush.msra.mxu1 %v2609_v11 }
  0xea   :  { %466 = vmatpush.msra.mxu3 %v2614_v12  ;;  %v1942_v37 = vld [vmem:[#allocation2] sm:$0x3] }
  0xeb   :  { %543 = vmatpush.msra.mxu0 %v2560_v3  ;;  %563 = vmatpush.msra.mxu1 %v2628_v14  ;;  %1994 = vst [vmem:[#allocation1] ss:$4 sm:$0xff] %v1942_v37 }
  0xec   :  { %467 = vmatpush.msra.mxu3 %v2633_v15 }
  0xed   :  { %544 = vmatpush.msra.mxu0 %v2577_v6  ;;  %564 = vmatpush.msra.mxu1 %v2647_v17 }
  0xee   :  { %468 = vmatpush.msra.mxu3 %v2652_v18 }
  0xef   :  { %545 = vmatpush.msra.mxu0 %v2601_v10  ;;  %565 = vmatpush.msra.mxu1 %v2666_v20 }
  0xf0   :  { %469 = vmatpush.msra.mxu3 %v2671_v21 }
  0xf1   :  { %546 = vmatpush.msra.mxu0 %v2620_v13  ;;  %566 = vmatpush.msra.mxu1 %v2685_v23 }
  0xf2   :  { %470 = vmatpush.msra.mxu3 %v2690_v24 }
  0xf3   :  { %547 = vmatpush.msra.mxu0 %v2639_v16  ;;  %567 = vmatpush.msra.mxu1 %v2704_v26 }
  0xf4   :  { %471 = vmatpush.msra.mxu3 %v2709_v27 }
  0xf5   :  { %548 = vmatpush.msra.mxu0 %v2658_v19  ;;  %568 = vmatpush.msra.mxu1 %v2723_v29 }
  0xf6   :  { %472 = vmatpush.msra.mxu3 %v2728_v30 }
  0xf7   :  { %549 = vmatpush.msra.mxu0 %v2677_v22  ;;  %569 = vmatpush.msra.mxu1 %v2742_v32 }
  0xf8   :  { %473 = vmatpush.msra.mxu3 %v2747_v33 }
  0xf9   :  { %550 = vmatpush.msra.mxu0 %v2696_v25  ;;  %570 = vmatpush.msra.mxu1 %v2761_v35 }
  0xfa   :  { %474 = vmatpush.msra.mxu3 %v2766_v36 }
  0xfb   :  { %551 = vmatpush.msra.mxu0 %v2715_v28  ;;  %571 = vmatpush.msra.mxu1 %v2780_v38 }
  0xfc   :  { %475 = vmatpush.msra.mxu3 %v2785_v39 }
  0xfd   :  { %552 = vmatpush.msra.mxu0 %v2734_v31  ;;  %572 = vmatpush.msra.mxu1 %v2799_v41 }
  0xfe   :  { %476 = vmatpush.msra.mxu3 %v2804_v42 }
  0xff   :  { %553 = vmatpush.msra.mxu0 %v2753_v34  ;;  %573 = vmatpush.msra.mxu1 %v4439_v40 }
 0x100   :  { %477 = vmatpush.msra.mxu3 %v4440_v43 }
 0x101   :  { %554 = vmatpush.msra.mxu0 %v4441_v44  ;;  %574 = vmatpush.msra.mxu1 %v4442_v46 }
 0x102   :  { %478 = vmatpush.msra.mxu3 %v4443_v47 }
 0x103   :  { %555 = vmatpush.msra.mxu0 %v4444_v56  ;;  %575 = vmatpush.msra.mxu1 %v4445_v57 }
 0x160   :  { %v226_v60 = vpop.f32.mrf.mxu0 }
 0x161   :  { %v272_v61 = vadd.f32 %v270_v59, %v226_v60 }
 0x163   :  { %v2182_v54 = vmul.f32 -1.442695, %v272_v61 }
 0x165   :  { %2242 = vpow2.f32 %v2182_v54  ;;  %v246_v54 = vpop.f32.mrf.mxu1 }
 0x166   :  { %v206_v62 = vpop.f32.mrf.mxu3 }
 0x167   :  { %v249_v55 = vadd.f32 %v2180_v58, %v206_v62 }
 0x169   :  { %v2181_v48 = vmul.f32 -1.442695, %v249_v55 }
 0x16b   :  { %v2243_v63 = vpop.eup %2242  ;;  %2244 = vpow2.f32 %v2181_v48  ;;  %v294_v48 = vrot.slane %v2180_v58, 4 }
 0x16c   :  { %v276_v45 = vadd.f32 1.0, %v2243_v63  ;;  %v292_v63 = vadd.f32 %v2963_v50, %v246_v54 }
 0x16e   :  { %2246 = vrcp.f32 %v276_v45  ;;  %vm282_vm13 = vweird.f32 %v276_v45 }
 0x171   :  { %v2245_v51 = vpop.eup %2244 }
 0x172   :  { %v253_v49 = vadd.f32 1.0, %v2245_v51 }
 0x174   :  { %2248 = vrcp.f32 %v253_v49  ;;  %v2247_v52 = vpop.eup %2246  ;;  %v265_v44 = vand.u32 2147483648, %v253_v49  ;;  %v263_v60 = vand.u32 2147483647, %v253_v49  ;;  %vm259_vm9 = vweird.f32 %v253_v49 }
 0x175   :  { %v278_v37 = vmul.f32 %v2247_v52, %v276_v45  ;;  %vm283_vm12 = vweird.f32 %v2247_v52 }
 0x176   :  { %v266_v55 = vor.u32 1.1754944e-38, %v265_v44  ;;  %vm264_vm11 = vcmp.eq.f32.partialorder %v263_v60, 8.507059e+37  ;;  %vm284_vm14 = vmor %vm282_vm13, %vm283_vm12 }
 0x177   :  { %v279_v47 = vsub.f32 1.0, %v278_v37  ;;  %v288_v37 = vand.u32 2147483648, %v276_v45 }
 0x179   :  { %v280_v61 = vmul.f32 %v2247_v52, %v279_v47  ;;  %v289_v42 = vor.u32 1.1754944e-38, %v288_v37 }
 0x17a   :  { %v2249_v57 = vpop.eup %2248 }
 0x17b   :  { %v255_v56 = vmul.f32 %v2249_v57, %v253_v49  ;;  %vm260_vm8 = vweird.f32 %v2249_v57  ;;  %v281_v43 = vadd.f32 %v2247_v52, %v280_v61 }
 0x17c   :  { %vm261_vm10 = vmor %vm259_vm9, %vm260_vm8 }
 0x17d   :  { %v256_v46 = vsub.f32 1.0, %v255_v56  ;;  %v285_v47 = vsel %vm284_vm14, %v2247_v52, %v281_v43  ;;  %v4453_v43 = vld [vmem:[#allocation5_spill] sm:$0xff]  ;;  %v2183_v52 = vld [vmem:[%s4372_s0 + $0xc] sm:$0x3f] }
 0x17e   :  { %v387_v61 = vrot.slane %v2183_v52, 2 }
 0x17f   :  { %v257_v59 = vmul.f32 %v2249_v57, %v256_v46  ;;  %v286_v46 = vand.u32 2147483647, %v276_v45  ;;  %v4454_v45 = vld [vmem:[#allocation11_spill] sm:$0xff] }
 0x181   :  { %v258_v62 = vadd.f32 %v2249_v57, %v257_v59  ;;  %vm287_vm15 = vcmp.eq.f32.partialorder %v286_v46, 8.507059e+37 }
 0x182   :  { %v290_v49 = vsel %vm287_vm15, %v289_v42, %v285_v47  ;;  %v4450_v42 = vld [vmem:[#allocation4_spill] sm:$0xff] }
 0x183   :  { %v262_v51 = vsel %vm261_vm10, %v2249_v57, %v258_v62  ;;  %v298_v44 = vsub.f32 1.0, %v290_v49  ;;  %v300_v57 = vmul.f32 %v290_v49, %v2966_v53  ;;  %v4451_v53 = vld [vmem:[#allocation10_spill] sm:$0xff] }
 0x184   :  { %v267_v40 = vsel %vm264_vm11, %v266_v55, %v262_v51 }
 0x185   :  { %v293_v56 = vmul.f32 %v292_v63, %v267_v40  ;;  %v4452_v40 = vld [vmem:[#allocation9_spill] sm:$0xff] }
 0x187   :  { %v296_v34 = vadd.f32 %v294_v48, %v293_v56 }
 0x189   :  { %2250 = vtanh.f32 %v296_v34 }
 0x18f   :  { %v2251_v58 = vpop.eup %2250 }
 0x190   :  { %v299_v59 = vmul.f32 %v2251_v58, %v298_v44 }
 0x192   :  { %v3025_v60 = vadd.f32 %v300_v57, %v299_v59 }
 0x194   :  { %303 = vst [vmem:[#allocation2 + $0x2] sm:$0x3] %v3025_v60  ;;  %322 = vmatmul.f32.vlgmr.msrb.gmra.mxu2 %v3025_v60  ;;  %342 = vmatmul.f32.vlgmr.msrb.gmra.mxu3 %v3025_v60 }
 0x195   :  { %362 = vmatmul.f32.vlgmr.msrb.gmra.mxu0 %v3025_v60  ;;  %580 = vmatpush.msrb.mxu2 %v2571_v5 }
 0x196   :  { %657 = vmatpush.msrb.mxu3 %v2541_v0  ;;  %677 = vmatpush.msrb.mxu0 %v2566_v4 }
 0x197   :  { %581 = vmatpush.msrb.mxu2 %v2583_v7 }
 0x198   :  { %658 = vmatpush.msrb.mxu3 %v2546_v1  ;;  %678 = vmatpush.msrb.mxu0 %v2590_v8  ;;  %v4446_v1 = vld [vmem:[#allocation6_spill] sm:$0xff] }
 0x199   :  { %582 = vmatpush.msrb.mxu2 %v2595_v9 }
 0x19a   :  { %659 = vmatpush.msrb.mxu3 %v2553_v2  ;;  %679 = vmatpush.msrb.mxu0 %v2609_v11  ;;  %v4447_v2 = vld [vmem:[#allocation3_spill] sm:$0xff] }
 0x19b   :  { %583 = vmatpush.msrb.mxu2 %v2614_v12  ;;  %v1943_v34 = vld [vmem:[#allocation2 + $0x2] sm:$0x3] }
 0x19c   :  { %660 = vmatpush.msrb.mxu3 %v2560_v3  ;;  %680 = vmatpush.msrb.mxu0 %v2628_v14  ;;  %1996 = vst [vmem:[#allocation1 + $0x1] ss:$4 sm:$0xff] %v1943_v34  ;;  %v4448_v3 = vld [vmem:[#allocation8_spill] sm:$0xff] }
 0x19d   :  { %584 = vmatpush.msrb.mxu2 %v2633_v15 }
 0x19e   :  { %661 = vmatpush.msrb.mxu3 %v2577_v6  ;;  %681 = vmatpush.msrb.mxu0 %v2647_v17  ;;  %v4449_v6 = vld [vmem:[#allocation7_spill] sm:$0xff] }
 0x19f   :  { %585 = vmatpush.msrb.mxu2 %v2652_v18 }
 0x1a0   :  { %662 = vmatpush.msrb.mxu3 %v2601_v10  ;;  %682 = vmatpush.msrb.mxu0 %v2666_v20 }
 0x1a1   :  { %586 = vmatpush.msrb.mxu2 %v2671_v21 }
 0x1a2   :  { %663 = vmatpush.msrb.mxu3 %v2620_v13  ;;  %683 = vmatpush.msrb.mxu0 %v2685_v23 }
 0x1a3   :  { %587 = vmatpush.msrb.mxu2 %v2690_v24 }
 0x1a4   :  { %664 = vmatpush.msrb.mxu3 %v2639_v16  ;;  %684 = vmatpush.msrb.mxu0 %v2704_v26 }
 0x1a5   :  { %588 = vmatpush.msrb.mxu2 %v2709_v27 }
 0x1a6   :  { %665 = vmatpush.msrb.mxu3 %v2658_v19  ;;  %685 = vmatpush.msrb.mxu0 %v2723_v29 }
 0x1a7   :  { %589 = vmatpush.msrb.mxu2 %v2728_v30 }
 0x1a8   :  { %666 = vmatpush.msrb.mxu3 %v2677_v22  ;;  %686 = vmatpush.msrb.mxu0 %v2742_v32 }
 0x1a9   :  { %590 = vmatpush.msrb.mxu2 %v2747_v33 }
 0x1aa   :  { %667 = vmatpush.msrb.mxu3 %v2696_v25  ;;  %687 = vmatpush.msrb.mxu0 %v2761_v35 }
 0x1ab   :  { %591 = vmatpush.msrb.mxu2 %v2766_v36 }
 0x1ac   :  { %668 = vmatpush.msrb.mxu3 %v2715_v28  ;;  %688 = vmatpush.msrb.mxu0 %v2780_v38 }
 0x1ad   :  { %592 = vmatpush.msrb.mxu2 %v2785_v39 }
 0x1ae   :  { %669 = vmatpush.msrb.mxu3 %v2734_v31  ;;  %689 = vmatpush.msrb.mxu0 %v2799_v41 }
 0x1af   :  { %593 = vmatpush.msrb.mxu2 %v4446_v1 }
 0x1b0   :  { %670 = vmatpush.msrb.mxu3 %v4447_v2  ;;  %690 = vmatpush.msrb.mxu0 %v4448_v3 }
 0x1b1   :  { %594 = vmatpush.msrb.mxu2 %v4449_v6 }
 0x1b2   :  { %671 = vmatpush.msrb.mxu3 %v4450_v42  ;;  %691 = vmatpush.msrb.mxu0 %v4451_v53 }
 0x1b3   :  { %595 = vmatpush.msrb.mxu2 %v4452_v40 }
 0x1b4   :  { %672 = vmatpush.msrb.mxu3 %v4453_v43  ;;  %692 = vmatpush.msrb.mxu0 %v4454_v45 }
 0x217   :  { %v323_v54 = vpop.f32.mrf.mxu2  ;;  %v343_v62 = vpop.f32.mrf.mxu3 }
 0x218   :  { %v366_v55 = vadd.f32 %v2183_v52, %v323_v54  ;;  %v389_v48 = vadd.f32 %v387_v61, %v343_v62  ;;  %v363_v54 = vpop.f32.mrf.mxu0 }
 0x21a   :  { %v2184_v63 = vmul.f32 -1.442695, %v366_v55  ;;  %v2185_v51 = vmul.f32 -1.442695, %v389_v48 }
 0x21c   :  { %2252 = vpow2.f32 %v2184_v63  ;;  %v409_v63 = vadd.f32 %v2963_v50, %v363_v54 }
 0x21d   :  { %2254 = vpow2.f32 %v2185_v51 }
 0x222   :  { %v2253_v37 = vpop.eup %2252 }
 0x223   :  { %v2255_v56 = vpop.eup %2254  ;;  %v370_v46 = vadd.f32 1.0, %v2253_v37  ;;  %v411_v37 = vrot.slane %v2183_v52, 4 }
 0x224   :  { %v393_v47 = vadd.f32 1.0, %v2255_v56 }
 0x225   :  { %2256 = vrcp.f32 %v370_v46  ;;  %v382_v34 = vand.u32 2147483648, %v370_v46  ;;  %v380_v61 = vand.u32 2147483647, %v370_v46  ;;  %vm376_vm1 = vweird.f32 %v370_v46 }
 0x226   :  { %2258 = vrcp.f32 %v393_v47  ;;  %v405_v53 = vand.u32 2147483648, %v393_v47  ;;  %vm399_vm5 = vweird.f32 %v393_v47 }
 0x227   :  { %v383_v48 = vor.u32 1.1754944e-38, %v382_v34  ;;  %vm381_vm3 = vcmp.eq.f32.partialorder %v380_v61, 8.507059e+37 }
 0x22b   :  { %v2257_v49 = vpop.eup %2256 }
 0x22c   :  { %v2259_v44 = vpop.eup %2258  ;;  %v372_v58 = vmul.f32 %v2257_v49, %v370_v46  ;;  %vm377_vm0 = vweird.f32 %v2257_v49 }
 0x22d   :  { %v395_v59 = vmul.f32 %v2259_v44, %v393_v47  ;;  %vm378_vm2 = vmor %vm376_vm1, %vm377_vm0  ;;  %vm400_vm4 = vweird.f32 %v2259_v44 }
 0x22e   :  { %v373_v57 = vsub.f32 1.0, %v372_v58  ;;  %vm401_vm6 = vmor %vm399_vm5, %vm400_vm4 }
 0x22f   :  { %v396_v45 = vsub.f32 1.0, %v395_v59  ;;  %v403_v59 = vand.u32 2147483647, %v393_v47 }
 0x230   :  { %v374_v43 = vmul.f32 %v2257_v49, %v373_v57 }
 0x231   :  { %v397_v62 = vmul.f32 %v2259_v44, %v396_v45  ;;  %vm404_vm7 = vcmp.eq.f32.partialorder %v403_v59, 8.507059e+37  ;;  %v3184_v59 = vld [vmem:[%s4370_s1 + $0x170] sm:$0xff] }
 0x232   :  { %v375_v55 = vadd.f32 %v2257_v49, %v374_v43  ;;  %v406_v43 = vor.u32 1.1754944e-38, %v405_v53 }
 0x233   :  { %v398_v40 = vadd.f32 %v2259_v44, %v397_v62 }
 0x234   :  { %v379_v51 = vsel %vm378_vm2, %v2257_v49, %v375_v55 }
 0x235   :  { %v384_v56 = vsel %vm381_vm3, %v383_v48, %v379_v51  ;;  %v402_v42 = vsel %vm401_vm6, %v2259_v44, %v398_v40 }
 0x236   :  { %v410_v58 = vmul.f32 %v409_v63, %v384_v56  ;;  %v407_v45 = vsel %vm404_vm7, %v406_v43, %v402_v42  ;;  %v3172_v56 = vld [vmem:[%s4370_s1 + $0x178] sm:$0xff] }
 0x237   :  { %v415_v46 = vsub.f32 1.0, %v407_v45  ;;  %v417_v49 = vmul.f32 %v407_v45, %v3025_v60  ;;  %v3097_v60 = vld [vmem:[%s4370_s1 + $0x150] sm:$0xff]  ;;  %v3197_v43 = vld [vmem:[%s4370_s1 + $0x158] sm:$0xff]  ;;  %v3203_v45 = vld [vmem:[%s4370_s1 + $0x148] sm:$0xff] }
 0x238   :  { %v413_v57 = vadd.f32 %v411_v37, %v410_v58  ;;  %v3178_v58 = vld [vmem:[%s4370_s1 + $0x168] sm:$0xff] }
 0x23a   :  { %2260 = vtanh.f32 %v413_v57  ;;  %v3190_v57 = vld [vmem:[%s4370_s1 + $0x160] sm:$0xff] }
 0x240   :  { %v2261_v34 = vpop.eup %2260 }
 0x241   :  { %v416_v54 = vmul.f32 %v2261_v34, %v415_v46  ;;  %v3210_v46 = vld [vmem:[%s4370_s1 + $0x140] sm:$0xff]  ;;  %v3216_v34 = vld [vmem:[%s4370_s1 + $0x130] sm:$0xff] }
 0x243   :  { %v3084_v52 = vadd.f32 %v417_v49, %v416_v54  ;;  %v3223_v49 = vld [vmem:[%s4370_s1 + $0x128] sm:$0xff] }
 0x245   :  { %420 = vst [vmem:[#allocation2 + $0x4] sm:$0x3] %v3084_v52  ;;  %439 = vmatmul.f32.vlgmr.msrb.gmra.mxu1 %v3084_v52  ;;  %459 = vmatmul.f32.vlgmr.msra.gmra.mxu2 %v3084_v52 }
 0x246   :  { %479 = vmatmul.f32.vlgmr.msra.gmra.mxu3 %v3084_v52  ;;  %697 = vmatpush.msrb.mxu1 %v2571_v5  ;;  %v3105_v5 = vld [vmem:[%s4370_s1 + $0x138] sm:$0xff] }
 0x247   :  { %774 = vmatpush.msra.mxu2 %v2541_v0  ;;  %794 = vmatpush.msra.mxu3 %v2566_v4  ;;  %v3113_v4 = vld [vmem:[%s4370_s1 + $0x120] sm:$0xff] }
 0x248   :  { %698 = vmatpush.msrb.mxu1 %v2583_v7  ;;  %v3121_v7 = vld [vmem:[%s4370_s1 + $0x108] sm:$0xff] }
 0x249   :  { %775 = vmatpush.msra.mxu2 %v3097_v60  ;;  %795 = vmatpush.msra.mxu3 %v2590_v8  ;;  %v4455_v8 = vld [vmem:[#allocation4_spill] sm:$0xff] }
 0x24a   :  { %699 = vmatpush.msrb.mxu1 %v2595_v9  ;;  %v4456_v9 = vld [vmem:[#allocation10_spill] sm:$0xff] }
 0x24b   :  { %776 = vmatpush.msra.mxu2 %v3105_v5  ;;  %796 = vmatpush.msra.mxu3 %v2609_v11  ;;  %v4458_v11 = vld [vmem:[#allocation5_spill] sm:$0xff] }
 0x24c   :  { %700 = vmatpush.msrb.mxu1 %v2614_v12  ;;  %v1944_v0 = vld [vmem:[#allocation2 + $0x4] sm:$0x3] }
 0x24d   :  { %777 = vmatpush.msra.mxu2 %v3113_v4  ;;  %797 = vmatpush.msra.mxu3 %v2628_v14  ;;  %1998 = vst [vmem:[#allocation1 + $0x2] ss:$4 sm:$0xff] %v1944_v0  ;;  %v4459_v12 = vld [vmem:[#allocation11_spill] sm:$0xff]  ;;  %v3236_v0 = vld [vmem:[%s4370_s1 + $0x110] sm:$0xff] }
 0x24e   :  { %701 = vmatpush.msrb.mxu1 %v2633_v15 }
 0x24f   :  { %778 = vmatpush.msra.mxu2 %v3121_v7  ;;  %798 = vmatpush.msra.mxu3 %v2647_v17 }
 0x250   :  { %702 = vmatpush.msrb.mxu1 %v2652_v18 }
 0x251   :  { %779 = vmatpush.msra.mxu2 %v2601_v10  ;;  %799 = vmatpush.msra.mxu3 %v2666_v20  ;;  %v4457_v10 = vld [vmem:[#allocation9_spill] sm:$0xff] }
 0x252   :  { %703 = vmatpush.msrb.mxu1 %v2671_v21 }
 0x253   :  { %780 = vmatpush.msra.mxu2 %v2620_v13  ;;  %800 = vmatpush.msra.mxu3 %v2685_v23  ;;  %v2186_v13 = vld [vmem:[%s4372_s0 + $0x12] sm:$0x3f] }
 0x254   :  { %704 = vmatpush.msrb.mxu1 %v2690_v24  ;;  %v504_v17 = vrot.slane %v2186_v13, 2 }
 0x255   :  { %781 = vmatpush.msra.mxu2 %v2639_v16  ;;  %801 = vmatpush.msra.mxu3 %v2704_v26 }
 0x256   :  { %705 = vmatpush.msrb.mxu1 %v2709_v27 }
 0x257   :  { %782 = vmatpush.msra.mxu2 %v2658_v19  ;;  %802 = vmatpush.msra.mxu3 %v2723_v29 }
 0x258   :  { %706 = vmatpush.msrb.mxu1 %v2728_v30 }
 0x259   :  { %783 = vmatpush.msra.mxu2 %v2677_v22  ;;  %803 = vmatpush.msra.mxu3 %v2742_v32 }
 0x25a   :  { %707 = vmatpush.msrb.mxu1 %v2747_v33 }
 0x25b   :  { %784 = vmatpush.msra.mxu2 %v2696_v25  ;;  %804 = vmatpush.msra.mxu3 %v2761_v35 }
 0x25c   :  { %708 = vmatpush.msrb.mxu1 %v2766_v36  ;;  %v528_v36 = vrot.slane %v2186_v13, 4 }
 0x25d   :  { %785 = vmatpush.msra.mxu2 %v2715_v28  ;;  %805 = vmatpush.msra.mxu3 %v2780_v38 }
 0x25e   :  { %709 = vmatpush.msrb.mxu1 %v2785_v39 }
 0x25f   :  { %786 = vmatpush.msra.mxu2 %v2734_v31  ;;  %806 = vmatpush.msra.mxu3 %v2799_v41 }
 0x260   :  { %710 = vmatpush.msrb.mxu1 %v4446_v1 }
 0x261   :  { %787 = vmatpush.msra.mxu2 %v4447_v2  ;;  %807 = vmatpush.msra.mxu3 %v4448_v3 }
 0x262   :  { %711 = vmatpush.msrb.mxu1 %v4449_v6 }
 0x263   :  { %788 = vmatpush.msra.mxu2 %v4455_v8  ;;  %808 = vmatpush.msra.mxu3 %v4456_v9  ;;  %v3242_v8 = vld [vmem:[%s4370_s1 + $0x100] sm:$0xff]  ;;  %v3248_v9 = vld [vmem:[%s4370_s1 + $0xf0] sm:$0xff] }
 0x264   :  { %712 = vmatpush.msrb.mxu1 %v4457_v10  ;;  %v3254_v10 = vld [vmem:[%s4370_s1 + $0xf8] sm:$0xff] }
 0x265   :  { %789 = vmatpush.msra.mxu2 %v4458_v11  ;;  %809 = vmatpush.msra.mxu3 %v4459_v12  ;;  %v3260_v11 = vld [vmem:[%s4370_s1 + $0xe8] sm:$0xff]  ;;  %v3266_v12 = vld [vmem:[%s4370_s1 + $0xd8] sm:$0xff] }
 0x2c2   :  { %v440_v14 = vpop.f32.mrf.mxu1 }
 0x2c3   :  { %v483_v15 = vadd.f32 %v2186_v13, %v440_v14  ;;  %v3272_v13 = vld [vmem:[%s4370_s1 + $0xe0] sm:$0xff]  ;;  %v3278_v14 = vld [vmem:[%s4370_s1 + $0xd0] sm:$0xff] }
 0x2c5   :  { %v2187_v16 = vmul.f32 -1.442695, %v483_v15  ;;  %v3284_v15 = vld [vmem:[%s4370_s1 + $0xc0] sm:$0xff] }
 0x2c7   :  { %2262 = vpow2.f32 %v2187_v16  ;;  %v3290_v16 = vld [vmem:[%s4370_s1 + $0xc8] sm:$0xff] }
 0x2c8   :  { %v460_v18 = vpop.f32.mrf.mxu2 }
 0x2c9   :  { %v506_v19 = vadd.f32 %v504_v17, %v460_v18  ;;  %v480_v32 = vpop.f32.mrf.mxu3  ;;  %v3296_v17 = vld [vmem:[%s4370_s1 + $0xb8] sm:$0xff]  ;;  %v3302_v18 = vld [vmem:[%s4370_s1 + $0xa8] sm:$0xff] }
 0x2ca   :  { %v526_v1 = vadd.f32 %v2963_v50, %v480_v32  ;;  %v3386_v32 = vld [vmem:[%s4370_s1 + $0x40] sm:$0xff] }
 0x2cb   :  { %v2188_v20 = vmul.f32 -1.442695, %v506_v19  ;;  %v3308_v19 = vld [vmem:[%s4370_s1 + $0xb0] sm:$0xff]  ;;  %4460 = vst [vmem:[#allocation6_spill] sm:$0xff] %v3386_v32 }
 0x2cd   :  { %v2263_v21 = vpop.eup %2262  ;;  %2264 = vpow2.f32 %v2188_v20  ;;  %v3314_v20 = vld [vmem:[%s4370_s1 + $0xa0] sm:$0xff] }
 0x2ce   :  { %v487_v22 = vadd.f32 1.0, %v2263_v21  ;;  %v3320_v21 = vld [vmem:[%s4370_s1 + $0x90] sm:$0xff] }
 0x2d0   :  { %2266 = vrcp.f32 %v487_v22  ;;  %v499_v28 = vand.u32 2147483648, %v487_v22  ;;  %v497_v30 = vand.u32 2147483647, %v487_v22  ;;  %vm493_vm9 = vweird.f32 %v487_v22 }
 0x2d2   :  { %v500_v38 = vor.u32 1.1754944e-38, %v499_v28  ;;  %vm498_vm11 = vcmp.eq.f32.partialorder %v497_v30, 8.507059e+37  ;;  %v3362_v28 = vld [vmem:[%s4370_s1 + $0x68] sm:$0xff] }
 0x2d3   :  { %v2265_v23 = vpop.eup %2264  ;;  %v3374_v30 = vld [vmem:[%s4370_s1 + $0x48] sm:$0xff] }
 0x2d4   :  { %v510_v24 = vadd.f32 1.0, %v2265_v23  ;;  %v3332_v23 = vld [vmem:[%s4370_s1 + $0x88] sm:$0xff] }
 0x2d6   :  { %v2267_v25 = vpop.eup %2266  ;;  %2268 = vrcp.f32 %v510_v24  ;;  %v522_v6 = vand.u32 2147483648, %v510_v24  ;;  %v520_v53 = vand.u32 2147483647, %v510_v24  ;;  %vm516_vm13 = vweird.f32 %v510_v24 }
 0x2d7   :  { %v489_v26 = vmul.f32 %v2267_v25, %v487_v22  ;;  %vm494_vm8 = vweird.f32 %v2267_v25  ;;  %v3326_v22 = vld [vmem:[%s4370_s1 + $0x98] sm:$0xff] }
 0x2d8   :  { %vm495_vm10 = vmor %vm493_vm9, %vm494_vm8  ;;  %v523_v44 = vor.u32 1.1754944e-38, %v522_v6  ;;  %vm521_vm15 = vcmp.eq.f32.partialorder %v520_v53, 8.507059e+37 }
 0x2d9   :  { %v490_v27 = vsub.f32 1.0, %v489_v26  ;;  %v3350_v26 = vld [vmem:[%s4370_s1 + $0x70] sm:$0xff] }
 0x2db   :  { %v491_v29 = vmul.f32 %v2267_v25, %v490_v27  ;;  %v3356_v27 = vld [vmem:[%s4370_s1 + $0x60] sm:$0xff] }
 0x2dc   :  { %v2269_v31 = vpop.eup %2268 }
 0x2dd   :  { %v512_v33 = vmul.f32 %v2269_v31, %v510_v24  ;;  %v492_v35 = vadd.f32 %v2267_v25, %v491_v29  ;;  %vm517_vm12 = vweird.f32 %v2269_v31  ;;  %v3338_v24 = vld [vmem:[%s4370_s1 + $0x78] sm:$0xff] }
 0x2de   :  { %vm518_vm14 = vmor %vm516_vm13, %vm517_vm12  ;;  %v3368_v29 = vld [vmem:[%s4370_s1 + $0x58] sm:$0xff] }
 0x2df   :  { %v513_v39 = vsub.f32 1.0, %v512_v33  ;;  %v496_v41 = vsel %vm495_vm10, %v2267_v25, %v492_v35  ;;  %v3344_v25 = vld [vmem:[%s4370_s1 + $0x80] sm:$0xff]  ;;  %v3392_v33 = vld [vmem:[%s4370_s1 + $0x30] sm:$0xff]  ;;  %v3398_v35 = vld [vmem:[%s4370_s1 + $0x38] sm:$0xff] }
 0x2e0   :  { %v501_v2 = vsel %vm498_vm11, %v500_v38, %v496_v41  ;;  %4461 = vst [vmem:[#allocation3_spill] sm:$0xff] %v3392_v33  ;;  %v3410_v38 = vld [vmem:[%s4370_s1 + $0x18] sm:$0xff]  ;;  %v3422_v41 = vld [vmem:[%s4370_s1 + $0x10] sm:$0xff] }
 0x2e1   :  { %v514_v3 = vmul.f32 %v2269_v31, %v513_v39  ;;  %v527_v42 = vmul.f32 %v526_v1, %v501_v2  ;;  %4462 = vst [vmem:[#allocation8_spill] sm:$0xff] %v3398_v35  ;;  %v3416_v39 = vld [vmem:[%s4370_s1 + $0x20] sm:$0xff]  ;;  %v3434_v2 = vld [vmem:[%s4370_s1 + $0x8] sm:$0xff] }
 0x2e2   :  { %4464 = vst [vmem:[#allocation4_spill] sm:$0xff] %v3410_v38  ;;  %v3428_v1 = vld [vmem:[%s4370_s1] sm:$0xff] }
 0x2e3   :  { %v515_v40 = vadd.f32 %v2269_v31, %v514_v3  ;;  %v530_v47 = vadd.f32 %v528_v36, %v527_v42  ;;  %v3404_v36 = vld [vmem:[%s4370_s1 + $0x28] sm:$0xff]  ;;  %4465 = vst [vmem:[#allocation10_spill] sm:$0xff] %v3416_v39  ;;  %v2189_v3 = vld [vmem:[%s4372_s0 + $0x18] sm:$0x3f] }
 0x2e4   :  { %4463 = vst [vmem:[#allocation7_spill] sm:$0xff] %v3404_v36  ;;  %v621_v6 = vrot.slane %v2189_v3, 2 }
 0x2e5   :  { %v519_v61 = vsel %vm518_vm14, %v2269_v31, %v515_v40  ;;  %2270 = vtanh.f32 %v530_v47  ;;  %v3380_v31 = vld [vmem:[%s4370_s1 + $0x50] sm:$0xff]  ;;  %4466 = vst [vmem:[#allocation9_spill] sm:$0xff] %v3422_v41 }
 0x2e6   :  { %v524_v62 = vsel %vm521_vm15, %v523_v44, %v519_v61  ;;  %4467 = vst [vmem:[#allocation5_spill] sm:$0xff] %v3428_v1 }
 0x2e7   :  { %v532_v55 = vsub.f32 1.0, %v524_v62  ;;  %v534_v51 = vmul.f32 %v524_v62, %v3084_v52  ;;  %v3229_v52 = vld [vmem:[%s4370_s1 + $0x118] sm:$0xff]  ;;  %4468 = vst [vmem:[#allocation11_spill] sm:$0xff] %v3434_v2 }
 0x2eb   :  { %v2271_v48 = vpop.eup %2270 }
 0x2ec   :  { %v533_v63 = vmul.f32 %v2271_v48, %v532_v55 }
 0x2ee   :  { %v3163_v37 = vadd.f32 %v534_v51, %v533_v63 }
 0x2f0   :  { %537 = vst [vmem:[#allocation2 + $0x6] sm:$0x3] %v3163_v37  ;;  %556 = vmatmul.f32.vlgmr.msra.gmra.mxu0 %v3163_v37  ;;  %576 = vmatmul.f32.vlgmr.msra.gmra.mxu1 %v3163_v37 }
 0x2f1   :  { %596 = vmatmul.f32.vlgmr.msrb.gmra.mxu2 %v3163_v37  ;;  %814 = vmatpush.msra.mxu0 %v3172_v56 }
 0x2f2   :  { %891 = vmatpush.msra.mxu1 %v3178_v58  ;;  %911 = vmatpush.msrb.mxu2 %v3184_v59 }
 0x2f3   :  { %815 = vmatpush.msra.mxu0 %v3190_v57 }
 0x2f4   :  { %892 = vmatpush.msra.mxu1 %v3097_v60  ;;  %912 = vmatpush.msrb.mxu2 %v3197_v43 }
 0x2f5   :  { %816 = vmatpush.msra.mxu0 %v3203_v45 }
 0x2f6   :  { %893 = vmatpush.msra.mxu1 %v3105_v5  ;;  %913 = vmatpush.msrb.mxu2 %v3210_v46 }
 0x2f7   :  { %817 = vmatpush.msra.mxu0 %v3216_v34  ;;  %v1945_v54 = vld [vmem:[#allocation2 + $0x6] sm:$0x3] }
 0x2f8   :  { %894 = vmatpush.msra.mxu1 %v3113_v4  ;;  %914 = vmatpush.msrb.mxu2 %v3223_v49  ;;  %2000 = vst [vmem:[#allocation1 + $0x3] ss:$4 sm:$0xff] %v1945_v54 }
 0x2f9   :  { %818 = vmatpush.msra.mxu0 %v3229_v52 }
 0x2fa   :  { %895 = vmatpush.msra.mxu1 %v3121_v7  ;;  %915 = vmatpush.msrb.mxu2 %v3236_v0 }
 0x2fb   :  { %819 = vmatpush.msra.mxu0 %v3242_v8 }
 0x2fc   :  { %896 = vmatpush.msra.mxu1 %v3248_v9  ;;  %916 = vmatpush.msrb.mxu2 %v3254_v10 }
 0x2fd   :  { %820 = vmatpush.msra.mxu0 %v3260_v11 }
 0x2fe   :  { %897 = vmatpush.msra.mxu1 %v3266_v12  ;;  %917 = vmatpush.msrb.mxu2 %v3272_v13 }
 0x2ff   :  { %821 = vmatpush.msra.mxu0 %v3278_v14 }
 0x300   :  { %898 = vmatpush.msra.mxu1 %v3284_v15  ;;  %918 = vmatpush.msrb.mxu2 %v3290_v16 }
 0x301   :  { %822 = vmatpush.msra.mxu0 %v3296_v17 }
 0x302   :  { %899 = vmatpush.msra.mxu1 %v3302_v18  ;;  %919 = vmatpush.msrb.mxu2 %v3308_v19 }
 0x303   :  { %823 = vmatpush.msra.mxu0 %v3314_v20 }
 0x304   :  { %900 = vmatpush.msra.mxu1 %v3320_v21  ;;  %920 = vmatpush.msrb.mxu2 %v3326_v22 }
 0x305   :  { %824 = vmatpush.msra.mxu0 %v3332_v23 }
 0x306   :  { %901 = vmatpush.msra.mxu1 %v3338_v24  ;;  %921 = vmatpush.msrb.mxu2 %v3344_v25 }
 0x307   :  { %825 = vmatpush.msra.mxu0 %v3350_v26 }
 0x308   :  { %902 = vmatpush.msra.mxu1 %v3356_v27  ;;  %922 = vmatpush.msrb.mxu2 %v3362_v28 }
 0x309   :  { %826 = vmatpush.msra.mxu0 %v3368_v29 }
 0x30a   :  { %903 = vmatpush.msra.mxu1 %v3374_v30  ;;  %923 = vmatpush.msrb.mxu2 %v3380_v31 }
 0x30b   :  { %827 = vmatpush.msra.mxu0 %v3386_v32 }
 0x30c   :  { %904 = vmatpush.msra.mxu1 %v3392_v33  ;;  %924 = vmatpush.msrb.mxu2 %v3398_v35 }
 0x30d   :  { %828 = vmatpush.msra.mxu0 %v3404_v36 }
 0x30e   :  { %905 = vmatpush.msra.mxu1 %v3410_v38  ;;  %925 = vmatpush.msrb.mxu2 %v3416_v39 }
 0x30f   :  { %829 = vmatpush.msra.mxu0 %v3422_v41 }
 0x310   :  { %906 = vmatpush.msra.mxu1 %v3428_v1  ;;  %926 = vmatpush.msrb.mxu2 %v3434_v2 }
 0x36d   :  { %v557_v42 = vpop.f32.mrf.mxu0  ;;  %v577_v53 = vpop.f32.mrf.mxu1 }
 0x36e   :  { %v600_v40 = vadd.f32 %v2189_v3, %v557_v42  ;;  %v623_v47 = vadd.f32 %v621_v6, %v577_v53 }
 0x370   :  { %v2190_v44 = vmul.f32 -1.442695, %v600_v40  ;;  %v2191_v61 = vmul.f32 -1.442695, %v623_v47 }
 0x372   :  { %2272 = vpow2.f32 %v2190_v44  ;;  %v645_v44 = vrot.slane %v2189_v3, 4 }
 0x373   :  { %2274 = vpow2.f32 %v2191_v61 }
 0x374   :  { %v597_v53 = vpop.f32.mrf.mxu2 }
 0x378   :  { %v2273_v62 = vpop.eup %2272 }
 0x379   :  { %v2275_v55 = vpop.eup %2274  ;;  %v604_v48 = vadd.f32 1.0, %v2273_v62  ;;  %v643_v62 = vadd.f32 %v2963_v50, %v597_v53  ;;  %v4476_v53 = vld [vmem:[#allocation5_spill] sm:$0xff] }
 0x37a   :  { %v627_v63 = vadd.f32 1.0, %v2275_v55 }
 0x37b   :  { %2276 = vrcp.f32 %v604_v48  ;;  %v616_v38 = vand.u32 2147483648, %v604_v48  ;;  %v614_v6 = vand.u32 2147483647, %v604_v48  ;;  %vm610_vm1 = vweird.f32 %v604_v48 }
 0x37c   :  { %2278 = vrcp.f32 %v627_v63  ;;  %vm633_vm5 = vweird.f32 %v627_v63 }
 0x37d   :  { %v617_v47 = vor.u32 1.1754944e-38, %v616_v38  ;;  %vm615_vm3 = vcmp.eq.f32.partialorder %v614_v6, 8.507059e+37  ;;  %v4474_v6 = vld [vmem:[#allocation10_spill] sm:$0xff] }
 0x381   :  { %v2277_v51 = vpop.eup %2276 }
 0x382   :  { %v2279_v54 = vpop.eup %2278  ;;  %v606_v2 = vmul.f32 %v2277_v51, %v604_v48  ;;  %vm611_vm0 = vweird.f32 %v2277_v51 }
 0x383   :  { %v629_v1 = vmul.f32 %v2279_v54, %v627_v63  ;;  %vm612_vm2 = vmor %vm610_vm1, %vm611_vm0  ;;  %vm634_vm4 = vweird.f32 %v2279_v54 }
 0x384   :  { %v607_v41 = vsub.f32 1.0, %v606_v2  ;;  %v639_v2 = vand.u32 2147483648, %v627_v63  ;;  %vm635_vm6 = vmor %vm633_vm5, %vm634_vm4 }
 0x385   :  { %v630_v39 = vsub.f32 1.0, %v629_v1 }
 0x386   :  { %v608_v36 = vmul.f32 %v2277_v51, %v607_v41  ;;  %v637_v41 = vand.u32 2147483647, %v627_v63  ;;  %v640_v32 = vor.u32 1.1754944e-38, %v639_v2  ;;  %v4472_v63 = vld [vmem:[#allocation7_spill] sm:$0xff] }
 0x387   :  { %v631_v42 = vmul.f32 %v2279_v54, %v630_v39 }
 0x388   :  { %v609_v40 = vadd.f32 %v2277_v51, %v608_v36  ;;  %vm638_vm7 = vcmp.eq.f32.partialorder %v637_v41, 8.507059e+37 }
 0x389   :  { %v632_v55 = vadd.f32 %v2279_v54, %v631_v42  ;;  %v4475_v42 = vld [vmem:[#allocation9_spill] sm:$0xff] }
 0x38a   :  { %v613_v61 = vsel %vm612_vm2, %v2277_v51, %v609_v40  ;;  %v4477_v40 = vld [vmem:[#allocation11_spill] sm:$0xff] }
 0x38b   :  { %v618_v35 = vsel %vm615_vm3, %v617_v47, %v613_v61  ;;  %v636_v39 = vsel %vm635_vm6, %v2279_v54, %v632_v55  ;;  %v4473_v54 = vld [vmem:[#allocation4_spill] sm:$0xff]  ;;  %v2192_v47 = vld [vmem:[%s4372_s0 + $0x1e] sm:$0x3f] }
 0x38c   :  { %v644_v1 = vmul.f32 %v643_v62, %v618_v35  ;;  %v641_v36 = vsel %vm638_vm7, %v640_v32, %v636_v39  ;;  %v4469_v32 = vld [vmem:[#allocation6_spill] sm:$0xff]  ;;  %v4471_v35 = vld [vmem:[#allocation8_spill] sm:$0xff] }
 0x38d   :  { %v649_v38 = vsub.f32 1.0, %v641_v36  ;;  %v651_v51 = vmul.f32 %v641_v36, %v3163_v37 }
 0x38e   :  { %v647_v33 = vadd.f32 %v645_v44, %v644_v1  ;;  %v738_v44 = vrot.slane %v2192_v47, 2 }
 0x390   :  { %2280 = vtanh.f32 %v647_v33  ;;  %v4470_v33 = vld [vmem:[#allocation3_spill] sm:$0xff] }
 0x396   :  { %v2281_v3 = vpop.eup %2280 }
 0x397   :  { %v650_v48 = vmul.f32 %v2281_v3, %v649_v38 }
 0x399   :  { %v3442_v50 = vadd.f32 %v651_v51, %v650_v48 }
 0x39b   :  { %654 = vst [vmem:[#allocation2 + $0x8] sm:$0x3] %v3442_v50  ;;  %673 = vmatmul.f32.vlgmr.msrb.gmra.mxu3 %v3442_v50  ;;  %693 = vmatmul.f32.vlgmr.msrb.gmra.mxu0 %v3442_v50 }
 0x39c   :  { %713 = vmatmul.f32.vlgmr.msrb.gmra.mxu1 %v3442_v50  ;;  %931 = vmatpush.msrb.mxu3 %v3172_v56 }
 0x39d   :  { %1008 = vmatpush.msrb.mxu0 %v3178_v58  ;;  %1028 = vmatpush.msrb.mxu1 %v3184_v59 }
 0x39e   :  { %932 = vmatpush.msrb.mxu3 %v3190_v57 }
 0x39f   :  { %1009 = vmatpush.msrb.mxu0 %v3097_v60  ;;  %1029 = vmatpush.msrb.mxu1 %v3197_v43 }
 0x3a0   :  { %933 = vmatpush.msrb.mxu3 %v3203_v45 }
 0x3a1   :  { %1010 = vmatpush.msrb.mxu0 %v3105_v5  ;;  %1030 = vmatpush.msrb.mxu1 %v3210_v46 }
 0x3a2   :  { %934 = vmatpush.msrb.mxu3 %v3216_v34  ;;  %v1946_v37 = vld [vmem:[#allocation2 + $0x8] sm:$0x3] }
 0x3a3   :  { %1011 = vmatpush.msrb.mxu0 %v3113_v4  ;;  %1031 = vmatpush.msrb.mxu1 %v3223_v49  ;;  %2002 = vst [vmem:[#allocation1 + $0x20] ss:$4 sm:$0xff] %v1946_v37 }
 0x3a4   :  { %935 = vmatpush.msrb.mxu3 %v3229_v52 }
 0x3a5   :  { %1012 = vmatpush.msrb.mxu0 %v3121_v7  ;;  %1032 = vmatpush.msrb.mxu1 %v3236_v0 }
 0x3a6   :  { %936 = vmatpush.msrb.mxu3 %v3242_v8 }
 0x3a7   :  { %1013 = vmatpush.msrb.mxu0 %v3248_v9  ;;  %1033 = vmatpush.msrb.mxu1 %v3254_v10 }
 0x3a8   :  { %937 = vmatpush.msrb.mxu3 %v3260_v11 }
 0x3a9   :  { %1014 = vmatpush.msrb.mxu0 %v3266_v12  ;;  %1034 = vmatpush.msrb.mxu1 %v3272_v13 }
 0x3aa   :  { %938 = vmatpush.msrb.mxu3 %v3278_v14 }
 0x3ab   :  { %1015 = vmatpush.msrb.mxu0 %v3284_v15  ;;  %1035 = vmatpush.msrb.mxu1 %v3290_v16 }
 0x3ac   :  { %939 = vmatpush.msrb.mxu3 %v3296_v17 }
 0x3ad   :  { %1016 = vmatpush.msrb.mxu0 %v3302_v18  ;;  %1036 = vmatpush.msrb.mxu1 %v3308_v19 }
 0x3ae   :  { %940 = vmatpush.msrb.mxu3 %v3314_v20 }
 0x3af   :  { %1017 = vmatpush.msrb.mxu0 %v3320_v21  ;;  %1037 = vmatpush.msrb.mxu1 %v3326_v22 }
 0x3b0   :  { %941 = vmatpush.msrb.mxu3 %v3332_v23 }
 0x3b1   :  { %1018 = vmatpush.msrb.mxu0 %v3338_v24  ;;  %1038 = vmatpush.msrb.mxu1 %v3344_v25 }
 0x3b2   :  { %942 = vmatpush.msrb.mxu3 %v3350_v26 }
 0x3b3   :  { %1019 = vmatpush.msrb.mxu0 %v3356_v27  ;;  %1039 = vmatpush.msrb.mxu1 %v3362_v28 }
 0x3b4   :  { %943 = vmatpush.msrb.mxu3 %v3368_v29 }
 0x3b5   :  { %1020 = vmatpush.msrb.mxu0 %v3374_v30  ;;  %1040 = vmatpush.msrb.mxu1 %v3380_v31 }
 0x3b6   :  { %944 = vmatpush.msrb.mxu3 %v4469_v32 }
 0x3b7   :  { %1021 = vmatpush.msrb.mxu0 %v4470_v33  ;;  %1041 = vmatpush.msrb.mxu1 %v4471_v35 }
 0x3b8   :  { %945 = vmatpush.msrb.mxu3 %v4472_v63 }
 0x3b9   :  { %1022 = vmatpush.msrb.mxu0 %v4473_v54  ;;  %1042 = vmatpush.msrb.mxu1 %v4474_v6 }
 0x3ba   :  { %946 = vmatpush.msrb.mxu3 %v4475_v42 }
 0x3bb   :  { %1023 = vmatpush.msrb.mxu0 %v4476_v53  ;;  %1043 = vmatpush.msrb.mxu1 %v4477_v40 }
 0x418   :  { %v694_v61 = vpop.f32.mrf.mxu0 }
 0x419   :  { %v740_v62 = vadd.f32 %v738_v44, %v694_v61 }
 0x41b   :  { %v2194_v55 = vmul.f32 -1.442695, %v740_v62 }
 0x41d   :  { %2282 = vpow2.f32 %v2194_v55  ;;  %v714_v55 = vpop.f32.mrf.mxu1 }
 0x41e   :  { %v674_v2 = vpop.f32.mrf.mxu3 }
 0x41f   :  { %v717_v1 = vadd.f32 %v2192_v47, %v674_v2 }
 0x421   :  { %v2193_v41 = vmul.f32 -1.442695, %v717_v1 }
 0x423   :  { %v2283_v39 = vpop.eup %2282  ;;  %2284 = vpow2.f32 %v2193_v41  ;;  %v762_v41 = vrot.slane %v2192_v47, 4 }
 0x424   :  { %v744_v36 = vadd.f32 1.0, %v2283_v39  ;;  %v3502_v39 = vld [vmem:[%s4371_s2] ss:$0 sm:$0xff] }
 0x426   :  { %2286 = vrcp.f32 %v744_v36  ;;  %v756_v54 = vand.u32 2147483648, %v744_v36  ;;  %vm750_vm13 = vweird.f32 %v744_v36 }
 0x428   :  { %v757_v47 = vor.u32 1.1754944e-38, %v756_v54  ;;  %v4482_v54 = vld [vmem:[#allocation4_spill] sm:$0xff] }
 0x429   :  { %v2285_v38 = vpop.eup %2284 }
 0x42a   :  { %v721_v3 = vadd.f32 1.0, %v2285_v38  ;;  %v760_v38 = vadd.f32 %v3502_v39, %v714_v55  ;;  %v4486_v55 = vld [vmem:[#allocation11_spill] sm:$0xff] }
 0x42c   :  { %2288 = vrcp.f32 %v721_v3  ;;  %v2287_v48 = vpop.eup %2286  ;;  %v733_v6 = vand.u32 2147483648, %v721_v3  ;;  %v731_v61 = vand.u32 2147483647, %v721_v3  ;;  %vm727_vm9 = vweird.f32 %v721_v3 }
 0x42d   :  { %v746_v51 = vmul.f32 %v2287_v48, %v744_v36  ;;  %vm751_vm12 = vweird.f32 %v2287_v48 }
 0x42e   :  { %v734_v1 = vor.u32 1.1754944e-38, %v733_v6  ;;  %vm732_vm11 = vcmp.eq.f32.partialorder %v731_v61, 8.507059e+37  ;;  %vm752_vm14 = vmor %vm750_vm13, %vm751_vm12 }
 0x42f   :  { %v747_v53 = vsub.f32 1.0, %v746_v51 }
 0x431   :  { %v748_v62 = vmul.f32 %v2287_v48, %v747_v53 }
 0x432   :  { %v2289_v37 = vpop.eup %2288 }
 0x433   :  { %v723_v40 = vmul.f32 %v2289_v37, %v721_v3  ;;  %vm728_vm8 = vweird.f32 %v2289_v37 }
 0x434   :  { %vm729_vm10 = vmor %vm727_vm9, %vm728_vm8 }
 0x435   :  { %v724_v42 = vsub.f32 1.0, %v723_v40  ;;  %v749_v40 = vadd.f32 %v2287_v48, %v748_v62  ;;  %v4485_v62 = vld [vmem:[#allocation5_spill] sm:$0xff] }
 0x437   :  { %v725_v44 = vmul.f32 %v2289_v37, %v724_v42  ;;  %v753_v6 = vsel %vm752_vm14, %v2287_v48, %v749_v40  ;;  %v4484_v48 = vld [vmem:[#allocation9_spill] sm:$0xff] }
 0x439   :  { %v726_v2 = vadd.f32 %v2289_v37, %v725_v44  ;;  %v754_v44 = vand.u32 2147483647, %v744_v36  ;;  %v4483_v36 = vld [vmem:[#allocation10_spill] sm:$0xff] }
 0x43b   :  { %v730_v51 = vsel %vm729_vm10, %v2289_v37, %v726_v2  ;;  %vm755_vm15 = vcmp.eq.f32.partialorder %v754_v44, 8.507059e+37  ;;  %v2195_v2 = vld [vmem:[%s4372_s0 + $0x24] sm:$0x3f] }
 0x43c   :  { %v735_v42 = vsel %vm732_vm11, %v734_v1, %v730_v51  ;;  %v758_v63 = vsel %vm755_vm15, %v757_v47, %v753_v6  ;;  %v855_v1 = vrot.slane %v2195_v2, 2 }
 0x43d   :  { %v761_v53 = vmul.f32 %v760_v38, %v735_v42  ;;  %v766_v35 = vsub.f32 1.0, %v758_v63  ;;  %v768_v37 = vmul.f32 %v758_v63, %v3442_v50  ;;  %v4481_v63 = vld [vmem:[#allocation7_spill] sm:$0xff] }
 0x43f   :  { %v764_v3 = vadd.f32 %v762_v41, %v761_v53 }
 0x441   :  { %2290 = vtanh.f32 %v764_v3 }
 0x447   :  { %v2291_v33 = vpop.eup %2290 }
 0x448   :  { %v767_v32 = vmul.f32 %v2291_v33, %v766_v35  ;;  %v4479_v33 = vld [vmem:[#allocation3_spill] sm:$0xff]  ;;  %v4480_v35 = vld [vmem:[#allocation8_spill] sm:$0xff] }
 0x44a   :  { %v3506_v61 = vadd.f32 %v768_v37, %v767_v32  ;;  %v4478_v32 = vld [vmem:[#allocation6_spill] sm:$0xff] }
 0x44c   :  { %771 = vst [vmem:[#allocation2 + $0xa] sm:$0x3] %v3506_v61  ;;  %790 = vmatmul.f32.vlgmr.msra.gmra.mxu2 %v3506_v61  ;;  %810 = vmatmul.f32.vlgmr.msra.gmra.mxu3 %v3506_v61 }
 0x44d   :  { %830 = vmatmul.f32.vlgmr.msra.gmra.mxu0 %v3506_v61  ;;  %1048 = vmatpush.msra.mxu2 %v3172_v56 }
 0x44e   :  { %1125 = vmatpush.msra.mxu3 %v3178_v58  ;;  %1145 = vmatpush.msra.mxu0 %v3184_v59 }
 0x44f   :  { %1049 = vmatpush.msra.mxu2 %v3190_v57 }
 0x450   :  { %1126 = vmatpush.msra.mxu3 %v3097_v60  ;;  %1146 = vmatpush.msra.mxu0 %v3197_v43 }
 0x451   :  { %1050 = vmatpush.msra.mxu2 %v3203_v45 }
 0x452   :  { %1127 = vmatpush.msra.mxu3 %v3105_v5  ;;  %1147 = vmatpush.msra.mxu0 %v3210_v46 }
 0x453   :  { %1051 = vmatpush.msra.mxu2 %v3216_v34  ;;  %v1947_v50 = vld [vmem:[#allocation2 + $0xa] sm:$0x3] }
 0x454   :  { %1128 = vmatpush.msra.mxu3 %v3113_v4  ;;  %1148 = vmatpush.msra.mxu0 %v3223_v49  ;;  %2004 = vst [vmem:[#allocation1 + $0x21] ss:$4 sm:$0xff] %v1947_v50 }
 0x455   :  { %1052 = vmatpush.msra.mxu2 %v3229_v52 }
 0x456   :  { %1129 = vmatpush.msra.mxu3 %v3121_v7  ;;  %1149 = vmatpush.msra.mxu0 %v3236_v0 }
 0x457   :  { %1053 = vmatpush.msra.mxu2 %v3242_v8 }
 0x458   :  { %1130 = vmatpush.msra.mxu3 %v3248_v9  ;;  %1150 = vmatpush.msra.mxu0 %v3254_v10 }
 0x459   :  { %1054 = vmatpush.msra.mxu2 %v3260_v11 }
 0x45a   :  { %1131 = vmatpush.msra.mxu3 %v3266_v12  ;;  %1151 = vmatpush.msra.mxu0 %v3272_v13 }
 0x45b   :  { %1055 = vmatpush.msra.mxu2 %v3278_v14 }
 0x45c   :  { %1132 = vmatpush.msra.mxu3 %v3284_v15  ;;  %1152 = vmatpush.msra.mxu0 %v3290_v16 }
 0x45d   :  { %1056 = vmatpush.msra.mxu2 %v3296_v17 }
 0x45e   :  { %1133 = vmatpush.msra.mxu3 %v3302_v18  ;;  %1153 = vmatpush.msra.mxu0 %v3308_v19 }
 0x45f   :  { %1057 = vmatpush.msra.mxu2 %v3314_v20 }
 0x460   :  { %1134 = vmatpush.msra.mxu3 %v3320_v21  ;;  %1154 = vmatpush.msra.mxu0 %v3326_v22 }
 0x461   :  { %1058 = vmatpush.msra.mxu2 %v3332_v23 }
 0x462   :  { %1135 = vmatpush.msra.mxu3 %v3338_v24  ;;  %1155 = vmatpush.msra.mxu0 %v3344_v25 }
 0x463   :  { %1059 = vmatpush.msra.mxu2 %v3350_v26 }
 0x464   :  { %1136 = vmatpush.msra.mxu3 %v3356_v27  ;;  %1156 = vmatpush.msra.mxu0 %v3362_v28 }
 0x465   :  { %1060 = vmatpush.msra.mxu2 %v3368_v29 }
 0x466   :  { %1137 = vmatpush.msra.mxu3 %v3374_v30  ;;  %1157 = vmatpush.msra.mxu0 %v3380_v31 }
 0x467   :  { %1061 = vmatpush.msra.mxu2 %v4478_v32 }
 0x468   :  { %1138 = vmatpush.msra.mxu3 %v4479_v33  ;;  %1158 = vmatpush.msra.mxu0 %v4480_v35 }
 0x469   :  { %1062 = vmatpush.msra.mxu2 %v4481_v63 }
 0x46a   :  { %1139 = vmatpush.msra.mxu3 %v4482_v54  ;;  %1159 = vmatpush.msra.mxu0 %v4483_v36 }
 0x46b   :  { %1063 = vmatpush.msra.mxu2 %v4484_v48 }
 0x46c   :  { %1140 = vmatpush.msra.mxu3 %v4485_v62  ;;  %1160 = vmatpush.msra.mxu0 %v4486_v55 }
 0x4cf   :  { %v791_v41 = vpop.f32.mrf.mxu2  ;;  %v811_v38 = vpop.f32.mrf.mxu3 }
 0x4d0   :  { %v834_v51 = vadd.f32 %v2195_v2, %v791_v41  ;;  %v857_v40 = vadd.f32 %v855_v1, %v811_v38  ;;  %v831_v41 = vpop.f32.mrf.mxu0 }
 0x4d2   :  { %v2196_v42 = vmul.f32 -1.442695, %v834_v51  ;;  %v2197_v53 = vmul.f32 -1.442695, %v857_v40 }
 0x4d4   :  { %2292 = vpow2.f32 %v2196_v42  ;;  %v877_v42 = vadd.f32 %v3502_v39, %v831_v41 }
 0x4d5   :  { %2294 = vpow2.f32 %v2197_v53 }
 0x4da   :  { %v2293_v44 = vpop.eup %2292 }
 0x4db   :  { %v2295_v3 = vpop.eup %2294  ;;  %v838_v6 = vadd.f32 1.0, %v2293_v44  ;;  %v879_v44 = vrot.slane %v2195_v2, 4 }
 0x4dc   :  { %v861_v47 = vadd.f32 1.0, %v2295_v3 }
 0x4dd   :  { %2296 = vrcp.f32 %v838_v6  ;;  %v850_v36 = vand.u32 2147483648, %v838_v6  ;;  %v848_v1 = vand.u32 2147483647, %v838_v6  ;;  %vm844_vm1 = vweird.f32 %v838_v6 }
 0x4de   :  { %2298 = vrcp.f32 %v861_v47  ;;  %v873_v33 = vand.u32 2147483648, %v861_v47  ;;  %vm867_vm5 = vweird.f32 %v861_v47 }
 0x4df   :  { %v851_v40 = vor.u32 1.1754944e-38, %v850_v36  ;;  %vm849_vm3 = vcmp.eq.f32.partialorder %v848_v1, 8.507059e+37  ;;  %v2198_v1 = vld [vmem:[%s4372_s0 + $0x2a] sm:$0x3f] }
 0x4e3   :  { %v2297_v37 = vpop.eup %2296 }
 0x4e4   :  { %v2299_v50 = vpop.eup %2298  ;;  %v840_v55 = vmul.f32 %v2297_v37, %v838_v6  ;;  %vm845_vm0 = vweird.f32 %v2297_v37 }
 0x4e5   :  { %v863_v62 = vmul.f32 %v2299_v50, %v861_v47  ;;  %vm846_vm2 = vmor %vm844_vm1, %vm845_vm0  ;;  %vm868_vm4 = vweird.f32 %v2299_v50 }
 0x4e6   :  { %v841_v48 = vsub.f32 1.0, %v840_v55  ;;  %vm869_vm6 = vmor %vm867_vm5, %vm868_vm4 }
 0x4e7   :  { %v864_v54 = vsub.f32 1.0, %v863_v62 }
 0x4e8   :  { %v842_v63 = vmul.f32 %v2297_v37, %v841_v48  ;;  %v871_v48 = vand.u32 2147483647, %v861_v47  ;;  %v4494_v47 = vld [vmem:[#allocation5_spill] sm:$0xff] }
 0x4e9   :  { %v865_v38 = vmul.f32 %v2299_v50, %v864_v54 }
 0x4ea   :  { %v843_v51 = vadd.f32 %v2297_v37, %v842_v63  ;;  %v874_v63 = vor.u32 1.1754944e-38, %v873_v33  ;;  %vm872_vm7 = vcmp.eq.f32.partialorder %v871_v48, 8.507059e+37  ;;  %v4492_v33 = vld [vmem:[#allocation10_spill] sm:$0xff] }
 0x4eb   :  { %v866_v35 = vadd.f32 %v2299_v50, %v865_v38 }
 0x4ec   :  { %v847_v53 = vsel %vm846_vm2, %v2297_v37, %v843_v51 }
 0x4ed   :  { %v852_v3 = vsel %vm849_vm3, %v851_v40, %v847_v53  ;;  %v870_v32 = vsel %vm869_vm6, %v2299_v50, %v866_v35  ;;  %v4493_v35 = vld [vmem:[#allocation9_spill] sm:$0xff]  ;;  %v4495_v50 = vld [vmem:[#allocation11_spill] sm:$0xff] }
 0x4ee   :  { %v878_v55 = vmul.f32 %v877_v42, %v852_v3  ;;  %v875_v54 = vsel %vm872_vm7, %v874_v63, %v870_v32  ;;  %v4491_v32 = vld [vmem:[#allocation4_spill] sm:$0xff]  ;;  %v972_v42 = vrot.slane %v2198_v1, 2 }
 0x4ef   :  { %v883_v36 = vsub.f32 1.0, %v875_v54  ;;  %v885_v37 = vmul.f32 %v875_v54, %v3506_v61 }
 0x4f0   :  { %v881_v62 = vadd.f32 %v879_v44, %v878_v55 }
 0x4f2   :  { %2300 = vtanh.f32 %v881_v62 }
 0x4f8   :  { %v2301_v6 = vpop.eup %2300 }
 0x4f9   :  { %v884_v41 = vmul.f32 %v2301_v6, %v883_v36 }
 0x4fb   :  { %v3565_v2 = vadd.f32 %v885_v37, %v884_v41 }
 0x4fd   :  { %888 = vst [vmem:[#allocation2 + $0xc] sm:$0x3] %v3565_v2  ;;  %907 = vmatmul.f32.vlgmr.msra.gmra.mxu1 %v3565_v2  ;;  %927 = vmatmul.f32.vlgmr.msrb.gmra.mxu2 %v3565_v2 }
 0x4fe   :  { %947 = vmatmul.f32.vlgmr.msrb.gmra.mxu3 %v3565_v2  ;;  %1165 = vmatpush.msra.mxu1 %v3172_v56 }
 0x4ff   :  { %1242 = vmatpush.msrb.mxu2 %v3178_v58  ;;  %1262 = vmatpush.msrb.mxu3 %v3184_v59 }
 0x500   :  { %1166 = vmatpush.msra.mxu1 %v3190_v57 }
 0x501   :  { %1243 = vmatpush.msrb.mxu2 %v3097_v60  ;;  %1263 = vmatpush.msrb.mxu3 %v3197_v43  ;;  %v4487_v60 = vld [vmem:[#allocation6_spill] sm:$0xff] }
 0x502   :  { %1167 = vmatpush.msra.mxu1 %v3203_v45 }
 0x503   :  { %1244 = vmatpush.msrb.mxu2 %v3105_v5  ;;  %1264 = vmatpush.msrb.mxu3 %v3210_v46  ;;  %v4488_v5 = vld [vmem:[#allocation3_spill] sm:$0xff] }
 0x504   :  { %1168 = vmatpush.msra.mxu1 %v3216_v34  ;;  %v1948_v61 = vld [vmem:[#allocation2 + $0xc] sm:$0x3] }
 0x505   :  { %1245 = vmatpush.msrb.mxu2 %v3113_v4  ;;  %1265 = vmatpush.msrb.mxu3 %v3223_v49  ;;  %2006 = vst [vmem:[#allocation1 + $0x22] ss:$4 sm:$0xff] %v1948_v61  ;;  %v4489_v4 = vld [vmem:[#allocation8_spill] sm:$0xff] }
 0x506   :  { %1169 = vmatpush.msra.mxu1 %v3229_v52 }
 0x507   :  { %1246 = vmatpush.msrb.mxu2 %v3121_v7  ;;  %1266 = vmatpush.msrb.mxu3 %v3236_v0  ;;  %v4490_v7 = vld [vmem:[#allocation7_spill] sm:$0xff] }
 0x508   :  { %1170 = vmatpush.msra.mxu1 %v3242_v8 }
 0x509   :  { %1247 = vmatpush.msrb.mxu2 %v3248_v9  ;;  %1267 = vmatpush.msrb.mxu3 %v3254_v10 }
 0x50a   :  { %1171 = vmatpush.msra.mxu1 %v3260_v11 }
 0x50b   :  { %1248 = vmatpush.msrb.mxu2 %v3266_v12  ;;  %1268 = vmatpush.msrb.mxu3 %v3272_v13 }
 0x50c   :  { %1172 = vmatpush.msra.mxu1 %v3278_v14 }
 0x50d   :  { %1249 = vmatpush.msrb.mxu2 %v3284_v15  ;;  %1269 = vmatpush.msrb.mxu3 %v3290_v16 }
 0x50e   :  { %1173 = vmatpush.msra.mxu1 %v3296_v17 }
 0x50f   :  { %1250 = vmatpush.msrb.mxu2 %v3302_v18  ;;  %1270 = vmatpush.msrb.mxu3 %v3308_v19 }
 0x510   :  { %1174 = vmatpush.msra.mxu1 %v3314_v20 }
 0x511   :  { %1251 = vmatpush.msrb.mxu2 %v3320_v21  ;;  %1271 = vmatpush.msrb.mxu3 %v3326_v22 }
 0x512   :  { %1175 = vmatpush.msra.mxu1 %v3332_v23 }
 0x513   :  { %1252 = vmatpush.msrb.mxu2 %v3338_v24  ;;  %1272 = vmatpush.msrb.mxu3 %v3344_v25 }
 0x514   :  { %1176 = vmatpush.msra.mxu1 %v3350_v26 }
 0x515   :  { %1253 = vmatpush.msrb.mxu2 %v3356_v27  ;;  %1273 = vmatpush.msrb.mxu3 %v3362_v28 }
 0x516   :  { %1177 = vmatpush.msra.mxu1 %v3368_v29 }
 0x517   :  { %1254 = vmatpush.msrb.mxu2 %v3374_v30  ;;  %1274 = vmatpush.msrb.mxu3 %v3380_v31 }
 0x518   :  { %1178 = vmatpush.msra.mxu1 %v4487_v60 }
 0x519   :  { %1255 = vmatpush.msrb.mxu2 %v4488_v5  ;;  %1275 = vmatpush.msrb.mxu3 %v4489_v4 }
 0x51a   :  { %1179 = vmatpush.msra.mxu1 %v4490_v7 }
 0x51b   :  { %1256 = vmatpush.msrb.mxu2 %v4491_v32  ;;  %1276 = vmatpush.msrb.mxu3 %v4492_v33 }
 0x51c   :  { %1180 = vmatpush.msra.mxu1 %v4493_v35 }
 0x51d   :  { %1257 = vmatpush.msrb.mxu2 %v4494_v47  ;;  %1277 = vmatpush.msrb.mxu3 %v4495_v50 }
 0x57a   :  { %v908_v38 = vpop.f32.mrf.mxu1 }
 0x57b   :  { %v951_v51 = vadd.f32 %v2198_v1, %v908_v38 }
 0x57d   :  { %v2199_v40 = vmul.f32 -1.442695, %v951_v51 }
 0x57f   :  { %2302 = vpow2.f32 %v2199_v40 }
 0x580   :  { %v928_v53 = vpop.f32.mrf.mxu2 }
 0x581   :  { %v974_v44 = vadd.f32 %v972_v42, %v928_v53  ;;  %v948_v51 = vpop.f32.mrf.mxu3  ;;  %v996_v42 = vrot.slane %v2198_v1, 4 }
 0x583   :  { %v2200_v3 = vmul.f32 -1.442695, %v974_v44 }
 0x585   :  { %v2303_v55 = vpop.eup %2302  ;;  %2304 = vpow2.f32 %v2200_v3 }
 0x586   :  { %v955_v48 = vadd.f32 1.0, %v2303_v55  ;;  %v994_v55 = vadd.f32 %v3502_v39, %v948_v51 }
 0x588   :  { %2306 = vrcp.f32 %v955_v48  ;;  %v967_v41 = vand.u32 2147483648, %v955_v48  ;;  %v965_v61 = vand.u32 2147483647, %v955_v48  ;;  %vm961_vm9 = vweird.f32 %v955_v48 }
 0x58a   :  { %v968_v53 = vor.u32 1.1754944e-38, %v967_v41  ;;  %vm966_vm11 = vcmp.eq.f32.partialorder %v965_v61, 8.507059e+37 }
 0x58b   :  { %v2305_v62 = vpop.eup %2304 }
 0x58c   :  { %v978_v63 = vadd.f32 1.0, %v2305_v62 }
 0x58e   :  { %v2307_v54 = vpop.eup %2306  ;;  %2308 = vrcp.f32 %v978_v63  ;;  %v988_v35 = vand.u32 2147483647, %v978_v63  ;;  %vm984_vm13 = vweird.f32 %v978_v63 }
 0x58f   :  { %v957_v36 = vmul.f32 %v2307_v54, %v955_v48  ;;  %vm962_vm8 = vweird.f32 %v2307_v54 }
 0x590   :  { %vm963_vm10 = vmor %vm961_vm9, %vm962_vm8  ;;  %vm989_vm15 = vcmp.eq.f32.partialorder %v988_v35, 8.507059e+37 }
 0x591   :  { %v958_v6 = vsub.f32 1.0, %v957_v36  ;;  %v990_v36 = vand.u32 2147483648, %v978_v63 }
 0x593   :  { %v959_v37 = vmul.f32 %v2307_v54, %v958_v6 }
 0x594   :  { %v2309_v38 = vpop.eup %2308 }
 0x595   :  { %v980_v40 = vmul.f32 %v2309_v38, %v978_v63  ;;  %v960_v50 = vadd.f32 %v2307_v54, %v959_v37  ;;  %vm985_vm12 = vweird.f32 %v2309_v38  ;;  %v991_v37 = vor.u32 1.1754944e-38, %v990_v36  ;;  %v3718_v36 = vld [vmem:[%s4370_s1 + $0x168] sm:$0xff] }
 0x596   :  { %vm986_vm14 = vmor %vm984_vm13, %vm985_vm12 }
 0x597   :  { %v981_v44 = vsub.f32 1.0, %v980_v40  ;;  %v964_v3 = vsel %vm963_vm10, %v2307_v54, %v960_v50 }
 0x598   :  { %v969_v62 = vsel %vm966_vm11, %v968_v53, %v964_v3 }
 0x599   :  { %v982_v47 = vmul.f32 %v2309_v38, %v981_v44  ;;  %v995_v6 = vmul.f32 %v994_v55, %v969_v62  ;;  %v3712_v62 = vld [vmem:[%s4370_s1 + $0x178] sm:$0xff] }
 0x59b   :  { %v983_v33 = vadd.f32 %v2309_v38, %v982_v47  ;;  %v998_v32 = vadd.f32 %v996_v42, %v995_v6  ;;  %v3724_v6 = vld [vmem:[%s4370_s1 + $0x170] sm:$0xff] }
 0x59d   :  { %v987_v48 = vsel %vm986_vm14, %v2309_v38, %v983_v33  ;;  %2310 = vtanh.f32 %v998_v32 }
 0x59e   :  { %v992_v1 = vsel %vm989_vm15, %v991_v37, %v987_v48  ;;  %v3730_v37 = vld [vmem:[%s4370_s1 + $0x160] sm:$0xff]  ;;  %v3737_v48 = vld [vmem:[%s4370_s1 + $0x158] sm:$0xff] }
 0x59f   :  { %v1000_v41 = vsub.f32 1.0, %v992_v1  ;;  %v1002_v61 = vmul.f32 %v992_v1, %v3565_v2  ;;  %v3637_v2 = vld [vmem:[%s4370_s1 + $0x150] sm:$0xff]  ;;  %v3743_v1 = vld [vmem:[%s4370_s1 + $0x148] sm:$0xff] }
 0x5a3   :  { %v2311_v50 = vpop.eup %2310 }
 0x5a4   :  { %v1001_v54 = vmul.f32 %v2311_v50, %v1000_v41  ;;  %v3750_v41 = vld [vmem:[%s4370_s1 + $0x140] sm:$0xff]  ;;  %v3756_v50 = vld [vmem:[%s4370_s1 + $0x130] sm:$0xff] }
 0x5a6   :  { %v3624_v51 = vadd.f32 %v1002_v61, %v1001_v54  ;;  %v3759_v61 = vld.sshfl [vmem:[#allocation1] sm:$0xff pattern:$0x73625140] }
 0x5a7   :  { %4501 = vst [vmem:[#allocation6_spill] sm:$0xff] %v3759_v61 }
 0x5a8   :  { %1005 = vst [vmem:[#allocation2 + $0xe] sm:$0x3] %v3624_v51  ;;  %1024 = vmatmul.f32.vlgmr.msrb.gmra.mxu0 %v3624_v51  ;;  %1044 = vmatmul.f32.vlgmr.msrb.gmra.mxu1 %v3624_v51 }
 0x5a9   :  { %1064 = vmatmul.f32.vlgmr.msra.gmra.mxu2 %v3624_v51  ;;  %1282 = vmatpush.msrb.mxu0 %v3172_v56  ;;  %v3645_v56 = vld [vmem:[%s4370_s1 + $0x138] sm:$0xff] }
 0x5aa   :  { %1359 = vmatpush.msrb.mxu1 %v3178_v58  ;;  %1379 = vmatpush.msra.mxu2 %v3184_v59  ;;  %v3653_v59 = vld [vmem:[%s4370_s1 + $0x120] sm:$0xff] }
 0x5ab   :  { %1283 = vmatpush.msrb.mxu0 %v3190_v57  ;;  %v3661_v57 = vld [vmem:[%s4370_s1 + $0x108] sm:$0xff] }
 0x5ac   :  { %1360 = vmatpush.msrb.mxu1 %v3637_v2  ;;  %1380 = vmatpush.msra.mxu2 %v3197_v43  ;;  %v4496_v43 = vld [vmem:[#allocation4_spill] sm:$0xff] }
 0x5ad   :  { %1284 = vmatpush.msrb.mxu0 %v3203_v45  ;;  %v4497_v45 = vld [vmem:[#allocation10_spill] sm:$0xff] }
 0x5ae   :  { %1361 = vmatpush.msrb.mxu1 %v3645_v56  ;;  %1381 = vmatpush.msra.mxu2 %v3210_v46  ;;  %v4498_v46 = vld [vmem:[#allocation9_spill] sm:$0xff] }
 0x5af   :  { %1285 = vmatpush.msrb.mxu0 %v3216_v34  ;;  %v1949_v58 = vld [vmem:[#allocation2 + $0xe] sm:$0x3]  ;;  %v4499_v34 = vld [vmem:[#allocation5_spill] sm:$0xff] }
 0x5b0   :  { %1362 = vmatpush.msrb.mxu1 %v3653_v59  ;;  %1382 = vmatpush.msra.mxu2 %v3223_v49  ;;  %2008 = vst [vmem:[#allocation1 + $0x23] ss:$4 sm:$0xff] %v1949_v58  ;;  %v4500_v49 = vld [vmem:[#allocation11_spill] sm:$0xff]  ;;  %v3771_v58 = vld [vmem:[%s4370_s1 + $0x118] sm:$0xff] }
 0x5b1   :  { %1286 = vmatpush.msrb.mxu0 %v3229_v52  ;;  %v2201_v52 = vld [vmem:[%s4372_s0 + $0x30] sm:$0x3f] }
 0x5b2   :  { %1363 = vmatpush.msrb.mxu1 %v3661_v57  ;;  %1383 = vmatpush.msra.mxu2 %v3236_v0  ;;  %v1089_v0 = vrot.slane %v2201_v52, 2 }
 0x5b3   :  { %1287 = vmatpush.msrb.mxu0 %v3242_v8 }
 0x5b4   :  { %1364 = vmatpush.msrb.mxu1 %v3248_v9  ;;  %1384 = vmatpush.msra.mxu2 %v3254_v10 }
 0x5b5   :  { %1288 = vmatpush.msrb.mxu0 %v3260_v11 }
 0x5b6   :  { %1365 = vmatpush.msrb.mxu1 %v3266_v12  ;;  %1385 = vmatpush.msra.mxu2 %v3272_v13 }
 0x5b7   :  { %1289 = vmatpush.msrb.mxu0 %v3278_v14 }
 0x5b8   :  { %1366 = vmatpush.msrb.mxu1 %v3284_v15  ;;  %1386 = vmatpush.msra.mxu2 %v3290_v16 }
 0x5b9   :  { %1290 = vmatpush.msrb.mxu0 %v3296_v17 }
 0x5ba   :  { %1367 = vmatpush.msrb.mxu1 %v3302_v18  ;;  %1387 = vmatpush.msra.mxu2 %v3308_v19 }
 0x5bb   :  { %1291 = vmatpush.msrb.mxu0 %v3314_v20 }
 0x5bc   :  { %1368 = vmatpush.msrb.mxu1 %v3320_v21  ;;  %1388 = vmatpush.msra.mxu2 %v3326_v22 }
 0x5bd   :  { %1292 = vmatpush.msrb.mxu0 %v3332_v23 }
 0x5be   :  { %1369 = vmatpush.msrb.mxu1 %v3338_v24  ;;  %1389 = vmatpush.msra.mxu2 %v3344_v25 }
 0x5bf   :  { %1293 = vmatpush.msrb.mxu0 %v3350_v26 }
 0x5c0   :  { %1370 = vmatpush.msrb.mxu1 %v3356_v27  ;;  %1390 = vmatpush.msra.mxu2 %v3362_v28 }
 0x5c1   :  { %1294 = vmatpush.msrb.mxu0 %v3368_v29 }
 0x5c2   :  { %1371 = vmatpush.msrb.mxu1 %v3374_v30  ;;  %1391 = vmatpush.msra.mxu2 %v3380_v31  ;;  %v1113_v31 = vrot.slane %v2201_v52, 4 }
 0x5c3   :  { %1295 = vmatpush.msrb.mxu0 %v4487_v60 }
 0x5c4   :  { %1372 = vmatpush.msrb.mxu1 %v4488_v5  ;;  %1392 = vmatpush.msra.mxu2 %v4489_v4 }
 0x5c5   :  { %1296 = vmatpush.msrb.mxu0 %v4490_v7 }
 0x5c6   :  { %1373 = vmatpush.msrb.mxu1 %v4496_v43  ;;  %1393 = vmatpush.msra.mxu2 %v4497_v45  ;;  %v3778_v43 = vld [vmem:[%s4370_s1 + $0x110] sm:$0xff]  ;;  %v3784_v45 = vld [vmem:[%s4370_s1 + $0x100] sm:$0xff] }
 0x5c7   :  { %1297 = vmatpush.msrb.mxu0 %v4498_v46  ;;  %v3790_v46 = vld [vmem:[%s4370_s1 + $0xf0] sm:$0xff] }
 0x5c8   :  { %1374 = vmatpush.msrb.mxu1 %v4499_v34  ;;  %1394 = vmatpush.msra.mxu2 %v4500_v49  ;;  %v3796_v34 = vld [vmem:[%s4370_s1 + $0xf8] sm:$0xff]  ;;  %v3802_v49 = vld [vmem:[%s4370_s1 + $0xe8] sm:$0xff] }
 0x625   :  { %v1025_v8 = vpop.f32.mrf.mxu0  ;;  %v1045_v9 = vpop.f32.mrf.mxu1 }
 0x626   :  { %v1068_v10 = vadd.f32 %v2201_v52, %v1025_v8  ;;  %v1091_v11 = vadd.f32 %v1089_v0, %v1045_v9  ;;  %v3808_v52 = vld [vmem:[%s4370_s1 + $0xd8] sm:$0xff]  ;;  %v3814_v0 = vld [vmem:[%s4370_s1 + $0xe0] sm:$0xff]  ;;  %v3820_v8 = vld [vmem:[%s4370_s1 + $0xd0] sm:$0xff] }
 0x627   :  { %v3826_v9 = vld [vmem:[%s4370_s1 + $0xc0] sm:$0xff] }
 0x628   :  { %v2202_v12 = vmul.f32 -1.442695, %v1068_v10  ;;  %v2203_v13 = vmul.f32 -1.442695, %v1091_v11  ;;  %v3832_v10 = vld [vmem:[%s4370_s1 + $0xc8] sm:$0xff]  ;;  %v3838_v11 = vld [vmem:[%s4370_s1 + $0xb8] sm:$0xff] }
 0x62a   :  { %2312 = vpow2.f32 %v2202_v12  ;;  %v3844_v12 = vld [vmem:[%s4370_s1 + $0xa8] sm:$0xff] }
 0x62b   :  { %2314 = vpow2.f32 %v2203_v13  ;;  %v3850_v13 = vld [vmem:[%s4370_s1 + $0xb0] sm:$0xff] }
 0x62c   :  { %v1065_v28 = vpop.f32.mrf.mxu2 }
 0x62d   :  { %v1111_v5 = vadd.f32 %v3502_v39, %v1065_v28  ;;  %v3940_v28 = vld [vmem:[%s4370_s1 + $0x38] sm:$0xff] }
 0x62e   :  { %4504 = vst [vmem:[#allocation7_spill] sm:$0xff] %v3940_v28 }
 0x630   :  { %v2313_v14 = vpop.eup %2312 }
 0x631   :  { %v2315_v15 = vpop.eup %2314  ;;  %v1072_v16 = vadd.f32 1.0, %v2313_v14  ;;  %v3856_v14 = vld [vmem:[%s4370_s1 + $0xa0] sm:$0xff] }
 0x632   :  { %v1095_v17 = vadd.f32 1.0, %v2315_v15  ;;  %v3862_v15 = vld [vmem:[%s4370_s1 + $0x90] sm:$0xff] }
 0x633   :  { %2316 = vrcp.f32 %v1072_v16  ;;  %v1084_v24 = vand.u32 2147483648, %v1072_v16  ;;  %v1082_v26 = vand.u32 2147483647, %v1072_v16  ;;  %vm1078_vm1 = vweird.f32 %v1072_v16 }
 0x634   :  { %2318 = vrcp.f32 %v1095_v17  ;;  %v1107_v32 = vand.u32 2147483648, %v1095_v17  ;;  %vm1101_vm5 = vweird.f32 %v1095_v17  ;;  %v1105_v35 = vand.u32 2147483647, %v1095_v17 }
 0x635   :  { %v1085_v30 = vor.u32 1.1754944e-38, %v1084_v24  ;;  %vm1083_vm3 = vcmp.eq.f32.partialorder %v1082_v26, 8.507059e+37  ;;  %v3916_v24 = vld [vmem:[%s4370_s1 + $0x48] sm:$0xff]  ;;  %v3928_v26 = vld [vmem:[%s4370_s1 + $0x40] sm:$0xff] }
 0x636   :  { %v1108_v38 = vor.u32 1.1754944e-38, %v1107_v32  ;;  %vm1106_vm7 = vcmp.eq.f32.partialorder %v1105_v35, 8.507059e+37  ;;  %4502 = vst [vmem:[#allocation3_spill] sm:$0xff] %v3928_v26 }
 0x639   :  { %v2317_v18 = vpop.eup %2316 }
 0x63a   :  { %v2319_v19 = vpop.eup %2318  ;;  %v1074_v20 = vmul.f32 %v2317_v18, %v1072_v16  ;;  %vm1079_vm0 = vweird.f32 %v2317_v18  ;;  %v3868_v16 = vld [vmem:[%s4370_s1 + $0x98] sm:$0xff] }
 0x63b   :  { %v1097_v21 = vmul.f32 %v2319_v19, %v1095_v17  ;;  %vm1080_vm2 = vmor %vm1078_vm1, %vm1079_vm0  ;;  %vm1102_vm4 = vweird.f32 %v2319_v19  ;;  %v3874_v17 = vld [vmem:[%s4370_s1 + $0x88] sm:$0xff] }
 0x63c   :  { %v1075_v22 = vsub.f32 1.0, %v1074_v20  ;;  %vm1103_vm6 = vmor %vm1101_vm5, %vm1102_vm4  ;;  %v3892_v20 = vld [vmem:[%s4370_s1 + $0x70] sm:$0xff] }
 0x63d   :  { %v1098_v23 = vsub.f32 1.0, %v1097_v21  ;;  %v3898_v21 = vld [vmem:[%s4370_s1 + $0x60] sm:$0xff] }
 0x63e   :  { %v1076_v25 = vmul.f32 %v2317_v18, %v1075_v22  ;;  %v3904_v22 = vld [vmem:[%s4370_s1 + $0x68] sm:$0xff] }
 0x63f   :  { %v1099_v27 = vmul.f32 %v2319_v19, %v1098_v23  ;;  %v3910_v23 = vld [vmem:[%s4370_s1 + $0x58] sm:$0xff] }
 0x640   :  { %v1077_v29 = vadd.f32 %v2317_v18, %v1076_v25  ;;  %v3922_v25 = vld [vmem:[%s4370_s1 + $0x50] sm:$0xff] }
 0x641   :  { %v1100_v4 = vadd.f32 %v2319_v19, %v1099_v27  ;;  %v3934_v27 = vld [vmem:[%s4370_s1 + $0x30] sm:$0xff] }
 0x642   :  { %v1081_v60 = vsel %vm1080_vm2, %v2317_v18, %v1077_v29  ;;  %v3880_v18 = vld [vmem:[%s4370_s1 + $0x78] sm:$0xff]  ;;  %4503 = vst [vmem:[#allocation8_spill] sm:$0xff] %v3934_v27  ;;  %v3946_v29 = vld [vmem:[%s4370_s1 + $0x28] sm:$0xff] }
 0x643   :  { %v1086_v7 = vsel %vm1083_vm3, %v1085_v30, %v1081_v60  ;;  %v1104_v63 = vsel %vm1103_vm6, %v2319_v19, %v1100_v4  ;;  %v3886_v19 = vld [vmem:[%s4370_s1 + $0x80] sm:$0xff]  ;;  %4505 = vst [vmem:[#allocation4_spill] sm:$0xff] %v3946_v29  ;;  %v3952_v30 = vld [vmem:[%s4370_s1 + $0x18] sm:$0xff]  ;;  %v3964_v60 = vld [vmem:[%s4370_s1 + $0x10] sm:$0xff] }
 0x644   :  { %v1112_v33 = vmul.f32 %v1111_v5, %v1086_v7  ;;  %v1109_v40 = vsel %vm1106_vm7, %v1108_v38, %v1104_v63  ;;  %4506 = vst [vmem:[#allocation10_spill] sm:$0xff] %v3952_v30  ;;  %v3970_v5 = vld [vmem:[%s4370_s1] sm:$0xff]  ;;  %v3976_v4 = vld [vmem:[%s4370_s1 + $0x8] sm:$0xff]  ;;  %v2204_v7 = vld [vmem:[%s4372_s0 + $0x36] sm:$0x3f] }
 0x645   :  { %v1117_v42 = vsub.f32 1.0, %v1109_v40  ;;  %v1119_v3 = vmul.f32 %v1109_v40, %v3624_v51  ;;  %v3765_v51 = vld [vmem:[%s4370_s1 + $0x128] sm:$0xff]  ;;  %4508 = vst [vmem:[#allocation5_spill] sm:$0xff] %v3964_v60  ;;  %v1206_v32 = vrot.slane %v2204_v7, 2 }
 0x646   :  { %v1115_v47 = vadd.f32 %v1113_v31, %v1112_v33  ;;  %v3958_v31 = vld [vmem:[%s4370_s1 + $0x20] sm:$0xff]  ;;  %4509 = vst [vmem:[#allocation11_spill] sm:$0xff] %v3970_v5 }
 0x647   :  { %4507 = vst [vmem:[#allocation9_spill] sm:$0xff] %v3958_v31 }
 0x648   :  { %2320 = vtanh.f32 %v1115_v47  ;;  %4510 = vst [vmem:[#allocation12_spill] sm:$0xff] %v3976_v4 }
 0x64e   :  { %v2321_v53 = vpop.eup %2320 }
 0x64f   :  { %v1118_v44 = vmul.f32 %v2321_v53, %v1117_v42 }
 0x651   :  { %v3703_v55 = vadd.f32 %v1119_v3, %v1118_v44 }
 0x653   :  { %1122 = vst [vmem:[#allocation2 + $0x10] sm:$0x3] %v3703_v55  ;;  %1141 = vmatmul.f32.vlgmr.msra.gmra.mxu3 %v3703_v55  ;;  %1161 = vmatmul.f32.vlgmr.msra.gmra.mxu0 %v3703_v55 }
 0x654   :  { %1181 = vmatmul.f32.vlgmr.msra.gmra.mxu1 %v3703_v55  ;;  %1399 = vmatpush.msra.mxu3 %v3712_v62 }
 0x655   :  { %1476 = vmatpush.msra.mxu0 %v3718_v36  ;;  %1496 = vmatpush.msra.mxu1 %v3724_v6 }
 0x656   :  { %1400 = vmatpush.msra.mxu3 %v3730_v37 }
 0x657   :  { %1477 = vmatpush.msra.mxu0 %v3637_v2  ;;  %1497 = vmatpush.msra.mxu1 %v3737_v48 }
 0x658   :  { %1401 = vmatpush.msra.mxu3 %v3743_v1 }
 0x659   :  { %1478 = vmatpush.msra.mxu0 %v3645_v56  ;;  %1498 = vmatpush.msra.mxu1 %v3750_v41 }
 0x65a   :  { %1402 = vmatpush.msra.mxu3 %v3756_v50  ;;  %v1950_v54 = vld [vmem:[#allocation2 + $0x10] sm:$0x3] }
 0x65b   :  { %1479 = vmatpush.msra.mxu0 %v3653_v59  ;;  %1499 = vmatpush.msra.mxu1 %v3765_v51  ;;  %2011 = vst [vmem:[#allocation1] ss:$4 sm:$0xff] %v1950_v54 }
 0x65c   :  { %1403 = vmatpush.msra.mxu3 %v3771_v58 }
 0x65d   :  { %1480 = vmatpush.msra.mxu0 %v3661_v57  ;;  %1500 = vmatpush.msra.mxu1 %v3778_v43 }
 0x65e   :  { %1404 = vmatpush.msra.mxu3 %v3784_v45 }
 0x65f   :  { %1481 = vmatpush.msra.mxu0 %v3790_v46  ;;  %1501 = vmatpush.msra.mxu1 %v3796_v34 }
 0x660   :  { %1405 = vmatpush.msra.mxu3 %v3802_v49 }
 0x661   :  { %1482 = vmatpush.msra.mxu0 %v3808_v52  ;;  %1502 = vmatpush.msra.mxu1 %v3814_v0 }
 0x662   :  { %1406 = vmatpush.msra.mxu3 %v3820_v8 }
 0x663   :  { %1483 = vmatpush.msra.mxu0 %v3826_v9  ;;  %1503 = vmatpush.msra.mxu1 %v3832_v10 }
 0x664   :  { %1407 = vmatpush.msra.mxu3 %v3838_v11 }
 0x665   :  { %1484 = vmatpush.msra.mxu0 %v3844_v12  ;;  %1504 = vmatpush.msra.mxu1 %v3850_v13 }
 0x666   :  { %1408 = vmatpush.msra.mxu3 %v3856_v14 }
 0x667   :  { %1485 = vmatpush.msra.mxu0 %v3862_v15  ;;  %1505 = vmatpush.msra.mxu1 %v3868_v16 }
 0x668   :  { %1409 = vmatpush.msra.mxu3 %v3874_v17 }
 0x669   :  { %1486 = vmatpush.msra.mxu0 %v3880_v18  ;;  %1506 = vmatpush.msra.mxu1 %v3886_v19 }
 0x66a   :  { %1410 = vmatpush.msra.mxu3 %v3892_v20 }
 0x66b   :  { %1487 = vmatpush.msra.mxu0 %v3898_v21  ;;  %1507 = vmatpush.msra.mxu1 %v3904_v22 }
 0x66c   :  { %1411 = vmatpush.msra.mxu3 %v3910_v23 }
 0x66d   :  { %1488 = vmatpush.msra.mxu0 %v3916_v24  ;;  %1508 = vmatpush.msra.mxu1 %v3922_v25 }
 0x66e   :  { %1412 = vmatpush.msra.mxu3 %v3928_v26 }
 0x66f   :  { %1489 = vmatpush.msra.mxu0 %v3934_v27  ;;  %1509 = vmatpush.msra.mxu1 %v3940_v28 }
 0x670   :  { %1413 = vmatpush.msra.mxu3 %v3946_v29 }
 0x671   :  { %1490 = vmatpush.msra.mxu0 %v3952_v30  ;;  %1510 = vmatpush.msra.mxu1 %v3958_v31 }
 0x672   :  { %1414 = vmatpush.msra.mxu3 %v3964_v60 }
 0x673   :  { %1491 = vmatpush.msra.mxu0 %v3970_v5  ;;  %1511 = vmatpush.msra.mxu1 %v3976_v4 }
 0x6d0   :  { %v1162_v33 = vpop.f32.mrf.mxu0 }
 0x6d1   :  { %v1208_v35 = vadd.f32 %v1206_v32, %v1162_v33 }
 0x6d3   :  { %v2206_v47 = vmul.f32 -1.442695, %v1208_v35 }
 0x6d5   :  { %2322 = vpow2.f32 %v2206_v47  ;;  %v1182_v47 = vpop.f32.mrf.mxu1 }
 0x6d6   :  { %v1142_v63 = vpop.f32.mrf.mxu3 }
 0x6d7   :  { %v1185_v38 = vadd.f32 %v2204_v7, %v1142_v63 }
 0x6d9   :  { %v2205_v40 = vmul.f32 -1.442695, %v1185_v38 }
 0x6db   :  { %v2323_v42 = vpop.eup %2322  ;;  %2324 = vpow2.f32 %v2205_v40  ;;  %v1230_v40 = vrot.slane %v2204_v7, 4 }
 0x6dc   :  { %v1212_v53 = vadd.f32 1.0, %v2323_v42  ;;  %v1228_v42 = vadd.f32 %v3502_v39, %v1182_v47  ;;  %v4519_v47 = vld [vmem:[#allocation12_spill] sm:$0xff] }
 0x6de   :  { %2326 = vrcp.f32 %v1212_v53  ;;  %vm1218_vm13 = vweird.f32 %v1212_v53 }
 0x6e1   :  { %v2325_v44 = vpop.eup %2324 }
 0x6e2   :  { %v1189_v3 = vadd.f32 1.0, %v2325_v44 }
 0x6e4   :  { %2328 = vrcp.f32 %v1189_v3  ;;  %v2327_v54 = vpop.eup %2326  ;;  %v1201_v30 = vand.u32 2147483648, %v1189_v3  ;;  %v1199_v33 = vand.u32 2147483647, %v1189_v3  ;;  %vm1195_vm9 = vweird.f32 %v1189_v3 }
 0x6e5   :  { %v1214_v61 = vmul.f32 %v2327_v54, %v1212_v53  ;;  %vm1219_vm12 = vweird.f32 %v2327_v54 }
 0x6e6   :  { %v1202_v38 = vor.u32 1.1754944e-38, %v1201_v30  ;;  %vm1200_vm11 = vcmp.eq.f32.partialorder %v1199_v33, 8.507059e+37  ;;  %vm1220_vm14 = vmor %vm1218_vm13, %vm1219_vm12  ;;  %v4517_v33 = vld [vmem:[#allocation5_spill] sm:$0xff] }
 0x6e7   :  { %v1215_v60 = vsub.f32 1.0, %v1214_v61  ;;  %v1224_v61 = vand.u32 2147483648, %v1212_v53 }
 0x6e9   :  { %v1216_v35 = vmul.f32 %v2327_v54, %v1215_v60  ;;  %v1225_v26 = vor.u32 1.1754944e-38, %v1224_v61 }
 0x6ea   :  { %v2329_v4 = vpop.eup %2328 }
 0x6eb   :  { %v1191_v5 = vmul.f32 %v2329_v4, %v1189_v3  ;;  %vm1196_vm8 = vweird.f32 %v2329_v4  ;;  %v1217_v29 = vadd.f32 %v2327_v54, %v1216_v35  ;;  %v4518_v35 = vld [vmem:[#allocation11_spill] sm:$0xff] }
 0x6ec   :  { %vm1197_vm10 = vmor %vm1195_vm9, %vm1196_vm8 }
 0x6ed   :  { %v1192_v31 = vsub.f32 1.0, %v1191_v5  ;;  %v1221_v60 = vsel %vm1220_vm14, %v2327_v54, %v1217_v29  ;;  %v4514_v29 = vld [vmem:[#allocation4_spill] sm:$0xff]  ;;  %v4516_v54 = vld [vmem:[#allocation9_spill] sm:$0xff] }
 0x6ef   :  { %v1193_v32 = vmul.f32 %v2329_v4, %v1192_v31  ;;  %v1222_v31 = vand.u32 2147483647, %v1212_v53  ;;  %v4515_v53 = vld [vmem:[#allocation10_spill] sm:$0xff] }
 0x6f1   :  { %v1194_v63 = vadd.f32 %v2329_v4, %v1193_v32  ;;  %vm1223_vm15 = vcmp.eq.f32.partialorder %v1222_v31, 8.507059e+37 }
 0x6f2   :  { %v1226_v3 = vsel %vm1223_vm15, %v1225_v26, %v1221_v60  ;;  %v4511_v26 = vld [vmem:[#allocation3_spill] sm:$0xff] }
 0x6f3   :  { %v1198_v44 = vsel %vm1197_vm10, %v2329_v4, %v1194_v63  ;;  %v1234_v30 = vsub.f32 1.0, %v1226_v3  ;;  %v1236_v39 = vmul.f32 %v1226_v3, %v3703_v55  ;;  %v2207_v63 = vld [vmem:[%s4372_s0 + $0x3c] sm:$0x3f] }
 0x6f4   :  { %v1203_v28 = vsel %vm1200_vm11, %v1202_v38, %v1198_v44  ;;  %v1323_v38 = vrot.slane %v2207_v63, 2 }
 0x6f5   :  { %v1229_v5 = vmul.f32 %v1228_v42, %v1203_v28  ;;  %v4513_v28 = vld [vmem:[#allocation7_spill] sm:$0xff] }
 0x6f7   :  { %v1232_v27 = vadd.f32 %v1230_v40, %v1229_v5 }
 0x6f9   :  { %2330 = vtanh.f32 %v1232_v27  ;;  %v4512_v27 = vld [vmem:[#allocation8_spill] sm:$0xff] }
 0x6ff   :  { %v2331_v7 = vpop.eup %2330 }
 0x700   :  { %v1235_v32 = vmul.f32 %v2331_v7, %v1234_v30 }
 0x702   :  { %v3984_v4 = vadd.f32 %v1236_v39, %v1235_v32 }
 0x704   :  { %1239 = vst [vmem:[#allocation2 + $0x12] sm:$0x3] %v3984_v4  ;;  %1258 = vmatmul.f32.vlgmr.msrb.gmra.mxu2 %v3984_v4  ;;  %1278 = vmatmul.f32.vlgmr.msrb.gmra.mxu3 %v3984_v4 }
 0x705   :  { %1298 = vmatmul.f32.vlgmr.msrb.gmra.mxu0 %v3984_v4  ;;  %1516 = vmatpush.msrb.mxu2 %v3712_v62 }
 0x706   :  { %1593 = vmatpush.msrb.mxu3 %v3718_v36  ;;  %1613 = vmatpush.msrb.mxu0 %v3724_v6 }
 0x707   :  { %1517 = vmatpush.msrb.mxu2 %v3730_v37 }
 0x708   :  { %1594 = vmatpush.msrb.mxu3 %v3637_v2  ;;  %1614 = vmatpush.msrb.mxu0 %v3737_v48 }
 0x709   :  { %1518 = vmatpush.msrb.mxu2 %v3743_v1 }
 0x70a   :  { %1595 = vmatpush.msrb.mxu3 %v3645_v56  ;;  %1615 = vmatpush.msrb.mxu0 %v3750_v41 }
 0x70b   :  { %1519 = vmatpush.msrb.mxu2 %v3756_v50  ;;  %v1951_v55 = vld [vmem:[#allocation2 + $0x12] sm:$0x3] }
 0x70c   :  { %1596 = vmatpush.msrb.mxu3 %v3653_v59  ;;  %1616 = vmatpush.msrb.mxu0 %v3765_v51  ;;  %2012 = vst [vmem:[#allocation1 + $0x1] ss:$4 sm:$0xff] %v1951_v55 }
 0x70d   :  { %1520 = vmatpush.msrb.mxu2 %v3771_v58 }
 0x70e   :  { %1597 = vmatpush.msrb.mxu3 %v3661_v57  ;;  %1617 = vmatpush.msrb.mxu0 %v3778_v43 }
 0x70f   :  { %1521 = vmatpush.msrb.mxu2 %v3784_v45 }
 0x710   :  { %1598 = vmatpush.msrb.mxu3 %v3790_v46  ;;  %1618 = vmatpush.msrb.mxu0 %v3796_v34 }
 0x711   :  { %1522 = vmatpush.msrb.mxu2 %v3802_v49 }
 0x712   :  { %1599 = vmatpush.msrb.mxu3 %v3808_v52  ;;  %1619 = vmatpush.msrb.mxu0 %v3814_v0 }
 0x713   :  { %1523 = vmatpush.msrb.mxu2 %v3820_v8 }
 0x714   :  { %1600 = vmatpush.msrb.mxu3 %v3826_v9  ;;  %1620 = vmatpush.msrb.mxu0 %v3832_v10 }
 0x715   :  { %1524 = vmatpush.msrb.mxu2 %v3838_v11 }
 0x716   :  { %1601 = vmatpush.msrb.mxu3 %v3844_v12  ;;  %1621 = vmatpush.msrb.mxu0 %v3850_v13 }
 0x717   :  { %1525 = vmatpush.msrb.mxu2 %v3856_v14 }
 0x718   :  { %1602 = vmatpush.msrb.mxu3 %v3862_v15  ;;  %1622 = vmatpush.msrb.mxu0 %v3868_v16 }
 0x719   :  { %1526 = vmatpush.msrb.mxu2 %v3874_v17 }
 0x71a   :  { %1603 = vmatpush.msrb.mxu3 %v3880_v18  ;;  %1623 = vmatpush.msrb.mxu0 %v3886_v19 }
 0x71b   :  { %1527 = vmatpush.msrb.mxu2 %v3892_v20 }
 0x71c   :  { %1604 = vmatpush.msrb.mxu3 %v3898_v21  ;;  %1624 = vmatpush.msrb.mxu0 %v3904_v22 }
 0x71d   :  { %1528 = vmatpush.msrb.mxu2 %v3910_v23 }
 0x71e   :  { %1605 = vmatpush.msrb.mxu3 %v3916_v24  ;;  %1625 = vmatpush.msrb.mxu0 %v3922_v25 }
 0x71f   :  { %1529 = vmatpush.msrb.mxu2 %v4511_v26 }
 0x720   :  { %1606 = vmatpush.msrb.mxu3 %v4512_v27  ;;  %1626 = vmatpush.msrb.mxu0 %v4513_v28 }
 0x721   :  { %1530 = vmatpush.msrb.mxu2 %v4514_v29 }
 0x722   :  { %1607 = vmatpush.msrb.mxu3 %v4515_v53  ;;  %1627 = vmatpush.msrb.mxu0 %v4516_v54 }
 0x723   :  { %1531 = vmatpush.msrb.mxu2 %v4517_v33 }
 0x724   :  { %1608 = vmatpush.msrb.mxu3 %v4518_v35  ;;  %1628 = vmatpush.msrb.mxu0 %v4519_v47 }
 0x787   :  { %v1259_v40 = vpop.f32.mrf.mxu2  ;;  %v1279_v42 = vpop.f32.mrf.mxu3 }
 0x788   :  { %v1302_v44 = vadd.f32 %v2207_v63, %v1259_v40  ;;  %v1325_v61 = vadd.f32 %v1323_v38, %v1279_v42  ;;  %v1299_v40 = vpop.f32.mrf.mxu0 }
 0x78a   :  { %v2208_v5 = vmul.f32 -1.442695, %v1302_v44  ;;  %v2209_v31 = vmul.f32 -1.442695, %v1325_v61 }
 0x78c   :  { %2332 = vpow2.f32 %v2208_v5  ;;  %v4044_v5 = vld [vmem:[%s4371_s2] ss:$0 sm:$0xff] }
 0x78d   :  { %2334 = vpow2.f32 %v2209_v31  ;;  %v1345_v31 = vadd.f32 %v4044_v5, %v1299_v40 }
 0x792   :  { %v2333_v60 = vpop.eup %2332 }
 0x793   :  { %v2335_v3 = vpop.eup %2334  ;;  %v1306_v30 = vadd.f32 1.0, %v2333_v60 }
 0x794   :  { %v1329_v7 = vadd.f32 1.0, %v2335_v3  ;;  %v1347_v3 = vrot.slane %v2207_v63, 4 }
 0x795   :  { %2336 = vrcp.f32 %v1306_v30  ;;  %v1318_v33 = vand.u32 2147483648, %v1306_v30  ;;  %v1316_v38 = vand.u32 2147483647, %v1306_v30  ;;  %vm1312_vm1 = vweird.f32 %v1306_v30 }
 0x796   :  { %2338 = vrcp.f32 %v1329_v7  ;;  %v1341_v29 = vand.u32 2147483648, %v1329_v7  ;;  %vm1335_vm5 = vweird.f32 %v1329_v7 }
 0x797   :  { %v1319_v61 = vor.u32 1.1754944e-38, %v1318_v33  ;;  %vm1317_vm3 = vcmp.eq.f32.partialorder %v1316_v38, 8.507059e+37  ;;  %v4526_v38 = vld [vmem:[#allocation5_spill] sm:$0xff] }
 0x79b   :  { %v2337_v32 = vpop.eup %2336 }
 0x79c   :  { %v2339_v39 = vpop.eup %2338  ;;  %v1308_v55 = vmul.f32 %v2337_v32, %v1306_v30  ;;  %vm1313_vm0 = vweird.f32 %v2337_v32  ;;  %v1342_v30 = vor.u32 1.1754944e-38, %v1341_v29  ;;  %v4523_v29 = vld [vmem:[#allocation4_spill] sm:$0xff] }
 0x79d   :  { %v1331_v47 = vmul.f32 %v2339_v39, %v1329_v7  ;;  %vm1314_vm2 = vmor %vm1312_vm1, %vm1313_vm0  ;;  %vm1336_vm4 = vweird.f32 %v2339_v39 }
 0x79e   :  { %v1309_v35 = vsub.f32 1.0, %v1308_v55  ;;  %vm1337_vm6 = vmor %vm1335_vm5, %vm1336_vm4 }
 0x79f   :  { %v1332_v54 = vsub.f32 1.0, %v1331_v47 }
 0x7a0   :  { %v1310_v53 = vmul.f32 %v2337_v32, %v1309_v35 }
 0x7a1   :  { %v1333_v42 = vmul.f32 %v2339_v39, %v1332_v54 }
 0x7a2   :  { %v1311_v44 = vadd.f32 %v2337_v32, %v1310_v53  ;;  %v1339_v53 = vand.u32 2147483647, %v1329_v7  ;;  %v4524_v7 = vld [vmem:[#allocation10_spill] sm:$0xff] }
 0x7a3   :  { %v1334_v35 = vadd.f32 %v2339_v39, %v1333_v42  ;;  %v4527_v42 = vld [vmem:[#allocation11_spill] sm:$0xff] }
 0x7a4   :  { %v1315_v60 = vsel %vm1314_vm2, %v2337_v32, %v1311_v44  ;;  %vm1340_vm7 = vcmp.eq.f32.partialorder %v1339_v53, 8.507059e+37  ;;  %v4528_v44 = vld [vmem:[#allocation12_spill] sm:$0xff] }
 0x7a5   :  { %v1320_v47 = vsel %vm1317_vm3, %v1319_v61, %v1315_v60  ;;  %v1338_v33 = vsel %vm1337_vm6, %v2339_v39, %v1334_v35  ;;  %v4525_v39 = vld [vmem:[#allocation9_spill] sm:$0xff]  ;;  %v2210_v61 = vld [vmem:[%s4372_s0 + $0x42] sm:$0x3f] }
 0x7a6   :  { %v1346_v55 = vmul.f32 %v1345_v31, %v1320_v47  ;;  %v1343_v28 = vsel %vm1340_vm7, %v1342_v30, %v1338_v33  ;;  %v1440_v47 = vrot.slane %v2210_v61, 2 }
 0x7a7   :  { %v1351_v27 = vsub.f32 1.0, %v1343_v28  ;;  %v1353_v32 = vmul.f32 %v1343_v28, %v3984_v4  ;;  %v4522_v28 = vld [vmem:[#allocation7_spill] sm:$0xff] }
 0x7a8   :  { %v1349_v54 = vadd.f32 %v1347_v3, %v1346_v55 }
 0x7aa   :  { %2340 = vtanh.f32 %v1349_v54 }
 0x7b0   :  { %v2341_v26 = vpop.eup %2340 }
 0x7b1   :  { %v1352_v40 = vmul.f32 %v2341_v26, %v1351_v27  ;;  %v4520_v26 = vld [vmem:[#allocation3_spill] sm:$0xff]  ;;  %v4521_v27 = vld [vmem:[#allocation8_spill] sm:$0xff] }
 0x7b3   :  { %v4048_v63 = vadd.f32 %v1353_v32, %v1352_v40 }
 0x7b5   :  { %1356 = vst [vmem:[#allocation2 + $0x14] sm:$0x3] %v4048_v63  ;;  %1375 = vmatmul.f32.vlgmr.msrb.gmra.mxu1 %v4048_v63  ;;  %1395 = vmatmul.f32.vlgmr.msra.gmra.mxu2 %v4048_v63 }
 0x7b6   :  { %1415 = vmatmul.f32.vlgmr.msra.gmra.mxu3 %v4048_v63  ;;  %1633 = vmatpush.msrb.mxu1 %v3712_v62 }
 0x7b7   :  { %1710 = vmatpush.msra.mxu2 %v3718_v36  ;;  %1730 = vmatpush.msra.mxu3 %v3724_v6 }
 0x7b8   :  { %1634 = vmatpush.msrb.mxu1 %v3730_v37 }
 0x7b9   :  { %1711 = vmatpush.msra.mxu2 %v3637_v2  ;;  %1731 = vmatpush.msra.mxu3 %v3737_v48 }
 0x7ba   :  { %1635 = vmatpush.msrb.mxu1 %v3743_v1 }
 0x7bb   :  { %1712 = vmatpush.msra.mxu2 %v3645_v56  ;;  %1732 = vmatpush.msra.mxu3 %v3750_v41 }
 0x7bc   :  { %1636 = vmatpush.msrb.mxu1 %v3756_v50  ;;  %v1952_v4 = vld [vmem:[#allocation2 + $0x14] sm:$0x3] }
 0x7bd   :  { %1713 = vmatpush.msra.mxu2 %v3653_v59  ;;  %1733 = vmatpush.msra.mxu3 %v3765_v51  ;;  %2013 = vst [vmem:[#allocation1 + $0x2] ss:$4 sm:$0xff] %v1952_v4 }
 0x7be   :  { %1637 = vmatpush.msrb.mxu1 %v3771_v58 }
 0x7bf   :  { %1714 = vmatpush.msra.mxu2 %v3661_v57  ;;  %1734 = vmatpush.msra.mxu3 %v3778_v43 }
 0x7c0   :  { %1638 = vmatpush.msrb.mxu1 %v3784_v45 }
 0x7c1   :  { %1715 = vmatpush.msra.mxu2 %v3790_v46  ;;  %1735 = vmatpush.msra.mxu3 %v3796_v34 }
 0x7c2   :  { %1639 = vmatpush.msrb.mxu1 %v3802_v49 }
 0x7c3   :  { %1716 = vmatpush.msra.mxu2 %v3808_v52  ;;  %1736 = vmatpush.msra.mxu3 %v3814_v0 }
 0x7c4   :  { %1640 = vmatpush.msrb.mxu1 %v3820_v8 }
 0x7c5   :  { %1717 = vmatpush.msra.mxu2 %v3826_v9  ;;  %1737 = vmatpush.msra.mxu3 %v3832_v10 }
 0x7c6   :  { %1641 = vmatpush.msrb.mxu1 %v3838_v11 }
 0x7c7   :  { %1718 = vmatpush.msra.mxu2 %v3844_v12  ;;  %1738 = vmatpush.msra.mxu3 %v3850_v13 }
 0x7c8   :  { %1642 = vmatpush.msrb.mxu1 %v3856_v14 }
 0x7c9   :  { %1719 = vmatpush.msra.mxu2 %v3862_v15  ;;  %1739 = vmatpush.msra.mxu3 %v3868_v16 }
 0x7ca   :  { %1643 = vmatpush.msrb.mxu1 %v3874_v17 }
 0x7cb   :  { %1720 = vmatpush.msra.mxu2 %v3880_v18  ;;  %1740 = vmatpush.msra.mxu3 %v3886_v19 }
 0x7cc   :  { %1644 = vmatpush.msrb.mxu1 %v3892_v20 }
 0x7cd   :  { %1721 = vmatpush.msra.mxu2 %v3898_v21  ;;  %1741 = vmatpush.msra.mxu3 %v3904_v22 }
 0x7ce   :  { %1645 = vmatpush.msrb.mxu1 %v3910_v23 }
 0x7cf   :  { %1722 = vmatpush.msra.mxu2 %v3916_v24  ;;  %1742 = vmatpush.msra.mxu3 %v3922_v25 }
 0x7d0   :  { %1646 = vmatpush.msrb.mxu1 %v4520_v26 }
 0x7d1   :  { %1723 = vmatpush.msra.mxu2 %v4521_v27  ;;  %1743 = vmatpush.msra.mxu3 %v4522_v28 }
 0x7d2   :  { %1647 = vmatpush.msrb.mxu1 %v4523_v29 }
 0x7d3   :  { %1724 = vmatpush.msra.mxu2 %v4524_v7  ;;  %1744 = vmatpush.msra.mxu3 %v4525_v39 }
 0x7d4   :  { %1648 = vmatpush.msrb.mxu1 %v4526_v38 }
 0x7d5   :  { %1725 = vmatpush.msra.mxu2 %v4527_v42  ;;  %1745 = vmatpush.msra.mxu3 %v4528_v44 }
 0x832   :  { %v1376_v31 = vpop.f32.mrf.mxu1 }
 0x833   :  { %v1419_v60 = vadd.f32 %v2210_v61, %v1376_v31 }
 0x835   :  { %v2211_v3 = vmul.f32 -1.442695, %v1419_v60 }
 0x837   :  { %2342 = vpow2.f32 %v2211_v3 }
 0x838   :  { %v1396_v35 = vpop.f32.mrf.mxu2 }
 0x839   :  { %v1442_v55 = vadd.f32 %v1440_v47, %v1396_v35  ;;  %v1416_v39 = vpop.f32.mrf.mxu3  ;;  %v1464_v47 = vrot.slane %v2210_v61, 4 }
 0x83b   :  { %v2212_v53 = vmul.f32 -1.442695, %v1442_v55 }
 0x83d   :  { %v2343_v54 = vpop.eup %2342  ;;  %2344 = vpow2.f32 %v2212_v53 }
 0x83e   :  { %v1423_v33 = vadd.f32 1.0, %v2343_v54  ;;  %v1462_v54 = vadd.f32 %v4044_v5, %v1416_v39 }
 0x840   :  { %2346 = vrcp.f32 %v1423_v33  ;;  %v1435_v42 = vand.u32 2147483648, %v1423_v33  ;;  %v1433_v31 = vand.u32 2147483647, %v1423_v33  ;;  %vm1429_vm9 = vweird.f32 %v1423_v33 }
 0x842   :  { %v1436_v35 = vor.u32 1.1754944e-38, %v1435_v42  ;;  %vm1434_vm11 = vcmp.eq.f32.partialorder %v1433_v31, 8.507059e+37 }
 0x843   :  { %v2345_v30 = vpop.eup %2344 }
 0x844   :  { %v1446_v40 = vadd.f32 1.0, %v2345_v30 }
 0x846   :  { %v2347_v32 = vpop.eup %2346  ;;  %2348 = vrcp.f32 %v1446_v40  ;;  %v1456_v28 = vand.u32 2147483647, %v1446_v40  ;;  %vm1452_vm13 = vweird.f32 %v1446_v40 }
 0x847   :  { %v1425_v4 = vmul.f32 %v2347_v32, %v1423_v33  ;;  %vm1430_vm8 = vweird.f32 %v2347_v32 }
 0x848   :  { %vm1431_vm10 = vmor %vm1429_vm9, %vm1430_vm8  ;;  %vm1457_vm15 = vcmp.eq.f32.partialorder %v1456_v28, 8.507059e+37 }
 0x849   :  { %v1426_v44 = vsub.f32 1.0, %v1425_v4  ;;  %v1458_v4 = vand.u32 2147483648, %v1446_v40 }
 0x84b   :  { %v1427_v38 = vmul.f32 %v2347_v32, %v1426_v44 }
 0x84c   :  { %v2349_v60 = vpop.eup %2348 }
 0x84d   :  { %v1448_v3 = vmul.f32 %v2349_v60, %v1446_v40  ;;  %v1428_v7 = vadd.f32 %v2347_v32, %v1427_v38  ;;  %vm1453_vm12 = vweird.f32 %v2349_v60  ;;  %v1459_v38 = vor.u32 1.1754944e-38, %v1458_v4 }
 0x84e   :  { %vm1454_vm14 = vmor %vm1452_vm13, %vm1453_vm12 }
 0x84f   :  { %v1449_v55 = vsub.f32 1.0, %v1448_v3  ;;  %v1432_v53 = vsel %vm1431_vm10, %v2347_v32, %v1428_v7 }
 0x850   :  { %v1437_v30 = vsel %vm1434_vm11, %v1436_v35, %v1432_v53 }
 0x851   :  { %v1450_v29 = vmul.f32 %v2349_v60, %v1449_v55  ;;  %v1463_v44 = vmul.f32 %v1462_v54, %v1437_v30 }
 0x853   :  { %v1451_v27 = vadd.f32 %v2349_v60, %v1450_v29  ;;  %v1466_v26 = vadd.f32 %v1464_v47, %v1463_v44 }
 0x855   :  { %v1455_v33 = vsel %vm1454_vm14, %v2349_v60, %v1451_v27  ;;  %2350 = vtanh.f32 %v1466_v26 }
 0x856   :  { %v1460_v42 = vsel %vm1457_vm15, %v1459_v38, %v1455_v33 }
 0x857   :  { %v1468_v61 = vsub.f32 1.0, %v1460_v42  ;;  %v1470_v39 = vmul.f32 %v1460_v42, %v4048_v63 }
 0x85b   :  { %v2351_v7 = vpop.eup %2350 }
 0x85c   :  { %v1469_v32 = vmul.f32 %v2351_v7, %v1468_v61 }
 0x85e   :  { %v4107_v31 = vadd.f32 %v1470_v39, %v1469_v32 }
 0x860   :  { %1473 = vst [vmem:[#allocation2 + $0x16] sm:$0x3] %v4107_v31  ;;  %1492 = vmatmul.f32.vlgmr.msra.gmra.mxu0 %v4107_v31  ;;  %1512 = vmatmul.f32.vlgmr.msra.gmra.mxu1 %v4107_v31 }
 0x861   :  { %1532 = vmatmul.f32.vlgmr.msrb.gmra.mxu2 %v4107_v31  ;;  %1750 = vmatpush.msra.mxu0 %v3712_v62 }
 0x862   :  { %1827 = vmatpush.msra.mxu1 %v3718_v36  ;;  %1847 = vmatpush.msrb.mxu2 %v3724_v6  ;;  %v4533_v36 = vld [vmem:[#allocation10_spill] sm:$0xff]  ;;  %v4534_v6 = vld [vmem:[#allocation9_spill] sm:$0xff] }
 0x863   :  { %1751 = vmatpush.msra.mxu0 %v3730_v37 }
 0x864   :  { %1828 = vmatpush.msra.mxu1 %v3637_v2  ;;  %1848 = vmatpush.msrb.mxu2 %v3737_v48  ;;  %v4529_v2 = vld [vmem:[#allocation3_spill] sm:$0xff]  ;;  %v4535_v48 = vld [vmem:[#allocation5_spill] sm:$0xff] }
 0x865   :  { %1752 = vmatpush.msra.mxu0 %v3743_v1 }
 0x866   :  { %1829 = vmatpush.msra.mxu1 %v3645_v56  ;;  %1849 = vmatpush.msrb.mxu2 %v3750_v41  ;;  %v4530_v56 = vld [vmem:[#allocation8_spill] sm:$0xff]  ;;  %v4536_v41 = vld [vmem:[#allocation11_spill] sm:$0xff] }
 0x867   :  { %1753 = vmatpush.msra.mxu0 %v3756_v50  ;;  %v1953_v63 = vld [vmem:[#allocation2 + $0x16] sm:$0x3] }
 0x868   :  { %2014 = vst [vmem:[#allocation1 + $0x3] ss:$4 sm:$0xff] %v1953_v63  ;;  %1830 = vmatpush.msra.mxu1 %v3653_v59  ;;  %1850 = vmatpush.msrb.mxu2 %v3765_v51  ;;  %v4531_v59 = vld [vmem:[#allocation7_spill] sm:$0xff]  ;;  %v4537_v51 = vld [vmem:[#allocation12_spill] sm:$0xff] }
 0x869   :  { %1754 = vmatpush.msra.mxu0 %v3771_v58 }
 0x86a   :  { %1831 = vmatpush.msra.mxu1 %v3661_v57  ;;  %1851 = vmatpush.msrb.mxu2 %v3778_v43  ;;  %v4532_v57 = vld [vmem:[#allocation4_spill] sm:$0xff]  ;;  %v2213_v43 = vld [vmem:[%s4372_s0 + $0x48] sm:$0x3f] }
 0x86b   :  { %1755 = vmatpush.msra.mxu0 %v3784_v45  ;;  %v1581_v35 = vrot.slane %v2213_v43, 4 }
 0x86c   :  { %1832 = vmatpush.msra.mxu1 %v3790_v46  ;;  %1852 = vmatpush.msrb.mxu2 %v3796_v34  ;;  %v1557_v46 = vrot.slane %v2213_v43, 2 }
 0x86d   :  { %1756 = vmatpush.msra.mxu0 %v3802_v49 }
 0x86e   :  { %1833 = vmatpush.msra.mxu1 %v3808_v52  ;;  %1853 = vmatpush.msrb.mxu2 %v3814_v0 }
 0x86f   :  { %1757 = vmatpush.msra.mxu0 %v3820_v8 }
 0x870   :  { %1834 = vmatpush.msra.mxu1 %v3826_v9  ;;  %1854 = vmatpush.msrb.mxu2 %v3832_v10 }
 0x871   :  { %1758 = vmatpush.msra.mxu0 %v3838_v11 }
 0x872   :  { %1835 = vmatpush.msra.mxu1 %v3844_v12  ;;  %1855 = vmatpush.msrb.mxu2 %v3850_v13 }
 0x873   :  { %1759 = vmatpush.msra.mxu0 %v3856_v14 }
 0x874   :  { %1836 = vmatpush.msra.mxu1 %v3862_v15  ;;  %1856 = vmatpush.msrb.mxu2 %v3868_v16 }
 0x875   :  { %1760 = vmatpush.msra.mxu0 %v3874_v17 }
 0x876   :  { %1837 = vmatpush.msra.mxu1 %v3880_v18  ;;  %1857 = vmatpush.msrb.mxu2 %v3886_v19 }
 0x877   :  { %1761 = vmatpush.msra.mxu0 %v3892_v20 }
 0x878   :  { %1838 = vmatpush.msra.mxu1 %v3898_v21  ;;  %1858 = vmatpush.msrb.mxu2 %v3904_v22 }
 0x879   :  { %1762 = vmatpush.msra.mxu0 %v3910_v23 }
 0x87a   :  { %1839 = vmatpush.msra.mxu1 %v3916_v24  ;;  %1859 = vmatpush.msrb.mxu2 %v3922_v25 }
 0x87b   :  { %1763 = vmatpush.msra.mxu0 %v4529_v2 }
 0x87c   :  { %1840 = vmatpush.msra.mxu1 %v4530_v56  ;;  %1860 = vmatpush.msrb.mxu2 %v4531_v59 }
 0x87d   :  { %1764 = vmatpush.msra.mxu0 %v4532_v57 }
 0x87e   :  { %1841 = vmatpush.msra.mxu1 %v4533_v36  ;;  %1861 = vmatpush.msrb.mxu2 %v4534_v6  ;;  %v4175_v6 = vld.sshfl [vmem:[#allocation1 + $0x20] sm:$0xff pattern:$0x73625140] }
 0x87f   :  { %1765 = vmatpush.msra.mxu0 %v4535_v48 }
 0x880   :  { %1842 = vmatpush.msra.mxu1 %v4536_v41  ;;  %1862 = vmatpush.msrb.mxu2 %v4537_v51  ;;  %v1965_v41 = vld [vmem:[%s4373_s3 + $0x38] sm:$0xff] }
 0x8dd   :  { %v1493_v34 = vpop.f32.mrf.mxu0  ;;  %v1513_v52 = vpop.f32.mrf.mxu1 }
 0x8de   :  { %v1536_v0 = vadd.f32 %v2213_v43, %v1493_v34  ;;  %v1559_v9 = vadd.f32 %v1557_v46, %v1513_v52  ;;  %v1964_v43 = vld [vmem:[%s4373_s3 + $0x30] sm:$0xff]  ;;  %v1963_v46 = vld [vmem:[%s4373_s3 + $0x28] sm:$0xff]  ;;  %v1962_v52 = vld [vmem:[%s4373_s3 + $0x20] sm:$0xff] }
 0x8e0   :  { %v2214_v10 = vmul.f32 -1.442695, %v1536_v0  ;;  %v2215_v12 = vmul.f32 -1.442695, %v1559_v9 }
 0x8e2   :  { %2352 = vpow2.f32 %v2214_v10  ;;  %v1961_v10 = vld [vmem:[%s4373_s3 + $0x18] sm:$0xff] }
 0x8e3   :  { %2354 = vpow2.f32 %v2215_v12  ;;  %v1960_v12 = vld [vmem:[%s4373_s3 + $0x10] sm:$0xff] }
 0x8e4   :  { %v1533_v60 = vpop.f32.mrf.mxu2 }
 0x8e5   :  { %v1579_v53 = vadd.f32 %v4044_v5, %v1533_v60 }
 0x8e8   :  { %v2353_v13 = vpop.eup %2352 }
 0x8e9   :  { %v2355_v15 = vpop.eup %2354  ;;  %v1540_v16 = vadd.f32 1.0, %v2353_v13  ;;  %v1959_v13 = vld [vmem:[%s4373_s3 + $0x8] sm:$0xff] }
 0x8ea   :  { %v1563_v18 = vadd.f32 1.0, %v2355_v15 }
 0x8eb   :  { %2356 = vrcp.f32 %v1540_v16  ;;  %v1552_v27 = vand.u32 2147483648, %v1540_v16  ;;  %v1550_v29 = vand.u32 2147483647, %v1540_v16  ;;  %vm1546_vm1 = vweird.f32 %v1540_v16 }
 0x8ec   :  { %2358 = vrcp.f32 %v1563_v18  ;;  %v1575_v4 = vand.u32 2147483648, %v1563_v18  ;;  %vm1569_vm5 = vweird.f32 %v1563_v18  ;;  %v1573_v38 = vand.u32 2147483647, %v1563_v18 }
 0x8ed   :  { %v1553_v47 = vor.u32 1.1754944e-38, %v1552_v27  ;;  %vm1551_vm3 = vcmp.eq.f32.partialorder %v1550_v29, 8.507059e+37 }
 0x8ee   :  { %v1576_v61 = vor.u32 1.1754944e-38, %v1575_v4  ;;  %vm1574_vm7 = vcmp.eq.f32.partialorder %v1573_v38, 8.507059e+37 }
 0x8f1   :  { %v2357_v19 = vpop.eup %2356 }
 0x8f2   :  { %v2359_v21 = vpop.eup %2358  ;;  %v1542_v22 = vmul.f32 %v2357_v19, %v1540_v16  ;;  %vm1547_vm0 = vweird.f32 %v2357_v19  ;;  %v1958_v16 = vld [vmem:[%s4373_s3] sm:$0xff] }
 0x8f3   :  { %v1565_v24 = vmul.f32 %v2359_v21, %v1563_v18  ;;  %vm1548_vm2 = vmor %vm1546_vm1, %vm1547_vm0  ;;  %vm1570_vm4 = vweird.f32 %v2359_v21 }
 0x8f4   :  { %v1543_v25 = vsub.f32 1.0, %v1542_v22  ;;  %vm1571_vm6 = vmor %vm1569_vm5, %vm1570_vm4 }
 0x8f5   :  { %v1566_v26 = vsub.f32 1.0, %v1565_v24 }
 0x8f6   :  { %v1544_v28 = vmul.f32 %v2357_v19, %v1543_v25 }
 0x8f7   :  { %v1567_v40 = vmul.f32 %v2359_v21, %v1566_v26 }
 0x8f8   :  { %v1545_v3 = vadd.f32 %v2357_v19, %v1544_v28 }
 0x8f9   :  { %v1568_v54 = vadd.f32 %v2359_v21, %v1567_v40 }
 0x8fa   :  { %v1549_v55 = vsel %vm1548_vm2, %v2357_v19, %v1545_v3 }
 0x8fb   :  { %v1554_v30 = vsel %vm1551_vm3, %v1553_v47, %v1549_v55  ;;  %v1572_v42 = vsel %vm1571_vm6, %v2359_v21, %v1568_v54 }
 0x8fc   :  { %v1580_v44 = vmul.f32 %v1579_v53, %v1554_v30  ;;  %v1577_v7 = vsel %vm1574_vm7, %v1576_v61, %v1572_v42 }
 0x8fd   :  { %v1585_v32 = vsub.f32 1.0, %v1577_v7  ;;  %v1587_v56 = vmul.f32 %v1577_v7, %v4107_v31  ;;  %v1967_v31 = vld [vmem:[%s4373_s3 + $0x48] sm:$0xff] }
 0x8fe   :  { %v1583_v33 = vadd.f32 %v1581_v35, %v1580_v44 }
 0x900   :  { %2360 = vtanh.f32 %v1583_v33 }
 0x906   :  { %v2361_v39 = vpop.eup %2360 }
 0x907   :  { %v1586_v63 = vmul.f32 %v2361_v39, %v1585_v32 }
 0x909   :  { %v4166_v59 = vadd.f32 %v1587_v56, %v1586_v63  ;;  %v4538_v56 = vld [vmem:[#allocation6_spill] sm:$0xff] }
 0x90b   :  { %1590 = vst [vmem:[#allocation2 + $0x18] sm:$0x3] %v4166_v59  ;;  %1609 = vmatmul.f32.vlgmr.msrb.gmra.mxu3 %v4166_v59  ;;  %1629 = vmatmul.f32.vlgmr.msrb.gmra.mxu0 %v4166_v59 }
 0x90c   :  { %1649 = vmatmul.f32.vlgmr.msrb.gmra.mxu1 %v4166_v59  ;;  %1867 = vmatpush.msrb.mxu3 %v3712_v62  ;;  %v4193_v62 = vld [vmem:[%s4372_s0 + $0x4e] sm:$0x3f] }
 0x90d   :  { %v1698_v60 = vrot.slane %v4193_v62, 4 }
 0x90e   :  { %1868 = vmatpush.msrb.mxu3 %v3730_v37  ;;  %v1674_v37 = vrot.slane %v4193_v62, 2 }
 0x910   :  { %1869 = vmatpush.msrb.mxu3 %v3743_v1  ;;  %v1973_v1 = vld [vmem:[%s4373_s3 + $0x78] sm:$0xff] }
 0x911   :  { %2025 = vmatpush.msrb.mxu0 %v1973_v1 }
 0x912   :  { %v1954_v36 = vld [vmem:[#allocation2 + $0x18] sm:$0x3]  ;;  %1870 = vmatpush.msrb.mxu3 %v3756_v50  ;;  %v1972_v50 = vld [vmem:[%s4373_s3 + $0x70] sm:$0xff] }
 0x913   :  { %2015 = vst [vmem:[#allocation1 + $0x20] ss:$4 sm:$0xff] %v1954_v36  ;;  %2026 = vmatpush.msrb.mxu0 %v1972_v50  ;;  %v2019_v36 = vld.sshfl [vmem:[#allocation1] sm:$0xff pattern:$0x73625140] }
 0x914   :  { %1871 = vmatpush.msrb.mxu3 %v3771_v58 }
 0x916   :  { %1872 = vmatpush.msrb.mxu3 %v3784_v45 }
 0x918   :  { %1873 = vmatpush.msrb.mxu3 %v3802_v49  ;;  %v1971_v49 = vld [vmem:[%s4373_s3 + $0x68] sm:$0xff] }
 0x919   :  { %2027 = vmatpush.msrb.mxu0 %v1971_v49 }
 0x91a   :  { %1874 = vmatpush.msrb.mxu3 %v3820_v8 }
 0x91c   :  { %1875 = vmatpush.msrb.mxu3 %v3838_v11  ;;  %v1970_v11 = vld [vmem:[%s4373_s3 + $0x60] sm:$0xff] }
 0x91d   :  { %2028 = vmatpush.msrb.mxu0 %v1970_v11 }
 0x91e   :  { %1876 = vmatpush.msrb.mxu3 %v3856_v14  ;;  %v1969_v14 = vld [vmem:[%s4373_s3 + $0x58] sm:$0xff] }
 0x91f   :  { %2029 = vmatpush.msrb.mxu0 %v1969_v14 }
 0x920   :  { %1877 = vmatpush.msrb.mxu3 %v3874_v17  ;;  %v1968_v17 = vld [vmem:[%s4373_s3 + $0x50] sm:$0xff] }
 0x921   :  { %2030 = vmatpush.msrb.mxu0 %v1968_v17 }
 0x922   :  { %1878 = vmatpush.msrb.mxu3 %v3892_v20 }
 0x923   :  { %2031 = vmatpush.msrb.mxu0 %v1967_v31 }
 0x924   :  { %1879 = vmatpush.msrb.mxu3 %v3910_v23 }
 0x926   :  { %1880 = vmatpush.msrb.mxu3 %v4529_v2 }
 0x928   :  { %1881 = vmatpush.msrb.mxu3 %v4532_v57  ;;  %v1966_v57 = vld [vmem:[%s4373_s3 + $0x40] sm:$0xff] }
 0x929   :  { %2032 = vmatpush.msrb.mxu0 %v1966_v57 }
 0x92a   :  { %1882 = vmatpush.msrb.mxu3 %v4535_v48 }
 0x92b   :  { %2033 = vmatpush.msrb.mxu0 %v1965_v41 }
 0x92d   :  { %2034 = vmatpush.msrb.mxu0 %v1964_v43 }
 0x92f   :  { %2035 = vmatpush.msrb.mxu0 %v1963_v46 }
 0x931   :  { %2036 = vmatpush.msrb.mxu0 %v1962_v52 }
 0x933   :  { %2037 = vmatpush.msrb.mxu0 %v1961_v10 }
 0x935   :  { %2038 = vmatpush.msrb.mxu0 %v1960_v12 }
 0x937   :  { %2039 = vmatpush.msrb.mxu0 %v1959_v13 }
 0x939   :  { %2040 = vmatpush.msrb.mxu0 %v1958_v16 }
 0x988   :  { %v1630_v58 = vpop.f32.mrf.mxu0 }
 0x989   :  { %v1676_v45 = vadd.f32 %v1674_v37, %v1630_v58  ;;  %v1650_v28 = vpop.f32.mrf.mxu1  ;;  %v4265_v58 = vld [vmem:[%s4374_s4] ss:$0 sm:$0xff] }
 0x98a   :  { %v1696_v3 = vadd.f32 %v4044_v5, %v1650_v28 }
 0x98b   :  { %v2218_v8 = vmul.f32 -1.442695, %v1676_v45 }
 0x98d   :  { %2362 = vpow2.f32 %v2218_v8 }
 0x98e   :  { %v1610_v20 = vpop.f32.mrf.mxu3 }
 0x98f   :  { %v1653_v23 = vadd.f32 %v4193_v62, %v1610_v20 }
 0x991   :  { %v2217_v2 = vmul.f32 -1.442695, %v1653_v23 }
 0x993   :  { %v2363_v48 = vpop.eup %2362  ;;  %2364 = vpow2.f32 %v2217_v2 }
 0x994   :  { %v1680_v51 = vadd.f32 1.0, %v2363_v48 }
 0x996   :  { %2366 = vrcp.f32 %v1680_v51  ;;  %v1692_v53 = vand.u32 2147483648, %v1680_v51  ;;  %vm1686_vm13 = vweird.f32 %v1680_v51  ;;  %v1690_v30 = vand.u32 2147483647, %v1680_v51 }
 0x998   :  { %v1693_v38 = vor.u32 1.1754944e-38, %v1692_v53  ;;  %vm1691_vm15 = vcmp.eq.f32.partialorder %v1690_v30, 8.507059e+37 }
 0x999   :  { %v2365_v34 = vpop.eup %2364 }
 0x99a   :  { %v1657_v0 = vadd.f32 1.0, %v2365_v34 }
 0x99c   :  { %2368 = vrcp.f32 %v1657_v0  ;;  %v2367_v9 = vpop.eup %2366  ;;  %v1669_v24 = vand.u32 2147483648, %v1657_v0  ;;  %v1667_v26 = vand.u32 2147483647, %v1657_v0  ;;  %vm1663_vm9 = vweird.f32 %v1657_v0 }
 0x99d   :  { %v1682_v15 = vmul.f32 %v2367_v9, %v1680_v51  ;;  %vm1687_vm12 = vweird.f32 %v2367_v9 }
 0x99e   :  { %v1670_v40 = vor.u32 1.1754944e-38, %v1669_v24  ;;  %vm1668_vm11 = vcmp.eq.f32.partialorder %v1667_v26, 8.507059e+37  ;;  %vm1688_vm14 = vmor %vm1686_vm13, %vm1687_vm12 }
 0x99f   :  { %v1683_v21 = vsub.f32 1.0, %v1682_v15 }
 0x9a1   :  { %v1684_v27 = vmul.f32 %v2367_v9, %v1683_v21 }
 0x9a2   :  { %v2369_v18 = vpop.eup %2368 }
 0x9a3   :  { %v1659_v19 = vmul.f32 %v2369_v18, %v1657_v0  ;;  %vm1664_vm8 = vweird.f32 %v2369_v18  ;;  %v1685_v35 = vadd.f32 %v2367_v9, %v1684_v27 }
 0x9a4   :  { %vm1665_vm10 = vmor %vm1663_vm9, %vm1664_vm8 }
 0x9a5   :  { %v1660_v22 = vsub.f32 1.0, %v1659_v19  ;;  %v1689_v44 = vsel %vm1688_vm14, %v2367_v9, %v1685_v35 }
 0x9a6   :  { %v1694_v33 = vsel %vm1691_vm15, %v1693_v38, %v1689_v44 }
 0x9a7   :  { %v1661_v25 = vmul.f32 %v2369_v18, %v1660_v22  ;;  %v1702_v42 = vsub.f32 1.0, %v1694_v33  ;;  %v1704_v32 = vmul.f32 %v1694_v33, %v4166_v59  ;;  %v4259_v59 = vld [vmem:[%s4372_s0 + $0x54] sm:$0x3f] }
 0x9a8   :  { %v1791_v37 = vrot.slane %v4259_v59, 2 }
 0x9a9   :  { %v1662_v29 = vadd.f32 %v2369_v18, %v1661_v25 }
 0x9ab   :  { %v1666_v47 = vsel %vm1665_vm10, %v2369_v18, %v1662_v29  ;;  %v1815_v29 = vrot.slane %v4259_v59, 4 }
 0x9ac   :  { %v1671_v55 = vsel %vm1668_vm11, %v1670_v40, %v1666_v47 }
 0x9ad   :  { %v1697_v54 = vmul.f32 %v1696_v3, %v1671_v55 }
 0x9af   :  { %v1700_v4 = vadd.f32 %v1698_v60, %v1697_v54 }
 0x9b1   :  { %2370 = vtanh.f32 %v1700_v4 }
 0x9b7   :  { %v2371_v61 = vpop.eup %2370 }
 0x9b8   :  { %v1703_v7 = vmul.f32 %v2371_v61, %v1702_v42 }
 0x9ba   :  { %v4248_v39 = vadd.f32 %v1704_v32, %v1703_v7 }
 0x9bc   :  { %1707 = vst [vmem:[#allocation2 + $0x1a] sm:$0x3] %v4248_v39  ;;  %1726 = vmatmul.f32.vlgmr.msra.gmra.mxu2 %v4248_v39  ;;  %1746 = vmatmul.f32.vlgmr.msra.gmra.mxu3 %v4248_v39 }
 0x9bd   :  { %1766 = vmatmul.f32.vlgmr.msra.gmra.mxu0 %v4248_v39 }
 0x9c3   :  { %v1955_v63 = vld [vmem:[#allocation2 + $0x1a] sm:$0x3] }
 0x9c4   :  { %2016 = vst [vmem:[#allocation1 + $0x21] ss:$4 sm:$0xff] %v1955_v63 }
 0x9c5   :  { %2041 = vmatmul.f32.vlgmr.msrb.gmra.mxu0 %v4538_v56 }
 0x9cd   :  { %2044 = vmatmul.f32.gmra.mxu0 %v4175_v6 }
 0x9d5   :  { %2047 = vmatmul.f32.gmra.mxu0 %v2019_v36 }
 0xa3a   :  { %v1767_v62 = vpop.f32.mrf.mxu0 }
 0xa3b   :  { %v1813_v25 = vadd.f32 %v4044_v5, %v1767_v62 }
 0xa3f   :  { %v1727_v1 = vpop.f32.mrf.mxu2  ;;  %v1747_v50 = vpop.f32.mrf.mxu3 }
 0xa40   :  { %v1770_v45 = vadd.f32 %v4259_v59, %v1727_v1  ;;  %v1793_v6 = vadd.f32 %v1791_v37, %v1747_v50 }
 0xa42   :  { %v2220_v49 = vmul.f32 -1.442695, %v1770_v45  ;;  %v2221_v8 = vmul.f32 -1.442695, %v1793_v6  ;;  %v2042_v11 = vpop.f32.mrf.mxu0 }
 0xa43   :  { %v2043_v14 = vadd.f32 %v4265_v58, %v2042_v11 }
 0xa44   :  { %2372 = vpow2.f32 %v2220_v49 }
 0xa45   :  { %2374 = vpow2.f32 %v2221_v8  ;;  %v2225_v17 = vmul.f32 -1.442695, %v2043_v14 }
 0xa47   :  { %2376 = vpow2.f32 %v2225_v17 }
 0xa4a   :  { %v2373_v20 = vpop.eup %2372  ;;  %v2045_v23 = vpop.f32.mrf.mxu0 }
 0xa4b   :  { %v2375_v31 = vpop.eup %2374  ;;  %v1774_v2 = vadd.f32 1.0, %v2373_v20  ;;  %v2046_v57 = vadd.f32 %v4265_v58, %v2045_v23 }
 0xa4c   :  { %v4270_v48 = vadd.f32 1.0, %v2375_v31 }
 0xa4d   :  { %v2377_v41 = vpop.eup %2376  ;;  %2378 = vrcp.f32 %v1774_v2  ;;  %v2226_v43 = vmul.f32 -1.442695, %v2046_v57  ;;  %v1784_v16 = vand.u32 2147483647, %v1774_v2  ;;  %v1786_v18 = vand.u32 2147483648, %v1774_v2 }
 0xa4e   :  { %2380 = vrcp.f32 %v4270_v48  ;;  %v2066_v51 = vadd.f32 1.0, %v2377_v41  ;;  %vm1780_vm1 = vweird.f32 %v1774_v2  ;;  %v1809_v30 = vand.u32 2147483648, %v4270_v48 }
 0xa4f   :  { %vm1785_vm3 = vcmp.eq.f32.partialorder %v1784_v16, 8.507059e+37  ;;  %v1787_v60 = vor.u32 1.1754944e-38, %v1786_v18  ;;  %vm1803_vm7 = vweird.f32 %v4270_v48  ;;  %v1807_v33 = vand.u32 2147483647, %v4270_v48 }
 0xa50   :  { %2382 = vrcp.f32 %v2066_v51  ;;  %v2081_v3 = vand.u32 2147483648, %v2066_v51  ;;  %v2079_v55 = vand.u32 2147483647, %v2066_v51  ;;  %vm2075_vm6 = vweird.f32 %v2066_v51 }
 0xa51   :  { %2384 = vpow2.f32 %v2226_v43  ;;  %v1810_v56 = vor.u32 1.1754944e-38, %v1809_v30  ;;  %vm1808_vm11 = vcmp.eq.f32.partialorder %v1807_v33, 8.507059e+37 }
 0xa52   :  { %v2048_v46 = vpop.f32.mrf.mxu0  ;;  %v2082_v42 = vor.u32 1.1754944e-38, %v2081_v3  ;;  %vm2080_vm10 = vcmp.eq.f32.partialorder %v2079_v55, 8.507059e+37 }
 0xa53   :  { %v2379_v34 = vpop.eup %2378  ;;  %v2049_v52 = vadd.f32 %v4265_v58, %v2048_v46 }
 0xa54   :  { %v4274_v0 = vpop.eup %2380  ;;  %v1776_v9 = vmul.f32 %v2379_v34, %v1774_v2  ;;  %vm1781_vm0 = vweird.f32 %v2379_v34 }
 0xa55   :  { %v1799_v10 = vmul.f32 %v4274_v0, %v4270_v48  ;;  %v2227_v12 = vmul.f32 -1.442695, %v2049_v52  ;;  %vm1782_vm2 = vmor %vm1780_vm1, %vm1781_vm0  ;;  %vm1804_vm5 = vweird.f32 %v4274_v0 }
 0xa56   :  { %v1777_v13 = vsub.f32 1.0, %v1776_v9  ;;  %v2383_v15 = vpop.eup %2382  ;;  %vm4291_vm9 = vmor %vm1803_vm7, %vm1804_vm5 }
 0xa57   :  { %v1800_v19 = vsub.f32 1.0, %v1799_v10  ;;  %2386 = vpow2.f32 %v2227_v12  ;;  %v2385_v21 = vpop.eup %2384  ;;  %v2071_v24 = vmul.f32 %v2383_v15, %v2066_v51  ;;  %vm2076_vm4 = vweird.f32 %v2383_v15 }
 0xa58   :  { %v1778_v22 = vmul.f32 %v2379_v34, %v1777_v13  ;;  %v4280_v27 = vadd.f32 1.0, %v2385_v21  ;;  %vm2077_vm8 = vmor %vm2075_vm6, %vm2076_vm4 }
 0xa59   :  { %v1801_v26 = vmul.f32 %v4274_v0, %v1800_v19  ;;  %v2072_v40 = vsub.f32 1.0, %v2071_v24  ;;  %v2222_v24 = vld [vmem:[%s4372_s0 + $0x5a] sm:$0x3f] }
 0xa5a   :  { %v1779_v28 = vadd.f32 %v2379_v34, %v1778_v22  ;;  %2388 = vrcp.f32 %v4280_v27  ;;  %v2094_v8 = vand.u32 2147483647, %v4280_v27  ;;  %v2096_v11 = vand.u32 2147483648, %v4280_v27 }
 0xa5b   :  { %v2073_v35 = vmul.f32 %v2383_v15, %v2072_v40  ;;  %v1802_v54 = vadd.f32 %v4274_v0, %v1801_v26  ;;  %vm2090_vm13 = vweird.f32 %v4280_v27  ;;  %v1932_v7 = vrot.slane %v2222_v24, 4 }
 0xa5c   :  { %v1783_v47 = vsel %vm1782_vm2, %v2379_v34, %v1779_v28  ;;  %vm2095_vm15 = vcmp.eq.f32.partialorder %v2094_v8, 8.507059e+37  ;;  %v2097_v41 = vor.u32 1.1754944e-38, %v2096_v11  ;;  %v1908_v28 = vrot.slane %v2222_v24, 2 }
 0xa5d   :  { %v2387_v5 = vpop.eup %2386  ;;  %v1788_v53 = vsel %vm1785_vm3, %v1787_v60, %v1783_v47  ;;  %v2074_v44 = vadd.f32 %v2383_v15, %v2073_v35  ;;  %v1806_v59 = vsel %vm4291_vm9, %v4274_v0, %v1802_v54 }
 0xa5e   :  { %v1814_v4 = vmul.f32 %v1813_v25, %v1788_v53  ;;  %v4287_v38 = vadd.f32 1.0, %v2387_v5  ;;  %v1811_v45 = vsel %vm1808_vm11, %v1810_v56, %v1806_v59 }
 0xa5f   :  { %v2078_v32 = vsel %vm2077_vm8, %v2383_v15, %v2074_v44  ;;  %v1819_v20 = vsub.f32 1.0, %v1811_v45  ;;  %v1821_v48 = vmul.f32 %v1811_v45, %v4248_v39 }
 0xa60   :  { %v1817_v61 = vadd.f32 %v1815_v29, %v1814_v4  ;;  %2390 = vrcp.f32 %v4287_v38  ;;  %v2389_v63 = vpop.eup %2388  ;;  %v2083_v36 = vsel %vm2080_vm10, %v2082_v42, %v2078_v32  ;;  %v2109_v51 = vand.u32 2147483647, %v4287_v38 }
 0xa61   :  { %v2134_v62 = vrot.slane %v2083_v36, 2  ;;  %v2135_v37 = vrot.slane %v2083_v36, 4  ;;  %v2136_v1 = vrot.slane %v2083_v36, 6  ;;  %2158 = vst [vmem:[%s4375_s5] sm:$0x3] %v2083_v36  ;;  %v2086_v50 = vmul.f32 %v2389_v63, %v4280_v27  ;;  %v2506_v36 = vld [vmem:[%s4371_s2] ss:$0 sm:$0xff] }
 0xa62   :  { %2392 = vtanh.f32 %v1817_v61  ;;  %vm2091_vm12 = vweird.f32 %v2389_v63  ;;  %v2111_v43 = vand.u32 2147483648, %v4287_v38  ;;  %vm2105_vm1 = vweird.f32 %v4287_v38 }
 0xa63   :  { %2159 = vst [vmem:[%s4375_s5 + $0x2] sm:$0x3] %v2134_v62  ;;  %v2087_v6 = vsub.f32 1.0, %v2086_v50  ;;  %vm2092_vm14 = vmor %vm2090_vm13, %vm2091_vm12  ;;  %vm2110_vm3 = vcmp.eq.f32.partialorder %v2109_v51, 8.507059e+37 }
 0xa64   :  { %2160 = vst [vmem:[%s4375_s5 + $0x4] sm:$0x3] %v2135_v37  ;;  %v2112_v13 = vor.u32 1.1754944e-38, %v2111_v43 }
 0xa65   :  { %2161 = vst [vmem:[%s4375_s5 + $0x6] sm:$0x3] %v2136_v1  ;;  %v2088_v14 = vmul.f32 %v2389_v63, %v2087_v6 }
 0xa66   :  { %v2391_v49 = vpop.eup %2390 }
 0xa67   :  { %v2101_v17 = vmul.f32 %v2391_v49, %v4287_v38  ;;  %v2089_v31 = vadd.f32 %v2389_v63, %v2088_v14  ;;  %vm2106_vm0 = vweird.f32 %v2391_v49 }
 0xa68   :  { %v2393_v23 = vpop.eup %2392  ;;  %vm2107_vm2 = vmor %vm2105_vm1, %vm2106_vm0 }
 0xa69   :  { %v2102_v2 = vsub.f32 1.0, %v2101_v17  ;;  %v1820_v57 = vmul.f32 %v2393_v23, %v1819_v20  ;;  %v2093_v46 = vsel %vm2092_vm14, %v2389_v63, %v2089_v31 }
 0xa6a   :  { %v2098_v0 = vsel %vm2095_vm15, %v2097_v41, %v2093_v46 }
 0xa6b   :  { %v2103_v34 = vmul.f32 %v2391_v49, %v2102_v2  ;;  %v4319_v52 = vadd.f32 %v1821_v48, %v1820_v57  ;;  %v2137_v9 = vrot.slane %v2098_v0, 2  ;;  %v2138_v10 = vrot.slane %v2098_v0, 4  ;;  %2162 = vst [vmem:[%s4375_s5 + $0x8] sm:$0x3] %v2098_v0 }
 0xa6c   :  { %v2139_v12 = vrot.slane %v2098_v0, 6 }
 0xa6d   :  { %v2104_v39 = vadd.f32 %v2391_v49, %v2103_v34  ;;  %1843 = vmatmul.f32.vlgmr.msra.gmra.mxu1 %v4319_v52  ;;  %1863 = vmatmul.f32.vlgmr.msrb.gmra.mxu2 %v4319_v52  ;;  %1824 = vst [vmem:[#allocation2 + $0x1c] sm:$0x3] %v4319_v52 }
 0xa6e   :  { %1883 = vmatmul.f32.vlgmr.msrb.gmra.mxu3 %v4319_v52  ;;  %2163 = vst [vmem:[%s4375_s5 + $0xa] sm:$0x3] %v2137_v9 }
 0xa6f   :  { %v2108_v15 = vsel %vm2107_vm2, %v2391_v49, %v2104_v39  ;;  %2164 = vst [vmem:[%s4375_s5 + $0xc] sm:$0x3] %v2138_v10 }
 0xa70   :  { %v2113_v16 = vsel %vm2110_vm3, %v2112_v13, %v2108_v15  ;;  %2165 = vst [vmem:[%s4375_s5 + $0xe] sm:$0x3] %v2139_v12 }
 0xa71   :  { %v2140_v18 = vrot.slane %v2113_v16, 2  ;;  %v2141_v19 = vrot.slane %v2113_v16, 4  ;;  %v2142_v21 = vrot.slane %v2113_v16, 6  ;;  %2166 = vst [vmem:[%s4375_s5 + $0x10] sm:$0x3] %v2113_v16 }
 0xa73   :  { %2167 = vst [vmem:[%s4375_s5 + $0x12] sm:$0x3] %v2140_v18 }
 0xa74   :  { %2168 = vst [vmem:[%s4375_s5 + $0x14] sm:$0x3] %v2141_v19  ;;  %v1956_v22 = vld [vmem:[#allocation2 + $0x1c] sm:$0x3] }
 0xa75   :  { %2169 = vst [vmem:[%s4375_s5 + $0x16] sm:$0x3] %v2142_v21 }
 0xa76   :  { %2017 = vst [vmem:[#allocation1 + $0x22] ss:$4 sm:$0xff] %v1956_v22 }
 0xaea   :  { %v1844_v25 = vpop.f32.mrf.mxu1 }
 0xaeb   :  { %v1887_v26 = vadd.f32 %v2222_v24, %v1844_v25 }
 0xaed   :  { %v2223_v27 = vmul.f32 -1.442695, %v1887_v26 }
 0xaef   :  { %2394 = vpow2.f32 %v2223_v27 }
 0xaf0   :  { %v1864_v29 = vpop.f32.mrf.mxu2 }
 0xaf1   :  { %v1910_v40 = vadd.f32 %v1908_v28, %v1864_v29  ;;  %v1884_v33 = vpop.f32.mrf.mxu3 }
 0xaf2   :  { %v1930_v59 = vadd.f32 %v2506_v36, %v1884_v33 }
 0xaf3   :  { %v2224_v60 = vmul.f32 -1.442695, %v1910_v40 }
 0xaf5   :  { %v2395_v3 = vpop.eup %2394  ;;  %2396 = vpow2.f32 %v2224_v60 }
 0xaf6   :  { %v1891_v47 = vadd.f32 1.0, %v2395_v3 }
 0xaf8   :  { %2398 = vrcp.f32 %v1891_v47  ;;  %v1903_v30 = vand.u32 2147483648, %v1891_v47  ;;  %v1901_v44 = vand.u32 2147483647, %v1891_v47  ;;  %vm1897_vm5 = vweird.f32 %v1891_v47 }
 0xafa   :  { %v1904_v32 = vor.u32 1.1754944e-38, %v1903_v30  ;;  %vm1902_vm7 = vcmp.eq.f32.partialorder %v1901_v44, 8.507059e+37 }
 0xafb   :  { %v2397_v35 = vpop.eup %2396 }
 0xafc   :  { %v1914_v55 = vadd.f32 1.0, %v2397_v35 }
 0xafe   :  { %v2399_v5 = vpop.eup %2398  ;;  %2400 = vrcp.f32 %v1914_v55  ;;  %v1926_v1 = vand.u32 2147483648, %v1914_v55  ;;  %v1924_v45 = vand.u32 2147483647, %v1914_v55  ;;  %vm1920_vm9 = vweird.f32 %v1914_v55 }
 0xaff   :  { %v1893_v53 = vmul.f32 %v2399_v5, %v1891_v47  ;;  %vm1898_vm4 = vweird.f32 %v2399_v5 }
 0xb00   :  { %vm1899_vm6 = vmor %vm1897_vm5, %vm1898_vm4  ;;  %v1927_v8 = vor.u32 1.1754944e-38, %v1926_v1  ;;  %vm1925_vm11 = vcmp.eq.f32.partialorder %v1924_v45, 8.507059e+37 }
 0xb01   :  { %v1894_v54 = vsub.f32 1.0, %v1893_v53 }
 0xb03   :  { %v1895_v4 = vmul.f32 %v2399_v5, %v1894_v54 }
 0xb04   :  { %v2401_v38 = vpop.eup %2400 }
 0xb05   :  { %v1916_v42 = vmul.f32 %v2401_v38, %v1914_v55  ;;  %v1896_v61 = vadd.f32 %v2399_v5, %v1895_v4  ;;  %vm1921_vm8 = vweird.f32 %v2401_v38 }
 0xb06   :  { %vm1922_vm10 = vmor %vm1920_vm9, %vm1921_vm8 }
 0xb07   :  { %v1917_v63 = vsub.f32 1.0, %v1916_v42  ;;  %v1900_v56 = vsel %vm1899_vm6, %v2399_v5, %v1896_v61 }
 0xb08   :  { %v1905_v62 = vsel %vm1902_vm7, %v1904_v32, %v1900_v56 }
 0xb09   :  { %v1918_v37 = vmul.f32 %v2401_v38, %v1917_v63  ;;  %v1931_v50 = vmul.f32 %v1930_v59, %v1905_v62 }
 0xb0b   :  { %v1919_v6 = vadd.f32 %v2401_v38, %v1918_v37  ;;  %v1934_v49 = vadd.f32 %v1932_v7, %v1931_v50 }
 0xb0d   :  { %v1923_v11 = vsel %vm1922_vm10, %v2401_v38, %v1919_v6  ;;  %2402 = vtanh.f32 %v1934_v49 }
 0xb0e   :  { %v1928_v14 = vsel %vm1925_vm11, %v1927_v8, %v1923_v11 }
 0xb0f   :  { %v1936_v17 = vsub.f32 1.0, %v1928_v14  ;;  %v1938_v31 = vmul.f32 %v1928_v14, %v4319_v52 }
 0xb13   :  { %v2403_v20 = vpop.eup %2402 }
 0xb14   :  { %v1937_v23 = vmul.f32 %v2403_v20, %v1936_v17 }
 0xb16   :  { %v1939_v2 = vadd.f32 %v1938_v31, %v1937_v23 }
 0xb18   :  { %1941 = vst [vmem:[#allocation2 + $0x1e] sm:$0x3] %v1939_v2 }
 0xb1f   :  { %v1957_v57 = vld [vmem:[#allocation2 + $0x1e] sm:$0x3] }
 0xb20   :  { %2018 = vst [vmem:[#allocation1 + $0x23] ss:$4 sm:$0xff] %v1957_v57 }
 0xb27   :  { %v2020_v48 = vld.sshfl [vmem:[#allocation1 + $0x20] sm:$0xff pattern:$0x73625140] }
 0xb28   :  { %2050 = vmatmul.f32.gmra.mxu0 %v2020_v48 }
 0xba5   :  { %v2051_v41 = vpop.f32.mrf.mxu0 }
 0xba6   :  { %v2052_v51 = vadd.f32 %v4265_v58, %v2051_v41 }
 0xba8   :  { %v2228_v43 = vmul.f32 -1.442695, %v2052_v51 }
 0xbaa   :  { %2404 = vpow2.f32 %v2228_v43 }
 0xbb0   :  { %v2405_v46 = vpop.eup %2404 }
 0xbb1   :  { %v2069_v34 = vadd.f32 1.0, %v2405_v46 }
 0xbb3   :  { %2406 = vrcp.f32 %v2069_v34  ;;  %v2126_v12 = vand.u32 2147483648, %v2069_v34  ;;  %v2124_v52 = vand.u32 2147483647, %v2069_v34  ;;  %vm2120_vm13 = vweird.f32 %v2069_v34 }
 0xbb5   :  { %v2127_v15 = vor.u32 1.1754944e-38, %v2126_v12  ;;  %vm2125_vm15 = vcmp.eq.f32.partialorder %v2124_v52, 8.507059e+37 }
 0xbb9   :  { %v2407_v0 = vpop.eup %2406 }
 0xbba   :  { %v2116_v9 = vmul.f32 %v2407_v0, %v2069_v34  ;;  %vm2121_vm12 = vweird.f32 %v2407_v0 }
 0xbbb   :  { %vm2122_vm14 = vmor %vm2120_vm13, %vm2121_vm12 }
 0xbbc   :  { %v2117_v10 = vsub.f32 1.0, %v2116_v9 }
 0xbbe   :  { %v2118_v39 = vmul.f32 %v2407_v0, %v2117_v10 }
 0xbc0   :  { %v2119_v13 = vadd.f32 %v2407_v0, %v2118_v39 }
 0xbc2   :  { %v2123_v16 = vsel %vm2122_vm14, %v2407_v0, %v2119_v13 }
 0xbc3   :  { %v2128_v18 = vsel %vm2125_vm15, %v2127_v15, %v2123_v16 }
 0xbc4   :  { %v2143_v58 = vrot.slane %v2128_v18, 2  ;;  %v2144_v19 = vrot.slane %v2128_v18, 4  ;;  %v2145_v21 = vrot.slane %v2128_v18, 6  ;;  %2170 = vst [vmem:[%s4375_s5 + $0x18] sm:$0x3] %v2128_v18 }
 0xbc6   :  { %2171 = vst [vmem:[%s4375_s5 + $0x1a] sm:$0x3] %v2143_v58 }
 0xbc7   :  { %2172 = vst [vmem:[%s4375_s5 + $0x1c] sm:$0x3] %v2144_v19 }
 0xbc8   :  { %2173 = vst [vmem:[%s4375_s5 + $0x1e] sm:$0x3] %v2145_v21 }

// kernel: mshe_a_forward.2
= control target key start
LH: loop header
LB: loop body
LE: loop exit
PB: predicated region body
PF: predicated region fallthrough
CT: control target
= control target key end

     0   :  { %s9948_s0 = inlined_call_operand.vmem [shape: f32[2,18,18,4], index: 0, kind: input, shape index: {}]   ;;  %s9949_s1 = inlined_call_operand.vmem [shape: bf16[9,4,128], index: 1, kind: input, shape index: {}]   ;;  %s9950_s2 = inlined_call_operand.vmem [shape: f32[1,128], index: 2, kind: input, shape index: {}]   ;;  %s9951_s3 = inlined_call_operand.vmem [shape: bf16[9,128,128], index: 3, kind: input, shape index: {}]   ;;  %s9952_s4 = inlined_call_operand.vmem [shape: f32[1,128], index: 4, kind: input, shape index: {}]   ;;  %s9953_s5 = inlined_call_operand.vmem [shape: bf16[128,384], index: 5, kind: input, shape index: {}]   ;;  %s9954_s6 = inlined_call_operand.vmem [shape: f32[1,384], index: 6, kind: input, shape index: {}]   ;;  %s9955_s7 = inlined_call_operand.vmem [shape: bf16[128,128], index: 7, kind: input, shape index: {}]   ;;  %s9956_s8 = inlined_call_operand.vmem [shape: f32[1,128], index: 8, kind: input, shape index: {}]   ;;  %s9957_s9 = inlined_call_operand.vmem [shape: bf16[128,128], index: 9, kind: input, shape index: {}]   ;;  %s9958_s10 = inlined_call_operand.vmem [shape: f32[1,128], index: 10, kind: input, shape index: {}]   ;;  %s9959_s11 = inlined_call_operand.vmem [shape: f32[16,768], index: 11, kind: output, shape index: {0}]   ;;  %s9960_s12 = inlined_call_operand.hbm [shape: f32[2,1,128], index: 12, kind: output, shape index: {1}]  }
   0x1   :  { %10070 = sst [smem:[#allocation48_spill]] %s9948_s0 }
   0x2   :  { %10071 = sst [smem:[#allocation49_spill]] %s9949_s1 }
   0x3   :  { %10072 = sst [smem:[#allocation50_spill]] %s9950_s2 }
   0x4   :  { %10073 = sst [smem:[#allocation51_spill]] %s9951_s3 }
   0x5   :  { %10074 = sst [smem:[#allocation52_spill]] %s9952_s4 }
   0x6   :  { %18 = vsyncpa [#allocation5], 0 }
   0x7   :  { %20 = vsyncpa [#allocation5 + $0x1], 0  ;;  %s6812_s21 = smov 0   ;;  %s6814_s22 = smov 0  }
   0x8   :  { %s6816_s23 = smov 0   ;;  %s6818_s24 = smov 0  }
   0x9 LB: > { %s6833_s25 = sadd.s32 4294967295, %s6741_s24   ;;  %s5878_s26 = sadd.s32 4294967294, %s6741_s24   ;;  %s6741_s24 = sphi %s6818_s24, %s10329_s24   ;;  %s6737_s23 = sphi %s6816_s23, %s10328_s23   ;;  %s6733_s22 = sphi %s6814_s22, %s10327_s22   ;;  %s6729_s21 = sphi %s6812_s21, %s10326_s21  }
   0xa   : > { %s6837_s27 = sadd.s32 1, %s6741_s24   ;;  %s269_s28 = sadd.s32 1, %s6737_s23 }
   0xb   : > { %s266_s29 = ssub.s32 %s6741_s24, %s6837_s27  ;;  %p279_p0 = scmp.ne.s32.totalorder %s6737_s23, %s6733_s22 }
   0xc   : > { %p267_p1 = scmp.eq.s32.totalorder %s266_s29, 0  ;;  %p280_p2 = scmp.eq.s32.totalorder %s6833_s25, 1 }
   0xd   : > { %p311_p3 = scmp.ne.s32.totalorder %s6733_s22, %s6729_s21  ;;  %p312_p4 = scmp.eq.s32.totalorder %s5878_s26, 1 }
   0xe   : > { %s6848_s30 = scalar_select %p267_p1, %s6737_s23, %s269_s28  }
   0xf   : > { %p6850_p5 = por %p280_p2, %p279_p0  ;;  %p6854_p6 = por %p312_p4, %p311_p3 }
  0x10   : > { %p5881_p7 = scmp.ge.s32.totalorder %s6741_s24, 1  ;;  %p368_p8 = scmp.lt.s32.totalorder %s6741_s24, 3 }
  0x12   : > { %p369_p9 = pnand %p5881_p7, %p368_p8 }
  0x14   : > { %372 = sbr.rel (%p369_p9) target bundleno = 1822 (0x71e), region = 64 }
  0x19   : > { %s10077_s1 = sld [smem:[#allocation49_spill]]  ;;  %vm1021_vm0 = vcmask 1041408   ;;  %p413_p10 = scmp.lt.s32.totalorder %s6833_s25, 1  ;;  %vm537_vm1 = vsmask.f32 3328  ;;  %vm972_vm2 = vcmask 31744  }
  0x1a   : > { %s10078_s0 = sld [smem:[#allocation48_spill]]  ;;  %vm538_vm3 = vsmask.f32 7440  ;;  %v10080_v39 = vmov 0  ;;  %vm1350_vm5 = vcmask 1042432   ;;  %vm1351_vm6 = vcmask 1046532  }
  0x1b   : > { %s414_s19 = scalar_select %p413_p10, %s6833_s25, 1  ;;  %vm6915_vm4 = vmor %vm537_vm1, %vm538_vm3 }
  0x1c   : > { %v10081_v39 = vsel %vm6915_vm4, 4294967295, %v10080_v39  ;;  %vm7143_vm7 = vmor %vm1350_vm5, %vm1351_vm6  ;;  %s10130_s3 = sld [smem:[#allocation51_spill]]  ;;  %s9863_s20 = sand.u32 1, %s6733_s22  }
  0x1d   : > { %s6631_s28 = smul.u32 432, %s414_s19  ;;  %10082 = vst [vmem:[#allocation8_spill] sm:$0xff] %v10081_v39  ;;  %s10197_s2 = sld [smem:[#allocation50_spill]] }
  0x1e   : > { %s10323_s4 = sld [smem:[#allocation52_spill]]  ;;  %s412_s26 = scalar_lea.vmem [#allocation4], %s9863_s20 }
  0x1f   : > { %v528_v0 = vld [vmem:[%s10077_s1] sm:$0x3]  ;;  %v529_v2 = vld [vmem:[%s10077_s1 + $0x2] sm:$0x3]  ;;  %v532_v4 = vld [vmem:[%s10077_s1 + $0x8] sm:$0x3] }
  0x20   : > { %v1243_v1 = vsel %vm1021_vm0, %v528_v0, 0  ;;  %v1023_v3 = vsel %vm1021_vm0, %v529_v2, 0  ;;  %v1848_v5 = vsel %vm1021_vm0, %v532_v4, 0  ;;  %s6877_s16 = scalar_lea.vmem %s10078_s0, %s6631_s28  ;;  %s6626_s29 = smul.u32 (%p6850_p5), 24, %s6833_s25 }
  0x21   : > { %6628 = vmatpush.bf16.msra.mxu2 %v1243_v1  ;;  %1252 = vmatpush.bf16.msra.mxu1 %v1243_v1  ;;  %v450_v6 = vld [vmem:[%s6877_s16 + $0xf0] sm:$0xff]  ;;  %v451_v7 = vld [vmem:[%s6877_s16 + $0xf8] sm:$0xff]  ;;  %v420_v8 = vld [vmem:[%s6877_s16] sm:$0xff] }
  0x22   : > { %1032 = vmatpush.bf16.msra.mxu0 %v1023_v3  ;;  %6627 = vmatpush.bf16.msra.mxu3 %v1023_v3  ;;  %v6882_v9 = vpack.c.bf16 %v450_v6, %v450_v6  ;;  %v6884_v10 = vpack.c.bf16 %v451_v7, %v451_v7  ;;  %v421_v11 = vld [vmem:[%s6877_s16 + $0x8] sm:$0xff]  ;;  %v422_v12 = vld [vmem:[%s6877_s16 + $0x10] sm:$0x3]  ;;  %v6888_v13 = vpack.c.bf16 %v420_v8, %v420_v8  ;;  %v452_v14 = vld [vmem:[%s6877_s16 + $0x100] sm:$0x3]  ;;  %s5758_s18 = scalar_lea.vmem (%p6850_p5), %s9959_s11, %s6626_s29 }
  0x23   : > { %v6891_v15 = vpack.c.bf16 %v421_v11, %v421_v11  ;;  %v6893_v16 = vpack.c.bf16 %v422_v12, %v422_v12  ;;  %v6895_v17 = vpack.c.bf16 %v452_v14, %v452_v14  ;;  %v453_v38 = vld [vmem:[%s6877_s16 + $0x108] sm:$0xff]  ;;  %v454_v44 = vld [vmem:[%s6877_s16 + $0x110] sm:$0xff]  ;;  %v423_v49 = vld [vmem:[%s6877_s16 + $0x18] sm:$0xff] }
  0x24   : > { %v1166_v18 = vunpack.c.l.b16 %v6882_v9  ;;  %v1167_v19 = vunpack.c.l.b16 %v6884_v10  ;;  %v541_v20 = vshrl.u32 %v6888_v13, 16  ;;  %v544_v21 = vshll.u32 %v6888_v13, 16  ;;  %v424_v58 = vld [vmem:[%s6877_s16 + $0x20] sm:$0xff]  ;;  %v425_v59 = vld [vmem:[%s6877_s16 + $0x28] sm:$0x3] }
  0x25   : > { %v550_v22 = vshll.u32 %v6891_v15, 16  ;;  %v554_v23 = vshrl.u32 %v6891_v15, 16  ;;  %v560_v24 = vshll.u32 %v6893_v16, 16  ;;  %v781_v25 = vshrl.u32 %v6882_v9, 16  ;;  %v455_v8 = vld [vmem:[%s6877_s16 + $0x118] sm:$0x3] }
  0x26   : > { %1857 = vmatpush.bf16.msrb.mxu0 %v1848_v5  ;;  %6629 = vmatpush.bf16.msrb.mxu3 %v1243_v1  ;;  %v6905_v26 = vpack.c.b16 %v1167_v19, %v1166_v18  ;;  %v543_v27 = vrot.slane %v541_v20, 4  ;;  %v546_v28 = vrot.slane %v544_v21, 5  ;;  %v784_v29 = vshll.u32 %v6882_v9, 16 }
  0x27   : > { %v552_v30 = vrot.slane %v550_v22, 5  ;;  %v556_v31 = vrot.slane %v554_v23, 4  ;;  %v562_v32 = vrot.slane %v560_v24, 5  ;;  %v783_v33 = vrot.slane %v781_v25, 4 }
  0x28   : > { %10079 = vst [vmem:[#allocation7_spill] sm:$0xff] %v6905_v26  ;;  %5909 = vmatmul.msk.bf16.vlgmr.msra.gmra.mxu2 %vm972_vm2, %v6905_v26  ;;  %v547_v34 = vor.u32 %v546_v28, %v543_v27  ;;  %v786_v35 = vrot.slane %v784_v29, 5  ;;  %v790_v36 = vshll.u32 %v6884_v10, 16  ;;  %v794_v37 = vshrl.u32 %v6884_v10, 16 }
  0x29   : > { %v557_v40 = vor.u32 %v556_v31, %v552_v30  ;;  %v800_v41 = vshll.u32 %v6895_v17, 16  ;;  %v1146_v42 = vunpack.c.l.b16 %v6888_v13  ;;  %v1147_v43 = vunpack.c.l.b16 %v6891_v15 }
  0x2a   : > { %v548_v45 = vrot.slane %v547_v34, 4  ;;  %v787_v46 = vor.u32 %v786_v35, %v783_v33  ;;  %v792_v47 = vrot.slane %v790_v36, 5  ;;  %v796_v48 = vrot.slane %v794_v37, 4 }
  0x2b   : > { %v558_v50 = vrot.slane %v557_v40, 4  ;;  %v802_v51 = vrot.slane %v800_v41, 5  ;;  %v1178_v52 = vpack.c.b16 %v1147_v43, %v1146_v42  ;;  %v6924_v53 = vpack.c.bf16 %v453_v38, %v453_v38  ;;  %v456_v41 = vld [vmem:[%s6877_s16 + $0x120] sm:$0xff]  ;;  %v457_v42 = vld [vmem:[%s6877_s16 + $0x128] sm:$0xff] }
  0x2c   : > { %v553_v54 = vsel %vm6915_vm4, %v548_v45, %v552_v30  ;;  %v788_v55 = vrot.slane %v787_v46, 4  ;;  %v797_v56 = vor.u32 %v796_v48, %v792_v47  ;;  %v6928_v57 = vpack.c.bf16 %v454_v44, %v454_v44 }
  0x2d   : > { %v563_v60 = vsel %vm6915_vm4, %v558_v50, %v562_v32  ;;  %v924_v61 = vunpack.c.l.b16 %v553_v54  ;;  %5899 = vmatmul.msk.bf16.vlgmr.msra.gmra.mxu1 %vm972_vm2, %v1178_v52  ;;  %v1168_v62 = vunpack.c.l.b16 %v6924_v53  ;;  %v6936_v63 = vpack.c.bf16 %v423_v49, %v423_v49 }
  0x2e   : > { %v925_v0 = vunpack.c.l.b16 %v563_v60  ;;  %v793_v1 = vsel %vm6915_vm4, %v788_v55, %v792_v47  ;;  %v798_v2 = vrot.slane %v797_v56, 4  ;;  %v1169_v3 = vunpack.c.l.b16 %v6928_v57 }
  0x2f   : > { %v944_v4 = vunpack.c.l.b16 %v793_v1  ;;  %v6941_v5 = vpack.c.bf16 %v424_v58, %v424_v58  ;;  %v6943_v6 = vpack.c.bf16 %v425_v59, %v425_v59  ;;  %v565_v7 = vshrl.u32 %v6936_v63, 16  ;;  %v427_v58 = vld [vmem:[%s6877_s16 + $0x38] sm:$0xff]  ;;  %v428_v59 = vld [vmem:[%s6877_s16 + $0x40] sm:$0x3] }
  0x30   : > { %v956_v11 = vpack.c.b16 %v925_v0, %v924_v61  ;;  %v803_v12 = vsel %vm6915_vm4, %v798_v2, %v802_v51  ;;  %v6949_v14 = vpack.c.b16 %v1169_v3, %v1168_v62  ;;  %v568_v18 = vshll.u32 %v6936_v63, 16  ;;  %v426_v51 = vld [vmem:[%s6877_s16 + $0x30] sm:$0xff] }
  0x31   : > { %v945_v19 = vunpack.c.l.b16 %v803_v12  ;;  %v567_v20 = vrot.slane %v565_v7, 4  ;;  %v574_v21 = vshll.u32 %v6941_v5, 16  ;;  %v578_v22 = vshrl.u32 %v6941_v5, 16  ;;  %v458_v12 = vld [vmem:[%s6877_s16 + $0x130] sm:$0x3] }
  0x32   : > { %10083 = vst [vmem:[#allocation9_spill] sm:$0xff] %v6949_v14  ;;  %5883 = vmatmul.msk.bf16.vlgmr.msra.gmra.mxu0 %vm972_vm2, %v956_v11  ;;  %v570_v23 = vrot.slane %v568_v18, 5  ;;  %v584_v24 = vshll.u32 %v6943_v6, 16  ;;  %v6956_v25 = vpack.c.bf16 %v455_v8, %v455_v8  ;;  %v805_v27 = vshrl.u32 %v6924_v53, 16 }
  0x33   : > { %v6959_v28 = vpack.c.b16 %v945_v19, %v944_v4  ;;  %v576_v29 = vrot.slane %v574_v21, 5  ;;  %v580_v30 = vrot.slane %v578_v22, 4  ;;  %v808_v31 = vshll.u32 %v6924_v53, 16 }
  0x34   : > { %v571_v32 = vor.u32 %v570_v23, %v567_v20  ;;  %v586_v33 = vrot.slane %v584_v24, 5  ;;  %v807_v34 = vrot.slane %v805_v27, 4  ;;  %v814_v35 = vshll.u32 %v6928_v57, 16 }
  0x35   : > { %10084 = vst [vmem:[#allocation10_spill] sm:$0xff] %v6959_v28  ;;  %5893 = vmatmul.msk.bf16.vlgmr.msra.gmra.mxu3 %vm972_vm2, %v6959_v28  ;;  %v581_v36 = vor.u32 %v580_v30, %v576_v29  ;;  %v810_v37 = vrot.slane %v808_v31, 5  ;;  %v818_v38 = vshrl.u32 %v6928_v57, 16  ;;  %v824_v40 = vshll.u32 %v6956_v25, 16 }
  0x36   : > { %v572_v43 = vrot.slane %v571_v32, 4  ;;  %v816_v44 = vrot.slane %v814_v35, 5  ;;  %v1148_v45 = vunpack.c.l.b16 %v6936_v63  ;;  %v1149_v46 = vunpack.c.l.b16 %v6941_v5 }
  0x37   : > { %v582_v47 = vrot.slane %v581_v36, 4  ;;  %v811_v48 = vor.u32 %v810_v37, %v807_v34  ;;  %v820_v49 = vrot.slane %v818_v38, 4  ;;  %v826_v50 = vrot.slane %v824_v40, 5 }
  0x38   : > { %5910 = vmatmul.msk.bf16.gmra.mxu2 %vm972_vm2, %v6949_v14  ;;  %v577_v52 = vsel %vm6915_vm4, %v572_v43, %v576_v29  ;;  %v6976_v54 = vpack.c.b16 %v1149_v46, %v1148_v45  ;;  %v6978_v55 = vpack.c.bf16 %v456_v41, %v456_v41  ;;  %v6980_v56 = vpack.c.bf16 %v457_v42, %v457_v42 }
  0x39   : > { %v587_v60 = vsel %vm6915_vm4, %v582_v47, %v586_v33  ;;  %v926_v61 = vunpack.c.l.b16 %v577_v52  ;;  %v812_v62 = vrot.slane %v811_v48, 4  ;;  %v821_v0 = vor.u32 %v820_v49, %v816_v44 }
  0x3a   : > { %v927_v1 = vunpack.c.l.b16 %v587_v60  ;;  %v1170_v2 = vunpack.c.l.b16 %v6978_v55  ;;  %v6987_v3 = vpack.c.bf16 %v426_v51, %v426_v51  ;;  %v6991_v8 = vpack.c.bf16 %v427_v58, %v427_v58  ;;  %v459_v60 = vld [vmem:[%s6877_s16 + $0x138] sm:$0xff] }
  0x3b   : > { %v817_v4 = vsel %vm6915_vm4, %v812_v62, %v816_v44  ;;  %v822_v7 = vrot.slane %v821_v0, 4  ;;  %v6993_v11 = vpack.c.bf16 %v428_v59, %v428_v59  ;;  %v1171_v20 = vunpack.c.l.b16 %v6980_v56  ;;  %v430_v62 = vld [vmem:[%s6877_s16 + $0x50] sm:$0xff] }
  0x3c   : > { %v6996_v18 = vpack.c.b16 %v927_v1, %v926_v61  ;;  %v946_v19 = vunpack.c.l.b16 %v817_v4  ;;  %v589_v21 = vshrl.u32 %v6987_v3, 16  ;;  %v592_v23 = vshll.u32 %v6987_v3, 16  ;;  %v429_v61 = vld [vmem:[%s6877_s16 + $0x48] sm:$0xff] }
  0x3d   : > { %v827_v22 = vsel %vm6915_vm4, %v822_v7, %v826_v50  ;;  %5900 = vmatmul.msk.bf16.gmra.mxu1 %vm972_vm2, %v6976_v54  ;;  %v598_v24 = vshll.u32 %v6991_v8, 16  ;;  %v602_v27 = vshrl.u32 %v6991_v8, 16  ;;  %v608_v31 = vshll.u32 %v6993_v11, 16  ;;  %v460_v7 = vld [vmem:[%s6877_s16 + $0x140] sm:$0xff] }
  0x3e   : > { %v947_v29 = vunpack.c.l.b16 %v827_v22  ;;  %v591_v30 = vrot.slane %v589_v21, 4  ;;  %v7008_v32 = vpack.c.bf16 %v458_v12, %v458_v12  ;;  %v594_v33 = vrot.slane %v592_v23, 5  ;;  %v431_v12 = vld [vmem:[%s6877_s16 + $0x58] sm:$0x3]  ;;  %v461_v23 = vld [vmem:[%s6877_s16 + $0x148] sm:$0x3] }
  0x3f   : > { %v600_v34 = vrot.slane %v598_v24, 5  ;;  %v604_v35 = vrot.slane %v602_v27, 4  ;;  %v829_v36 = vshrl.u32 %v6978_v55, 16  ;;  %v610_v38 = vrot.slane %v608_v31, 5 }
  0x40   : > { %v7011_v37 = vpack.c.b16 %v947_v29, %v946_v19  ;;  %v832_v40 = vshll.u32 %v6978_v55, 16  ;;  %v838_v41 = vshll.u32 %v6980_v56, 16  ;;  %v595_v42 = vor.u32 %v594_v33, %v591_v30 }
  0x41   : > { %v605_v43 = vor.u32 %v604_v35, %v600_v34  ;;  %v831_v44 = vrot.slane %v829_v36, 4  ;;  %v842_v45 = vshrl.u32 %v6980_v56, 16  ;;  %v848_v48 = vshll.u32 %v7008_v32, 16 }
  0x42   : > { %10085 = vst [vmem:[#allocation11_spill] sm:$0xff] %v7011_v37  ;;  %5884 = vmatmul.msk.bf16.gmra.mxu0 %vm972_vm2, %v6996_v18  ;;  %v834_v46 = vrot.slane %v832_v40, 5  ;;  %v840_v47 = vrot.slane %v838_v41, 5  ;;  %v596_v49 = vrot.slane %v595_v42, 4  ;;  %v7019_v52 = vpack.c.b16 %v1171_v20, %v1170_v2 }
  0x43   : > { %v606_v50 = vrot.slane %v605_v43, 4  ;;  %v844_v51 = vrot.slane %v842_v45, 4  ;;  %v1150_v59 = vunpack.c.l.b16 %v6987_v3  ;;  %v1151_v2 = vunpack.c.l.b16 %v6991_v8 }
  0x44   : > { %10086 = vst [vmem:[#allocation12_spill] sm:$0xff] %v7019_v52  ;;  %v835_v58 = vor.u32 %v834_v46, %v831_v44  ;;  %v601_v0 = vsel %vm6915_vm4, %v596_v49, %v600_v34  ;;  %v850_v22 = vrot.slane %v848_v48, 5  ;;  %v7035_v27 = vpack.c.bf16 %v459_v60, %v459_v60 }
  0x45   : > { %5894 = vmatmul.msk.bf16.gmra.mxu3 %vm972_vm2, %v7011_v37  ;;  %v611_v1 = vsel %vm6915_vm4, %v606_v50, %v610_v38  ;;  %v845_v4 = vor.u32 %v844_v51, %v840_v47  ;;  %v928_v19 = vunpack.c.l.b16 %v601_v0  ;;  %v7037_v29 = vpack.c.bf16 %v429_v61, %v429_v61 }
  0x46   : > { %v929_v20 = vunpack.c.l.b16 %v611_v1  ;;  %v836_v21 = vrot.slane %v835_v58, 4  ;;  %10087 = vst [vmem:[#allocation13_spill] sm:$0xff] %v7035_v27  ;;  %v7039_v30 = vpack.c.bf16 %v430_v62, %v430_v62  ;;  %v7045_v33 = vpack.c.bf16 %v460_v7, %v460_v7 }
  0x47   : > { %v846_v24 = vrot.slane %v845_v4, 4  ;;  %v7047_v34 = vpack.c.bf16 %v431_v12, %v431_v12  ;;  %v7051_v36 = vpack.c.b16 %v1151_v2, %v1150_v59  ;;  %v613_v38 = vshrl.u32 %v7037_v29, 16 }
  0x48   : > { %5911 = vmatmul.msk.bf16.gmra.mxu2 %vm972_vm2, %v7019_v52  ;;  %v841_v31 = vsel %vm6915_vm4, %v836_v21, %v840_v47  ;;  %10088 = vst [vmem:[#allocation14_spill] sm:$0xff] %v7045_v33  ;;  %v7049_v35 = vpack.c.b16 %v929_v20, %v928_v19  ;;  %v7054_v40 = vpack.c.bf16 %v461_v23, %v461_v23  ;;  %v616_v42 = vshll.u32 %v7037_v29, 16  ;;  %v432_v21 = vld [vmem:[%s6877_s16 + $0x60] sm:$0xff] }
  0x49   : > { %10089 = vst [vmem:[#allocation15_spill] sm:$0xff] %v7051_v36  ;;  %v851_v41 = vsel %vm6915_vm4, %v846_v24, %v850_v22  ;;  %v622_v43 = vshll.u32 %v7039_v30, 16  ;;  %v626_v44 = vshrl.u32 %v7039_v30, 16  ;;  %v948_v45 = vunpack.c.l.b16 %v841_v31 }
  0x4a   : > { %10090 = vst [vmem:[#allocation16_spill] sm:$0xff] %v7054_v40  ;;  %v615_v46 = vrot.slane %v613_v38, 4  ;;  %v853_v47 = vshrl.u32 %v7035_v27, 16  ;;  %v856_v48 = vshll.u32 %v7035_v27, 16  ;;  %v618_v49 = vrot.slane %v616_v42, 5  ;;  %v462_v38 = vld [vmem:[%s6877_s16 + $0x150] sm:$0xff] }
  0x4b   : > { %v624_v50 = vrot.slane %v622_v43, 5  ;;  %v628_v51 = vrot.slane %v626_v44, 4  ;;  %v632_v58 = vshll.u32 %v7047_v34, 16  ;;  %v949_v59 = vunpack.c.l.b16 %v851_v41  ;;  %v463_v41 = vld [vmem:[%s6877_s16 + $0x158] sm:$0xff] }
  0x4c   : > { %v855_v60 = vrot.slane %v853_v47, 4  ;;  %v858_v61 = vrot.slane %v856_v48, 5  ;;  %v862_v62 = vshll.u32 %v7045_v33, 16  ;;  %v619_v0 = vor.u32 %v618_v49, %v615_v46  ;;  %v433_v47 = vld [vmem:[%s6877_s16 + $0x68] sm:$0xff] }
  0x4d   : > { %5901 = vmatmul.msk.bf16.gmra.mxu1 %vm972_vm2, %v7051_v36  ;;  %v629_v1 = vor.u32 %v628_v51, %v624_v50  ;;  %v866_v4 = vshrl.u32 %v7045_v33, 16  ;;  %v872_v2 = vshll.u32 %v7054_v40, 16  ;;  %v1172_v7 = vunpack.c.l.b16 %v7035_v27 }
  0x4e   : > { %v1173_v12 = vunpack.c.l.b16 %v7045_v33  ;;  %v859_v19 = vor.u32 %v858_v61, %v855_v60  ;;  %v864_v20 = vrot.slane %v862_v62, 5  ;;  %v620_v22 = vrot.slane %v619_v0, 4  ;;  %v434_v61 = vld [vmem:[%s6877_s16 + $0x70] sm:$0x3] }
  0x4f   : > { %v630_v23 = vrot.slane %v629_v1, 4  ;;  %v634_v24 = vrot.slane %v632_v58, 5  ;;  %v868_v31 = vrot.slane %v866_v4, 4  ;;  %v7074_v42 = vpack.c.b16 %v949_v59, %v948_v45 }
  0x50   : > { %v860_v43 = vrot.slane %v859_v19, 4  ;;  %v1152_v44 = vunpack.c.l.b16 %v7037_v29  ;;  %v1153_v46 = vunpack.c.l.b16 %v7039_v30  ;;  %v874_v49 = vrot.slane %v872_v2, 5 }
  0x51   : > { %10091 = vst [vmem:[#allocation17_spill] sm:$0xff] %v7074_v42  ;;  %v869_v48 = vor.u32 %v868_v31, %v864_v20  ;;  %v7081_v51 = vpack.c.bf16 %v432_v21, %v432_v21  ;;  %v7083_v58 = vpack.c.b16 %v1173_v12, %v1172_v7  ;;  %v625_v60 = vsel %vm6915_vm4, %v620_v22, %v624_v50 }
  0x52   : > { %5885 = vmatmul.msk.bf16.gmra.mxu0 %vm972_vm2, %v7049_v35  ;;  %v7087_v45 = vpack.c.bf16 %v462_v38, %v462_v38  ;;  %v7089_v59 = vpack.c.bf16 %v463_v41, %v463_v41  ;;  %v635_v62 = vsel %vm6915_vm4, %v630_v23, %v634_v24  ;;  %v865_v0 = vsel %vm6915_vm4, %v860_v43, %v864_v20 }
  0x53   : > { %10092 = vst [vmem:[#allocation18_spill] sm:$0xff] %v7083_v58  ;;  %v870_v1 = vrot.slane %v869_v48, 4  ;;  %v7096_v4 = vpack.c.bf16 %v433_v47, %v433_v47  ;;  %v7100_v2 = vpack.c.b16 %v1153_v46, %v1152_v44  ;;  %v637_v50 = vshrl.u32 %v7081_v51, 16  ;;  %v464_v44 = vld [vmem:[%s6877_s16 + $0x160] sm:$0x3] }
  0x54   : > { %10093 = vst [vmem:[#allocation19_spill] sm:$0xff] %v7087_v45  ;;  %v640_v7 = vshll.u32 %v7081_v51, 16  ;;  %v7106_v19 = vpack.c.bf16 %v434_v61, %v434_v61  ;;  %v930_v22 = vunpack.c.l.b16 %v625_v60  ;;  %v931_v23 = vunpack.c.l.b16 %v635_v62 }
  0x55   : > { %10094 = vst [vmem:[#allocation20_spill] sm:$0xff] %v7089_v59  ;;  %5895 = vmatmul.msk.bf16.gmra.mxu3 %vm972_vm2, %v7074_v42  ;;  %v875_v12 = vsel %vm6915_vm4, %v870_v1, %v874_v49  ;;  %v646_v20 = vshll.u32 %v7096_v4, 16  ;;  %v650_v21 = vshrl.u32 %v7096_v4, 16  ;;  %v950_v24 = vunpack.c.l.b16 %v865_v0 }
  0x56   : > { %v1174_v31 = vunpack.c.l.b16 %v7087_v45  ;;  %v1175_v38 = vunpack.c.l.b16 %v7089_v59  ;;  %v639_v41 = vrot.slane %v637_v50, 4  ;;  %v642_v43 = vrot.slane %v640_v7, 5  ;;  %v530_v50 = vld [vmem:[%s10077_s1 + $0x4] sm:$0x3] }
  0x57   : > { %v877_v46 = vshrl.u32 %v7087_v45, 16  ;;  %v951_v47 = vunpack.c.l.b16 %v875_v12  ;;  %v7116_v48 = vrot.slane %v646_v20, 5  ;;  %v652_v49 = vrot.slane %v650_v21, 4 }
  0x58   : > { %5912 = vmatmul.msk.bf16.gmra.mxu2 %vm972_vm2, %v7083_v58  ;;  %v880_v60 = vshll.u32 %v7087_v45, 16  ;;  %v656_v61 = vshll.u32 %v7106_v19, 16  ;;  %v886_v0 = vshll.u32 %v7089_v59, 16  ;;  %v890_v1 = vshrl.u32 %v7089_v59, 16  ;;  %v466_v59 = vld [vmem:[%s6877_s16 + $0x170] sm:$0xff] }
  0x59   : > { %v879_v62 = vrot.slane %v877_v46, 4  ;;  %v7125_v7 = vpack.c.bf16 %v464_v44, %v464_v44  ;;  %v643_v20 = vor.u32 %v642_v43, %v639_v41  ;;  %v7129_v37 = vpack.c.b16 %v931_v23, %v930_v22  ;;  %v435_v41 = vld [vmem:[%s6877_s16 + $0x78] sm:$0xff]  ;;  %v436_v43 = vld [vmem:[%s6877_s16 + $0x80] sm:$0xff] }
  0x5a   : > { %v882_v12 = vrot.slane %v880_v60, 5  ;;  %v7127_v21 = vrot.slane %v886_v0, 5  ;;  %v892_v42 = vrot.slane %v890_v1, 4  ;;  %v653_v46 = vor.u32 %v652_v49, %v7116_v48 }
  0x5b   : > { %10095 = vst [vmem:[#allocation21_spill] sm:$0xff] %v7125_v7  ;;  %v1562_v58 = vsel %vm1021_vm0, %v530_v50, 0  ;;  %v7135_v28 = vpack.c.b16 %v951_v47, %v950_v24  ;;  %v7137_v52 = vpack.c.b16 %v1175_v38, %v1174_v31  ;;  %v658_v44 = vrot.slane %v656_v61, 5 }
  0x5c   : > { %v883_v45 = vor.u32 %v882_v12, %v879_v62  ;;  %1571 = vmatpush.bf16.msrb.mxu2 %v1562_v58  ;;  %v893_v60 = vor.u32 %v892_v42, %v7127_v21  ;;  %v896_v22 = vshll.u32 %v7125_v7, 16  ;;  %v644_v23 = vrot.slane %v643_v20, 4  ;;  %v465_v20 = vld [vmem:[%s6877_s16 + $0x168] sm:$0xff] }
  0x5d   : > { %5902 = vmatmul.msk.bf16.gmra.mxu1 %vm972_vm2, %v7100_v2  ;;  %10096 = vst [vmem:[#allocation22_spill] sm:$0xff] %v7135_v28  ;;  %v10098_v49 = vmov 0  ;;  %v5915_v24 = vrot.slane %v6888_v13, 9  ;;  %v1355_v31 = vrot.slane %v6891_v15, 5  ;;  %v1358_v58 = vrot.slane %v6893_v16, 5 }
  0x5e   : > { %10097 = vst [vmem:[#allocation23_spill] sm:$0xff] %v7137_v52  ;;  %v10099_v49 = vsel %vm7143_vm7, 4294967295, %v10098_v49  ;;  %v654_v38 = vrot.slane %v653_v46, 4  ;;  %v1154_v42 = vunpack.c.l.b16 %v7081_v51  ;;  %v7151_v47 = vpack.c.bf16 %v435_v41, %v435_v41  ;;  %v437_v41 = vld [vmem:[%s6877_s16 + $0x88] sm:$0x3] }
  0x5f   : > { %10100 = vst [vmem:[#allocation24_spill] sm:$0xff] %v10099_v49  ;;  %v7153_v61 = vpack.c.bf16 %v436_v43, %v436_v43  ;;  %v884_v62 = vrot.slane %v883_v45, 4  ;;  %v1155_v13 = vunpack.c.l.b16 %v7096_v4  ;;  %v1356_v15 = vsel %vm7143_vm7, %v5915_v24, %v1355_v31 }
  0x60   : > { %v1357_v0 = vrot.slane %v1355_v31, 4  ;;  %v894_v16 = vrot.slane %v893_v60, 4  ;;  %v898_v1 = vrot.slane %v896_v22, 5  ;;  %v1465_v50 = vunpack.c.l.b16 %v1356_v15 }
  0x61   : > { %v661_v12 = vshrl.u32 %v7151_v47, 16  ;;  %v664_v43 = vshll.u32 %v7151_v47, 16  ;;  %v670_v45 = vshll.u32 %v7153_v61, 16  ;;  %v674_v7 = vshrl.u32 %v7153_v61, 16 }
  0x62   : > { %5886 = vmatmul.msk.bf16.gmra.mxu0 %vm972_vm2, %v7129_v37  ;;  %v1359_v46 = vsel %vm7143_vm7, %v1357_v0, %v1358_v58  ;;  %v649_v60 = vsel %vm6915_vm4, %v644_v23, %v7116_v48  ;;  %v659_v24 = vsel %vm6915_vm4, %v654_v38, %v658_v44  ;;  %v889_v31 = vsel %vm6915_vm4, %v884_v62, %v7127_v21 }
  0x63   : > { %v1466_v22 = vunpack.c.l.b16 %v1359_v46  ;;  %v7179_v58 = vpack.c.b16 %v1155_v13, %v1154_v42  ;;  %v7181_v15 = vpack.c.bf16 %v465_v20, %v465_v20  ;;  %v899_v0 = vsel %vm6915_vm4, %v894_v16, %v898_v1  ;;  %v467_v42 = vld [vmem:[%s6877_s16 + $0x178] sm:$0x3] }
  0x64   : > { %v7187_v14 = vpack.c.bf16 %v437_v41, %v437_v41  ;;  %v7189_v48 = vpack.c.bf16 %v466_v59, %v466_v59  ;;  %v663_v44 = vrot.slane %v661_v12, 4  ;;  %v666_v23 = vrot.slane %v664_v43, 5 }
  0x65   : > { %5896 = vmatmul.msk.bf16.gmra.mxu3 %vm972_vm2, %v7135_v28  ;;  %10101 = vst [vmem:[#allocation25_spill] sm:$0xff] %v7181_v15  ;;  %v7185_v28 = vpack.c.b16 %v1466_v22, %v1465_v50  ;;  %v672_v38 = vrot.slane %v670_v45, 5  ;;  %v676_v21 = vrot.slane %v674_v7, 4  ;;  %v901_v62 = vshrl.u32 %v7181_v15, 16 }
  0x66   : > { %10102 = vst [vmem:[#allocation26_spill] sm:$0xff] %v7189_v48  ;;  %v904_v13 = vshll.u32 %v7181_v15, 16  ;;  %v910_v16 = vshll.u32 %v7189_v48, 16  ;;  %v914_v1 = vshrl.u32 %v7189_v48, 16  ;;  %v932_v50 = vunpack.c.l.b16 %v649_v60 }
  0x67   : > { %v933_v20 = vunpack.c.l.b16 %v659_v24  ;;  %v952_v59 = vunpack.c.l.b16 %v889_v31  ;;  %v953_v46 = vunpack.c.l.b16 %v899_v0  ;;  %v680_v41 = vshll.u32 %v7187_v14, 16 }
  0x68   : > { %5913 = vmatmul.msk.bf16.gmra.mxu2 %vm972_vm2, %v7137_v52  ;;  %v667_v12 = vor.u32 %v666_v23, %v663_v44  ;;  %v677_v43 = vor.u32 %v676_v21, %v672_v38  ;;  %v7199_v45 = vpack.c.bf16 %v467_v42, %v467_v42  ;;  %v5916_v7 = vrot.slane %v6936_v63, 9  ;;  %v438_v21 = vld [vmem:[%s6877_s16 + $0x90] sm:$0xff] }
  0x69   : > { %v903_v22 = vrot.slane %v901_v62, 4  ;;  %v906_v52 = vrot.slane %v904_v13, 5  ;;  %v912_v40 = vrot.slane %v910_v16, 5  ;;  %v916_v60 = vrot.slane %v914_v1, 4  ;;  %v439_v13 = vld [vmem:[%s6877_s16 + $0x98] sm:$0xff] }
  0x6a   : > { %10103 = vst [vmem:[#allocation27_spill] sm:$0xff] %v7199_v45  ;;  %v7204_v24 = vpack.c.b16 %v933_v20, %v932_v50  ;;  %v1362_v31 = vrot.slane %v6941_v5, 5  ;;  %v1365_v0 = vrot.slane %v6943_v6, 5  ;;  %v7208_v44 = vpack.c.b16 %v953_v46, %v952_v59 }
  0x6b   : > { %v682_v23 = vrot.slane %v680_v41, 5  ;;  %v668_v42 = vrot.slane %v667_v12, 4  ;;  %v920_v63 = vshll.u32 %v7199_v45, 16  ;;  %v678_v16 = vrot.slane %v677_v43, 4 }
  0x6c   : > { %10104 = vst [vmem:[#allocation28_spill] sm:$0xff] %v7208_v44  ;;  %v1363_v27 = vsel %vm7143_vm7, %v5916_v7, %v1362_v31  ;;  %v1364_v62 = vrot.slane %v1362_v31, 4  ;;  %v907_v1 = vor.u32 %v906_v52, %v903_v22  ;;  %v917_v50 = vor.u32 %v916_v60, %v912_v40 }
  0x6d   : > { %5903 = vmatmul.msk.bf16.gmra.mxu1 %vm972_vm2, %v7179_v58  ;;  %v1467_v20 = vunpack.c.l.b16 %v1363_v27  ;;  %v7219_v6 = vpack.c.bf16 %v438_v21, %v438_v21  ;;  %v7221_v46 = vpack.c.bf16 %v439_v13, %v439_v13  ;;  %v673_v41 = vsel %vm6915_vm4, %v668_v42, %v672_v38 }
  0x6e   : > { %v1366_v5 = vsel %vm7143_vm7, %v1364_v62, %v1365_v0  ;;  %v922_v12 = vrot.slane %v920_v63, 5  ;;  %v1156_v43 = vunpack.c.l.b16 %v7151_v47  ;;  %v1157_v52 = vunpack.c.l.b16 %v7153_v61 }
  0x6f   : > { %v1468_v59 = vunpack.c.l.b16 %v1366_v5  ;;  %v683_v27 = vsel %vm6915_vm4, %v678_v16, %v682_v23  ;;  %v908_v7 = vrot.slane %v907_v1, 4  ;;  %v918_v22 = vrot.slane %v917_v50, 4  ;;  %v440_v1 = vld [vmem:[%s6877_s16 + $0xa0] sm:$0x3] }
  0x70   : > { %v685_v31 = vshrl.u32 %v7219_v6, 16  ;;  %v688_v38 = vshll.u32 %v7219_v6, 16  ;;  %v5917_v0 = vrot.slane %v6987_v3, 9  ;;  %v694_v21 = vshll.u32 %v7221_v46, 16  ;;  %v531_v3 = vld [vmem:[%s10077_s1 + $0x6] sm:$0x3] }
  0x71   : > { %v7231_v60 = vpack.c.b16 %v1468_v59, %v1467_v20  ;;  %v698_v42 = vshrl.u32 %v7221_v46, 16  ;;  %v1369_v63 = vrot.slane %v6991_v8, 5  ;;  %v1372_v62 = vrot.slane %v6993_v11, 5 }
  0x72   : > { %5887 = vmatmul.msk.bf16.gmra.mxu0 %vm972_vm2, %v7204_v24  ;;  %v934_v23 = vunpack.c.l.b16 %v673_v41  ;;  %v935_v13 = vunpack.c.l.b16 %v683_v27  ;;  %v7242_v16 = vpack.c.b16 %v1157_v52, %v1156_v43  ;;  %v913_v50 = vsel %vm6915_vm4, %v908_v7, %v912_v40 }
  0x73   : > { %v923_v8 = vsel %vm6915_vm4, %v918_v22, %v922_v12  ;;  %v1370_v11 = vsel %vm7143_vm7, %v5917_v0, %v1369_v63  ;;  %v687_v20 = vrot.slane %v685_v31, 4  ;;  %v690_v5 = vrot.slane %v688_v38, 5  ;;  %v441_v31 = vld [vmem:[%s6877_s16 + $0xa8] sm:$0xff] }
  0x74   : > { %v1469_v59 = vunpack.c.l.b16 %v1370_v11  ;;  %v1694_v41 = vsel %vm1021_vm0, %v531_v3, 0  ;;  %v7255_v43 = vpack.c.bf16 %v440_v1, %v440_v1  ;;  %v696_v52 = vrot.slane %v694_v21, 5 }
  0x75   : > { %5897 = vmatmul.msk.bf16.gmra.mxu3 %vm972_vm2, %v7208_v44  ;;  %v700_v27 = vrot.slane %v698_v42, 4  ;;  %v954_v7 = vunpack.c.l.b16 %v913_v50  ;;  %v955_v22 = vunpack.c.l.b16 %v923_v8  ;;  %v7262_v38 = vpack.c.b16 %v935_v13, %v934_v23  ;;  %v442_v42 = vld [vmem:[%s6877_s16 + $0xb0] sm:$0xff] }
  0x76   : > { %1703 = vmatpush.bf16.msra.mxu3 %v1694_v41  ;;  %v691_v0 = vor.u32 %v690_v5, %v687_v20  ;;  %v704_v21 = vshll.u32 %v7255_v43, 16  ;;  %v7268_v3 = vpack.c.bf16 %v441_v31, %v441_v31  ;;  %v7274_v8 = vpack.c.bf16 %v442_v42, %v442_v42 }
  0x77   : > { %v701_v1 = vor.u32 %v700_v27, %v696_v52  ;;  %v1376_v11 = vrot.slane %v7039_v30, 5  ;;  %v5918_v41 = vrot.slane %v7037_v29, 9  ;;  %v443_v30 = vld [vmem:[%s6877_s16 + $0xb8] sm:$0x3] }
  0x78   : > { %5931 = vmatmul.msk.bf16.vlgmr.msrb.gmra.mxu2 %vm972_vm2, %v7185_v28  ;;  %v1371_v28 = vrot.slane %v1369_v63, 4  ;;  %v692_v50 = vrot.slane %v691_v0, 4  ;;  %v706_v13 = vrot.slane %v704_v21, 5  ;;  %v709_v20 = vshrl.u32 %v7268_v3, 16 }
  0x79   : > { %v702_v23 = vrot.slane %v701_v1, 4  ;;  %v712_v5 = vshll.u32 %v7268_v3, 16  ;;  %v1378_v27 = vrot.slane %v1376_v11, 4  ;;  %v1377_v0 = vsel %vm7143_vm7, %v5918_v41, %v1376_v11 }
  0x7a   : > { %v1373_v40 = vsel %vm7143_vm7, %v1371_v28, %v1372_v62  ;;  %v7270_v62 = vpack.c.b16 %v955_v22, %v954_v7  ;;  %v1158_v28 = vunpack.c.l.b16 %v7219_v6  ;;  %v718_v7 = vshll.u32 %v7274_v8, 16 }
  0x7b   : > { %v1470_v12 = vunpack.c.l.b16 %v1373_v40  ;;  %v1379_v40 = vrot.slane %v7047_v34, 5  ;;  %v722_v22 = vshrl.u32 %v7274_v8, 16  ;;  %v707_v31 = vsel %vm6915_vm4, %v702_v23, %v706_v13 }
  0x7c   : > { %10106 = vst [vmem:[#allocation30_spill] sm:$0xff] %v7270_v62  ;;  %v711_v34 = vrot.slane %v709_v20, 4  ;;  %v714_v1 = vrot.slane %v712_v5, 5  ;;  %v937_v23 = vunpack.c.l.b16 %v707_v31  ;;  %v720_v13 = vrot.slane %v718_v7, 5 }
  0x7d   : > { %5904 = vmatmul.msk.bf16.gmra.mxu1 %vm972_vm2, %v7242_v16  ;;  %v7264_v63 = vpack.c.b16 %v1470_v12, %v1469_v59  ;;  %v1159_v59 = vunpack.c.l.b16 %v7221_v46  ;;  %v697_v12 = vsel %vm6915_vm4, %v692_v50, %v696_v52  ;;  %v1380_v29 = vsel %vm7143_vm7, %v1378_v27, %v1379_v40 }
  0x7e   : > { %v1471_v52 = vunpack.c.l.b16 %v1377_v0  ;;  %v1472_v21 = vunpack.c.l.b16 %v1380_v29  ;;  %v936_v42 = vunpack.c.l.b16 %v697_v12  ;;  %v724_v11 = vrot.slane %v722_v22, 4 }
  0x7f   : > { %10105 = vst [vmem:[#allocation29_spill] sm:$0xff] %v7264_v63  ;;  %v7298_v50 = vpack.c.b16 %v1159_v59, %v1158_v28  ;;  %v715_v27 = vor.u32 %v714_v1, %v711_v34  ;;  %v1176_v20 = vunpack.c.l.b16 %v7181_v15  ;;  %v1177_v5 = vunpack.c.l.b16 %v7189_v48  ;;  %v444_v59 = vld [vmem:[%s6877_s16 + $0xc0] sm:$0xff] }
  0x80   : > { %v7302_v41 = vpack.c.b16 %v1472_v21, %v1471_v52  ;;  %v7308_v40 = vpack.c.b16 %v937_v23, %v936_v42  ;;  %v725_v12 = vor.u32 %v724_v11, %v720_v13  ;;  %v7315_v22 = vpack.c.bf16 %v444_v59, %v444_v59 }
  0x81   : > { %v716_v31 = vrot.slane %v715_v27, 4  ;;  %v7313_v7 = vpack.c.b16 %v1177_v5, %v1176_v20  ;;  %v1383_v1 = vrot.slane %v7096_v4, 5  ;;  %v1160_v21 = vunpack.c.l.b16 %v7268_v3  ;;  %v446_v5 = vld [vmem:[%s6877_s16 + $0xd0] sm:$0x3] }
  0x82   : > { %5888 = vmatmul.msk.bf16.gmra.mxu0 %vm972_vm2, %v7262_v38  ;;  %10107 = vst [vmem:[#allocation31_spill] sm:$0xff] %v7302_v41  ;;  %v726_v0 = vrot.slane %v725_v12, 4  ;;  %v1161_v42 = vunpack.c.l.b16 %v7274_v8  ;;  %v733_v23 = vshrl.u32 %v7315_v22, 16  ;;  %v5919_v11 = vrot.slane %v7081_v51, 9 }
  0x83   : > { %10108 = vst [vmem:[#allocation32_spill] sm:$0xff] %v7313_v7  ;;  %v721_v52 = vsel %vm6915_vm4, %v716_v31, %v720_v13  ;;  %v1385_v27 = vrot.slane %v1383_v1, 4  ;;  %v1386_v20 = vrot.slane %v7106_v19, 5  ;;  %v736_v13 = vshll.u32 %v7315_v22, 16 }
  0x84   : > { %v1384_v59 = vsel %vm7143_vm7, %v5919_v11, %v1383_v1  ;;  %v7343_v51 = vpack.c.b16 %v1161_v42, %v1160_v21  ;;  %v7345_v44 = vpack.c.bf16 %v446_v5, %v446_v5 }
  0x85   : > { %5898 = vmatmul.msk.bf16.gmra.mxu3 %vm972_vm2, %v7270_v62  ;;  %v7300_v62 = vpack.c.bf16 %v443_v30, %v443_v30  ;;  %v445_v30 = vld [vmem:[%s6877_s16 + $0xc8] sm:$0xff]  ;;  %v1473_v19 = vunpack.c.l.b16 %v1384_v59  ;;  %v738_v45 = vrot.slane %v736_v13, 5  ;;  %v447_v59 = vld [vmem:[%s6877_s16 + $0xd8] sm:$0xff] }
  0x86   : > { %v7319_v34 = vpack.c.bf16 %v445_v30, %v445_v30  ;;  %v1387_v30 = vsel %vm7143_vm7, %v1385_v27, %v1386_v20  ;;  %v752_v20 = vshll.u32 %v7345_v44, 16  ;;  %v7358_v13 = vpack.c.bf16 %v447_v59, %v447_v59 }
  0x87   : > { %v728_v28 = vshll.u32 %v7300_v62, 16  ;;  %v1474_v31 = vunpack.c.l.b16 %v1387_v30  ;;  %v5920_v30 = vrot.slane %v7151_v47, 9 }
  0x88   : > { %5932 = vmatmul.msk.bf16.gmra.mxu2 %vm972_vm2, %v7231_v60  ;;  %v742_v12 = vshll.u32 %v7319_v34, 16  ;;  %v754_v5 = vrot.slane %v752_v20, 5 }
  0x89   : > { %v730_v29 = vrot.slane %v728_v28, 5  ;;  %v746_v28 = vshrl.u32 %v7319_v34, 16  ;;  %v7347_v11 = vpack.c.b16 %v1474_v31, %v1473_v19  ;;  %v1393_v31 = vrot.slane %v7187_v14, 5 }
  0x8a   : > { %v744_v15 = vrot.slane %v742_v12, 5 }
  0x8b   : > { %v731_v4 = vsel %vm6915_vm4, %v726_v0, %v730_v29  ;;  %v938_v0 = vunpack.c.l.b16 %v721_v52  ;;  %v748_v1 = vrot.slane %v746_v28, 4  ;;  %10109 = vst [vmem:[#allocation33_spill] sm:$0xff] %v7347_v11  ;;  %v448_v52 = vld [vmem:[%s6877_s16 + $0xe0] sm:$0xff]  ;;  %v1390_v28 = vrot.slane %v7153_v61, 5 }
  0x8c   : > { %v939_v29 = vunpack.c.l.b16 %v731_v4  ;;  %v7360_v12 = vpack.c.bf16 %v448_v52, %v448_v52  ;;  %v757_v61 = vshrl.u32 %v7358_v13, 16 }
  0x8d   : > { %5905 = vmatmul.msk.bf16.gmra.mxu1 %vm972_vm2, %v7298_v50  ;;  %v749_v42 = vor.u32 %v748_v1, %v744_v15  ;;  %v1392_v19 = vrot.slane %v1390_v28, 4  ;;  %v449_v1 = vld [vmem:[%s6877_s16 + $0xe8] sm:$0x3]  ;;  %v1391_v47 = vsel %vm7143_vm7, %v5920_v30, %v1390_v28  ;;  %v534_v28 = vld [vmem:[%s10077_s1 + $0xc] sm:$0x3] }
  0x8e   : > { %v7351_v27 = vpack.c.b16 %v939_v29, %v938_v0  ;;  %v535_v30 = vld [vmem:[%s10077_s1 + $0xe] sm:$0x3] }
  0x8f   : > { %v750_v4 = vrot.slane %v749_v42, 4  ;;  %v770_v42 = vshrl.u32 %v7360_v12, 16  ;;  %v1394_v14 = vsel %vm7143_vm7, %v1392_v19, %v1393_v31 }
  0x90   : > { %10110 = vst [vmem:[#allocation34_spill] sm:$0xff] %v7351_v27  ;;  %v1476_v20 = vunpack.c.l.b16 %v1394_v14 }
  0x91   : > { %v755_v29 = vsel %vm6915_vm4, %v750_v4, %v754_v5  ;;  %v7386_v4 = vpack.c.bf16 %v449_v1, %v449_v1  ;;  %v533_v5 = vld [vmem:[%s10077_s1 + $0xa] sm:$0x3]  ;;  %v759_v1 = vrot.slane %v757_v61, 4  ;;  %v772_v48 = vrot.slane %v770_v42, 4 }
  0x92   : > { %5889 = vmatmul.msk.bf16.gmra.mxu0 %vm972_vm2, %v7308_v40  ;;  %v941_v52 = vunpack.c.l.b16 %v755_v29  ;;  %v1986_v31 = vsel %vm1021_vm0, %v533_v5, 0 }
  0x93   : > { %1995 = vmatpush.bf16.msrb.mxu1 %v1986_v31 }
  0x95   : > { %5914 = vmatmul.msk.bf16.vlgmr.msrb.gmra.mxu3 %vm972_vm2, %v7313_v7  ;;  %v735_v7 = vrot.slane %v733_v23, 4 }
  0x97   : > { %v739_v21 = vor.u32 %v738_v45, %v735_v7  ;;  %v1162_v45 = vunpack.c.l.b16 %v7315_v22  ;;  %v1163_v7 = vunpack.c.l.b16 %v7319_v34 }
  0x98   : > { %5933 = vmatmul.msk.bf16.gmra.mxu2 %vm972_vm2, %v7264_v63 }
  0x99   : > { %v740_v23 = vrot.slane %v739_v21, 4  ;;  %v760_v21 = vshll.u32 %v7358_v13, 16 }
  0x9b   : > { %v745_v0 = vsel %vm6915_vm4, %v740_v23, %v744_v15  ;;  %v1475_v15 = vunpack.c.l.b16 %v1391_v47  ;;  %v7384_v23 = vpack.c.b16 %v1163_v7, %v1162_v45  ;;  %v2118_v45 = vsel %vm1021_vm0, %v534_v28, 0 }
  0x9c   : > { %v940_v59 = vunpack.c.l.b16 %v745_v0  ;;  %v2272_v0 = vsel %vm1021_vm0, %v535_v30, 0  ;;  %v762_v47 = vrot.slane %v760_v21, 5  ;;  %2127 = vmatpush.bf16.msra.mxu2 %v2118_v45 }
  0x9d   : > { %5906 = vmatmul.msk.bf16.gmra.mxu1 %vm972_vm2, %v7343_v51  ;;  %v7399_v7 = vpack.c.b16 %v1476_v20, %v1475_v15  ;;  %2281 = vmatpush.bf16.msrb.mxu3 %v2272_v0  ;;  %v776_v15 = vshll.u32 %v7386_v4, 16 }
  0x9e   : > { %v7404_v33 = vpack.c.b16 %v941_v52, %v940_v59  ;;  %v763_v26 = vor.u32 %v762_v47, %v759_v1  ;;  %v1164_v59 = vunpack.c.l.b16 %v7358_v13  ;;  %v1165_v52 = vunpack.c.l.b16 %v7360_v12 }
  0x9f   : > { %10111 = vst [vmem:[#allocation35_spill] sm:$0xff] %v7399_v7  ;;  %v778_v30 = vrot.slane %v776_v15, 5 }
  0xa0   : > { %10112 = vst [vmem:[#allocation36_spill] sm:$0xff] %v7404_v33 }
  0xa2   : > { %5890 = vmatmul.msk.bf16.gmra.mxu0 %vm972_vm2, %v7351_v27 }
  0xa5   : > { %5947 = vmatmul.msk.bf16.vlgmr.msra.gmra.mxu3 %vm972_vm2, %v6976_v54  ;;  %v766_v54 = vshll.u32 %v7360_v12, 16 }
  0xa7   : > { %v768_v14 = vrot.slane %v766_v54, 5  ;;  %v764_v54 = vrot.slane %v763_v26, 4 }
  0xa8   : > { %5934 = vmatmul.msk.bf16.gmra.mxu2 %vm972_vm2, %v7302_v41 }
  0xa9   : > { %v773_v28 = vor.u32 %v772_v48, %v768_v14  ;;  %v536_v48 = vld [vmem:[%s10077_s1 + $0x10] sm:$0x3]  ;;  %v769_v45 = vsel %vm6915_vm4, %v764_v54, %v768_v14 }
  0xaa   : > { %v1254_v19 = vpop.f32.mrf.mxu1  ;;  %v942_v15 = vunpack.c.l.b16 %v769_v45 }
  0xab   : > { %v1304_v29 = vpop.f32.mrf.mxu2  ;;  %v774_v42 = vrot.slane %v773_v28, 4 }
  0xad   : > { %5907 = vmatmul.msk.bf16.gmra.mxu1 %vm972_vm2, %v7384_v23  ;;  %v779_v26 = vsel %vm6915_vm4, %v774_v42, %v778_v30 }
  0xaf   : > { %v1034_v5 = vpop.f32.mrf.mxu0 }
  0xb0   : > { %v7407_v20 = vadd.f32 %v1254_v19, %v1034_v5  ;;  %v2410_v19 = vsel %vm1021_vm0, %v536_v48, 0  ;;  %v7429_v5 = vpack.c.b16 %v1165_v52, %v1164_v59  ;;  %v943_v48 = vunpack.c.l.b16 %v779_v26 }
  0xb1   : > { %2419 = vmatpush.bf16.msra.mxu0 %v2410_v19  ;;  %v1397_v52 = vrot.slane %v7221_v46, 5 }
  0xb2   : > { %5891 = vmatmul.msk.bf16.gmra.mxu0 %vm972_vm2, %v7404_v33  ;;  %v1256_v61 = vpop.f32.mrf.mxu1  ;;  %v7433_v14 = vpack.c.b16 %v943_v48, %v942_v15 }
  0xb3   : > { %v1306_v21 = vpop.f32.mrf.mxu2 }
  0xb5   : > { %5948 = vmatmul.msk.bf16.gmra.mxu3 %vm972_vm2, %v7051_v36 }
  0xb7   : > { %v1036_v31 = vpop.f32.mrf.mxu0 }
  0xb8   : > { %v1084_v0 = vpop.f32.mrf.mxu3  ;;  %v7423_v1 = vadd.f32 %v1256_v61, %v1036_v31  ;;  %5935 = vmatmul.msk.bf16.gmra.mxu2 %vm972_vm2, %v7347_v11 }
  0xb9   : > { %v7427_v47 = vadd.f32 %v1304_v29, %v1084_v0  ;;  %v1399_v0 = vrot.slane %v1397_v52, 4 }
  0xba   : > { %v1259_v28 = vpop.f32.mrf.mxu1 }
  0xbb   : > { %v1309_v36 = vpop.f32.mrf.mxu2 }
  0xbd   : > { %5908 = vmatmul.msk.bf16.gmra.mxu1 %vm972_vm2, %v7429_v5 }
  0xbf   : > { %v1039_v54 = vpop.f32.mrf.mxu0 }
  0xc0   : > { %v1086_v42 = vpop.f32.mrf.mxu3  ;;  %v7435_v61 = vadd.f32 %v1259_v28, %v1039_v54  ;;  %v1400_v28 = vrot.slane %v7255_v43, 5 }
  0xc1   : > { %v7437_v30 = vadd.f32 %v1306_v21, %v1086_v42  ;;  %v5921_v21 = vrot.slane %v7219_v6, 9 }
  0xc2   : > { %5892 = vmatmul.msk.bf16.gmra.mxu0 %vm972_vm2, %v7433_v14  ;;  %v1261_v29 = vpop.f32.mrf.mxu1  ;;  %v1401_v54 = vsel %vm7143_vm7, %v1399_v0, %v1400_v28 }
  0xc3   : > { %v1311_v59 = vpop.f32.mrf.mxu2  ;;  %v1398_v46 = vsel %vm7143_vm7, %v5921_v21, %v1397_v52  ;;  %v1478_v6 = vunpack.c.l.b16 %v1401_v54  ;;  %v1404_v52 = vrot.slane %v7274_v8, 5 }
  0xc5   : > { %5949 = vmatmul.msk.bf16.gmra.mxu3 %vm972_vm2, %v7100_v2 }
  0xc7   : > { %v1041_v19 = vpop.f32.mrf.mxu0 }
  0xc8   : > { %v1089_v31 = vpop.f32.mrf.mxu3  ;;  %v7444_v45 = vadd.f32 %v1261_v29, %v1041_v19  ;;  %5936 = vmatmul.msk.bf16.gmra.mxu2 %vm972_vm2, %v7399_v7  ;;  %v1477_v19 = vunpack.c.l.b16 %v1398_v46  ;;  %v1407_v46 = vrot.slane %v7300_v62, 5 }
  0xc9   : > { %v7448_v26 = vadd.f32 %v1309_v36, %v1089_v31 }
  0xca   : > { %v1264_v15 = vpop.f32.mrf.mxu1 }
  0xcb   : > { %v1314_v48 = vpop.f32.mrf.mxu2 }
  0xcd   : > { %5980 = vmatmul.msk.bf16.vlgmr.msrb.gmra.mxu1 %vm972_vm2, %v7231_v60  ;;  %v7464_v60 = vpack.c.b16 %v1478_v6, %v1477_v19 }
  0xcf   : > { %v1044_v42 = vpop.f32.mrf.mxu0  ;;  %10113 = vst [vmem:[#allocation37_spill] sm:$0xff] %v7464_v60 }
  0xd0   : > { %v1091_v29 = vpop.f32.mrf.mxu3  ;;  %v7458_v36 = vadd.f32 %v1264_v15, %v1044_v42  ;;  %v1406_v15 = vrot.slane %v1404_v52, 4 }
  0xd1   : > { %v7460_v31 = vadd.f32 %v1311_v59, %v1091_v29 }
  0xd2   : > { %5963 = vmatmul.msk.bf16.vlgmr.msrb.gmra.mxu0 %vm972_vm2, %v6996_v18  ;;  %v1266_v43 = vpop.f32.mrf.mxu1  ;;  %v5922_v18 = vrot.slane %v7268_v3, 9  ;;  %v1408_v29 = vsel %vm7143_vm7, %v1406_v15, %v1407_v46 }
  0xd3   : > { %v1316_v39 = vpop.f32.mrf.mxu2  ;;  %v1480_v3 = vunpack.c.l.b16 %v1408_v29  ;;  %v1414_v29 = vrot.slane %v7345_v44, 5 }
  0xd4   : > { %v1405_v8 = vsel %vm7143_vm7, %v5922_v18, %v1404_v52  ;;  %v1411_v52 = vrot.slane %v7319_v34, 5 }
  0xd5   : > { %5950 = vmatmul.msk.bf16.gmra.mxu3 %vm972_vm2, %v7179_v58 }
  0xd7   : > { %v1046_v21 = vpop.f32.mrf.mxu0 }
  0xd8   : > { %v1094_v0 = vpop.f32.mrf.mxu3  ;;  %v7469_v28 = vadd.f32 %v1266_v43, %v1046_v21  ;;  %5937 = vmatmul.msk.bf16.gmra.mxu2 %vm972_vm2, %v7464_v60  ;;  %v1479_v43 = vunpack.c.l.b16 %v1405_v8  ;;  %v1413_v8 = vrot.slane %v1411_v52, 4 }
  0xd9   : > { %v7473_v59 = vadd.f32 %v1314_v48, %v1094_v0 }
  0xda   : > { %v1269_v54 = vpop.f32.mrf.mxu1 }
  0xdb   : > { %v1319_v42 = vpop.f32.mrf.mxu2 }
  0xdd   : > { %5981 = vmatmul.msk.bf16.gmra.mxu1 %vm972_vm2, %v7264_v63  ;;  %v7489_v63 = vpack.c.b16 %v1480_v3, %v1479_v43  ;;  %v1415_v43 = vsel %vm7143_vm7, %v1413_v8, %v1414_v29 }
  0xdf   : > { %v1049_v19 = vpop.f32.mrf.mxu0  ;;  %10114 = vst [vmem:[#allocation38_spill] sm:$0xff] %v7489_v63 }
  0xe0   : > { %v1096_v6 = vpop.f32.mrf.mxu3  ;;  %v7483_v48 = vadd.f32 %v1269_v54, %v1049_v19  ;;  %v5923_v54 = vrot.slane %v7315_v22, 9  ;;  %v1482_v22 = vunpack.c.l.b16 %v1415_v43  ;;  %v1421_v43 = vrot.slane %v7386_v4, 5 }
  0xe1   : > { %v7485_v21 = vadd.f32 %v1316_v39, %v1096_v6 }
  0xe2   : > { %5964 = vmatmul.msk.bf16.gmra.mxu0 %vm972_vm2, %v7049_v35  ;;  %v1271_v62 = vpop.f32.mrf.mxu1  ;;  %v1412_v34 = vsel %vm7143_vm7, %v5923_v54, %v1411_v52  ;;  %v1418_v52 = vrot.slane %v7360_v12, 5 }
  0xe3   : > { %v1321_v0 = vpop.f32.mrf.mxu2 }
  0xe5   : > { %5951 = vmatmul.msk.bf16.gmra.mxu3 %vm972_vm2, %v7242_v16 }
  0xe7   : > { %v1051_v18 = vpop.f32.mrf.mxu0 }
  0xe8   : > { %v1099_v15 = vpop.f32.mrf.mxu3  ;;  %v7494_v46 = vadd.f32 %v1271_v62, %v1051_v18  ;;  %5938 = vmatmul.msk.bf16.gmra.mxu2 %vm972_vm2, %v7489_v63  ;;  %v1481_v18 = vunpack.c.l.b16 %v1412_v34  ;;  %v1420_v34 = vrot.slane %v1418_v52, 4 }
  0xe9   : > { %v7498_v39 = vadd.f32 %v1319_v42, %v1099_v15 }
  0xea   : > { %v1274_v19 = vpop.f32.mrf.mxu1 }
  0xeb   : > { %10115 = vst [vmem:[#allocation39_spill] sm:$0xff] %v7498_v39  ;;  %v1324_v6 = vpop.f32.mrf.mxu2 }
  0xed   : > { %5982 = vmatmul.msk.bf16.gmra.mxu1 %vm972_vm2, %v7302_v41  ;;  %v7514_v41 = vpack.c.b16 %v1482_v22, %v1481_v18 }
  0xef   : > { %v1054_v3 = vpop.f32.mrf.mxu0  ;;  %10116 = vst [vmem:[#allocation40_spill] sm:$0xff] %v7514_v41 }
  0xf0   : > { %v1101_v62 = vpop.f32.mrf.mxu3  ;;  %v7508_v42 = vadd.f32 %v1274_v19, %v1054_v3  ;;  %v5924_v19 = vrot.slane %v7358_v13, 9 }
  0xf1   : > { %v7510_v15 = vadd.f32 %v1321_v0, %v1101_v62 }
  0xf2   : > { %5965 = vmatmul.msk.bf16.gmra.mxu0 %vm972_vm2, %v7129_v37  ;;  %v1276_v44 = vpop.f32.mrf.mxu1  ;;  %v1419_v12 = vsel %vm7143_vm7, %v5924_v19, %v1418_v52  ;;  %v1425_v19 = vrot.slane %v6884_v10, 5 }
  0xf3   : > { %v1326_v39 = vpop.f32.mrf.mxu2 }
  0xf5   : > { %5952 = vmatmul.msk.bf16.gmra.mxu3 %vm972_vm2, %v7298_v50 }
  0xf7   : > { %v1056_v54 = vpop.f32.mrf.mxu0 }
  0xf8   : > { %v1104_v8 = vpop.f32.mrf.mxu3  ;;  %v7519_v29 = vadd.f32 %v1276_v44, %v1056_v54  ;;  %5939 = vmatmul.msk.bf16.gmra.mxu2 %vm972_vm2, %v7514_v41  ;;  %v1483_v54 = vunpack.c.l.b16 %v1419_v12  ;;  %v1427_v12 = vrot.slane %v1425_v19, 4 }
  0xf9   : > { %v7523_v0 = vadd.f32 %v1324_v6, %v1104_v8  ;;  %v1422_v6 = vsel %vm7143_vm7, %v1420_v34, %v1421_v43 }
  0xfa   : > { %v1279_v3 = vpop.f32.mrf.mxu1  ;;  %v1484_v4 = vunpack.c.l.b16 %v1422_v6 }
  0xfb   : > { %v1573_v62 = vpop.f32.mrf.mxu2 }
  0xfc   : > { %v7528_v18 = vadd.f32 %v1573_v62, %v7407_v20  ;;  %v7545_v52 = vpack.c.b16 %v1484_v4, %v1483_v54 }
  0xfd   : > { %5983 = vmatmul.msk.bf16.gmra.mxu1 %vm972_vm2, %v7347_v11 }
  0xff   : > { %v1059_v22 = vpop.f32.mrf.mxu0 }
 0x100   : > { %v1106_v44 = vpop.f32.mrf.mxu3  ;;  %v7536_v13 = vadd.f32 %v1279_v3, %v1059_v22 }
 0x101   : > { %v7538_v8 = vadd.f32 %v1326_v39, %v1106_v44  ;;  %v5925_v39 = vrot.slane %v6882_v9, 9 }
 0x102   : > { %5966 = vmatmul.msk.bf16.gmra.mxu0 %vm972_vm2, %v7204_v24  ;;  %v1281_v20 = vpop.f32.mrf.mxu1 }
 0x103   : > { %v1575_v62 = vpop.f32.mrf.mxu2  ;;  %v1426_v10 = vsel %vm7143_vm7, %v5925_v39, %v1425_v19  ;;  %v1432_v19 = vrot.slane %v6928_v57, 5 }
 0x104   : > { %v7543_v11 = vadd.f32 %v1575_v62, %v7423_v1  ;;  %v1428_v1 = vrot.slane %v6895_v17, 5  ;;  %v1485_v62 = vunpack.c.l.b16 %v1426_v10  ;;  %v5926_v10 = vrot.slane %v6924_v53, 9 }
 0x105   : > { %5953 = vmatmul.msk.bf16.gmra.mxu3 %vm972_vm2, %v7343_v51 }
 0x106   : > { %v1429_v54 = vsel %vm7143_vm7, %v1427_v12, %v1428_v1  ;;  %v1433_v57 = vsel %vm7143_vm7, %v5926_v10, %v1432_v19  ;;  %v1439_v10 = vrot.slane %v6980_v56, 5 }
 0x107   : > { %v1061_v34 = vpop.f32.mrf.mxu0  ;;  %v1486_v17 = vunpack.c.l.b16 %v1429_v54  ;;  %v1435_v54 = vrot.slane %v6956_v25, 5 }
 0x108   : > { %v1109_v43 = vpop.f32.mrf.mxu3  ;;  %v7550_v3 = vadd.f32 %v1281_v20, %v1061_v34  ;;  %5940 = vmatmul.msk.bf16.gmra.mxu2 %vm972_vm2, %v7545_v52 }
 0x10a   : > { %v1284_v6 = vpop.f32.mrf.mxu1 }
 0x10b   : > { %v1578_v22 = vpop.f32.mrf.mxu2 }
 0x10c   : > { %v7557_v44 = vadd.f32 %v1578_v22, %v7435_v61 }
 0x10d   : > { %5984 = vmatmul.msk.bf16.gmra.mxu1 %vm972_vm2, %v7399_v7  ;;  %v7572_v7 = vpack.c.b16 %v1486_v17, %v1485_v62 }
 0x10f   : > { %v1064_v4 = vpop.f32.mrf.mxu0  ;;  %10117 = vst [vmem:[#allocation41_spill] sm:$0xff] %v7572_v7 }
 0x110   : > { %v1111_v20 = vpop.f32.mrf.mxu3  ;;  %v7565_v9 = vadd.f32 %v1284_v6, %v1064_v4 }
 0x112   : > { %5967 = vmatmul.msk.bf16.gmra.mxu0 %vm972_vm2, %v7262_v38  ;;  %v1286_v61 = vpop.f32.mrf.mxu1 }
 0x113   : > { %v1580_v34 = vpop.f32.mrf.mxu2 }
 0x114   : > { %v7570_v22 = vadd.f32 %v1580_v34, %v7444_v45  ;;  %v1434_v45 = vrot.slane %v1432_v19, 4 }
 0x115   : > { %5954 = vmatmul.msk.bf16.gmra.mxu3 %vm972_vm2, %v7384_v23 }
 0x117   : > { %v1066_v39 = vpop.f32.mrf.mxu0 }
 0x118   : > { %v1329_v12 = vpop.f32.mrf.mxu3  ;;  %v7577_v1 = vadd.f32 %v1286_v61, %v1066_v39  ;;  %5941 = vmatmul.msk.bf16.gmra.mxu2 %vm972_vm2, %v7572_v7  ;;  %v1487_v39 = vunpack.c.l.b16 %v1433_v57  ;;  %v1441_v57 = vrot.slane %v1439_v10, 4 }
 0x119   : > { %v7581_v6 = vadd.f32 %v1329_v12, %v1109_v43  ;;  %v1436_v43 = vsel %vm7143_vm7, %v1434_v45, %v1435_v54 }
 0x11a   : > { %v1289_v4 = vpop.f32.mrf.mxu1  ;;  %v1488_v25 = vunpack.c.l.b16 %v1436_v43  ;;  %v1442_v43 = vrot.slane %v7008_v32, 5 }
 0x11b   : > { %10118 = vst [vmem:[#allocation42_spill] sm:$0xff] %v7581_v6  ;;  %v1583_v62 = vpop.f32.mrf.mxu2 }
 0x11c   : > { %v7586_v17 = vadd.f32 %v1583_v62, %v7458_v36  ;;  %v7603_v19 = vpack.c.b16 %v1488_v25, %v1487_v39 }
 0x11d   : > { %5985 = vmatmul.msk.bf16.gmra.mxu1 %vm972_vm2, %v7464_v60 }
 0x11f   : > { %v1069_v61 = vpop.f32.mrf.mxu0 }
 0x120   : > { %v1331_v34 = vpop.f32.mrf.mxu3  ;;  %v7594_v53 = vadd.f32 %v1289_v4, %v1069_v61 }
 0x121   : > { %v7596_v12 = vadd.f32 %v1331_v34, %v1111_v20 }
 0x122   : > { %5968 = vmatmul.msk.bf16.gmra.mxu0 %vm972_vm2, %v7308_v40  ;;  %v1291_v36 = vpop.f32.mrf.mxu1 }
 0x123   : > { %10119 = vst [vmem:[#allocation43_spill] sm:$0xff] %v7596_v12  ;;  %v1585_v62 = vpop.f32.mrf.mxu2 }
 0x124   : > { %v7601_v60 = vadd.f32 %v1585_v62, %v7469_v28  ;;  %v5927_v28 = vrot.slane %v6978_v55, 9 }
 0x125   : > { %5955 = vmatmul.msk.bf16.gmra.mxu3 %vm972_vm2, %v7429_v5 }
 0x126   : > { %v1440_v56 = vsel %vm7143_vm7, %v5927_v28, %v1439_v10  ;;  %v10121_v28 = vld [vmem:[#allocation7_spill] sm:$0xff] }
 0x127   : > { %v1071_v45 = vpop.f32.mrf.mxu0  ;;  %v1489_v62 = vunpack.c.l.b16 %v1440_v56 }
 0x128   : > { %v1705_v54 = vpop.f32.mrf.mxu3  ;;  %v7608_v4 = vadd.f32 %v1291_v36, %v1071_v45  ;;  %5942 = vmatmul.msk.bf16.gmra.mxu2 %vm972_vm2, %v7603_v19 }
 0x129   : > { %v7613_v20 = vadd.f32 %v1705_v54, %v7528_v18  ;;  %v1443_v18 = vsel %vm7143_vm7, %v1441_v57, %v1442_v43  ;;  %v10122_v57 = vld [vmem:[#allocation14_spill] sm:$0xff] }
 0x12a   : > { %v1294_v61 = vpop.f32.mrf.mxu1  ;;  %v1490_v32 = vunpack.c.l.b16 %v1443_v18  ;;  %v1446_v43 = vrot.slane %v10122_v57, 5 }
 0x12b   : > { %v1588_v34 = vpop.f32.mrf.mxu2 }
 0x12c   : > { %v7618_v39 = vadd.f32 %v1588_v34, %v7483_v48  ;;  %v7636_v10 = vpack.c.b16 %v1490_v32, %v1489_v62  ;;  %v10124_v62 = vld [vmem:[#allocation16_spill] sm:$0xff] }
 0x12d   : > { %5986 = vmatmul.msk.bf16.gmra.mxu1 %vm972_vm2, %v7489_v63  ;;  %v1449_v32 = vrot.slane %v10124_v62, 5 }
 0x12e   : > { %10120 = vst [vmem:[#allocation44_spill] sm:$0xff] %v7636_v10 }
 0x12f   : > { %v1074_v25 = vpop.f32.mrf.mxu0 }
 0x130   : > { %v1707_v36 = vpop.f32.mrf.mxu3  ;;  %v7626_v55 = vadd.f32 %v1294_v61, %v1074_v25  ;;  %v10123_v25 = vld [vmem:[#allocation13_spill] sm:$0xff] }
 0x131   : > { %v7629_v45 = vadd.f32 %v1707_v36, %v7543_v11  ;;  %v1448_v36 = vrot.slane %v1446_v43, 4 }
 0x132   : > { %5969 = vmatmul.msk.bf16.gmra.mxu0 %vm972_vm2, %v7351_v27  ;;  %v1296_v48 = vpop.f32.mrf.mxu1 }
 0x133   : > { %v1590_v54 = vpop.f32.mrf.mxu2 }
 0x134   : > { %v7634_v34 = vadd.f32 %v1590_v54, %v7494_v46  ;;  %v5928_v46 = vrot.slane %v10123_v25, 9 }
 0x135   : > { %5956 = vmatmul.msk.bf16.gmra.mxu3 %vm972_vm2, %v10121_v28 }
 0x137   : > { %v1076_v61 = vpop.f32.mrf.mxu0 }
 0x138   : > { %v1710_v56 = vpop.f32.mrf.mxu3  ;;  %v7641_v18 = vadd.f32 %v1296_v48, %v1076_v61  ;;  %5943 = vmatmul.msk.bf16.gmra.mxu2 %vm972_vm2, %v7636_v10  ;;  %v1447_v48 = vsel %vm7143_vm7, %v5928_v46, %v1446_v43  ;;  %v10126_v46 = vld [vmem:[#allocation9_spill] sm:$0xff] }
 0x139   : > { %v7646_v11 = vadd.f32 %v1710_v56, %v7557_v44  ;;  %v1450_v44 = vsel %vm7143_vm7, %v1448_v36, %v1449_v32  ;;  %v1491_v25 = vunpack.c.l.b16 %v1447_v48  ;;  %v10127_v36 = vld [vmem:[#allocation20_spill] sm:$0xff] }
 0x13a   : > { %v1299_v54 = vpop.f32.mrf.mxu1  ;;  %v1492_v62 = vunpack.c.l.b16 %v1450_v44  ;;  %v1453_v32 = vrot.slane %v10127_v36, 5 }
 0x13b   : > { %v1593_v63 = vpop.f32.mrf.mxu2 }
 0x13c   : > { %v7651_v28 = vadd.f32 %v1593_v63, %v7508_v42  ;;  %v7669_v43 = vpack.c.b16 %v1492_v62, %v1491_v25  ;;  %v10129_v25 = vld [vmem:[#allocation21_spill] sm:$0xff] }
 0x13d   : > { %5987 = vmatmul.msk.bf16.gmra.mxu1 %vm972_vm2, %v7514_v41  ;;  %v1456_v62 = vrot.slane %v10129_v25, 5 }
 0x13e   : > { %10125 = vst [vmem:[#allocation14_spill] sm:$0xff] %v7669_v43 }
 0x13f   : > { %v1079_v57 = vpop.f32.mrf.mxu0 }
 0x140   : > { %v1712_v61 = vpop.f32.mrf.mxu3  ;;  %v7659_v56 = vadd.f32 %v1299_v54, %v1079_v57  ;;  %v10128_v57 = vld [vmem:[#allocation19_spill] sm:$0xff] }
 0x141   : > { %v7662_v27 = vadd.f32 %v1712_v61, %v7570_v22  ;;  %v1455_v61 = vrot.slane %v1453_v32, 4 }
 0x142   : > { %5970 = vmatmul.msk.bf16.gmra.mxu0 %vm972_vm2, %v7404_v33  ;;  %v1301_v63 = vpop.f32.mrf.mxu1 }
 0x143   : > { %v1595_v42 = vpop.f32.mrf.mxu2 }
 0x144   : > { %v7667_v41 = vadd.f32 %v1595_v42, %v7519_v29  ;;  %v5929_v29 = vrot.slane %v10128_v57, 9  ;;  %v6529_v42 = vld [vmem:[%s10130_s3 + $0x78] sm:$0xff] }
 0x145   : > { %5957 = vmatmul.msk.bf16.gmra.mxu3 %vm972_vm2, %v10126_v46  ;;  %3436 = vmatpush.bf16.msra.mxu1 %v6529_v42 }
 0x147   : > { %v1081_v54 = vpop.f32.mrf.mxu0 }
 0x148   : > { %v1715_v48 = vpop.f32.mrf.mxu3  ;;  %v7674_v44 = vadd.f32 %v1301_v63, %v1081_v54  ;;  %5944 = vmatmul.msk.bf16.gmra.mxu2 %vm972_vm2, %v7669_v43  ;;  %v1457_v54 = vsel %vm7143_vm7, %v1455_v61, %v1456_v62  ;;  %v10133_v61 = vld [vmem:[#allocation12_spill] sm:$0xff] }
 0x149   : > { %v7679_v22 = vadd.f32 %v1715_v48, %v7586_v17  ;;  %v1454_v17 = vsel %vm7143_vm7, %v5929_v29, %v1453_v32  ;;  %v1494_v12 = vunpack.c.l.b16 %v1457_v54 }
 0x14a   : > { %v1997_v36 = vpop.f32.mrf.mxu1  ;;  %v1493_v33 = vunpack.c.l.b16 %v1454_v17 }
 0x14b   : > { %v1598_v46 = vpop.f32.mrf.mxu2 }
 0x14c   : > { %v7687_v63 = vadd.f32 %v1598_v46, %v7536_v13  ;;  %v7704_v29 = vpack.c.b16 %v1494_v12, %v1493_v33 }
 0x14d   : > { %5988 = vmatmul.msk.bf16.gmra.mxu1 %vm972_vm2, %v7545_v52 }
 0x14e   : > { %10132 = vst [vmem:[#allocation16_spill] sm:$0xff] %v7704_v29 }
 0x14f   : > { %v1859_v48 = vpop.f32.mrf.mxu0 }
 0x150   : > { %v1717_v57 = vpop.f32.mrf.mxu3  ;;  %v1939_v25 = vadd.f32 %v1859_v48, %v7613_v20  ;;  %v10134_v20 = vld [vmem:[#allocation26_spill] sm:$0xff]  ;;  %v10135_v48 = vld [vmem:[#allocation25_spill] sm:$0xff] }
 0x151   : > { %v1790_v42 = vadd.f32 %v1717_v57, %v7601_v60  ;;  %v1460_v62 = vrot.slane %v10134_v20, 5  ;;  %v5930_v57 = vrot.slane %v10135_v48, 9 }
 0x152   : > { %v7697_v6 = vadd.f32 %v1997_v36, %v1939_v25  ;;  %5971 = vmatmul.msk.bf16.gmra.mxu0 %vm972_vm2, %v7433_v14  ;;  %v1999_v13 = vpop.f32.mrf.mxu1  ;;  %v10136_v25 = vld [vmem:[#allocation27_spill] sm:$0xff] }
 0x153   : > { %v1600_v46 = vpop.f32.mrf.mxu2  ;;  %v1463_v33 = vrot.slane %v10136_v25, 5 }
 0x154   : > { %10131 = vst [vmem:[#allocation13_spill] sm:$0xff] %v7697_v6  ;;  %v7702_v32 = vadd.f32 %v1600_v46, %v7550_v3  ;;  %v1462_v3 = vrot.slane %v1460_v62, 4 }
 0x155   : > { %5958 = vmatmul.msk.bf16.gmra.mxu3 %vm972_vm2, %v10133_v61 }
 0x157   : > { %v1861_v17 = vpop.f32.mrf.mxu0 }
 0x158   : > { %v1720_v54 = vpop.f32.mrf.mxu3  ;;  %v1940_v60 = vadd.f32 %v1861_v17, %v7629_v45  ;;  %5945 = vmatmul.msk.bf16.gmra.mxu2 %vm972_vm2, %v7704_v29  ;;  %v1461_v45 = vsel %vm7143_vm7, %v5930_v57, %v1460_v62 }
 0x159   : > { %v1791_v36 = vadd.f32 %v1720_v54, %v7618_v39  ;;  %v1464_v39 = vsel %vm7143_vm7, %v1462_v3, %v1463_v33  ;;  %v10139_v3 = vld [vmem:[#allocation18_spill] sm:$0xff] }
 0x15a   : > { %v7715_v12 = vadd.f32 %v1999_v13, %v1940_v60  ;;  %v2002_v46 = vpop.f32.mrf.mxu1  ;;  %v1495_v13 = vunpack.c.l.b16 %v1461_v45  ;;  %v1496_v60 = vunpack.c.l.b16 %v1464_v39 }
 0x15b   : > { %v1603_v6 = vpop.f32.mrf.mxu2 }
 0x15c   : > { %10137 = vst [vmem:[#allocation20_spill] sm:$0xff] %v7715_v12  ;;  %v7718_v20 = vadd.f32 %v1603_v6, %v7565_v9  ;;  %v10138_v9 = vld [vmem:[#allocation10_spill] sm:$0xff]  ;;  %v7735_v57 = vpack.c.b16 %v1496_v60, %v1495_v13  ;;  %v10142_v60 = vld [vmem:[#allocation11_spill] sm:$0xff] }
 0x15d   : > { %5989 = vmatmul.msk.bf16.gmra.mxu1 %vm972_vm2, %v7572_v7 }
 0x15f   : > { %v1864_v17 = vpop.f32.mrf.mxu0 }
 0x160   : > { %v1722_v54 = vpop.f32.mrf.mxu3  ;;  %v1941_v48 = vadd.f32 %v1864_v17, %v7646_v11 }
 0x161   : > { %v1792_v25 = vadd.f32 %v1722_v54, %v7634_v34 }
 0x162   : > { %v7728_v12 = vadd.f32 %v2002_v46, %v1941_v48  ;;  %5972 = vmatmul.msk.bf16.gmra.mxu0 %vm972_vm2, %v10138_v9  ;;  %v2004_v6 = vpop.f32.mrf.mxu1  ;;  %v6528_v46 = vld [vmem:[%s10130_s3 + $0x70] sm:$0xff] }
 0x163   : > { %v1605_v7 = vpop.f32.mrf.mxu2  ;;  %3437 = vmatpush.bf16.msra.mxu1 %v6528_v46 }
 0x164   : > { %v7733_v62 = vadd.f32 %v1605_v7, %v7577_v1 }
 0x165   : > { %5959 = vmatmul.msk.bf16.gmra.mxu3 %vm972_vm2, %v10139_v3 }
 0x167   : > { %v1866_v11 = vpop.f32.mrf.mxu0 }
 0x168   : > { %v1725_v33 = vpop.f32.mrf.mxu3  ;;  %v1942_v45 = vadd.f32 %v1866_v11, %v7662_v27  ;;  %5946 = vmatmul.msk.bf16.gmra.mxu2 %vm972_vm2, %v7735_v57 }
 0x169   : > { %v1793_v34 = vadd.f32 %v1725_v33, %v7651_v28 }
 0x16a   : > { %v7746_v7 = vadd.f32 %v2004_v6, %v1942_v45  ;;  %v2007_v1 = vpop.f32.mrf.mxu1 }
 0x16b   : > { %v1608_v39 = vpop.f32.mrf.mxu2 }
 0x16c   : > { %10140 = vst [vmem:[#allocation19_spill] sm:$0xff] %v7746_v7  ;;  %v7749_v17 = vadd.f32 %v1608_v39, %v7594_v53  ;;  %v10143_v53 = vld [vmem:[#allocation23_spill] sm:$0xff] }
 0x16d   : > { %5990 = vmatmul.msk.bf16.gmra.mxu1 %vm972_vm2, %v7603_v19  ;;  %v10144_v7 = vld [vmem:[#allocation15_spill] sm:$0xff] }
 0x16f   : > { %v1869_v27 = vpop.f32.mrf.mxu0 }
 0x170   : > { %v1727_v54 = vpop.f32.mrf.mxu3  ;;  %v1943_v48 = vadd.f32 %v1869_v27, %v7679_v22 }
 0x171   : > { %v1794_v28 = vadd.f32 %v1727_v54, %v7667_v41 }
 0x172   : > { %v7755_v13 = vadd.f32 %v2007_v1, %v1943_v48  ;;  %5973 = vmatmul.msk.bf16.gmra.mxu0 %vm972_vm2, %v10142_v60  ;;  %v2009_v6 = vpop.f32.mrf.mxu1 }
 0x173   : > { %v1610_v11 = vpop.f32.mrf.mxu2 }
 0x174   : > { %10141 = vst [vmem:[#allocation21_spill] sm:$0xff] %v7755_v13  ;;  %v7760_v33 = vadd.f32 %v1610_v11, %v7608_v4 }
 0x175   : > { %5960 = vmatmul.msk.bf16.gmra.mxu3 %vm972_vm2, %v10143_v53 }
 0x177   : > { %v1871_v45 = vpop.f32.mrf.mxu0 }
 0x178   : > { %v1730_v46 = vpop.f32.mrf.mxu3  ;;  %v1944_v39 = vadd.f32 %v1871_v45, %v1790_v42  ;;  %5996 = vmatmul.msk.bf16.vlgmr.msra.gmra.mxu2 %vm972_vm2, %v10144_v7 }
 0x179   : > { %v1795_v41 = vadd.f32 %v1730_v46, %v7687_v63  ;;  %v10147_v63 = vld [vmem:[#allocation17_spill] sm:$0xff] }
 0x17a   : > { %v7767_v22 = vadd.f32 %v2009_v6, %v1944_v39  ;;  %v2012_v1 = vpop.f32.mrf.mxu1  ;;  %v468_v39 = vld [vmem:[%s6877_s16 + $0x180] sm:$0xff] }
 0x17b   : > { %v1613_v27 = vpop.f32.mrf.mxu2 }
 0x17c   : > { %10145 = vst [vmem:[#allocation12_spill] sm:$0xff] %v7767_v22  ;;  %v7770_v4 = vadd.f32 %v1613_v27, %v7626_v55  ;;  %v10148_v55 = vld [vmem:[#allocation32_spill] sm:$0xff]  ;;  %v469_v27 = vld [vmem:[%s6877_s16 + $0x188] sm:$0xff] }
 0x17d   : > { %5991 = vmatmul.msk.bf16.gmra.mxu1 %vm972_vm2, %v7636_v10 }
 0x17f   : > { %v1874_v54 = vpop.f32.mrf.mxu0 }
 0x180   : > { %v1732_v48 = vpop.f32.mrf.mxu3  ;;  %v1945_v42 = vadd.f32 %v1874_v54, %v1791_v36  ;;  %v7793_v54 = vpack.c.bf16 %v469_v27, %v469_v27 }
 0x181   : > { %v1796_v11 = vadd.f32 %v1732_v48, %v7702_v32 }
 0x182   : > { %v7775_v7 = vadd.f32 %v2012_v1, %v1945_v42  ;;  %5974 = vmatmul.msk.bf16.gmra.mxu0 %vm972_vm2, %v10147_v63  ;;  %v2014_v6 = vpop.f32.mrf.mxu1  ;;  %v7791_v1 = vpack.c.bf16 %v468_v39, %v468_v39 }
 0x183   : > { %v1615_v45 = vpop.f32.mrf.mxu2 }
 0x184   : > { %10146 = vst [vmem:[#allocation26_spill] sm:$0xff] %v7775_v7  ;;  %v7780_v46 = vadd.f32 %v1615_v45, %v7641_v18  ;;  %v6527_v18 = vld [vmem:[%s10130_s3 + $0x68] sm:$0xff] }
 0x185   : > { %5961 = vmatmul.msk.bf16.gmra.mxu3 %vm972_vm2, %v10148_v55  ;;  %3438 = vmatpush.bf16.msra.mxu1 %v6527_v18  ;;  %v10151_v18 = vld [vmem:[#allocation22_spill] sm:$0xff] }
 0x187   : > { %v1876_v22 = vpop.f32.mrf.mxu0 }
 0x188   : > { %v1735_v10 = vpop.f32.mrf.mxu3  ;;  %v1946_v36 = vadd.f32 %v1876_v22, %v1792_v25  ;;  %5997 = vmatmul.msk.bf16.gmra.mxu2 %vm972_vm2, %v7100_v2  ;;  %v1687_v2 = vunpack.c.l.b16 %v7791_v1 }
 0x189   : > { %v7789_v32 = vadd.f32 %v1735_v10, %v7718_v20  ;;  %v1688_v10 = vunpack.c.l.b16 %v7793_v54 }
 0x18a   : > { %v7798_v48 = vadd.f32 %v2014_v6, %v1946_v36  ;;  %v2017_v42 = vpop.f32.mrf.mxu1 }
 0x18b   : > { %v1618_v45 = vpop.f32.mrf.mxu2  ;;  %v7810_v6 = vpack.c.b16 %v1688_v10, %v1687_v2 }
 0x18c   : > { %10149 = vst [vmem:[#allocation25_spill] sm:$0xff] %v7798_v48  ;;  %v7801_v25 = vadd.f32 %v1618_v45, %v7659_v56 }
 0x18d   : > { %5992 = vmatmul.msk.bf16.gmra.mxu1 %vm972_vm2, %v7669_v43 }
 0x18f   : > { %v1879_v20 = vpop.f32.mrf.mxu0 }
 0x190   : > { %v1737_v22 = vpop.f32.mrf.mxu3  ;;  %v1947_v39 = vadd.f32 %v1879_v20, %v1793_v34 }
 0x191   : > { %v7808_v27 = vadd.f32 %v1737_v22, %v7733_v62 }
 0x192   : > { %v7812_v36 = vadd.f32 %v2017_v42, %v1947_v39  ;;  %5975 = vmatmul.msk.bf16.gmra.mxu0 %vm972_vm2, %v10151_v18  ;;  %v7816_v56 = vpop.f32.mrf.mxu1 }
 0x193   : > { %10152 = vst [vmem:[#allocation10_spill] sm:$0xff] %v7816_v56  ;;  %v1620_v45 = vpop.f32.mrf.mxu2 }
 0x194   : > { %10150 = vst [vmem:[#allocation27_spill] sm:$0xff] %v7812_v36  ;;  %v7819_v48 = vadd.f32 %v1620_v45, %v7674_v44 }
 0x195   : > { %5962 = vmatmul.msk.bf16.gmra.mxu3 %vm972_vm2, %v7810_v6 }
 0x197   : > { %v1881_v34 = vpop.f32.mrf.mxu0 }
 0x198   : > { %v1740_v20 = vpop.f32.mrf.mxu3  ;;  %v7823_v62 = vadd.f32 %v1881_v34, %v1794_v28  ;;  %5998 = vmatmul.msk.bf16.gmra.mxu2 %vm972_vm2, %v7179_v58  ;;  %v10155_v58 = vld [vmem:[#allocation28_spill] sm:$0xff] }
 0x199   : > { %v7828_v42 = vadd.f32 %v1740_v20, %v7749_v17 }
 0x19a   : > { %10153 = vst [vmem:[#allocation18_spill] sm:$0xff] %v7823_v62  ;;  %v2022_v2 = vpop.f32.mrf.mxu1 }
 0x19b   : > { %v1623_v10 = vpop.f32.mrf.mxu2 }
 0x19c   : > { %v7831_v22 = vadd.f32 %v1623_v10, %v7427_v47 }
 0x19d   : > { %5993 = vmatmul.msk.bf16.gmra.mxu1 %vm972_vm2, %v7704_v29  ;;  %v470_v29 = vld [vmem:[%s6877_s16 + $0x190] sm:$0x3] }
 0x19f   : > { %v1884_v44 = vpop.f32.mrf.mxu0 }
 0x1a0   : > { %v1742_v39 = vpop.f32.mrf.mxu3  ;;  %v1949_v45 = vadd.f32 %v1884_v44, %v1795_v41  ;;  %v1818_v41 = vshrl.u32 %v7791_v1, 16  ;;  %v1831_v44 = vshrl.u32 %v7793_v54, 16 }
 0x1a1   : > { %v7836_v28 = vadd.f32 %v1742_v39, %v7760_v33  ;;  %v1821_v33 = vshll.u32 %v7791_v1, 16 }
 0x1a2   : > { %v7838_v34 = vadd.f32 %v2022_v2, %v1949_v45  ;;  %5976 = vmatmul.msk.bf16.gmra.mxu0 %vm972_vm2, %v10155_v58  ;;  %v7842_v17 = vpop.f32.mrf.mxu1  ;;  %v1827_v2 = vshll.u32 %v7793_v54, 16  ;;  %v1820_v62 = vrot.slane %v1818_v41, 4 }
 0x1a3   : > { %10156 = vst [vmem:[#allocation23_spill] sm:$0xff] %v7842_v17  ;;  %v1625_v20 = vpop.f32.mrf.mxu2  ;;  %v524_v17 = vpack.c.bf16 %v470_v29, %v470_v29  ;;  %v1823_v36 = vrot.slane %v1821_v33, 5 }
 0x1a4   : > { %10154 = vst [vmem:[#allocation11_spill] sm:$0xff] %v7838_v34  ;;  %v7845_v47 = vadd.f32 %v1625_v20, %v7437_v30  ;;  %v1974_v34 = vrot.slane %v7793_v54, 5  ;;  %v1829_v43 = vrot.slane %v1827_v2, 5 }
 0x1a5   : > { %6012 = vmatmul.msk.bf16.vlgmr.msrb.gmra.mxu3 %vm972_vm2, %v7049_v35  ;;  %v6526_v35 = vld [vmem:[%s10130_s3 + $0x60] sm:$0xff]  ;;  %v1824_v29 = vor.u32 %v1823_v36, %v1820_v62  ;;  %v1837_v54 = vshll.u32 %v524_v17, 16 }
 0x1a6   : > { %3439 = vmatpush.bf16.msra.mxu1 %v6526_v35 }
 0x1a7   : > { %v1886_v10 = vpop.f32.mrf.mxu0  ;;  %v1839_v35 = vrot.slane %v1837_v54, 5 }
 0x1a8   : > { %v1745_v39 = vpop.f32.mrf.mxu3  ;;  %v7854_v45 = vadd.f32 %v1886_v10, %v1796_v11  ;;  %5999 = vmatmul.msk.bf16.gmra.mxu2 %vm972_vm2, %v7242_v16  ;;  %v1833_v11 = vrot.slane %v1831_v44, 4  ;;  %v5979_v16 = vrot.slane %v7791_v1, 9 }
 0x1a9   : > { %v7859_v30 = vadd.f32 %v1745_v39, %v7770_v4  ;;  %v1976_v4 = vrot.slane %v1974_v34, 4  ;;  %v1977_v39 = vrot.slane %v524_v17, 5  ;;  %v1825_v17 = vrot.slane %v1824_v29, 4 }
 0x1aa   : > { %10157 = vst [vmem:[#allocation15_spill] sm:$0xff] %v7854_v45  ;;  %v2027_v20 = vpop.f32.mrf.mxu1  ;;  %v1834_v7 = vor.u32 %v1833_v11, %v1829_v43  ;;  %v1975_v1 = vsel %vm7143_vm7, %v5979_v16, %v1974_v34 }
 0x1ab   : > { %v1628_v56 = vpop.f32.mrf.mxu2  ;;  %v1978_v36 = vsel %vm7143_vm7, %v1976_v4, %v1977_v39  ;;  %v1830_v11 = vsel %vm6915_vm4, %v1825_v17, %v1829_v43 }
 0x1ac   : > { %v7866_v10 = vadd.f32 %v1628_v56, %v7448_v26  ;;  %v10158_v26 = vld [vmem:[#allocation30_spill] sm:$0xff]  ;;  %v1835_v44 = vrot.slane %v1834_v7, 4  ;;  %v1841_v39 = vunpack.c.l.b16 %v1830_v11 }
 0x1ad   : > { %5994 = vmatmul.msk.bf16.gmra.mxu1 %vm972_vm2, %v7735_v57 }
 0x1ae   : > { %v1840_v34 = vsel %vm6915_vm4, %v1835_v44, %v1839_v35 }
 0x1af   : > { %v1889_v45 = vpop.f32.mrf.mxu0  ;;  %v1842_v29 = vunpack.c.l.b16 %v1840_v34 }
 0x1b0   : > { %v1747_v13 = vpop.f32.mrf.mxu3  ;;  %v1951_v41 = vadd.f32 %v1889_v45, %v7789_v32 }
 0x1b1   : > { %v1802_v33 = vadd.f32 %v1747_v13, %v7780_v46  ;;  %v1979_v13 = vunpack.c.l.b16 %v1975_v1  ;;  %v1980_v46 = vunpack.c.l.b16 %v1978_v36 }
 0x1b2   : > { %v7873_v2 = vadd.f32 %v2027_v20, %v1951_v41  ;;  %5977 = vmatmul.msk.bf16.gmra.mxu0 %vm972_vm2, %v10158_v26  ;;  %v7877_v56 = vpop.f32.mrf.mxu1  ;;  %v7901_v41 = vpack.c.b16 %v1842_v29, %v1841_v39 }
 0x1b3   : > { %v1630_v62 = vpop.f32.mrf.mxu2  ;;  %v7896_v7 = vpack.c.b16 %v1980_v46, %v1979_v13 }
 0x1b4   : > { %v1676_v32 = vadd.f32 %v1630_v62, %v7460_v31 }
 0x1b5   : > { %6013 = vmatmul.msk.bf16.gmra.mxu3 %vm972_vm2, %v7129_v37 }
 0x1b7   : > { %v1891_v45 = vpop.f32.mrf.mxu0 }
 0x1b8   : > { %v1750_v16 = vpop.f32.mrf.mxu3  ;;  %v7891_v4 = vadd.f32 %v1891_v45, %v7808_v27  ;;  %6000 = vmatmul.msk.bf16.gmra.mxu2 %vm972_vm2, %v7298_v50 }
 0x1b9   : > { %v1803_v31 = vadd.f32 %v1750_v16, %v7801_v25 }
 0x1ba   : > { %v2032_v37 = vpop.f32.mrf.mxu1 }
 0x1bb   : > { %v1633_v54 = vpop.f32.mrf.mxu2 }
 0x1bc   : > { %v1677_v43 = vadd.f32 %v1633_v54, %v7473_v59 }
 0x1bd   : > { %5995 = vmatmul.msk.bf16.gmra.mxu1 %vm972_vm2, %v7896_v7 }
 0x1bf   : > { %v1894_v27 = vpop.f32.mrf.mxu0 }
 0x1c0   : > { %v1752_v1 = vpop.f32.mrf.mxu3  ;;  %v1953_v36 = vadd.f32 %v1894_v27, %v7828_v42  ;;  %v6525_v42 = vld [vmem:[%s10130_s3 + $0x58] sm:$0xff] }
 0x1c1   : > { %v1804_v50 = vadd.f32 %v1752_v1, %v7819_v48  ;;  %3440 = vmatpush.bf16.msra.mxu1 %v6525_v42 }
 0x1c2   : > { %v7905_v25 = vadd.f32 %v2032_v37, %v1953_v36  ;;  %5978 = vmatmul.msk.bf16.gmra.mxu0 %vm972_vm2, %v7901_v41  ;;  %v7909_v62 = vpop.f32.mrf.mxu1 }
 0x1c3   : > { %v1635_v17 = vpop.f32.mrf.mxu2 }
 0x1c4   : > { %v1678_v59 = vadd.f32 %v1635_v17, %v7485_v21  ;;  %v10160_v21 = vld [vmem:[#allocation39_spill] sm:$0xff] }
 0x1c5   : > { %6014 = vmatmul.msk.bf16.gmra.mxu3 %vm972_vm2, %v7204_v24 }
 0x1c7   : > { %v1896_v44 = vpop.f32.mrf.mxu0 }
 0x1c8   : > { %v1755_v35 = vpop.f32.mrf.mxu3  ;;  %v7915_v13 = vadd.f32 %v1896_v44, %v7836_v28  ;;  %6001 = vmatmul.msk.bf16.gmra.mxu2 %vm972_vm2, %v7343_v51  ;;  %v10161_v51 = vld [vmem:[#allocation29_spill] sm:$0xff] }
 0x1c9   : > { %v1805_v48 = vadd.f32 %v1755_v35, %v7831_v22 }
 0x1ca   : > { %v2037_v46 = vpop.f32.mrf.mxu1 }
 0x1cb   : > { %v1638_v45 = vpop.f32.mrf.mxu2 }
 0x1cc   : > { %v1679_v11 = vadd.f32 %v1638_v45, %v10160_v21 }
 0x1cf   : > { %v1899_v24 = vpop.f32.mrf.mxu0 }
 0x1d0   : > { %v1757_v34 = vpop.f32.mrf.mxu3  ;;  %v1955_v16 = vadd.f32 %v1899_v24, %v7859_v30 }
 0x1d1   : > { %v1806_v28 = vadd.f32 %v1757_v34, %v7845_v47 }
 0x1d2   : > { %v7926_v37 = vadd.f32 %v2037_v46, %v1955_v16  ;;  %6029 = vmatmul.msk.bf16.vlgmr.msra.gmra.mxu0 %vm972_vm2, %v10161_v51  ;;  %v7930_v22 = vpop.f32.mrf.mxu1  ;;  %v10168_v16 = vld [vmem:[#allocation42_spill] sm:$0xff] }
 0x1d3   : > { %10162 = vst [vmem:[#allocation17_spill] sm:$0xff] %v7930_v22  ;;  %v1640_v39 = vpop.f32.mrf.mxu2 }
 0x1d4   : > { %v1680_v29 = vadd.f32 %v1640_v39, %v7510_v15 }
 0x1d5   : > { %6015 = vmatmul.msk.bf16.gmra.mxu3 %vm972_vm2, %v7262_v38  ;;  %v10165_v38 = vld [vmem:[#allocation31_spill] sm:$0xff] }
 0x1d7   : > { %v1901_v54 = vpop.f32.mrf.mxu0 }
 0x1d8   : > { %v1760_v27 = vpop.f32.mrf.mxu3  ;;  %v7935_v1 = vadd.f32 %v1901_v54, %v1802_v33  ;;  %6002 = vmatmul.msk.bf16.gmra.mxu2 %vm972_vm2, %v7384_v23 }
 0x1d9   : > { %v1807_v47 = vadd.f32 %v1760_v27, %v7866_v10 }
 0x1da   : > { %10163 = vst [vmem:[#allocation32_spill] sm:$0xff] %v7935_v1  ;;  %v2042_v30 = vpop.f32.mrf.mxu1 }
 0x1db   : > { %v1643_v36 = vpop.f32.mrf.mxu2 }
 0x1dc   : > { %v1681_v17 = vadd.f32 %v1643_v36, %v7523_v0 }
 0x1df   : > { %v1904_v44 = vpop.f32.mrf.mxu0 }
 0x1e0   : > { %v1762_v35 = vpop.f32.mrf.mxu3  ;;  %v1957_v42 = vadd.f32 %v1904_v44, %v1803_v31  ;;  %v6524_v31 = vld [vmem:[%s10130_s3 + $0x50] sm:$0xff] }
 0x1e1   : > { %v1808_v15 = vadd.f32 %v1762_v35, %v1676_v32  ;;  %3441 = vmatpush.bf16.msra.mxu1 %v6524_v31  ;;  %v10173_v44 = vld [vmem:[#allocation34_spill] sm:$0xff] }
 0x1e2   : > { %v7941_v46 = vadd.f32 %v2042_v30, %v1957_v42  ;;  %6030 = vmatmul.msk.bf16.gmra.mxu0 %vm972_vm2, %v10165_v38  ;;  %v7945_v33 = vpop.f32.mrf.mxu1  ;;  %v10172_v30 = vld [vmem:[#allocation43_spill] sm:$0xff] }
 0x1e3   : > { %10166 = vst [vmem:[#allocation28_spill] sm:$0xff] %v7945_v33  ;;  %v1645_v45 = vpop.f32.mrf.mxu2 }
 0x1e4   : > { %10164 = vst [vmem:[#allocation22_spill] sm:$0xff] %v7941_v46  ;;  %v1682_v23 = vadd.f32 %v1645_v45, %v7538_v8  ;;  %v10175_v45 = vld [vmem:[#allocation7_spill] sm:$0xff] }
 0x1e5   : > { %6016 = vmatmul.msk.bf16.gmra.mxu3 %vm972_vm2, %v7308_v40 }
 0x1e7   : > { %v1906_v10 = vpop.f32.mrf.mxu0 }
 0x1e8   : > { %v1765_v21 = vpop.f32.mrf.mxu3  ;;  %v7950_v0 = vadd.f32 %v1906_v10, %v1804_v50  ;;  %6003 = vmatmul.msk.bf16.gmra.mxu2 %vm972_vm2, %v7429_v5  ;;  %v10170_v50 = vld [vmem:[#allocation33_spill] sm:$0xff] }
 0x1e9   : > { %v1809_v32 = vadd.f32 %v1765_v21, %v1677_v43 }
 0x1ea   : > { %10167 = vst [vmem:[#allocation30_spill] sm:$0xff] %v7950_v0  ;;  %v2047_v24 = vpop.f32.mrf.mxu1 }
 0x1eb   : > { %v1648_v34 = vpop.f32.mrf.mxu2 }
 0x1ec   : > { %v1683_v8 = vadd.f32 %v1648_v34, %v10168_v16 }
 0x1ef   : > { %v1909_v51 = vpop.f32.mrf.mxu0 }
 0x1f0   : > { %v1767_v39 = vpop.f32.mrf.mxu3  ;;  %v1959_v40 = vadd.f32 %v1909_v51, %v1805_v48  ;;  %v10177_v51 = vld [vmem:[#allocation35_spill] sm:$0xff] }
 0x1f1   : > { %v1810_v54 = vadd.f32 %v1767_v39, %v1678_v59 }
 0x1f2   : > { %v7958_v27 = vadd.f32 %v2047_v24, %v1959_v40  ;;  %6031 = vmatmul.msk.bf16.gmra.mxu0 %vm972_vm2, %v10170_v50  ;;  %v7962_v5 = vpop.f32.mrf.mxu1  ;;  %v10179_v40 = vld [vmem:[#allocation36_spill] sm:$0xff] }
 0x1f3   : > { %10171 = vst [vmem:[#allocation29_spill] sm:$0xff] %v7962_v5  ;;  %v1650_v43 = vpop.f32.mrf.mxu2 }
 0x1f4   : > { %10169 = vst [vmem:[#allocation39_spill] sm:$0xff] %v7958_v27  ;;  %v1684_v36 = vadd.f32 %v1650_v43, %v10172_v30  ;;  %v10181_v30 = vld [vmem:[#allocation9_spill] sm:$0xff] }
 0x1f5   : > { %6017 = vmatmul.msk.bf16.gmra.mxu3 %vm972_vm2, %v10173_v44 }
 0x1f7   : > { %v1911_v35 = vpop.f32.mrf.mxu0 }
 0x1f8   : > { %v1770_v42 = vpop.f32.mrf.mxu3  ;;  %v7967_v38 = vadd.f32 %v1911_v35, %v1806_v28  ;;  %6004 = vmatmul.msk.bf16.gmra.mxu2 %vm972_vm2, %v10175_v45 }
 0x1f9   : > { %v1811_v59 = vadd.f32 %v1770_v42, %v1679_v11 }
 0x1fa   : > { %10174 = vst [vmem:[#allocation31_spill] sm:$0xff] %v7967_v38  ;;  %v2052_v48 = vpop.f32.mrf.mxu1 }
 0x1fb   : > { %v7971_v10 = vpop.f32.mrf.mxu2 }
 0x1ff   : > { %v1914_v21 = vpop.f32.mrf.mxu0 }
 0x200   : > { %v1772_v31 = vpop.f32.mrf.mxu3  ;;  %v1961_v24 = vadd.f32 %v1914_v21, %v1807_v47  ;;  %v6523_v47 = vld [vmem:[%s10130_s3 + $0x48] sm:$0xff] }
 0x201   : > { %v1812_v34 = vadd.f32 %v1772_v31, %v1680_v29  ;;  %3442 = vmatpush.bf16.msra.mxu1 %v6523_v47 }
 0x202   : > { %v7973_v16 = vadd.f32 %v2052_v48, %v1961_v24  ;;  %6032 = vmatmul.msk.bf16.gmra.mxu0 %vm972_vm2, %v10177_v51  ;;  %v7977_v39 = vpop.f32.mrf.mxu1 }
 0x203   : > { %10178 = vst [vmem:[#allocation33_spill] sm:$0xff] %v7977_v39  ;;  %v7979_v28 = vpop.f32.mrf.mxu2  ;;  %v10203_v39 = vld [vmem:[#allocation12_spill] sm:$0xff] }
 0x204   : > { %10176 = vst [vmem:[#allocation42_spill] sm:$0xff] %v7973_v16 }
 0x205   : > { %6018 = vmatmul.msk.bf16.gmra.mxu3 %vm972_vm2, %v10179_v40 }
 0x207   : > { %v1916_v11 = vpop.f32.mrf.mxu0 }
 0x208   : > { %v1775_v50 = vpop.f32.mrf.mxu3  ;;  %v7983_v43 = vadd.f32 %v1916_v11, %v1808_v15  ;;  %6005 = vmatmul.msk.bf16.gmra.mxu2 %vm972_vm2, %v10181_v30  ;;  %v10183_v15 = vld [vmem:[#allocation37_spill] sm:$0xff] }
 0x209   : > { %v1813_v29 = vadd.f32 %v1775_v50, %v1681_v17 }
 0x20a   : > { %10180 = vst [vmem:[#allocation43_spill] sm:$0xff] %v7983_v43  ;;  %v2057_v44 = vpop.f32.mrf.mxu1 }
 0x20b   : > { %v7990_v35 = vpop.f32.mrf.mxu2 }
 0x20f   : > { %v1919_v42 = vpop.f32.mrf.mxu0 }
 0x210   : > { %v1777_v45 = vpop.f32.mrf.mxu3  ;;  %v1963_v48 = vadd.f32 %v1919_v42, %v1809_v32 }
 0x211   : > { %v1814_v21 = vadd.f32 %v1777_v45, %v1682_v23 }
 0x212   : > { %v7992_v31 = vadd.f32 %v2057_v44, %v1963_v48  ;;  %6033 = vmatmul.msk.bf16.gmra.mxu0 %vm972_vm2, %v10183_v15  ;;  %v7996_v24 = vpop.f32.mrf.mxu1 }
 0x213   : > { %10184 = vst [vmem:[#allocation7_spill] sm:$0xff] %v7996_v24  ;;  %v7998_v17 = vpop.f32.mrf.mxu2  ;;  %v6535_v24 = vld [vmem:[%s10130_s3 + $0xa8] sm:$0xff] }
 0x214   : > { %10182 = vst [vmem:[#allocation34_spill] sm:$0xff] %v7992_v31 }
 0x215   : > { %6019 = vmatmul.msk.bf16.gmra.mxu3 %vm972_vm2, %v7433_v14  ;;  %v10187_v14 = vld [vmem:[#allocation38_spill] sm:$0xff] }
 0x217   : > { %v1921_v51 = vpop.f32.mrf.mxu0 }
 0x218   : > { %v1780_v40 = vpop.f32.mrf.mxu3  ;;  %v8002_v11 = vadd.f32 %v1921_v51, %v1810_v54  ;;  %6006 = vmatmul.msk.bf16.gmra.mxu2 %vm972_vm2, %v10133_v61 }
 0x219   : > { %v8006_v23 = vadd.f32 %v1780_v40, %v1683_v8  ;;  %v6743_v40 = vmov 0.0  }
 0x21a   : > { %10185 = vst [vmem:[#allocation35_spill] sm:$0xff] %v8002_v11  ;;  %v2062_v32 = vpop.f32.mrf.mxu1 }
 0x21b   : > { %v8008_v50 = vpop.f32.mrf.mxu2  ;;  %2604 = vst [vmem:[#allocation2 + $0x18] sm:$0xff] %v6743_v40 }
 0x21c   : > { %2605 = vst [vmem:[#allocation2 + $0x20] sm:$0xff] %v6743_v40 }
 0x21d   : > { %2601 = vst [vmem:[#allocation2] sm:$0xff] %v6743_v40 }
 0x21e   : > { %2603 = vst [vmem:[#allocation2 + $0x10] sm:$0x3] %v6743_v40 }
 0x21f   : > { %v1924_v30 = vpop.f32.mrf.mxu0  ;;  %2606 = vst [vmem:[#allocation2 + $0x28] sm:$0x3] %v6743_v40 }
 0x220   : > { %v1782_v47 = vpop.f32.mrf.mxu3  ;;  %v1965_v44 = vadd.f32 %v1924_v30, %v1811_v59  ;;  %v10191_v30 = vld [vmem:[#allocation40_spill] sm:$0xff]  ;;  %2607 = vst [vmem:[#allocation2 + $0x30] sm:$0xff] %v6743_v40 }
 0x221   : > { %v8010_v42 = vadd.f32 %v1782_v47, %v1684_v36  ;;  %v6522_v36 = vld [vmem:[%s10130_s3 + $0x40] sm:$0xff]  ;;  %2608 = vst [vmem:[#allocation2 + $0x38] sm:$0xff] %v6743_v40 }
 0x222   : > { %v8012_v45 = vadd.f32 %v2062_v32, %v1965_v44  ;;  %6034 = vmatmul.msk.bf16.gmra.mxu0 %vm972_vm2, %v10187_v14  ;;  %v8016_v54 = vpop.f32.mrf.mxu1  ;;  %3443 = vmatpush.bf16.msra.mxu1 %v6522_v36  ;;  %2609 = vst [vmem:[#allocation2 + $0x40] sm:$0x3] %v6743_v40 }
 0x223   : > { %10188 = vst [vmem:[#allocation9_spill] sm:$0xff] %v8016_v54  ;;  %v8018_v48 = vpop.f32.mrf.mxu2 }
 0x224   : > { %10186 = vst [vmem:[#allocation36_spill] sm:$0xff] %v8012_v45  ;;  %v2214_v43 = vadd.f32 %v8018_v48, %v10203_v39 }
 0x225   : > { %6020 = vmatmul.msk.bf16.gmra.mxu3 %vm972_vm2, %v10138_v9  ;;  %2610 = vst [vmem:[#allocation2 + $0x48] sm:$0xff] %v6743_v40  ;;  %v2690_v36 = vld [vmem:[#allocation2 + $0x10] sm:$0x3] }
 0x226   : > { %2611 = vst [vmem:[#allocation2 + $0x50] sm:$0xff] %v6743_v40 }
 0x227   : > { %v1926_v61 = vpop.f32.mrf.mxu0  ;;  %2612 = vst [vmem:[#allocation2 + $0x58] sm:$0x3] %v6743_v40 }
 0x228   : > { %v8022_v8 = vpop.f32.mrf.mxu3  ;;  %v8024_v15 = vadd.f32 %v1926_v61, %v1812_v34  ;;  %6007 = vmatmul.msk.bf16.gmra.mxu2 %vm972_vm2, %v10139_v3  ;;  %2613 = vst [vmem:[#allocation2 + $0x60] sm:$0xff] %v6743_v40 }
 0x229   : > { %2614 = vst [vmem:[#allocation2 + $0x68] sm:$0xff] %v6743_v40 }
 0x22a   : > { %10189 = vst [vmem:[#allocation37_spill] sm:$0xff] %v8024_v15  ;;  %v2067_v51 = vpop.f32.mrf.mxu1 }
 0x22b   : > { %v8031_v59 = vpop.f32.mrf.mxu2  ;;  %2615 = vst [vmem:[#allocation2 + $0x70] sm:$0x3] %v6743_v40 }
 0x22c   : > { %2616 = vst [vmem:[#allocation2 + $0x78] sm:$0xff] %v6743_v40 }
 0x22d   : > { %2617 = vst [vmem:[#allocation2 + $0x80] sm:$0xff] %v6743_v40 }
 0x22e   : > { %2618 = vst [vmem:[#allocation2 + $0x88] sm:$0x3] %v6743_v40 }
 0x22f   : > { %v1929_v9 = vpop.f32.mrf.mxu0  ;;  %2619 = vst [vmem:[#allocation2 + $0x90] sm:$0xff] %v6743_v40 }
 0x230   : > { %v8036_v34 = vpop.f32.mrf.mxu3  ;;  %v1967_v32 = vadd.f32 %v1929_v9, %v1813_v29  ;;  %2620 = vst [vmem:[#allocation2 + $0x98] sm:$0xff] %v6743_v40 }
 0x231   : > { %2621 = vst [vmem:[#allocation2 + $0xa0] sm:$0x3] %v6743_v40 }
 0x232   : > { %v8039_v3 = vadd.f32 %v2067_v51, %v1967_v32  ;;  %6035 = vmatmul.msk.bf16.gmra.mxu0 %vm972_vm2, %v10191_v30  ;;  %v8050_v44 = vpop.f32.mrf.mxu1  ;;  %v8063_v32 = vpack.c.bf16 %v2690_v36, %v2690_v36  ;;  %v6521_v36 = vld [vmem:[%s10130_s3 + $0x38] sm:$0xff]  ;;  %2622 = vst [vmem:[#allocation2 + $0xa8] sm:$0xff] %v6743_v40 }
 0x233   : > { %v8044_v47 = vpop.f32.mrf.mxu2  ;;  %10192 = vst [vmem:[#allocation40_spill] sm:$0xff] %v8050_v44  ;;  %3669 = vmatpush.bf16.msrb.mxu2 %v6521_v36  ;;  %v6553_v36 = vld [vmem:[%s10130_s3 + $0x138] sm:$0xff] }
 0x234   : > { %10190 = vst [vmem:[#allocation38_spill] sm:$0xff] %v8039_v3  ;;  %4370 = vmatpush.bf16.msrb.mxu1 %v6553_v36  ;;  %v10199_v36 = vld [vmem:[#allocation20_spill] sm:$0xff] }
 0x235   : > { %6021 = vmatmul.msk.bf16.gmra.mxu3 %vm972_vm2, %v10142_v60  ;;  %v6744_v60 = vmov 0   ;;  %2623 = vst [vmem:[#allocation2 + $0xb0] sm:$0xff] %v6743_v40 }
 0x236   : > { %v2943_v51 = vrot.slane %v6744_v60, 4  ;;  %v2946_v9 = vrot.slane %v6744_v60, 5  ;;  %2624 = vst [vmem:[#allocation2 + $0xb8] sm:$0x3] %v6743_v40 }
 0x237   : > { %v1931_v29 = vpop.f32.mrf.mxu0  ;;  %2625 = vst [vmem:[#allocation2 + $0xc0] sm:$0xff] %v6743_v40 }
 0x238   : > { %v8055_v14 = vpop.f32.mrf.mxu3  ;;  %v8057_v61 = vadd.f32 %v1931_v29, %v1814_v21  ;;  %6008 = vmatmul.msk.bf16.gmra.mxu2 %vm972_vm2, %v10143_v53  ;;  %v2947_v30 = vor.u32 %v2946_v9, %v2943_v51  ;;  %v2960_v21 = vshll.u32 %v8063_v32, 16  ;;  %2626 = vst [vmem:[#allocation2 + $0xc8] sm:$0xff] %v6743_v40 }
 0x239   : > { %2627 = vst [vmem:[#allocation2 + $0xd0] sm:$0x3] %v6743_v40 }
 0x23a   : > { %10193 = vst [vmem:[#allocation45_spill] sm:$0xff] %v8057_v61  ;;  %v2948_v53 = vrot.slane %v2947_v30, 4  ;;  %v2962_v29 = vrot.slane %v2960_v21, 5  ;;  %v2072_v61 = vpop.f32.mrf.mxu1 }
 0x23b   : > { %v8066_v44 = vpop.f32.mrf.mxu2  ;;  %2628 = vst [vmem:[#allocation2 + $0xd8] sm:$0xff] %v6743_v40 }
 0x23c   : > { %v2953_v60 = vsel %vm6915_vm4, %v2948_v53, %v2946_v9  ;;  %v2963_v3 = vsel %vm6915_vm4, %v2948_v53, %v2962_v29  ;;  %v6520_v53 = vld [vmem:[%s10130_s3 + $0x30] sm:$0xff]  ;;  %2629 = vst [vmem:[#allocation2 + $0xe0] sm:$0xff] %v6743_v40 }
 0x23d   : > { %v3324_v30 = vunpack.c.l.b16 %v2953_v60  ;;  %v3325_v15 = vunpack.c.l.b16 %v2963_v3  ;;  %3670 = vmatpush.bf16.msrb.mxu2 %v6520_v53  ;;  %v6518_v60 = vld [vmem:[%s10130_s3 + $0x20] sm:$0xff]  ;;  %2630 = vst [vmem:[#allocation2 + $0xe8] sm:$0x3] %v6743_v40 }
 0x23e   : > { %2631 = vst [vmem:[#allocation2 + $0xf0] sm:$0xff] %v6743_v40 }
 0x23f   : > { %v1934_v51 = vpop.f32.mrf.mxu0  ;;  %v3356_v9 = vpack.c.b16 %v3325_v15, %v3324_v30  ;;  %v6545_v15 = vld [vmem:[%s10130_s3 + $0xf8] sm:$0xff]  ;;  %2632 = vst [vmem:[#allocation2 + $0xf8] sm:$0xff] %v6743_v40 }
 0x240   : > { %v8081_v54 = vpop.f32.mrf.mxu3  ;;  %v1969_v21 = vadd.f32 %v1934_v51, %v8006_v23  ;;  %v6537_v23 = vld [vmem:[%s10130_s3 + $0xb8] sm:$0xff]  ;;  %4173 = vmatpush.bf16.msrb.mxu0 %v6545_v15  ;;  %2633 = vst [vmem:[#allocation2 + $0x100] sm:$0x3] %v6743_v40  ;;  %v10198_v15 = vld [vmem:[#allocation41_spill] sm:$0xff] }
 0x241   : > { %3444 = vmatmul.bf16.vlgmr.msra.gmra.mxu1 %v3356_v9  ;;  %3998 = vmatpush.bf16.msra.mxu3 %v6537_v23  ;;  %2634 = vst [vmem:[#allocation2 + $0x108] sm:$0xff] %v6743_v40  ;;  %v6517_v9 = vld [vmem:[%s10130_s3 + $0x18] sm:$0xff] }
 0x242   : > { %v8086_v45 = vadd.f32 %v2072_v61, %v1969_v21  ;;  %6036 = vmatmul.msk.bf16.gmra.mxu0 %vm972_vm2, %v7545_v52  ;;  %v6519_v52 = vld [vmem:[%s10130_s3 + $0x28] sm:$0xff]  ;;  %v8139_v21 = vld [vmem:[%s10197_s2] ss:$0 sm:$0xff]  ;;  %2635 = vst [vmem:[#allocation2 + $0x110] sm:$0xff] %v6743_v40 }
 0x243   : > { %v8094_v29 = vpop.f32.mrf.mxu2  ;;  %3671 = vmatpush.bf16.msrb.mxu2 %v6519_v52  ;;  %2636 = vst [vmem:[#allocation2 + $0x118] sm:$0x3] %v6743_v40 }
 0x244   : > { %10194 = vst [vmem:[#allocation46_spill] sm:$0xff] %v8086_v45 }
 0x245   : > { %6022 = vmatmul.msk.bf16.gmra.mxu3 %vm972_vm2, %v10147_v63  ;;  %2637 = vst [vmem:[#allocation2 + $0x120] sm:$0xff] %v6743_v40 }
 0x246   : > { %2638 = vst [vmem:[#allocation2 + $0x128] sm:$0xff] %v6743_v40 }
 0x247   : > { %v1936_v3 = vpop.f32.mrf.mxu0  ;;  %3672 = vmatpush.bf16.msrb.mxu2 %v6518_v60  ;;  %2639 = vst [vmem:[#allocation2 + $0x130] sm:$0x3] %v6743_v40  ;;  %v2210_v60 = vadd.f32 %v7979_v28, %v10199_v36 }
 0x248   : > { %v8112_v61 = vpop.f32.mrf.mxu3  ;;  %v8115_v63 = vadd.f32 %v1936_v3, %v8010_v42  ;;  %6009 = vmatmul.msk.bf16.gmra.mxu2 %vm972_vm2, %v10148_v55  ;;  %v10196_v55 = vld [vmem:[#allocation13_spill] sm:$0xff]  ;;  %2640 = vst [vmem:[#allocation2 + $0x138] sm:$0xff] %v6743_v40 }
 0x249   : > { %v2209_v51 = vadd.f32 %v7971_v10, %v10196_v55  ;;  %2641 = vst [vmem:[#allocation2 + $0x140] sm:$0xff] %v6743_v40 }
 0x24a   : > { %10195 = vst [vmem:[#allocation47_spill] sm:$0xff] %v8115_v63 }
 0x24b   : > { %v8128_v42 = vpop.f32.mrf.mxu2  ;;  %v2363_v30 = vadd.f32 %v8022_v8, %v2209_v51  ;;  %3673 = vmatpush.bf16.msrb.mxu2 %v6517_v9  ;;  %v6516_v8 = vld [vmem:[%s10130_s3 + $0x10] sm:$0xff]  ;;  %v2364_v51 = vadd.f32 %v8036_v34, %v2210_v60  ;;  %2642 = vst [vmem:[#allocation2 + $0x148] sm:$0x3] %v6743_v40  ;;  %v472_v34 = vld [vmem:[%s6877_s16 + $0x1a0] sm:$0xff] }
 0x24c   : > { %2643 = vst [vmem:[#allocation2 + $0x150] sm:$0xff] %v6743_v40  ;;  %v8192_v36 = vpack.c.bf16 %v472_v34, %v472_v34 }
 0x24d   : > { %2644 = vst [vmem:[#allocation2 + $0x158] sm:$0xff] %v6743_v40 }
 0x24e   : > { %2645 = vst [vmem:[#allocation2 + $0x160] sm:$0x3] %v6743_v40 }
 0x24f   : > { %v2421_v53 = vpop.f32.mrf.mxu0  ;;  %3674 = vmatpush.bf16.msrb.mxu2 %v6516_v8  ;;  %2646 = vst [vmem:[#allocation2 + $0x168] sm:$0xff] %v6743_v40 }
 0x250   : > { %v8146_v10 = vpop.f32.mrf.mxu3  ;;  %v2501_v23 = vadd.f32 %v2421_v53, %v2363_v30  ;;  %v6515_v30 = vld [vmem:[%s10130_s3 + $0x8] sm:$0xff]  ;;  %2647 = vst [vmem:[#allocation2 + $0x170] sm:$0xff] %v6743_v40 }
 0x251   : > { %2648 = vst [vmem:[#allocation2 + $0x178] sm:$0x3] %v6743_v40 }
 0x252   : > { %v2537_v52 = vadd.f32 %v8139_v21, %v2501_v23  ;;  %6037 = vmatmul.msk.bf16.gmra.mxu0 %vm972_vm2, %v10198_v15  ;;  %v6514_v23 = vld [vmem:[%s10130_s3] sm:$0xff]  ;;  %2649 = vst [vmem:[#allocation2 + $0x180] sm:$0xff] %v6743_v40 }
 0x253   : > { %v8158_v3 = vpop.f32.mrf.mxu2  ;;  %3675 = vmatpush.bf16.msrb.mxu2 %v6515_v30  ;;  %2650 = vst [vmem:[#allocation2 + $0x188] sm:$0xff] %v6743_v40 }
 0x254   : > { %v2569_v55 = vmax.f32 %v2537_v52, 0.0  ;;  %v2211_v52 = vadd.f32 %v7990_v35, %v7728_v12  ;;  %2651 = vst [vmem:[#allocation2 + $0x190] sm:$0x3] %v6743_v40 }
 0x255   : > { %6023 = vmatmul.msk.bf16.gmra.mxu3 %vm972_vm2, %v10151_v18  ;;  %v471_v18 = vld [vmem:[%s6877_s16 + $0x198] sm:$0xff]  ;;  %2654 = vst [vmem:[#allocation2 + $0x1a8] sm:$0x3] %v6743_v40  ;;  %v6544_v40 = vld [vmem:[%s10130_s3 + $0xf0] sm:$0xff] }
 0x256   : > { %2656 = vst [vmem:[#allocation2 + $0x19] sm:$0xff] %v2569_v55  ;;  %v8190_v15 = vpack.c.bf16 %v471_v18, %v471_v18  ;;  %v2365_v60 = vadd.f32 %v8055_v14, %v2211_v52  ;;  %v6536_v55 = vld [vmem:[%s10130_s3 + $0xb0] sm:$0xff]  ;;  %v2112_v14 = vunpack.c.l.b16 %v8192_v36  ;;  %4174 = vmatpush.bf16.msrb.mxu0 %v6544_v40 }
 0x257   : > { %v2423_v28 = vpop.f32.mrf.mxu0  ;;  %3676 = vmatpush.bf16.msrb.mxu2 %v6514_v23  ;;  %3999 = vmatpush.bf16.msra.mxu3 %v6536_v55  ;;  %v10200_v52 = vld [vmem:[#allocation19_spill] sm:$0xff] }
 0x258   : > { %v8172_v9 = vpop.f32.mrf.mxu3  ;;  %v2502_v53 = vadd.f32 %v2423_v28, %v2364_v51  ;;  %6010 = vmatmul.msk.bf16.gmra.mxu2 %vm972_vm2, %v7810_v6 }
 0x25a   : > { %v2538_v6 = vadd.f32 %v8139_v21, %v2502_v53  ;;  %v2111_v53 = vunpack.c.l.b16 %v8190_v15 }
 0x25b   : > { %v8184_v8 = vpop.f32.mrf.mxu2  ;;  %4000 = vmatpush.bf16.msra.mxu3 %v6535_v24 }
 0x25c   : > { %v2570_v51 = vmax.f32 %v2538_v6, 0.0  ;;  %v2212_v6 = vadd.f32 %v7998_v17, %v10200_v52  ;;  %v6552_v52 = vld [vmem:[%s10130_s3 + $0x130] sm:$0xff] }
 0x25d   : > { %v2691_v35 = vld [vmem:[#allocation2 + $0x18] sm:$0xff]  ;;  %4371 = vmatpush.bf16.msrb.mxu1 %v6552_v52 }
 0x25e   : > { %v8209_v34 = vpack.c.bf16 %v2691_v35, %v2691_v35  ;;  %2657 = vst [vmem:[#allocation2 + $0x21] sm:$0xff] %v2570_v51  ;;  %v2366_v55 = vadd.f32 %v8081_v54, %v2212_v6  ;;  %v10201_v6 = vld [vmem:[#allocation21_spill] sm:$0xff] }
 0x25f   : > { %v2426_v12 = vpop.f32.mrf.mxu0 }
 0x260   : > { %v8202_v30 = vpop.f32.mrf.mxu3  ;;  %v2503_v28 = vadd.f32 %v2426_v12, %v2365_v60  ;;  %v2113_v12 = vpack.c.b16 %v2112_v14, %v2111_v53  ;;  %v2968_v35 = vshll.u32 %v8209_v34, 16 }
 0x262   : > { %v2539_v18 = vadd.f32 %v8139_v21, %v2503_v28  ;;  %6038 = vmatmul.msk.bf16.gmra.mxu0 %vm972_vm2, %v7603_v19  ;;  %v2965_v19 = vshrl.u32 %v8209_v34, 16  ;;  %v2970_v54 = vrot.slane %v2968_v35, 5 }
 0x263   : > { %v8212_v23 = vpop.f32.mrf.mxu2 }
 0x264   : > { %v2571_v60 = vmax.f32 %v2539_v18, 0.0  ;;  %v2967_v51 = vrot.slane %v2965_v19, 4 }
 0x265   : > { %6024 = vmatmul.msk.bf16.gmra.mxu3 %vm972_vm2, %v10155_v58  ;;  %v2692_v14 = vld [vmem:[#allocation2 + $0x20] sm:$0xff]  ;;  %v2693_v18 = vld [vmem:[#allocation2 + $0x28] sm:$0x3] }
 0x266   : > { %2658 = vst [vmem:[#allocation2 + $0x31] sm:$0xff] %v2571_v60  ;;  %v2213_v60 = vadd.f32 %v8008_v50, %v10201_v6  ;;  %v2971_v35 = vor.u32 %v2970_v54, %v2967_v51 }
 0x267   : > { %v2428_v28 = vpop.f32.mrf.mxu0 }
 0x268   : > { %v8224_v63 = vpop.f32.mrf.mxu3  ;;  %v2504_v17 = vadd.f32 %v2428_v28, %v2366_v55  ;;  %6011 = vmatmul.msk.bf16.gmra.mxu2 %vm972_vm2, %v2113_v12  ;;  %v8235_v55 = vpack.c.bf16 %v2692_v14, %v2692_v14  ;;  %v8237_v12 = vpack.c.bf16 %v2693_v18, %v2693_v18  ;;  %v2367_v19 = vadd.f32 %v8112_v61, %v2213_v60  ;;  %v10202_v60 = vld [vmem:[#allocation44_spill] sm:$0xff] }
 0x269   : > { %v10010_v14 = vmov 0.0|0.0   ;;  %v2972_v11 = vrot.slane %v2971_v35, 4  ;;  %v6534_v35 = vld [vmem:[%s10130_s3 + $0xa0] sm:$0xff] }
 0x26a   : > { %v2540_v58 = vadd.f32 %v8139_v21, %v2504_v17  ;;  %v2974_v28 = vshll.u32 %v8235_v55, 16  ;;  %v2978_v17 = vshrl.u32 %v8235_v55, 16  ;;  %v3557_v18 = vunpack.c.l.b16 %v10010_v14  ;;  %4001 = vmatpush.bf16.msra.mxu3 %v6534_v35  ;;  %v473_v35 = vld [vmem:[%s6877_s16 + $0x1a8] sm:$0x3]  ;;  %s6630_s16 = smul.u32 48, %s9863_s20 }
 0x26b   : > { %v8228_v53 = vpop.f32.mrf.mxu2  ;;  %v8295_v33 = vpack.c.bf16 %v473_v35, %v473_v35 }
 0x26c   : > { %v2572_v45 = vmax.f32 %v2540_v58, 0.0  ;;  %v2984_v58 = vshll.u32 %v8237_v12, 16  ;;  %v2976_v61 = vrot.slane %v2974_v28, 5  ;;  %v2980_v51 = vrot.slane %v2978_v17, 4  ;;  %s9887_s17 = scalar_lea.vmem [#allocation3], %s6630_s16 }
 0x26d   : > { %v2694_v40 = vld [vmem:[#allocation2 + $0x30] sm:$0xff]  ;;  %v3589_v14 = vpack.c.b16 %v3557_v18, %v3557_v18 }
 0x26e   : > { %2659 = vst [vmem:[#allocation2 + $0x39] sm:$0xff] %v2572_v45  ;;  %v8247_v6 = vpack.c.bf16 %v2694_v40, %v2694_v40  ;;  %v2981_v31 = vor.u32 %v2980_v51, %v2976_v61  ;;  %v2986_v40 = vrot.slane %v2984_v58, 5  ;;  %v2977_v24 = vsel %vm6915_vm4, %v2972_v11, %v2976_v61  ;;  %v6533_v11 = vld [vmem:[%s10130_s3 + $0x98] sm:$0xff] }
 0x26f   : > { %v2431_v50 = vpop.f32.mrf.mxu0  ;;  %v2242_v61 = vshrl.u32 %v8190_v15, 16  ;;  %4002 = vmatpush.bf16.msra.mxu3 %v6533_v11 }
 0x270   : > { %v8249_v52 = vpop.f32.mrf.mxu3  ;;  %v2505_v45 = vadd.f32 %v2431_v50, %v2367_v19  ;;  %v2989_v5 = vshrl.u32 %v8247_v6, 16  ;;  %v2982_v28 = vrot.slane %v2981_v31, 4  ;;  %v2992_v17 = vshll.u32 %v8247_v6, 16 }
 0x271   : > { %v2368_v50 = vadd.f32 %v8146_v10, %v2214_v43  ;;  %v3326_v43 = vunpack.c.l.b16 %v2977_v24  ;;  %v2251_v24 = vshll.u32 %v8192_v36, 16 }
 0x272   : > { %v2541_v54 = vadd.f32 %v8139_v21, %v2505_v45  ;;  %6039 = vmatmul.msk.bf16.gmra.mxu0 %vm972_vm2, %v10202_v60  ;;  %v2987_v58 = vsel %vm6915_vm4, %v2982_v28, %v2986_v40  ;;  %v2994_v60 = vrot.slane %v2992_v17, 5  ;;  %v10205_v17 = vld [vmem:[#allocation26_spill] sm:$0xff] }
 0x273   : > { %v8256_v16 = vpop.f32.mrf.mxu2  ;;  %v3327_v10 = vunpack.c.l.b16 %v2987_v58  ;;  %v8300_v0 = vrot.slane %v2251_v24, 5 }
 0x274   : > { %v2573_v19 = vmax.f32 %v2541_v54, 0.0 }
 0x275   : > { %6025 = vmatmul.msk.bf16.gmra.mxu3 %vm972_vm2, %v10158_v26  ;;  %v2695_v39 = vld [vmem:[#allocation2 + $0x38] sm:$0xff]  ;;  %v2696_v48 = vld [vmem:[#allocation2 + $0x40] sm:$0x3]  ;;  %v2991_v26 = vrot.slane %v2989_v5, 4  ;;  %v8282_v28 = vpack.c.b16 %v3327_v10, %v3326_v43  ;;  %v2255_v5 = vshrl.u32 %v8192_v36, 16 }
 0x276   : > { %2660 = vst [vmem:[#allocation2 + $0x49] sm:$0xff] %v2573_v19  ;;  %v8270_v18 = vpack.c.bf16 %v2695_v39, %v2695_v39  ;;  %v8272_v31 = vpack.c.bf16 %v2696_v48, %v2696_v48  ;;  %v2245_v39 = vshll.u32 %v8190_v15, 16 }
 0x277   : > { %v2433_v45 = vpop.f32.mrf.mxu0  ;;  %10204 = vst [vmem:[#allocation13_spill] sm:$0xff] %v8282_v28  ;;  %3449 = vmatmul.bf16.gmra.mxu1 %v8282_v28  ;;  %v2257_v11 = vrot.slane %v2255_v5, 4 }
 0x278   : > { %v8278_v51 = vpop.f32.mrf.mxu3  ;;  %v2506_v54 = vadd.f32 %v2433_v45, %v2368_v50  ;;  %3677 = vmatmul.bf16.vlgmr.msrb.gmra.mxu2 %v3589_v14  ;;  %v2998_v40 = vshll.u32 %v8270_v18, 16  ;;  %v3002_v19 = vshrl.u32 %v8270_v18, 16  ;;  %v3008_v14 = vshll.u32 %v8272_v31, 16 }
 0x279   : > { %v2215_v50 = vadd.f32 %v8031_v59, %v10205_v17  ;;  %v2995_v45 = vor.u32 %v2994_v60, %v2991_v26 }
 0x27a   : > { %v2542_v48 = vadd.f32 %v8139_v21, %v2506_v54  ;;  %v3000_v58 = vrot.slane %v2998_v40, 5  ;;  %v3004_v38 = vrot.slane %v3002_v19, 4  ;;  %v6532_v54 = vld [vmem:[%s10130_s3 + $0x90] sm:$0xff]  ;;  %v2244_v40 = vrot.slane %v2242_v61, 4 }
 0x27b   : > { %v8293_v43 = vpop.f32.mrf.mxu2  ;;  %v2247_v19 = vrot.slane %v2245_v39, 5  ;;  %v2369_v59 = vadd.f32 %v8172_v9, %v2215_v50  ;;  %v3010_v28 = vrot.slane %v3008_v14, 5  ;;  %4003 = vmatpush.bf16.msra.mxu3 %v6532_v54  ;;  %v2996_v39 = vrot.slane %v2995_v45, 4 }
 0x27c   : > { %v2574_v10 = vmax.f32 %v2542_v48, 0.0  ;;  %v3005_v27 = vor.u32 %v3004_v38, %v3000_v58  ;;  %v6531_v38 = vld [vmem:[%s10130_s3 + $0x88] sm:$0xff]  ;;  %v2258_v9 = vor.u32 %v2257_v11, %v8300_v0  ;;  %v3560_v45 = vunpack.c.l.b16 %v8235_v55 }
 0x27d   : > { %v2697_v46 = vld [vmem:[#allocation2 + $0x48] sm:$0xff]  ;;  %v2248_v5 = vor.u32 %v2247_v19, %v2244_v40 }
 0x27e   : > { %2661 = vst [vmem:[#allocation2 + $0x51] sm:$0xff] %v2574_v10  ;;  %v3006_v17 = vrot.slane %v3005_v27, 4  ;;  %v8306_v60 = vpack.c.bf16 %v2697_v46, %v2697_v46  ;;  %v2261_v27 = vshll.u32 %v8295_v33, 16  ;;  %v10206_v48 = vld [vmem:[#allocation25_spill] sm:$0xff]  ;;  %v10207_v10 = vld [vmem:[#allocation14_spill] sm:$0xff]  ;;  %v3001_v46 = vsel %vm6915_vm4, %v2996_v39, %v3000_v58 }
 0x27f   : > { %v2436_v26 = vpop.f32.mrf.mxu0  ;;  %v2216_v14 = vadd.f32 %v8044_v47, %v10206_v48  ;;  %4004 = vmatpush.bf16.msra.mxu3 %v6531_v38  ;;  %v3559_v47 = vunpack.c.l.b16 %v8209_v34  ;;  %v3328_v58 = vunpack.c.l.b16 %v3001_v46  ;;  %v2249_v38 = vrot.slane %v2248_v5, 4 }
 0x280   : > { %v8308_v35 = vpop.f32.mrf.mxu3  ;;  %v2507_v61 = vadd.f32 %v2436_v26, %v2369_v59  ;;  %v3011_v24 = vsel %vm6915_vm4, %v3006_v17, %v3010_v28  ;;  %v3013_v40 = vshrl.u32 %v8306_v60, 16  ;;  %v3016_v59 = vshll.u32 %v8306_v60, 16  ;;  %v6530_v17 = vld [vmem:[%s10130_s3 + $0x80] sm:$0xff] }
 0x281   : > { %v3329_v54 = vunpack.c.l.b16 %v3011_v24  ;;  %v2370_v19 = vadd.f32 %v8202_v30, %v2216_v14  ;;  %v2259_v26 = vrot.slane %v2258_v9, 4  ;;  %v8333_v30 = vpack.c.b16 %v3560_v45, %v3559_v47 }
 0x282   : > { %v2543_v50 = vadd.f32 %v8139_v21, %v2507_v61  ;;  %6040 = vmatmul.msk.bf16.gmra.mxu0 %vm972_vm2, %v10207_v10  ;;  %v2263_v61 = vrot.slane %v2261_v27, 5  ;;  %v3015_v5 = vrot.slane %v3013_v40, 4  ;;  %v3018_v46 = vrot.slane %v3016_v59, 5 }
 0x283   : > { %v8322_v28 = vpop.f32.mrf.mxu2  ;;  %10209 = vst [vmem:[#allocation20_spill] sm:$0xff] %v8333_v30  ;;  %4005 = vmatpush.bf16.msra.mxu3 %v6530_v17  ;;  %v8342_v10 = vpack.c.b16 %v3329_v54, %v3328_v58  ;;  %v2254_v47 = vsel %vm6915_vm4, %v2249_v38, %v8300_v0 }
 0x284   : > { %10208 = vst [vmem:[#allocation41_spill] sm:$0xff] %v8322_v28  ;;  %v2575_v11 = vmax.f32 %v2543_v50, 0.0  ;;  %v6543_v50 = vld [vmem:[%s10130_s3 + $0xe8] sm:$0xff]  ;;  %v2264_v54 = vsel %vm6915_vm4, %v2259_v26, %v2263_v61  ;;  %v2265_v61 = vunpack.c.l.b16 %v2254_v47 }
 0x285   : > { %6026 = vmatmul.msk.bf16.gmra.mxu3 %vm972_vm2, %v7901_v41  ;;  %v2698_v39 = vld [vmem:[#allocation2 + $0x50] sm:$0xff]  ;;  %v2699_v24 = vld [vmem:[#allocation2 + $0x58] sm:$0x3]  ;;  %10210 = vst [vmem:[#allocation19_spill] sm:$0xff] %v8342_v10  ;;  %4175 = vmatpush.bf16.msrb.mxu0 %v6543_v50  ;;  %v3019_v50 = vor.u32 %v3018_v46, %v3015_v5  ;;  %v10213_v46 = vmov 0.0|0.0  }
 0x286   : > { %2662 = vst [vmem:[#allocation2 + $0x61] sm:$0xff] %v2575_v11  ;;  %v8335_v48 = vpack.c.bf16 %v2698_v39, %v2698_v39  ;;  %v8337_v14 = vpack.c.bf16 %v2699_v24, %v2699_v24  ;;  %v6551_v39 = vld [vmem:[%s10130_s3 + $0x128] sm:$0xff]  ;;  %v10212_v24 = vld [vmem:[#allocation27_spill] sm:$0xff]  ;;  %v3776_v47 = vrot.slane %v10213_v46, 5 }
 0x287   : > { %v2438_v41 = vpop.f32.mrf.mxu0  ;;  %3454 = vmatmul.bf16.gmra.mxu1 %v8342_v10  ;;  %v2217_v0 = vadd.f32 %v8066_v44, %v10212_v24  ;;  %v3020_v1 = vrot.slane %v3019_v50, 4 }
 0x288   : > { %v8344_v9 = vpop.f32.mrf.mxu3  ;;  %v2508_v27 = vadd.f32 %v2438_v41, %v2370_v19  ;;  %3682 = vmatmul.bf16.gmra.mxu2 %v8333_v30  ;;  %v3022_v45 = vshll.u32 %v8335_v48, 16  ;;  %v3026_v11 = vshrl.u32 %v8335_v48, 16  ;;  %v3032_v19 = vshll.u32 %v8337_v14, 16  ;;  %4372 = vmatpush.bf16.msrb.mxu1 %v6551_v39  ;;  %v10216_v39 = vld [vmem:[#allocation16_spill] sm:$0xff] }
 0x289   : > { %v2266_v41 = vunpack.c.l.b16 %v2264_v54  ;;  %v10214_v54 = vld [vmem:[#allocation18_spill] sm:$0xff] }
 0x28a   : > { %v2544_v40 = vadd.f32 %v8139_v21, %v2508_v27  ;;  %v3024_v17 = vrot.slane %v3022_v45, 5  ;;  %v3028_v58 = vrot.slane %v3026_v11, 4  ;;  %v2371_v45 = vadd.f32 %v8224_v63, %v2217_v0 }
 0x28b   : > { %v8357_v59 = vpop.f32.mrf.mxu2  ;;  %v3034_v10 = vrot.slane %v3032_v19, 5  ;;  %v2267_v5 = vpack.c.b16 %v2266_v41, %v2265_v61  ;;  %v6109_v41 = vrot.slane %v10213_v46, 9 }
 0x28c   : > { %10211 = vst [vmem:[#allocation21_spill] sm:$0xff] %v8357_v59  ;;  %v2576_v38 = vmax.f32 %v2544_v40, 0.0  ;;  %v3029_v26 = vor.u32 %v3028_v58, %v3024_v17  ;;  %v10215_v40 = vld [vmem:[#allocation10_spill] sm:$0xff]  ;;  %v3025_v19 = vsel %vm6915_vm4, %v3020_v1, %v3024_v17  ;;  %v3778_v1 = vrot.slane %v3776_v47, 4 }
 0x28d   : > { %v2700_v27 = vld [vmem:[#allocation2 + $0x60] sm:$0xff]  ;;  %v2086_v58 = vadd.f32 %v10215_v40, %v10214_v54  ;;  %v3330_v61 = vunpack.c.l.b16 %v3025_v19  ;;  %v3779_v17 = vrot.slane %v8063_v32, 5  ;;  %v3777_v19 = vsel %vm7143_vm7, %v6109_v41, %v3776_v47 }
 0x28e   : > { %2663 = vst [vmem:[#allocation2 + $0x69] sm:$0xff] %v2576_v38  ;;  %v3030_v11 = vrot.slane %v3029_v26, 4  ;;  %v8365_v28 = vpack.c.bf16 %v2700_v27, %v2700_v27  ;;  %v3561_v26 = vunpack.c.l.b16 %v8247_v6  ;;  %v3886_v47 = vunpack.c.l.b16 %v3777_v19  ;;  %v10223_v19 = vld [vmem:[#allocation23_spill] sm:$0xff] }
 0x28f   : > { %v2441_v59 = vpop.f32.mrf.mxu0  ;;  %v2218_v38 = vadd.f32 %v8094_v29, %v2086_v58 }
 0x290   : > { %v8367_v30 = vpop.f32.mrf.mxu3  ;;  %v2509_v22 = vadd.f32 %v2441_v59, %v2371_v45  ;;  %v3035_v44 = vsel %vm6915_vm4, %v3030_v11, %v3034_v10  ;;  %v3562_v59 = vunpack.c.l.b16 %v8270_v18  ;;  %v3037_v10 = vshrl.u32 %v8365_v28, 16 }
 0x291   : > { %v3331_v0 = vunpack.c.l.b16 %v3035_v44  ;;  %v2372_v11 = vadd.f32 %v8249_v52, %v2218_v38 }
 0x292   : > { %v2545_v63 = vadd.f32 %v8139_v21, %v2509_v22  ;;  %6041 = vmatmul.msk.bf16.gmra.mxu0 %vm972_vm2, %v10216_v39  ;;  %v3040_v22 = vshll.u32 %v8365_v28, 16  ;;  %v8390_v44 = vpack.c.b16 %v3562_v59, %v3561_v26  ;;  %v3039_v58 = vrot.slane %v3037_v10, 4 }
 0x293   : > { %v8380_v24 = vpop.f32.mrf.mxu2  ;;  %v8396_v40 = vpack.c.b16 %v3331_v0, %v3330_v61  ;;  %v3780_v59 = vsel %vm7143_vm7, %v3778_v1, %v3779_v17 }
 0x294   : > { %10217 = vst [vmem:[#allocation44_spill] sm:$0xff] %v8380_v24  ;;  %v2577_v50 = vmax.f32 %v2545_v63, 0.0  ;;  %v3042_v32 = vrot.slane %v3040_v22, 5  ;;  %v10221_v22 = vld [vmem:[#allocation11_spill] sm:$0xff]  ;;  %v3887_v41 = vunpack.c.l.b16 %v3780_v59 }
 0x295   : > { %6027 = vmatmul.msk.bf16.gmra.mxu3 %vm972_vm2, %v2267_v5  ;;  %v2701_v27 = vld [vmem:[#allocation2 + $0x68] sm:$0xff]  ;;  %v2702_v45 = vld [vmem:[#allocation2 + $0x70] sm:$0x3]  ;;  %10218 = vst [vmem:[#allocation12_spill] sm:$0xff] %v8390_v44  ;;  %v2219_v61 = vadd.f32 %v8128_v42, %v10221_v22 }
 0x296   : > { %2664 = vst [vmem:[#allocation2 + $0x79] sm:$0xff] %v2577_v50  ;;  %v8392_v29 = vpack.c.bf16 %v2701_v27, %v2701_v27  ;;  %v8394_v54 = vpack.c.bf16 %v2702_v45, %v2702_v45  ;;  %v3043_v45 = vor.u32 %v3042_v32, %v3039_v58  ;;  %v3918_v58 = vpack.c.b16 %v3887_v41, %v3886_v47  ;;  %v10222_v32 = vld [vmem:[#allocation15_spill] sm:$0xff] }
 0x297   : > { %10219 = vst [vmem:[#allocation26_spill] sm:$0xff] %v8396_v40  ;;  %v2443_v5 = vpop.f32.mrf.mxu0  ;;  %3459 = vmatmul.bf16.gmra.mxu1 %v8396_v40  ;;  %v2373_v1 = vadd.f32 %v8278_v51, %v2219_v61  ;;  %v2088_v59 = vadd.f32 %v10223_v19, %v10222_v32  ;;  %v3783_v61 = vrot.slane %v8235_v55, 5 }
 0x298   : > { %v8398_v63 = vpop.f32.mrf.mxu3  ;;  %v2510_v46 = vadd.f32 %v2443_v5, %v2372_v11  ;;  %3687 = vmatmul.bf16.gmra.mxu2 %v8390_v44  ;;  %v3046_v39 = vshll.u32 %v8392_v29, 16  ;;  %v3050_v52 = vshrl.u32 %v8392_v29, 16  ;;  %v3056_v50 = vshll.u32 %v8394_v54, 16 }
 0x299   : > { %v3044_v24 = vrot.slane %v3043_v45, 4  ;;  %v2220_v45 = vadd.f32 %v8158_v3, %v2088_v59  ;;  %v6542_v3 = vld [vmem:[%s10130_s3 + $0xe0] sm:$0xff] }
 0x29a   : > { %v2546_v0 = vadd.f32 %v8139_v21, %v2510_v46  ;;  %v3048_v38 = vrot.slane %v3046_v39, 5  ;;  %v3052_v10 = vrot.slane %v3050_v52, 4  ;;  %v3058_v46 = vrot.slane %v3056_v50, 5  ;;  %4176 = vmatpush.bf16.msrb.mxu0 %v6542_v3 }
 0x29b   : > { %v8410_v26 = vpop.f32.mrf.mxu2 }
 0x29c   : > { %10220 = vst [vmem:[#allocation25_spill] sm:$0xff] %v8410_v26  ;;  %v2578_v27 = vmax.f32 %v2546_v0, 0.0  ;;  %v3053_v11 = vor.u32 %v3052_v10, %v3048_v38  ;;  %v3049_v51 = vsel %vm6915_vm4, %v3044_v24, %v3048_v38  ;;  %v3564_v10 = vunpack.c.l.b16 %v8335_v48 }
 0x29d   : > { %v2703_v5 = vld [vmem:[#allocation2 + $0x78] sm:$0xff]  ;;  %v2374_v38 = vadd.f32 %v8308_v35, %v2220_v45 }
 0x29e   : > { %2665 = vst [vmem:[#allocation2 + $0x81] sm:$0xff] %v2578_v27  ;;  %v3054_v17 = vrot.slane %v3053_v11, 4  ;;  %v8415_v52 = vpack.c.bf16 %v2703_v5, %v2703_v5 }
 0x29f   : > { %v2446_v39 = vpop.f32.mrf.mxu0 }
 0x2a0   : > { %v8417_v40 = vpop.f32.mrf.mxu3  ;;  %v2511_v26 = vadd.f32 %v2446_v39, %v2373_v1  ;;  %v3059_v42 = vsel %vm6915_vm4, %v3054_v17, %v3058_v46  ;;  %v3061_v27 = vshrl.u32 %v8415_v52, 16  ;;  %v3064_v47 = vshll.u32 %v8415_v52, 16 }
 0x2a1   : > { %v3333_v22 = vunpack.c.l.b16 %v3059_v42  ;;  %v3785_v39 = vrot.slane %v3783_v61, 4 }
 0x2a2   : > { %v2547_v0 = vadd.f32 %v8139_v21, %v2511_v26  ;;  %6042 = vmatmul.msk.bf16.gmra.mxu0 %vm972_vm2, %v7735_v57  ;;  %v3563_v26 = vunpack.c.l.b16 %v8306_v60  ;;  %v3332_v57 = vunpack.c.l.b16 %v3049_v51  ;;  %v3063_v42 = vrot.slane %v3061_v27, 4 }
 0x2a3   : > { %v8429_v50 = vpop.f32.mrf.mxu2  ;;  %v3066_v35 = vrot.slane %v3064_v47, 5  ;;  %v3786_v51 = vrot.slane %v8237_v12, 5  ;;  %v6110_v47 = vrot.slane %v8209_v34, 9 }
 0x2a4   : > { %v2579_v11 = vmax.f32 %v2547_v0, 0.0  ;;  %v8437_v5 = vpack.c.b16 %v3564_v10, %v3563_v26  ;;  %v8446_v17 = vpack.c.b16 %v3333_v22, %v3332_v57  ;;  %v6541_v0 = vld [vmem:[%s10130_s3 + $0xd8] sm:$0xff]  ;;  %v6550_v57 = vld [vmem:[%s10130_s3 + $0x120] sm:$0xff] }
 0x2a5   : > { %4006 = vmatmul.bf16.vlgmr.msra.gmra.mxu3 %v3918_v58  ;;  %v2704_v41 = vld [vmem:[#allocation2 + $0x80] sm:$0xff]  ;;  %v2705_v24 = vld [vmem:[#allocation2 + $0x88] sm:$0x3]  ;;  %4177 = vmatpush.bf16.msrb.mxu0 %v6541_v0 }
 0x2a6   : > { %2666 = vst [vmem:[#allocation2 + $0x91] sm:$0xff] %v2579_v11  ;;  %v8439_v1 = vpack.c.bf16 %v2704_v41, %v2704_v41  ;;  %v8441_v55 = vpack.c.bf16 %v2705_v24, %v2705_v24  ;;  %v2221_v11 = vadd.f32 %v8184_v8, %v7873_v2  ;;  %v3787_v41 = vsel %vm7143_vm7, %v3785_v39, %v3786_v51  ;;  %v6540_v39 = vld [vmem:[%s10130_s3 + $0xd0] sm:$0xff] }
 0x2a7   : > { %10224 = vst [vmem:[#allocation14_spill] sm:$0xff] %v8437_v5  ;;  %v2448_v46 = vpop.f32.mrf.mxu0  ;;  %3464 = vmatmul.bf16.gmra.mxu1 %v8446_v17  ;;  %v3067_v24 = vor.u32 %v3066_v35, %v3063_v42  ;;  %v2090_v2 = vadd.f32 %v7877_v56, %v7891_v4  ;;  %v3784_v8 = vsel %vm7143_vm7, %v6110_v47, %v3783_v61  ;;  %v3889_v35 = vunpack.c.l.b16 %v3787_v41 }
 0x2a8   : > { %10225 = vst [vmem:[#allocation27_spill] sm:$0xff] %v8446_v17  ;;  %v8448_v58 = vpop.f32.mrf.mxu3  ;;  %v2512_v32 = vadd.f32 %v2448_v46, %v2374_v38  ;;  %3692 = vmatmul.bf16.gmra.mxu2 %v8437_v5  ;;  %v3070_v19 = vshll.u32 %v8439_v1, 16  ;;  %v3074_v59 = vshrl.u32 %v8439_v1, 16  ;;  %v3080_v45 = vshll.u32 %v8441_v55, 16  ;;  %4373 = vmatpush.bf16.msrb.mxu1 %v6550_v57 }
 0x2a9   : > { %v2375_v34 = vadd.f32 %v8344_v9, %v2221_v11  ;;  %v2222_v56 = vadd.f32 %v8212_v23, %v2090_v2  ;;  %v3068_v0 = vrot.slane %v3067_v24, 4  ;;  %4178 = vmatpush.bf16.msrb.mxu0 %v6540_v39  ;;  %v3888_v51 = vunpack.c.l.b16 %v3784_v8 }
 0x2aa   : > { %v2548_v10 = vadd.f32 %v8139_v21, %v2512_v32  ;;  %v3072_v22 = vrot.slane %v3070_v19, 5  ;;  %v3076_v27 = vrot.slane %v3074_v59, 4  ;;  %v3082_v32 = vrot.slane %v3080_v45, 5 }
 0x2ab   : > { %v8462_v26 = vpop.f32.mrf.mxu2  ;;  %v2398_v19 = vrot.slane %v8192_v36, 5  ;;  %v6539_v36 = vld [vmem:[%s10130_s3 + $0xc8] sm:$0xff]  ;;  %v3790_v45 = vrot.slane %v8270_v18, 5  ;;  %v2401_v57 = vrot.slane %v8295_v33, 5 }
 0x2ac   : > { %v2580_v12 = vmax.f32 %v2548_v10, 0.0  ;;  %v3077_v38 = vor.u32 %v3076_v27, %v3072_v22  ;;  %v3566_v10 = vunpack.c.l.b16 %v8392_v29  ;;  %v6028_v27 = vrot.slane %v8190_v15, 9 }
 0x2ad   : > { %v2706_v3 = vld [vmem:[#allocation2 + $0x90] sm:$0xff]  ;;  %v3073_v11 = vsel %vm6915_vm4, %v3068_v0, %v3072_v22  ;;  %v2400_v47 = vrot.slane %v2398_v19, 4  ;;  %v3565_v15 = vunpack.c.l.b16 %v8365_v28  ;;  %4179 = vmatpush.bf16.msrb.mxu0 %v6539_v36 }
 0x2ae   : > { %2667 = vst [vmem:[#allocation2 + $0x99] sm:$0xff] %v2580_v12  ;;  %v3078_v46 = vrot.slane %v3077_v38, 4  ;;  %v8479_v59 = vpack.c.bf16 %v2706_v3, %v2706_v3  ;;  %v8498_v12 = vpack.c.b16 %v3889_v35, %v3888_v51  ;;  %v3334_v22 = vunpack.c.l.b16 %v3073_v11 }
 0x2af   : > { %v2451_v42 = vpop.f32.mrf.mxu0  ;;  %v8507_v8 = vpack.c.b16 %v3566_v10, %v3565_v15  ;;  %v2223_v15 = vadd.f32 %v8228_v53, %v7905_v25 }
 0x2b0   : > { %v8482_v4 = vpop.f32.mrf.mxu3  ;;  %v2513_v61 = vadd.f32 %v2451_v42, %v2375_v34  ;;  %v3083_v9 = vsel %vm6915_vm4, %v3078_v46, %v3082_v32  ;;  %v3085_v18 = vshrl.u32 %v8479_v59, 16  ;;  %v3088_v2 = vshll.u32 %v8479_v59, 16 }
 0x2b1   : > { %v3335_v24 = vunpack.c.l.b16 %v3083_v9  ;;  %10226 = vst [vmem:[#allocation18_spill] sm:$0xff] %v8507_v8  ;;  %v2399_v34 = vsel %vm7143_vm7, %v6028_v27, %v2398_v19  ;;  %v2402_v46 = vsel %vm7143_vm7, %v2400_v47, %v2401_v57 }
 0x2b2   : > { %v2549_v23 = vadd.f32 %v8139_v21, %v2513_v61  ;;  %6043 = vmatmul.msk.bf16.gmra.mxu0 %vm972_vm2, %v7896_v7  ;;  %v2376_v7 = vadd.f32 %v8367_v30, %v2222_v56  ;;  %v6538_v30 = vld [vmem:[%s10130_s3 + $0xc0] sm:$0xff]  ;;  %v3792_v56 = vrot.slane %v3790_v45, 4  ;;  %v3087_v61 = vrot.slane %v3085_v18, 4 }
 0x2b3   : > { %v8500_v41 = vpop.f32.mrf.mxu2  ;;  %v8520_v42 = vpack.c.b16 %v3335_v24, %v3334_v22  ;;  %v3090_v19 = vrot.slane %v3088_v2, 5  ;;  %4180 = vmatpush.bf16.msrb.mxu0 %v6538_v30  ;;  %v2403_v10 = vunpack.c.l.b16 %v2399_v34  ;;  %v2404_v27 = vunpack.c.l.b16 %v2402_v46 }
 0x2b4   : > { %v2581_v38 = vmax.f32 %v2549_v23, 0.0  ;;  %v3793_v23 = vrot.slane %v8272_v31, 5  ;;  %v2377_v34 = vadd.f32 %v8398_v63, %v2223_v15  ;;  %v3567_v15 = vunpack.c.l.b16 %v8415_v52 }
 0x2b5   : > { %4011 = vmatmul.bf16.gmra.mxu3 %v8498_v12  ;;  %v2707_v33 = vld [vmem:[#allocation2 + $0x98] sm:$0xff]  ;;  %v2708_v3 = vld [vmem:[#allocation2 + $0xa0] sm:$0x3]  ;;  %10227 = vst [vmem:[#allocation10_spill] sm:$0xff] %v8520_v42  ;;  %v3091_v31 = vor.u32 %v3090_v19, %v3087_v61  ;;  %v2405_v25 = vpack.c.b16 %v2404_v27, %v2403_v10  ;;  %v3568_v10 = vunpack.c.l.b16 %v8439_v1 }
 0x2b6   : > { %2668 = vst [vmem:[#allocation2 + $0xa9] sm:$0xff] %v2581_v38  ;;  %v8513_v32 = vpack.c.bf16 %v2707_v33, %v2707_v33  ;;  %v8515_v39 = vpack.c.bf16 %v2708_v3, %v2708_v3  ;;  %v6111_v38 = vrot.slane %v8247_v6, 9 }
 0x2b7   : > { %v2453_v35 = vpop.f32.mrf.mxu0  ;;  %3469 = vmatmul.bf16.gmra.mxu1 %v8520_v42 }
 0x2b8   : > { %v8522_v0 = vpop.f32.mrf.mxu3  ;;  %v2514_v9 = vadd.f32 %v2453_v35, %v2376_v7  ;;  %3697 = vmatmul.bf16.gmra.mxu2 %v8507_v8  ;;  %v3094_v36 = vshll.u32 %v8513_v32, 16  ;;  %v3098_v51 = vshrl.u32 %v8513_v32, 16  ;;  %v3104_v24 = vshll.u32 %v8515_v39, 16 }
 0x2b9   : > { %v3794_v7 = vsel %vm7143_vm7, %v3792_v56, %v3793_v23  ;;  %v3791_v33 = vsel %vm7143_vm7, %v6111_v38, %v3790_v45  ;;  %v3092_v56 = vrot.slane %v3091_v31, 4  ;;  %v2092_v45 = vadd.f32 %v7909_v62, %v7915_v13 }
 0x2ba   : > { %v2550_v11 = vadd.f32 %v8139_v21, %v2514_v9  ;;  %v3096_v47 = vrot.slane %v3094_v36, 5  ;;  %v3100_v57 = vrot.slane %v3098_v51, 4  ;;  %v3106_v46 = vrot.slane %v3104_v24, 5 }
 0x2bb   : > { %v8533_v18 = vpop.f32.mrf.mxu2  ;;  %v3891_v35 = vunpack.c.l.b16 %v3794_v7  ;;  %v3890_v19 = vunpack.c.l.b16 %v3791_v33  ;;  %v2224_v62 = vadd.f32 %v8256_v16, %v2092_v45 }
 0x2bc   : > { %v2582_v2 = vmax.f32 %v2550_v11, 0.0  ;;  %v3101_v22 = vor.u32 %v3100_v57, %v3096_v47  ;;  %v3097_v51 = vsel %vm6915_vm4, %v3092_v56, %v3096_v47  ;;  %v3797_v57 = vrot.slane %v8335_v48, 5 }
 0x2bd   : > { %v2709_v3 = vld [vmem:[#allocation2 + $0xa8] sm:$0xff]  ;;  %v8554_v27 = vpack.c.b16 %v3891_v35, %v3890_v19  ;;  %v3336_v47 = vunpack.c.l.b16 %v3097_v51  ;;  %v2378_v31 = vadd.f32 %v8417_v40, %v2224_v62 }
 0x2be   : > { %2669 = vst [vmem:[#allocation2 + $0xb1] sm:$0xff] %v2582_v2  ;;  %v3102_v53 = vrot.slane %v3101_v22, 4  ;;  %v8541_v9 = vpack.c.bf16 %v2709_v3, %v2709_v3  ;;  %v8565_v22 = vpack.c.b16 %v3568_v10, %v3567_v15  ;;  %v6112_v10 = vrot.slane %v8306_v60, 9 }
 0x2bf   : > { %v2456_v30 = vpop.f32.mrf.mxu0  ;;  %10228 = vst [vmem:[#allocation16_spill] sm:$0xff] %v8554_v27 }
 0x2c0   : > { %v8543_v6 = vpop.f32.mrf.mxu3  ;;  %v2515_v36 = vadd.f32 %v2456_v30, %v2377_v34  ;;  %v3107_v61 = vsel %vm6915_vm4, %v3102_v53, %v3106_v46  ;;  %v3109_v24 = vshrl.u32 %v8541_v9, 16  ;;  %v3112_v38 = vshll.u32 %v8541_v9, 16  ;;  %10229 = vst [vmem:[#allocation11_spill] sm:$0xff] %v8565_v22 }
 0x2c1   : > { %v3337_v11 = vunpack.c.l.b16 %v3107_v61  ;;  %v3799_v34 = vrot.slane %v3797_v57, 4 }
 0x2c2   : > { %v2551_v63 = vadd.f32 %v8139_v21, %v2515_v36  ;;  %6044 = vmatmul.msk.bf16.gmra.mxu0 %vm972_vm2, %v2405_v25  ;;  %v3111_v25 = vrot.slane %v3109_v24, 4  ;;  %v3114_v30 = vrot.slane %v3112_v38, 5  ;;  %v3800_v36 = vrot.slane %v8337_v14, 5 }
 0x2c3   : > { %v8556_v23 = vpop.f32.mrf.mxu2  ;;  %v8571_v16 = vpack.c.b16 %v3337_v11, %v3336_v47  ;;  %v6549_v11 = vld [vmem:[%s10130_s3 + $0x118] sm:$0xff] }
 0x2c4   : > { %v2583_v13 = vmax.f32 %v2551_v63, 0.0  ;;  %v2225_v63 = vadd.f32 %v8293_v43, %v7926_v37  ;;  %v3801_v24 = vsel %vm7143_vm7, %v3799_v34, %v3800_v36  ;;  %v3115_v62 = vor.u32 %v3114_v30, %v3111_v25  ;;  %4374 = vmatpush.bf16.msrb.mxu1 %v6549_v11  ;;  %v10231_v30 = vld [vmem:[#allocation32_spill] sm:$0xff] }
 0x2c5   : > { %4016 = vmatmul.bf16.gmra.mxu3 %v8554_v27  ;;  %v2710_v2 = vld [vmem:[#allocation2 + $0xb0] sm:$0xff]  ;;  %v2711_v7 = vld [vmem:[#allocation2 + $0xb8] sm:$0x3]  ;;  %10230 = vst [vmem:[#allocation15_spill] sm:$0xff] %v8571_v16  ;;  %v3798_v43 = vsel %vm7143_vm7, %v6112_v10, %v3797_v57  ;;  %v10233_v57 = vld [vmem:[#allocation20_spill] sm:$0xff]  ;;  %v3804_v10 = vrot.slane %v8392_v29, 5 }
 0x2c6   : > { %2670 = vst [vmem:[#allocation2 + $0xc1] sm:$0xff] %v2583_v13  ;;  %v8567_v48 = vpack.c.bf16 %v2710_v2, %v2710_v2  ;;  %v8569_v33 = vpack.c.bf16 %v2711_v7, %v2711_v7  ;;  %v2379_v37 = vadd.f32 %v8448_v58, %v2225_v63  ;;  %v3893_v2 = vunpack.c.l.b16 %v3801_v24  ;;  %v10232_v58 = vld [vmem:[#allocation17_spill] sm:$0xff] }
 0x2c7   : > { %v2458_v3 = vpop.f32.mrf.mxu0  ;;  %3474 = vmatmul.bf16.gmra.mxu1 %v8571_v16  ;;  %v3116_v34 = vrot.slane %v3115_v62, 4 }
 0x2c8   : > { %v8573_v53 = vpop.f32.mrf.mxu3  ;;  %v2516_v46 = vadd.f32 %v2458_v3, %v2378_v31  ;;  %3702 = vmatmul.bf16.gmra.mxu2 %v8565_v22  ;;  %v3118_v40 = vshll.u32 %v8567_v48, 16  ;;  %v3122_v35 = vshrl.u32 %v8567_v48, 16  ;;  %v3128_v45 = vshll.u32 %v8569_v33, 16 }
 0x2ca   : > { %v2552_v56 = vadd.f32 %v8139_v21, %v2516_v46  ;;  %v3120_v61 = vrot.slane %v3118_v40, 5  ;;  %v3124_v19 = vrot.slane %v3122_v35, 4  ;;  %v3130_v60 = vrot.slane %v3128_v45, 5 }
 0x2cb   : > { %v8584_v51 = vpop.f32.mrf.mxu2  ;;  %v3892_v46 = vunpack.c.l.b16 %v3798_v43  ;;  %v2094_v40 = vadd.f32 %v10232_v58, %v10231_v30 }
 0x2cc   : > { %v2584_v14 = vmax.f32 %v2552_v56, 0.0  ;;  %v3125_v13 = vor.u32 %v3124_v19, %v3120_v61  ;;  %v3121_v36 = vsel %vm6915_vm4, %v3116_v34, %v3120_v61  ;;  %v3570_v56 = vunpack.c.l.b16 %v8513_v32 }
 0x2cd   : > { %v2712_v15 = vld [vmem:[#allocation2 + $0xc0] sm:$0xff]  ;;  %v8608_v19 = vpack.c.b16 %v3893_v2, %v3892_v46  ;;  %v3338_v61 = vunpack.c.l.b16 %v3121_v36 }
 0x2ce   : > { %2671 = vst [vmem:[#allocation2 + $0xc9] sm:$0xff] %v2584_v14  ;;  %v3126_v38 = vrot.slane %v3125_v13, 4  ;;  %v8595_v7 = vpack.c.bf16 %v2712_v15, %v2712_v15  ;;  %v10235_v14 = vld [vmem:[#allocation41_spill] sm:$0xff] }
 0x2cf   : > { %v2461_v47 = vpop.f32.mrf.mxu0  ;;  %10234 = vst [vmem:[#allocation23_spill] sm:$0xff] %v8608_v19  ;;  %v2226_v24 = vadd.f32 %v10235_v14, %v2094_v40  ;;  %v3807_v40 = vrot.slane %v8394_v54, 5  ;;  %v10238_v14 = vld [vmem:[#allocation21_spill] sm:$0xff]  ;;  %v6113_v54 = vrot.slane %v8365_v28, 9 }
 0x2d0   : > { %v8597_v31 = vpop.f32.mrf.mxu3  ;;  %v2517_v3 = vadd.f32 %v2461_v47, %v2379_v37  ;;  %v3131_v25 = vsel %vm6915_vm4, %v3126_v38, %v3130_v60  ;;  %v3133_v11 = vshrl.u32 %v8595_v7, 16  ;;  %v3136_v13 = vshll.u32 %v8595_v7, 16 }
 0x2d1   : > { %v3339_v63 = vunpack.c.l.b16 %v3131_v25  ;;  %v2380_v43 = vadd.f32 %v8482_v4, %v2226_v24 }
 0x2d2   : > { %v2553_v35 = vadd.f32 %v8139_v21, %v2517_v3  ;;  %4181 = vmatmul.bf16.vlgmr.msrb.gmra.mxu0 %v10233_v57  ;;  %v3569_v21 = vunpack.c.l.b16 %v8479_v59  ;;  %v3806_v3 = vrot.slane %v3804_v10, 4  ;;  %v3135_v34 = vrot.slane %v3133_v11, 4  ;;  %v10237_v11 = vld [vmem:[#allocation22_spill] sm:$0xff] }
 0x2d3   : > { %v8610_v45 = vpop.f32.mrf.mxu2  ;;  %v8625_v47 = vpack.c.b16 %v3339_v63, %v3338_v61  ;;  %v3138_v30 = vrot.slane %v3136_v13, 5  ;;  %v2227_v24 = vadd.f32 %v10238_v14, %v10237_v11 }
 0x2d4   : > { %v2585_v62 = vmax.f32 %v2553_v35, 0.0  ;;  %v8619_v38 = vpack.c.b16 %v3570_v56, %v3569_v21  ;;  %v8636_v35 = vld [vmem:[%s10197_s2] ss:$0 sm:$0xff]  ;;  %v3808_v13 = vsel %vm7143_vm7, %v3806_v3, %v3807_v40 }
 0x2d5   : > { %4021 = vmatmul.bf16.gmra.mxu3 %v8608_v19  ;;  %v2713_v15 = vld [vmem:[#allocation2 + $0xc8] sm:$0xff]  ;;  %v2714_v37 = vld [vmem:[#allocation2 + $0xd0] sm:$0x3]  ;;  %10236 = vst [vmem:[#allocation32_spill] sm:$0xff] %v8625_v47  ;;  %v3139_v61 = vor.u32 %v3138_v30, %v3135_v34  ;;  %v3895_v14 = vunpack.c.l.b16 %v3808_v13 }
 0x2d6   : > { %2672 = vst [vmem:[#allocation2 + $0xd9] sm:$0xff] %v2585_v62  ;;  %v8621_v29 = vpack.c.bf16 %v2713_v15, %v2713_v15  ;;  %v8623_v60 = vpack.c.bf16 %v2714_v37, %v2714_v37 }
 0x2d7   : > { %v2463_v2 = vpop.f32.mrf.mxu0  ;;  %3479 = vmatmul.bf16.gmra.mxu1 %v8625_v47  ;;  %v3140_v34 = vrot.slane %v3139_v61, 4 }
 0x2d8   : > { %v8627_v25 = vpop.f32.mrf.mxu3  ;;  %v2518_v46 = vadd.f32 %v2463_v2, %v2380_v43  ;;  %3707 = vmatmul.bf16.gmra.mxu2 %v8619_v38  ;;  %v3142_v4 = vshll.u32 %v8621_v29, 16  ;;  %v3146_v58 = vshrl.u32 %v8621_v29, 16  ;;  %v3152_v63 = vshll.u32 %v8623_v60, 16  ;;  %v8648_v43 = vpop.f32.mrf.mxu1 }
 0x2d9   : > { %v2381_v2 = vadd.f32 %v8522_v0, %v2227_v24  ;;  %v10240_v0 = vld [vmem:[#allocation28_spill] sm:$0xff] }
 0x2da   : > { %v2554_v57 = vadd.f32 %v8636_v35, %v2518_v46  ;;  %v3144_v36 = vrot.slane %v3142_v4, 5  ;;  %v3148_v56 = vrot.slane %v3146_v58, 4  ;;  %v3805_v46 = vsel %vm7143_vm7, %v6113_v54, %v3804_v10 }
 0x2db   : > { %v8643_v62 = vpop.f32.mrf.mxu2  ;;  %v3154_v58 = vrot.slane %v3152_v63, 5  ;;  %v3894_v40 = vunpack.c.l.b16 %v3805_v46  ;;  %v3572_v63 = vunpack.c.l.b16 %v8567_v48 }
 0x2dc   : > { %v2586_v21 = vmax.f32 %v2554_v57, 0.0  ;;  %v3149_v15 = vor.u32 %v3148_v56, %v3144_v36  ;;  %v10239_v56 = vld [vmem:[#allocation30_spill] sm:$0xff]  ;;  %v3145_v10 = vsel %vm6915_vm4, %v3140_v34, %v3144_v36 }
 0x2dd   : > { %v2715_v37 = vld [vmem:[#allocation2 + $0xd8] sm:$0xff]  ;;  %v2096_v24 = vadd.f32 %v10240_v0, %v10239_v56  ;;  %v8666_v54 = vpack.c.b16 %v3895_v14, %v3894_v40  ;;  %v3340_v36 = vunpack.c.l.b16 %v3145_v10 }
 0x2de   : > { %2673 = vst [vmem:[#allocation2 + $0xe1] sm:$0xff] %v2586_v21  ;;  %v3150_v4 = vrot.slane %v3149_v15, 4  ;;  %v8653_v28 = vpack.c.bf16 %v2715_v37, %v2715_v37  ;;  %v3811_v15 = vrot.slane %v8439_v1, 5 }
 0x2df   : > { %v2466_v11 = vpop.f32.mrf.mxu0  ;;  %10241 = vst [vmem:[#allocation17_spill] sm:$0xff] %v8666_v54 }
 0x2e0   : > { %v8655_v57 = vpop.f32.mrf.mxu3  ;;  %v2519_v3 = vadd.f32 %v2466_v11, %v2381_v2  ;;  %v3155_v30 = vsel %vm6915_vm4, %v3150_v4, %v3154_v58  ;;  %v3157_v37 = vshrl.u32 %v8653_v28, 16  ;;  %v10242_v2 = vld [vmem:[#allocation44_spill] sm:$0xff]  ;;  %v3571_v58 = vunpack.c.l.b16 %v8541_v9  ;;  %v8677_v40 = vpop.f32.mrf.mxu1 }
 0x2e1   : > { %v3341_v61 = vunpack.c.l.b16 %v3155_v30  ;;  %v2228_v46 = vadd.f32 %v10242_v2, %v2096_v24  ;;  %v3160_v11 = vshll.u32 %v8653_v28, 16 }
 0x2e2   : > { %v2555_v21 = vadd.f32 %v8636_v35, %v2519_v3  ;;  %4186 = vmatmul.bf16.gmra.mxu0 %v8390_v44  ;;  %v8679_v1 = vpack.c.b16 %v3572_v63, %v3571_v58  ;;  %v3159_v2 = vrot.slane %v3157_v37, 4  ;;  %v10245_v37 = vld [vmem:[#allocation25_spill] sm:$0xff] }
 0x2e3   : > { %v8668_v13 = vpop.f32.mrf.mxu2  ;;  %v2382_v34 = vadd.f32 %v8543_v6, %v2228_v46  ;;  %v8685_v0 = vpack.c.b16 %v3341_v61, %v3340_v36  ;;  %v3162_v6 = vrot.slane %v3160_v11, 5  ;;  %v6114_v11 = vrot.slane %v8415_v52, 9 }
 0x2e4   : > { %v2587_v4 = vmax.f32 %v2555_v21, 0.0  ;;  %v3813_v21 = vrot.slane %v3811_v15, 4 }
 0x2e5   : > { %4026 = vmatmul.bf16.gmra.mxu3 %v8666_v54  ;;  %v2716_v3 = vld [vmem:[#allocation2 + $0xe0] sm:$0xff]  ;;  %v2717_v14 = vld [vmem:[#allocation2 + $0xe8] sm:$0x3]  ;;  %10243 = vst [vmem:[#allocation20_spill] sm:$0xff] %v8685_v0 }
 0x2e6   : > { %2674 = vst [vmem:[#allocation2 + $0xf1] sm:$0xff] %v2587_v4  ;;  %v8681_v30 = vpack.c.bf16 %v2716_v3, %v2716_v3  ;;  %v8683_v56 = vpack.c.bf16 %v2717_v14, %v2717_v14  ;;  %v3814_v4 = vrot.slane %v8441_v55, 5  ;;  %v10244_v14 = vld [vmem:[#allocation39_spill] sm:$0xff] }
 0x2e7   : > { %v2468_v24 = vpop.f32.mrf.mxu0  ;;  %v2229_v16 = vadd.f32 %v10245_v37, %v10244_v14  ;;  %3484 = vmatmul.bf16.gmra.mxu1 %v8685_v0  ;;  %v3812_v37 = vsel %vm7143_vm7, %v6114_v11, %v3811_v15 }
 0x2e8   : > { %v8687_v47 = vpop.f32.mrf.mxu3  ;;  %v2520_v10 = vadd.f32 %v2468_v24, %v2382_v34  ;;  %3712 = vmatmul.bf16.gmra.mxu2 %v8679_v1  ;;  %v3166_v46 = vshll.u32 %v8681_v30, 16  ;;  %v3170_v63 = vshrl.u32 %v8681_v30, 16  ;;  %v3176_v36 = vshll.u32 %v8683_v56, 16  ;;  %v6548_v24 = vld [vmem:[%s10130_s3 + $0x110] sm:$0xff] }
 0x2e9   : > { %4375 = vmatpush.bf16.msrb.mxu1 %v6548_v24  ;;  %v2383_v14 = vadd.f32 %v8573_v53, %v2229_v16  ;;  %v3896_v16 = vunpack.c.l.b16 %v3812_v37  ;;  %v10246_v53 = vld [vmem:[#allocation31_spill] sm:$0xff] }
 0x2ea   : > { %v2556_v58 = vadd.f32 %v8636_v35, %v2520_v10  ;;  %v3168_v3 = vrot.slane %v3166_v46, 5  ;;  %v3172_v61 = vrot.slane %v3170_v63, 4  ;;  %v3815_v10 = vsel %vm7143_vm7, %v3813_v21, %v3814_v4  ;;  %v10247_v4 = vld [vmem:[#allocation29_spill] sm:$0xff] }
 0x2eb   : > { %v8698_v34 = vpop.f32.mrf.mxu2  ;;  %v3163_v46 = vor.u32 %v3162_v6, %v3159_v2  ;;  %v3178_v52 = vrot.slane %v3176_v36, 5  ;;  %v3897_v44 = vunpack.c.l.b16 %v3815_v10  ;;  %v3574_v36 = vunpack.c.l.b16 %v8621_v29 }
 0x2ec   : > { %v2588_v55 = vmax.f32 %v2556_v58, 0.0  ;;  %v3173_v63 = vor.u32 %v3172_v61, %v3168_v3  ;;  %v8711_v58 = vpop.f32.mrf.mxu1  ;;  %v2098_v61 = vadd.f32 %v10247_v4, %v10246_v53 }
 0x2ed   : > { %v2718_v42 = vld [vmem:[#allocation2 + $0xf0] sm:$0xff]  ;;  %v3164_v2 = vrot.slane %v3163_v46, 4  ;;  %v8724_v11 = vpack.c.b16 %v3897_v44, %v3896_v16 }
 0x2ee   : > { %2675 = vst [vmem:[#allocation2 + $0xf9] sm:$0xff] %v2588_v55  ;;  %v3174_v0 = vrot.slane %v3173_v63, 4  ;;  %v8709_v17 = vpack.c.bf16 %v2718_v42, %v2718_v42  ;;  %v2230_v10 = vadd.f32 %v8429_v50, %v2098_v61  ;;  %v3573_v63 = vunpack.c.l.b16 %v8595_v7 }
 0x2ef   : > { %v2471_v54 = vpop.f32.mrf.mxu0  ;;  %v3169_v42 = vsel %vm6915_vm4, %v3164_v2, %v3168_v3  ;;  %10248 = vst [vmem:[#allocation41_spill] sm:$0xff] %v8724_v11 }
 0x2f0   : > { %v8713_v19 = vpop.f32.mrf.mxu3  ;;  %v2521_v21 = vadd.f32 %v2471_v54, %v2383_v14  ;;  %v3179_v6 = vsel %vm6915_vm4, %v3174_v0, %v3178_v52  ;;  %v3818_v0 = vrot.slane %v8513_v32, 5  ;;  %v3181_v55 = vshrl.u32 %v8709_v17, 16 }
 0x2f1   : > { %v3343_v24 = vunpack.c.l.b16 %v3179_v6  ;;  %v3184_v14 = vshll.u32 %v8709_v17, 16  ;;  %v3342_v3 = vunpack.c.l.b16 %v3169_v42  ;;  %v2384_v52 = vadd.f32 %v8597_v31, %v2230_v10 }
 0x2f2   : > { %v2557_v15 = vadd.f32 %v8636_v35, %v2521_v21  ;;  %4191 = vmatmul.bf16.gmra.mxu0 %v8437_v5  ;;  %v8735_v21 = vpack.c.b16 %v3574_v36, %v3573_v63  ;;  %v3820_v16 = vrot.slane %v3818_v0, 4  ;;  %v3183_v53 = vrot.slane %v3181_v55, 4 }
 0x2f3   : > { %v8726_v54 = vpop.f32.mrf.mxu2  ;;  %v8741_v50 = vpack.c.b16 %v3343_v24, %v3342_v3  ;;  %v3186_v31 = vrot.slane %v3184_v14, 5  ;;  %v3821_v10 = vrot.slane %v8515_v39, 5  ;;  %v10250_v3 = vld [vmem:[#allocation42_spill] sm:$0xff]  ;;  %v6115_v14 = vrot.slane %v8479_v59, 9 }
 0x2f4   : > { %v2589_v46 = vmax.f32 %v2557_v15, 0.0  ;;  %v8743_v4 = vpop.f32.mrf.mxu1 }
 0x2f5   : > { %4031 = vmatmul.bf16.gmra.mxu3 %v8724_v11  ;;  %v2719_v37 = vld [vmem:[#allocation2 + $0xf8] sm:$0xff]  ;;  %v2720_v44 = vld [vmem:[#allocation2 + $0x100] sm:$0x3]  ;;  %10249 = vst [vmem:[#allocation22_spill] sm:$0xff] %v8741_v50 }
 0x2f6   : > { %2676 = vst [vmem:[#allocation2 + $0x109] sm:$0xff] %v2589_v46  ;;  %v8737_v32 = vpack.c.bf16 %v2719_v37, %v2719_v37  ;;  %v8739_v2 = vpack.c.bf16 %v2720_v44, %v2720_v44  ;;  %v2231_v37 = vadd.f32 %v8462_v26, %v10250_v3  ;;  %v3819_v26 = vsel %vm7143_vm7, %v6115_v14, %v3818_v0  ;;  %v10288_v20 = vld [vmem:[#allocation41_spill] sm:$0xff] }
 0x2f7   : > { %v2473_v6 = vpop.f32.mrf.mxu0  ;;  %3489 = vmatmul.bf16.gmra.mxu1 %v8741_v50  ;;  %v3576_v14 = vunpack.c.l.b16 %v8681_v30 }
 0x2f8   : > { %v8745_v61 = vpop.f32.mrf.mxu3  ;;  %v2522_v15 = vadd.f32 %v2473_v6, %v2384_v52  ;;  %3717 = vmatmul.bf16.gmra.mxu2 %v8735_v21  ;;  %v3190_v42 = vshll.u32 %v8737_v32, 16  ;;  %v3194_v36 = vshrl.u32 %v8737_v32, 16  ;;  %v3200_v55 = vshll.u32 %v8739_v2, 16 }
 0x2f9   : > { %v3822_v52 = vsel %vm7143_vm7, %v3820_v16, %v3821_v10  ;;  %v2385_v11 = vadd.f32 %v8627_v25, %v2231_v37  ;;  %v10251_v16 = vld [vmem:[#allocation43_spill] sm:$0xff]  ;;  %v10252_v10 = vld [vmem:[#allocation33_spill] sm:$0xff]  ;;  %v3898_v37 = vunpack.c.l.b16 %v3819_v26 }
 0x2fa   : > { %v2558_v24 = vadd.f32 %v8636_v35, %v2522_v15  ;;  %v3192_v46 = vrot.slane %v3190_v42, 5  ;;  %v3196_v63 = vrot.slane %v3194_v36, 4  ;;  %v3187_v15 = vor.u32 %v3186_v31, %v3183_v53 }
 0x2fb   : > { %v3678_v44 = vpop.f32.mrf.mxu2  ;;  %v3202_v50 = vrot.slane %v3200_v55, 5  ;;  %v3899_v59 = vunpack.c.l.b16 %v3822_v52 }
 0x2fc   : > { %v2590_v6 = vmax.f32 %v2558_v24, 0.0  ;;  %v8760_v39 = vadd.f32 %v3678_v44, %v8677_v40  ;;  %v3197_v42 = vor.u32 %v3196_v63, %v3192_v46  ;;  %v2100_v24 = vadd.f32 %v10252_v10, %v10251_v16  ;;  %v8769_v40 = vpop.f32.mrf.mxu1 }
 0x2fd   : > { %v2721_v36 = vld [vmem:[#allocation2 + $0x108] sm:$0xff]  ;;  %v3188_v63 = vrot.slane %v3187_v15, 4  ;;  %v8781_v52 = vpack.c.b16 %v3899_v59, %v3898_v37 }
 0x2fe   : > { %2677 = vst [vmem:[#allocation2 + $0x111] sm:$0xff] %v2590_v6  ;;  %v3198_v3 = vrot.slane %v3197_v42, 4  ;;  %v8765_v27 = vpack.c.bf16 %v2721_v36, %v2721_v36  ;;  %v2232_v0 = vadd.f32 %v8500_v41, %v2100_v24  ;;  %v3575_v42 = vunpack.c.l.b16 %v8653_v28 }
 0x2ff   : > { %v2476_v5 = vpop.f32.mrf.mxu0  ;;  %v3193_v44 = vsel %vm6915_vm4, %v3188_v63, %v3192_v46  ;;  %10253 = vst [vmem:[#allocation21_spill] sm:$0xff] %v8781_v52 }
 0x300   : > { %v8771_v53 = vpop.f32.mrf.mxu3  ;;  %v2523_v31 = vadd.f32 %v2476_v5, %v2385_v11  ;;  %v3203_v25 = vsel %vm6915_vm4, %v3198_v3, %v3202_v50  ;;  %v3825_v11 = vrot.slane %v8567_v48, 5  ;;  %v3205_v50 = vshrl.u32 %v8765_v27, 16 }
 0x301   : > { %v3345_v5 = vunpack.c.l.b16 %v3203_v25  ;;  %v3208_v36 = vshll.u32 %v8765_v27, 16  ;;  %v3344_v46 = vunpack.c.l.b16 %v3193_v44  ;;  %v2386_v59 = vadd.f32 %v8655_v57, %v2232_v0 }
 0x302   : > { %v2559_v55 = vadd.f32 %v8636_v35, %v2523_v31  ;;  %4196 = vmatmul.bf16.gmra.mxu0 %v8507_v8  ;;  %v8792_v16 = vpack.c.b16 %v3576_v14, %v3575_v42  ;;  %v3827_v31 = vrot.slane %v3825_v11, 4  ;;  %v3207_v63 = vrot.slane %v3205_v50, 4  ;;  %v10256_v42 = vld [vmem:[#allocation34_spill] sm:$0xff]  ;;  %v10258_v8 = vld [vmem:[#allocation7_spill] sm:$0xff] }
 0x303   : > { %v3680_v6 = vpop.f32.mrf.mxu2  ;;  %v3210_v57 = vrot.slane %v3208_v36, 5  ;;  %v3828_v14 = vrot.slane %v8569_v33, 5  ;;  %v6116_v36 = vrot.slane %v8541_v9, 9  ;;  %v6547_v33 = vld [vmem:[%s10130_s3 + $0x108] sm:$0xff] }
 0x304   : > { %v2591_v15 = vmax.f32 %v2559_v55, 0.0  ;;  %v8786_v41 = vadd.f32 %v3680_v6, %v8711_v58  ;;  %10254 = vst [vmem:[#allocation30_spill] sm:$0xff] %v8792_v16  ;;  %v8798_v58 = vpack.c.b16 %v3345_v5, %v3344_v46  ;;  %v8800_v25 = vpop.f32.mrf.mxu1  ;;  %v2233_v46 = vadd.f32 %v8533_v18, %v10256_v42  ;;  %4376 = vmatpush.bf16.msrb.mxu1 %v6547_v33 }
 0x305   : > { %4036 = vmatmul.bf16.gmra.mxu3 %v8781_v52  ;;  %v2722_v26 = vld [vmem:[#allocation2 + $0x110] sm:$0xff]  ;;  %v2723_v3 = vld [vmem:[#allocation2 + $0x118] sm:$0x3]  ;;  %v3826_v9 = vsel %vm7143_vm7, %v6116_v36, %v3825_v11 }
 0x306   : > { %2678 = vst [vmem:[#allocation2 + $0x121] sm:$0xff] %v2591_v15  ;;  %v8794_v48 = vpack.c.bf16 %v2722_v26, %v2722_v26  ;;  %v8796_v10 = vpack.c.bf16 %v2723_v3, %v2723_v3  ;;  %v3829_v3 = vsel %vm7143_vm7, %v3827_v31, %v3828_v14  ;;  %v2387_v18 = vadd.f32 %v8687_v47, %v2233_v46 }
 0x307   : > { %10255 = vst [vmem:[#allocation28_spill] sm:$0xff] %v8798_v58  ;;  %v2478_v24 = vpop.f32.mrf.mxu0  ;;  %3494 = vmatmul.bf16.gmra.mxu1 %v8798_v58  ;;  %v3901_v58 = vunpack.c.l.b16 %v3829_v3  ;;  %v3900_v46 = vunpack.c.l.b16 %v3826_v9 }
 0x308   : > { %v8802_v37 = vpop.f32.mrf.mxu3  ;;  %v2524_v55 = vadd.f32 %v2478_v24, %v2386_v59  ;;  %3722 = vmatmul.bf16.gmra.mxu2 %v8792_v16  ;;  %v3214_v0 = vshll.u32 %v8794_v48, 16  ;;  %v3218_v44 = vshrl.u32 %v8794_v48, 16  ;;  %v3224_v50 = vshll.u32 %v8796_v10, 16 }
 0x309   : > { %v8841_v3 = vpack.c.b16 %v3901_v58, %v3900_v46 }
 0x30a   : > { %v2560_v6 = vadd.f32 %v8636_v35, %v2524_v55  ;;  %v3216_v5 = vrot.slane %v3214_v0, 5  ;;  %v3220_v15 = vrot.slane %v3218_v44, 4  ;;  %v3211_v55 = vor.u32 %v3210_v57, %v3207_v63 }
 0x30b   : > { %v3683_v26 = vpop.f32.mrf.mxu2  ;;  %v3226_v31 = vrot.slane %v3224_v50, 5  ;;  %10259 = vst [vmem:[#allocation44_spill] sm:$0xff] %v8841_v3 }
 0x30c   : > { %v2592_v59 = vmax.f32 %v2560_v6, 0.0  ;;  %v8820_v24 = vadd.f32 %v3683_v26, %v8743_v4  ;;  %v3221_v0 = vor.u32 %v3220_v15, %v3216_v5  ;;  %v10257_v6 = vld [vmem:[#allocation35_spill] sm:$0xff]  ;;  %v8829_v26 = vpop.f32.mrf.mxu1  ;;  %v3212_v15 = vrot.slane %v3211_v55, 4 }
 0x30d   : > { %v2724_v44 = vld [vmem:[#allocation2 + $0x120] sm:$0xff]  ;;  %v2102_v4 = vadd.f32 %v10258_v8, %v10257_v6  ;;  %v3578_v8 = vunpack.c.l.b16 %v8737_v32  ;;  %v3832_v55 = vrot.slane %v8621_v29, 5 }
 0x30e   : > { %2679 = vst [vmem:[#allocation2 + $0x129] sm:$0xff] %v2592_v59  ;;  %v3222_v42 = vrot.slane %v3221_v0, 4  ;;  %v8825_v52 = vpack.c.bf16 %v2724_v44, %v2724_v44  ;;  %v3217_v36 = vsel %vm6915_vm4, %v3212_v15, %v3216_v5 }
 0x30f   : > { %v2481_v14 = vpop.f32.mrf.mxu0  ;;  %v2234_v11 = vadd.f32 %v8556_v23, %v2102_v4  ;;  %v3346_v5 = vunpack.c.l.b16 %v3217_v36 }
 0x310   : > { %v8831_v63 = vpop.f32.mrf.mxu3  ;;  %v2525_v57 = vadd.f32 %v2481_v14, %v2387_v18  ;;  %v3227_v47 = vsel %vm6915_vm4, %v3222_v42, %v3226_v31  ;;  %v3229_v0 = vshrl.u32 %v8825_v52, 16  ;;  %v3577_v18 = vunpack.c.l.b16 %v8709_v17 }
 0x311   : > { %v3347_v59 = vunpack.c.l.b16 %v3227_v47  ;;  %v3232_v9 = vshll.u32 %v8825_v52, 16  ;;  %v2388_v31 = vadd.f32 %v8713_v19, %v2234_v11 }
 0x312   : > { %v2561_v50 = vadd.f32 %v8636_v35, %v2525_v57  ;;  %4201 = vmatmul.bf16.gmra.mxu0 %v8565_v22  ;;  %v8852_v14 = vpack.c.b16 %v3578_v8, %v3577_v18  ;;  %v3834_v57 = vrot.slane %v3832_v55, 4  ;;  %v3231_v15 = vrot.slane %v3229_v0, 4  ;;  %v10261_v18 = vld [vmem:[#allocation36_spill] sm:$0xff] }
 0x313   : > { %v3685_v33 = vpop.f32.mrf.mxu2  ;;  %v3234_v19 = vrot.slane %v3232_v9, 5  ;;  %v3835_v8 = vrot.slane %v8623_v60, 5  ;;  %v6117_v9 = vrot.slane %v8595_v7, 9 }
 0x314   : > { %v2593_v44 = vmax.f32 %v2561_v50, 0.0  ;;  %v8846_v23 = vadd.f32 %v3685_v33, %v8769_v40  ;;  %v8858_v40 = vpack.c.b16 %v3347_v59, %v3346_v5  ;;  %v8860_v47 = vpop.f32.mrf.mxu1  ;;  %v2235_v5 = vadd.f32 %v8584_v51, %v10261_v18 }
 0x315   : > { %4041 = vmatmul.bf16.gmra.mxu3 %v8841_v3  ;;  %v2725_v42 = vld [vmem:[#allocation2 + $0x128] sm:$0xff]  ;;  %v2726_v58 = vld [vmem:[#allocation2 + $0x130] sm:$0x3]  ;;  %v3833_v51 = vsel %vm7143_vm7, %v6117_v9, %v3832_v55  ;;  %v3580_v9 = vunpack.c.l.b16 %v8794_v48 }
 0x316   : > { %2680 = vst [vmem:[#allocation2 + $0x139] sm:$0xff] %v2593_v44  ;;  %v8854_v29 = vpack.c.bf16 %v2725_v42, %v2725_v42  ;;  %v8856_v6 = vpack.c.bf16 %v2726_v58, %v2726_v58  ;;  %v3836_v58 = vsel %vm7143_vm7, %v3834_v57, %v3835_v8  ;;  %v10262_v57 = vld [vmem:[#allocation37_spill] sm:$0xff] }
 0x317   : > { %10260 = vst [vmem:[#allocation39_spill] sm:$0xff] %v8858_v40  ;;  %v2483_v4 = vpop.f32.mrf.mxu0  ;;  %3499 = vmatmul.bf16.gmra.mxu1 %v8858_v40  ;;  %v3903_v7 = vunpack.c.l.b16 %v3836_v58  ;;  %v10263_v8 = vld [vmem:[#allocation9_spill] sm:$0xff] }
 0x318   : > { %v8862_v46 = vpop.f32.mrf.mxu3  ;;  %v2526_v50 = vadd.f32 %v2483_v4, %v2388_v31  ;;  %3727 = vmatmul.bf16.gmra.mxu2 %v8852_v14  ;;  %v3238_v11 = vshll.u32 %v8854_v29, 16  ;;  %v3242_v36 = vshrl.u32 %v8854_v29, 16  ;;  %v3248_v0 = vshll.u32 %v8856_v6, 16 }
 0x319   : > { %v3235_v4 = vor.u32 %v3234_v19, %v3231_v15 }
 0x31a   : > { %v2562_v33 = vadd.f32 %v8636_v35, %v2526_v50  ;;  %v3240_v59 = vrot.slane %v3238_v11, 5  ;;  %v3244_v44 = vrot.slane %v3242_v36, 4  ;;  %v2389_v36 = vadd.f32 %v8745_v61, %v2235_v5 }
 0x31b   : > { %v3688_v42 = vpop.f32.mrf.mxu2  ;;  %v3250_v40 = vrot.slane %v3248_v0, 5  ;;  %v3902_v5 = vunpack.c.l.b16 %v3833_v51 }
 0x31c   : > { %v2594_v31 = vmax.f32 %v2562_v33, 0.0  ;;  %v8877_v60 = vadd.f32 %v3688_v42, %v8800_v25  ;;  %v3245_v50 = vor.u32 %v3244_v44, %v3240_v59  ;;  %v2104_v33 = vadd.f32 %v10263_v8, %v10262_v57  ;;  %v8886_v25 = vpop.f32.mrf.mxu1 }
 0x31d   : > { %v2727_v11 = vld [vmem:[#allocation2 + $0x138] sm:$0xff]  ;;  %v3236_v44 = vrot.slane %v3235_v4, 4  ;;  %v8898_v58 = vpack.c.b16 %v3903_v7, %v3902_v5  ;;  %v3839_v4 = vrot.slane %v8681_v30, 5 }
 0x31e   : > { %2681 = vst [vmem:[#allocation2 + $0x141] sm:$0xff] %v2594_v31  ;;  %v3246_v18 = vrot.slane %v3245_v50, 4  ;;  %v8882_v22 = vpack.c.bf16 %v2727_v11, %v2727_v11  ;;  %v2236_v55 = vadd.f32 %v8610_v45, %v2104_v33  ;;  %v3579_v11 = vunpack.c.l.b16 %v8765_v27 }
 0x31f   : > { %v2486_v3 = vpop.f32.mrf.mxu0  ;;  %v3241_v42 = vsel %vm6915_vm4, %v3236_v44, %v3240_v59  ;;  %10264 = vst [vmem:[#allocation25_spill] sm:$0xff] %v8898_v58 }
 0x320   : > { %v8888_v15 = vpop.f32.mrf.mxu3  ;;  %v2527_v19 = vadd.f32 %v2486_v3, %v2389_v36  ;;  %v3251_v61 = vsel %vm6915_vm4, %v3246_v18, %v3250_v40  ;;  %v3253_v40 = vshrl.u32 %v8882_v22, 16  ;;  %v3256_v36 = vshll.u32 %v8882_v22, 16 }
 0x321   : > { %v3349_v3 = vunpack.c.l.b16 %v3251_v61  ;;  %v3348_v59 = vunpack.c.l.b16 %v3241_v42  ;;  %v2390_v7 = vadd.f32 %v8771_v53, %v2236_v55  ;;  %v8909_v57 = vpack.c.b16 %v3580_v9, %v3579_v11 }
 0x322   : > { %v2563_v0 = vadd.f32 %v8636_v35, %v2527_v19  ;;  %4206 = vmatmul.bf16.gmra.mxu0 %v8619_v38  ;;  %v3841_v19 = vrot.slane %v3839_v4, 4  ;;  %v3255_v44 = vrot.slane %v3253_v40, 4  ;;  %v3258_v42 = vrot.slane %v3256_v36, 5 }
 0x323   : > { %v3690_v31 = vpop.f32.mrf.mxu2 }
 0x324   : > { %v2595_v50 = vmax.f32 %v2563_v0, 0.0  ;;  %v8903_v45 = vadd.f32 %v3690_v31, %v8829_v26  ;;  %v8915_v26 = vpack.c.b16 %v3349_v3, %v3348_v59  ;;  %v8917_v61 = vpop.f32.mrf.mxu1  ;;  %v3842_v31 = vrot.slane %v8683_v56, 5  ;;  %v10266_v59 = vld [vmem:[#allocation38_spill] sm:$0xff]  ;;  %v6546_v56 = vld [vmem:[%s10130_s3 + $0x100] sm:$0xff] }
 0x325   : > { %4046 = vmatmul.bf16.gmra.mxu3 %v8898_v58  ;;  %v2728_v51 = vld [vmem:[#allocation2 + $0x140] sm:$0xff]  ;;  %v2729_v18 = vld [vmem:[#allocation2 + $0x148] sm:$0x3]  ;;  %4377 = vmatpush.bf16.msrb.mxu1 %v6546_v56 }
 0x326   : > { %2682 = vst [vmem:[#allocation2 + $0x151] sm:$0xff] %v2595_v50  ;;  %v8911_v30 = vpack.c.bf16 %v2728_v51, %v2728_v51  ;;  %v8913_v8 = vpack.c.bf16 %v2729_v18, %v2729_v18  ;;  %v2237_v51 = vadd.f32 %v8643_v62, %v10266_v59  ;;  %v6118_v18 = vrot.slane %v8653_v28, 9  ;;  %v10268_v58 = vld [vmem:[#allocation40_spill] sm:$0xff] }
 0x327   : > { %10265 = vst [vmem:[#allocation31_spill] sm:$0xff] %v8915_v26  ;;  %v2488_v33 = vpop.f32.mrf.mxu0  ;;  %3504 = vmatmul.bf16.gmra.mxu1 %v8915_v26 }
 0x328   : > { %v4007_v5 = vpop.f32.mrf.mxu3  ;;  %v2528_v0 = vadd.f32 %v2488_v33, %v2390_v7  ;;  %3732 = vmatmul.bf16.gmra.mxu2 %v8909_v57  ;;  %v3262_v53 = vshll.u32 %v8911_v30, 16  ;;  %v3266_v55 = vshrl.u32 %v8911_v30, 16  ;;  %v3272_v11 = vshll.u32 %v8913_v8, 16 }
 0x329   : > { %v8923_v9 = vadd.f32 %v4007_v5, %v8760_v39  ;;  %v3843_v39 = vsel %vm7143_vm7, %v3841_v19, %v3842_v31  ;;  %v3259_v5 = vor.u32 %v3258_v42, %v3255_v44  ;;  %v2391_v62 = vadd.f32 %v8802_v37, %v2237_v51 }
 0x32a   : > { %v2564_v3 = vadd.f32 %v8636_v35, %v2528_v0  ;;  %v3264_v50 = vrot.slane %v3262_v53, 5  ;;  %v3268_v40 = vrot.slane %v3266_v55, 4  ;;  %v3840_v28 = vsel %vm7143_vm7, %v6118_v18, %v3839_v4 }
 0x32b   : > { %v3693_v36 = vpop.f32.mrf.mxu2  ;;  %v3274_v19 = vrot.slane %v3272_v11, 5  ;;  %v3905_v59 = vunpack.c.l.b16 %v3843_v39  ;;  %v3904_v4 = vunpack.c.l.b16 %v3840_v28  ;;  %v3582_v39 = vunpack.c.l.b16 %v8854_v29 }
 0x32c   : > { %v2596_v7 = vmax.f32 %v2564_v3, 0.0  ;;  %v8938_v33 = vadd.f32 %v3693_v36, %v8860_v47  ;;  %v3269_v0 = vor.u32 %v3268_v40, %v3264_v50  ;;  %v10267_v3 = vld [vmem:[#allocation45_spill] sm:$0xff]  ;;  %v8947_v36 = vpop.f32.mrf.mxu1  ;;  %v3260_v40 = vrot.slane %v3259_v5, 4 }
 0x32d   : > { %v2730_v53 = vld [vmem:[#allocation2 + $0x150] sm:$0xff]  ;;  %v2106_v47 = vadd.f32 %v10268_v58, %v10267_v3  ;;  %v8960_v56 = vpack.c.b16 %v3905_v59, %v3904_v4 }
 0x32e   : > { %2683 = vst [vmem:[#allocation2 + $0x159] sm:$0xff] %v2596_v7  ;;  %v3270_v55 = vrot.slane %v3269_v0, 4  ;;  %v8943_v26 = vpack.c.bf16 %v2730_v53, %v2730_v53  ;;  %v3265_v58 = vsel %vm6915_vm4, %v3260_v40, %v3264_v50  ;;  %v3846_v0 = vrot.slane %v8737_v32, 5 }
 0x32f   : > { %v2491_v31 = vpop.f32.mrf.mxu0  ;;  %v2238_v11 = vadd.f32 %v8668_v13, %v2106_v47  ;;  %v3350_v50 = vunpack.c.l.b16 %v3265_v58 }
 0x330   : > { %v4009_v44 = vpop.f32.mrf.mxu3  ;;  %v2529_v42 = vadd.f32 %v2491_v31, %v2391_v62  ;;  %v3275_v37 = vsel %vm6915_vm4, %v3270_v55, %v3274_v19  ;;  %v3581_v62 = vunpack.c.l.b16 %v8825_v52  ;;  %v3280_v28 = vshll.u32 %v8943_v26, 16 }
 0x331   : > { %v8952_v51 = vadd.f32 %v4009_v44, %v8786_v41  ;;  %v3351_v5 = vunpack.c.l.b16 %v3275_v37  ;;  %v3277_v41 = vshrl.u32 %v8943_v26, 16  ;;  %v2392_v31 = vadd.f32 %v8831_v63, %v2238_v11 }
 0x332   : > { %v2565_v18 = vadd.f32 %v8636_v35, %v2529_v42  ;;  %4211 = vmatmul.bf16.gmra.mxu0 %v8679_v1  ;;  %v8971_v59 = vpack.c.b16 %v3582_v39, %v3581_v62  ;;  %v3848_v44 = vrot.slane %v3846_v0, 4  ;;  %v3849_v39 = vrot.slane %v8739_v2, 5  ;;  %v10270_v62 = vld [vmem:[#allocation46_spill] sm:$0xff]  ;;  %v6561_v2 = vld [vmem:[%s10130_s3 + $0x178] sm:$0xff] }
 0x333   : > { %v3695_v7 = vpop.f32.mrf.mxu2  ;;  %v3279_v42 = vrot.slane %v3277_v41, 4  ;;  %4551 = vmatpush.bf16.msra.mxu2 %v6561_v2 }
 0x334   : > { %v2597_v53 = vmax.f32 %v2565_v18, 0.0  ;;  %v8965_v13 = vadd.f32 %v3695_v7, %v8886_v25  ;;  %v8977_v25 = vpack.c.b16 %v3351_v5, %v3350_v50  ;;  %v8979_v40 = vpop.f32.mrf.mxu1  ;;  %v3282_v18 = vrot.slane %v3280_v28, 5 }
 0x335   : > { %4051 = vmatmul.bf16.gmra.mxu3 %v8960_v56  ;;  %v2731_v55 = vld [vmem:[#allocation2 + $0x158] sm:$0xff]  ;;  %v2732_v19 = vld [vmem:[#allocation2 + $0x160] sm:$0x3]  ;;  %v2239_v50 = vadd.f32 %v8698_v34, %v10270_v62 }
 0x336   : > { %2684 = vst [vmem:[#allocation2 + $0x169] sm:$0xff] %v2597_v53  ;;  %v8973_v32 = vpack.c.bf16 %v2731_v55, %v2731_v55  ;;  %v8975_v3 = vpack.c.bf16 %v2732_v19, %v2732_v19  ;;  %v6119_v55 = vrot.slane %v8709_v17, 9 }
 0x337   : > { %10269 = vst [vmem:[#allocation29_spill] sm:$0xff] %v8977_v25  ;;  %v2493_v47 = vpop.f32.mrf.mxu0  ;;  %3509 = vmatmul.bf16.gmra.mxu1 %v8977_v25  ;;  %v2393_v34 = vadd.f32 %v8862_v46, %v2239_v50 }
 0x338   : > { %v4012_v37 = vpop.f32.mrf.mxu3  ;;  %v2530_v4 = vadd.f32 %v2493_v47, %v2392_v31  ;;  %3737 = vmatmul.bf16.gmra.mxu2 %v8971_v59  ;;  %v3286_v63 = vshll.u32 %v8973_v32, 16  ;;  %v3290_v11 = vshrl.u32 %v8973_v32, 16  ;;  %v3296_v53 = vshll.u32 %v8975_v3, 16 }
 0x339   : > { %v8985_v58 = vadd.f32 %v4012_v37, %v8820_v24  ;;  %v3850_v24 = vsel %vm7143_vm7, %v3848_v44, %v3849_v39  ;;  %v3283_v47 = vor.u32 %v3282_v18, %v3279_v42  ;;  %v3847_v17 = vsel %vm7143_vm7, %v6119_v55, %v3846_v0  ;;  %v6569_v0 = vld [vmem:[%s10130_s3 + $0x1b8] sm:$0xff] }
 0x33a   : > { %v2566_v7 = vadd.f32 %v8636_v35, %v2530_v4  ;;  %v3288_v5 = vrot.slane %v3286_v63, 5  ;;  %v3292_v41 = vrot.slane %v3290_v11, 4  ;;  %v3298_v44 = vrot.slane %v3296_v53, 5  ;;  %4726 = vmatpush.bf16.msrb.mxu3 %v6569_v0 }
 0x33b   : > { %v3698_v28 = vpop.f32.mrf.mxu2  ;;  %v3907_v39 = vunpack.c.l.b16 %v3850_v24  ;;  %v3906_v50 = vunpack.c.l.b16 %v3847_v17 }
 0x33c   : > { %v2598_v19 = vmax.f32 %v2566_v7, 0.0  ;;  %v9000_v31 = vadd.f32 %v3698_v28, %v8917_v61  ;;  %v3293_v37 = vor.u32 %v3292_v41, %v3288_v5  ;;  %v10271_v7 = vld [vmem:[#allocation47_spill] sm:$0xff]  ;;  %v9009_v28 = vpop.f32.mrf.mxu1  ;;  %v3284_v41 = vrot.slane %v3283_v47, 4 }
 0x33d   : > { %v2733_v4 = vld [vmem:[#allocation2 + $0x168] sm:$0xff]  ;;  %v2108_v61 = vadd.f32 %v8648_v43, %v10271_v7  ;;  %v6560_v43 = vld [vmem:[%s10130_s3 + $0x170] sm:$0xff]  ;;  %v9028_v47 = vpack.c.b16 %v3907_v39, %v3906_v50 }
 0x33e   : > { %2685 = vst [vmem:[#allocation2 + $0x171] sm:$0xff] %v2598_v19  ;;  %v3294_v63 = vrot.slane %v3293_v37, 4  ;;  %v9005_v62 = vpack.c.bf16 %v2733_v4, %v2733_v4  ;;  %v3289_v2 = vsel %vm6915_vm4, %v3284_v41, %v3288_v5  ;;  %v3584_v19 = vunpack.c.l.b16 %v8911_v30  ;;  %4552 = vmatpush.bf16.msra.mxu2 %v6560_v43 }
 0x33f   : > { %v2496_v11 = vpop.f32.mrf.mxu0  ;;  %v2240_v55 = vadd.f32 %v8726_v54, %v2108_v61  ;;  %v3853_v4 = vrot.slane %v8794_v48, 5 }
 0x340   : > { %v4014_v42 = vpop.f32.mrf.mxu3  ;;  %v2531_v18 = vadd.f32 %v2496_v11, %v2393_v34  ;;  %v3299_v46 = vsel %vm6915_vm4, %v3294_v63, %v3298_v44  ;;  %v3301_v34 = vshrl.u32 %v9005_v62, 16  ;;  %v3583_v63 = vunpack.c.l.b16 %v8882_v22 }
 0x341   : > { %v9017_v53 = vadd.f32 %v4014_v42, %v8846_v23  ;;  %v3353_v37 = vunpack.c.l.b16 %v3299_v46  ;;  %v3304_v5 = vshll.u32 %v9005_v62, 16  ;;  %v3352_v44 = vunpack.c.l.b16 %v3289_v2  ;;  %v6559_v2 = vld [vmem:[%s10130_s3 + $0x168] sm:$0xff] }
 0x342   : > { %v2567_v24 = vadd.f32 %v8636_v35, %v2531_v18  ;;  %4216 = vmatmul.bf16.gmra.mxu0 %v8735_v21  ;;  %v2394_v7 = vadd.f32 %v8888_v15, %v2240_v55  ;;  %v9039_v48 = vpack.c.b16 %v3584_v19, %v3583_v63  ;;  %v3855_v41 = vrot.slane %v3853_v4, 4  ;;  %v6577_v19 = vld [vmem:[%s10130_s3 + $0x1f8] sm:$0xff]  ;;  %4553 = vmatpush.bf16.msra.mxu2 %v6559_v2 }
 0x343   : > { %v3700_v23 = vpop.f32.mrf.mxu2  ;;  %v3303_v46 = vrot.slane %v3301_v34, 4  ;;  %4923 = vmatpush.bf16.msra.mxu0 %v6577_v19 }
 0x344   : > { %v2599_v54 = vmax.f32 %v2567_v24, 0.0  ;;  %v9033_v17 = vadd.f32 %v3700_v23, %v8947_v36  ;;  %v9045_v36 = vpack.c.b16 %v3353_v37, %v3352_v44  ;;  %v9047_v0 = vpop.f32.mrf.mxu1  ;;  %v3306_v24 = vrot.slane %v3304_v5, 5 }
 0x345   : > { %4056 = vmatmul.bf16.gmra.mxu3 %v9028_v47  ;;  %v2734_v11 = vld [vmem:[#allocation2 + $0x170] sm:$0xff]  ;;  %v2735_v39 = vld [vmem:[#allocation2 + $0x178] sm:$0x3]  ;;  %v3856_v37 = vrot.slane %v8796_v10, 5 }
 0x346   : > { %2686 = vst [vmem:[#allocation2 + $0x181] sm:$0xff] %v2599_v54  ;;  %v9041_v61 = vpack.c.bf16 %v2734_v11, %v2734_v11  ;;  %v9043_v42 = vpack.c.bf16 %v2735_v39, %v2735_v39  ;;  %v6120_v11 = vrot.slane %v8765_v27, 9  ;;  %v6585_v10 = vld [vmem:[%s10130_s3 + $0x238] sm:$0xff] }
 0x347   : > { %10272 = vst [vmem:[#allocation42_spill] sm:$0xff] %v9045_v36  ;;  %v2498_v18 = vpop.f32.mrf.mxu0  ;;  %3514 = vmatmul.bf16.gmra.mxu1 %v9045_v36  ;;  %v3857_v39 = vsel %vm7143_vm7, %v3855_v41, %v3856_v37 }
 0x348   : > { %v4017_v50 = vpop.f32.mrf.mxu3  ;;  %v2532_v43 = vadd.f32 %v2498_v18, %v2394_v7  ;;  %3742 = vmatmul.bf16.gmra.mxu2 %v9039_v48  ;;  %v3310_v15 = vshll.u32 %v9041_v61, 16  ;;  %v3314_v55 = vshrl.u32 %v9041_v61, 16  ;;  %v3320_v5 = vshll.u32 %v9043_v42, 16  ;;  %5104 = vmatpush.bf16.msra.mxu1 %v6585_v10  ;;  %v6556_v10 = vld [vmem:[%s10130_s3 + $0x150] sm:$0xff] }
 0x349   : > { %v9059_v23 = vadd.f32 %v4017_v50, %v8877_v60  ;;  %v3307_v18 = vor.u32 %v3306_v24, %v3303_v46  ;;  %v3854_v27 = vsel %vm7143_vm7, %v6120_v11, %v3853_v4  ;;  %v3909_v19 = vunpack.c.l.b16 %v3857_v39  ;;  %v6557_v4 = vld [vmem:[%s10130_s3 + $0x158] sm:$0xff] }
 0x34a   : > { %v2568_v34 = vadd.f32 %v8636_v35, %v2532_v43  ;;  %v3312_v54 = vrot.slane %v3310_v15, 5  ;;  %v3316_v63 = vrot.slane %v3314_v55, 4  ;;  %v6558_v35 = vld [vmem:[%s10130_s3 + $0x160] sm:$0xff]  ;;  %v3322_v15 = vrot.slane %v3320_v5, 5 }
 0x34b   : > { %v3703_v44 = vpop.f32.mrf.mxu2  ;;  %4554 = vmatpush.bf16.msra.mxu2 %v6558_v35  ;;  %v3308_v46 = vrot.slane %v3307_v18, 4  ;;  %v3908_v5 = vunpack.c.l.b16 %v3854_v27  ;;  %v3586_v39 = vunpack.c.l.b16 %v8973_v32  ;;  %v3585_v27 = vunpack.c.l.b16 %v8943_v26 }
 0x34c   : > { %v2600_v60 = vmax.f32 %v2568_v34, 0.0  ;;  %v9075_v7 = vadd.f32 %v3703_v44, %v8979_v40  ;;  %v3317_v50 = vor.u32 %v3316_v63, %v3312_v54  ;;  %v9081_v37 = vpop.f32.mrf.mxu1 }
 0x34d   : > { %v2736_v43 = vld [vmem:[#allocation2 + $0x180] sm:$0xff]  ;;  %v9103_v35 = vpack.c.b16 %v3909_v19, %v3908_v5 }
 0x34e   : > { %2687 = vst [vmem:[#allocation2 + $0x189] sm:$0xff] %v2600_v60  ;;  %v3318_v41 = vrot.slane %v3317_v50, 4  ;;  %v9079_v55 = vpack.c.bf16 %v2736_v43, %v2736_v43 }
 0x34f   : > { %v4182_v2 = vpop.f32.mrf.mxu0  ;;  %4555 = vmatpush.bf16.msra.mxu2 %v6557_v4  ;;  %10273 = vst [vmem:[#allocation43_spill] sm:$0xff] %v9103_v35 }
 0x350   : > { %v4019_v34 = vpop.f32.mrf.mxu3  ;;  %v9084_v40 = vadd.f32 %v4182_v2, %v8923_v9  ;;  %v3323_v24 = vsel %vm6915_vm4, %v3318_v41, %v3322_v15  ;;  %v4295_v44 = vshrl.u32 %v9079_v55, 16  ;;  %v4298_v11 = vshll.u32 %v9079_v55, 16 }
 0x351   : > { %v9092_v63 = vadd.f32 %v4019_v34, %v8903_v45  ;;  %v3313_v9 = vsel %vm6915_vm4, %v3308_v46, %v3312_v54  ;;  %v3355_v60 = vunpack.c.l.b16 %v3323_v24  ;;  %v3860_v54 = vrot.slane %v8854_v29, 5 }
 0x352   : > { %4221 = vmatmul.bf16.gmra.mxu0 %v8792_v16  ;;  %v4297_v18 = vrot.slane %v4295_v44, 4  ;;  %v4300_v50 = vrot.slane %v4298_v11, 5  ;;  %v3354_v41 = vunpack.c.l.b16 %v3313_v9  ;;  %v9111_v34 = vpack.c.b16 %v3586_v39, %v3585_v27  ;;  %v6555_v9 = vld [vmem:[%s10130_s3 + $0x148] sm:$0xff] }
 0x353   : > { %v3705_v45 = vpop.f32.mrf.mxu2  ;;  %4556 = vmatpush.bf16.msra.mxu2 %v6556_v10  ;;  %v3862_v11 = vrot.slane %v3860_v54, 4 }
 0x354   : > { %v9106_v43 = vadd.f32 %v3705_v45, %v9009_v28  ;;  %10274 = vst [vmem:[#allocation33_spill] sm:$0xff] %v9111_v34  ;;  %v4301_v24 = vor.u32 %v4300_v50, %v4297_v18  ;;  %v9115_v4 = vpack.c.b16 %v3355_v60, %v3354_v41  ;;  %v9117_v5 = vpop.f32.mrf.mxu1  ;;  %v3863_v60 = vrot.slane %v8856_v6, 5 }
 0x355   : > { %4061 = vmatmul.bf16.gmra.mxu3 %v9103_v35  ;;  %v2737_v15 = vld [vmem:[#allocation2 + $0x188] sm:$0xff]  ;;  %v2738_v2 = vld [vmem:[#allocation2 + $0x190] sm:$0x3]  ;;  %v6221_v18 = vrot.slane %v9079_v55, 9 }
 0x356   : > { %v9113_v19 = vpack.c.bf16 %v2737_v15, %v2737_v15  ;;  %v2792_v46 = vpack.c.bf16 %v2738_v2, %v2738_v2  ;;  %10275 = vst [vmem:[#allocation34_spill] sm:$0xff] %v9115_v4  ;;  %v4302_v50 = vrot.slane %v4301_v24, 4  ;;  %v3864_v24 = vsel %vm7143_vm7, %v3862_v11, %v3863_v60  ;;  %v6568_v60 = vld [vmem:[%s10130_s3 + $0x1b0] sm:$0xff] }
 0x357   : > { %v4184_v28 = vpop.f32.mrf.mxu0  ;;  %4557 = vmatpush.bf16.msra.mxu2 %v6555_v9  ;;  %3519 = vmatmul.bf16.gmra.mxu1 %v9115_v4 }
 0x358   : > { %v4022_v44 = vpop.f32.mrf.mxu3  ;;  %v9120_v29 = vadd.f32 %v4184_v28, %v8952_v51  ;;  %3747 = vmatmul.bf16.gmra.mxu2 %v9111_v34  ;;  %v4304_v39 = vshll.u32 %v9113_v19, 16  ;;  %v4308_v10 = vshrl.u32 %v9113_v19, 16  ;;  %v4494_v51 = vrot.slane %v9113_v19, 5  ;;  %4727 = vmatpush.bf16.msrb.mxu3 %v6568_v60 }
 0x359   : > { %v9129_v45 = vadd.f32 %v4022_v44, %v8938_v33  ;;  %v4314_v15 = vshll.u32 %v2792_v46, 16  ;;  %v6121_v28 = vrot.slane %v8825_v52, 9  ;;  %v6554_v33 = vld [vmem:[%s10130_s3 + $0x140] sm:$0xff]  ;;  %v4497_v36 = vrot.slane %v2792_v46, 5 }
 0x35a   : > { %v4306_v27 = vrot.slane %v4304_v39, 5  ;;  %v4310_v41 = vrot.slane %v4308_v10, 4  ;;  %v4495_v6 = vsel %vm7143_vm7, %v6221_v18, %v4494_v51  ;;  %v4496_v44 = vrot.slane %v4494_v51, 4 }
 0x35b   : > { %v3708_v2 = vpop.f32.mrf.mxu2  ;;  %v3861_v52 = vsel %vm7143_vm7, %v6121_v28, %v3860_v54  ;;  %4558 = vmatpush.bf16.msra.mxu2 %v6554_v33  ;;  %v4316_v51 = vrot.slane %v4314_v15, 5  ;;  %v4499_v46 = vunpack.c.l.b16 %v4495_v6 }
 0x35c   : > { %v9142_v9 = vadd.f32 %v3708_v2, %v9047_v0  ;;  %v4307_v39 = vsel %vm6915_vm4, %v4302_v50, %v4306_v27  ;;  %v4311_v10 = vor.u32 %v4310_v41, %v4306_v27  ;;  %v4498_v4 = vsel %vm7143_vm7, %v4496_v44, %v4497_v36  ;;  %v3482_v35 = vpop.f32.mrf.mxu1 }
 0x35d   : > { %v4500_v25 = vunpack.c.l.b16 %v4498_v4  ;;  %v3911_v2 = vunpack.c.l.b16 %v3864_v24  ;;  %v3910_v4 = vunpack.c.l.b16 %v3861_v52  ;;  %v4318_v27 = vunpack.c.l.b16 %v4307_v39 }
 0x35e   : > { %v4312_v18 = vrot.slane %v4311_v10, 4 }
 0x35f   : > { %v4187_v0 = vpop.f32.mrf.mxu0  ;;  %v9160_v36 = vpack.c.b16 %v4500_v25, %v4499_v46  ;;  %v9167_v15 = vpack.c.b16 %v3911_v2, %v3910_v4  ;;  %v3587_v25 = vunpack.c.l.b16 %v9005_v62  ;;  %v6122_v2 = vrot.slane %v8882_v22, 9 }
 0x360   : > { %v4024_v16 = vpop.f32.mrf.mxu3  ;;  %v9153_v11 = vadd.f32 %v4187_v0, %v8985_v58  ;;  %v4317_v54 = vsel %vm6915_vm4, %v4312_v18, %v4316_v51  ;;  %v3588_v58 = vunpack.c.l.b16 %v9041_v61  ;;  %v10278_v51 = vld [vmem:[#allocation13_spill] sm:$0xff] }
 0x361   : > { %10276 = vst [vmem:[#allocation35_spill] sm:$0xff] %v9160_v36  ;;  %v9163_v50 = vadd.f32 %v4024_v16, %v8965_v13  ;;  %v4319_v41 = vunpack.c.l.b16 %v4317_v54  ;;  %v3867_v16 = vrot.slane %v8911_v30, 5  ;;  %v3870_v30 = vrot.slane %v8913_v8, 5 }
 0x362   : > { %4226 = vmatmul.bf16.gmra.mxu0 %v8852_v14  ;;  %v9177_v13 = vpack.c.b16 %v3588_v58, %v3587_v25 }
 0x363   : > { %v3710_v28 = vpop.f32.mrf.mxu2  ;;  %v9169_v33 = vpack.c.b16 %v4319_v41, %v4318_v27  ;;  %v3869_v52 = vrot.slane %v3867_v16, 4  ;;  %v3868_v8 = vsel %vm7143_vm7, %v6122_v2, %v3867_v16 }
 0x364   : > { %v9172_v6 = vadd.f32 %v3710_v28, %v9081_v37  ;;  %10277 = vst [vmem:[#allocation7_spill] sm:$0xff] %v9177_v13  ;;  %v3485_v24 = vpop.f32.mrf.mxu1  ;;  %v6576_v37 = vld [vmem:[%s10130_s3 + $0x1f0] sm:$0xff]  ;;  %v3912_v58 = vunpack.c.l.b16 %v3868_v8  ;;  %v6566_v28 = vld [vmem:[%s10130_s3 + $0x1a0] sm:$0xff] }
 0x365   : > { %4066 = vmatmul.bf16.gmra.mxu3 %v9167_v15  ;;  %4924 = vmatpush.bf16.msra.mxu0 %v6576_v37  ;;  %v3871_v60 = vsel %vm7143_vm7, %v3869_v52, %v3870_v30 }
 0x366   : > { %v3913_v54 = vunpack.c.l.b16 %v3871_v60 }
 0x367   : > { %v4189_v44 = vpop.f32.mrf.mxu0  ;;  %4378 = vmatmul.bf16.vlgmr.msrb.gmra.mxu1 %v10278_v51  ;;  %v6565_v51 = vld [vmem:[%s10130_s3 + $0x198] sm:$0xff] }
 0x368   : > { %v4027_v39 = vpop.f32.mrf.mxu3  ;;  %v9180_v10 = vadd.f32 %v4189_v44, %v9017_v53  ;;  %3752 = vmatmul.bf16.gmra.mxu2 %v9177_v13  ;;  %v6584_v53 = vld [vmem:[%s10130_s3 + $0x230] sm:$0xff]  ;;  %v9215_v25 = vpack.c.b16 %v3913_v54, %v3912_v58  ;;  %v3874_v44 = vrot.slane %v8973_v32, 5  ;;  %v3877_v32 = vrot.slane %v8975_v3, 5  ;;  %v6562_v58 = vld [vmem:[%s10130_s3 + $0x180] sm:$0xff] }
 0x369   : > { %v9187_v18 = vadd.f32 %v4027_v39, %v9000_v31  ;;  %5105 = vmatpush.bf16.msra.mxu1 %v6584_v53 }
 0x36a   : > { %v3876_v30 = vrot.slane %v3874_v44, 4 }
 0x36b   : > { %v3713_v46 = vpop.f32.mrf.mxu2 }
 0x36c   : > { %v9195_v0 = vadd.f32 %v3713_v46, %v9117_v5  ;;  %v3487_v4 = vpop.f32.mrf.mxu1  ;;  %v6567_v5 = vld [vmem:[%s10130_s3 + $0x1a8] sm:$0xff]  ;;  %v10279_v46 = vld [vmem:[#allocation19_spill] sm:$0xff]  ;;  %v3878_v60 = vsel %vm7143_vm7, %v3876_v30, %v3877_v32 }
 0x36d   : > { %4728 = vmatpush.bf16.msrb.mxu3 %v6567_v5  ;;  %v3915_v8 = vunpack.c.l.b16 %v3878_v60 }
 0x36f   : > { %v4192_v31 = vpop.f32.mrf.mxu0 }
 0x370   : > { %v4029_v27 = vpop.f32.mrf.mxu3  ;;  %v9203_v41 = vadd.f32 %v4192_v31, %v9059_v23 }
 0x371   : > { %v9209_v22 = vadd.f32 %v4029_v27, %v9033_v17  ;;  %4729 = vmatpush.bf16.msrb.mxu3 %v6566_v28 }
 0x372   : > { %4231 = vmatmul.bf16.gmra.mxu0 %v8909_v57 }
 0x373   : > { %v3715_v16 = vpop.f32.mrf.mxu2 }
 0x374   : > { %v9217_v23 = vadd.f32 %v3715_v16, %v3482_v35  ;;  %v3490_v39 = vpop.f32.mrf.mxu1 }
 0x375   : > { %4071 = vmatmul.bf16.gmra.mxu3 %v9215_v25 }
 0x376   : > { %4730 = vmatpush.bf16.msrb.mxu3 %v6565_v51  ;;  %v10280_v51 = vld [vmem:[#allocation16_spill] sm:$0xff] }
 0x377   : > { %v4194_v17 = vpop.f32.mrf.mxu0  ;;  %4383 = vmatmul.bf16.gmra.mxu1 %v10279_v46 }
 0x378   : > { %v4032_v52 = vpop.f32.mrf.mxu3  ;;  %v9222_v37 = vadd.f32 %v4194_v17, %v9092_v63  ;;  %4559 = vmatmul.bf16.vlgmr.msra.gmra.mxu2 %v8498_v12  ;;  %v6564_v63 = vld [vmem:[%s10130_s3 + $0x190] sm:$0xff]  ;;  %v6123_v12 = vrot.slane %v8943_v26, 9 }
 0x379   : > { %v9229_v35 = vadd.f32 %v4032_v52, %v9075_v7 }
 0x37a   : > { %v3875_v7 = vsel %vm7143_vm7, %v6123_v12, %v3874_v44  ;;  %4731 = vmatpush.bf16.msrb.mxu3 %v6564_v63  ;;  %v3881_v44 = vrot.slane %v9041_v61, 5  ;;  %v3884_v61 = vrot.slane %v9043_v42, 5  ;;  %v10281_v63 = vld [vmem:[#allocation26_spill] sm:$0xff] }
 0x37b   : > { %v3718_v53 = vpop.f32.mrf.mxu2  ;;  %v3914_v5 = vunpack.c.l.b16 %v3875_v7  ;;  %v6124_v7 = vrot.slane %v9005_v62, 9 }
 0x37c   : > { %v9236_v2 = vadd.f32 %v3718_v53, %v3485_v24  ;;  %v3492_v31 = vpop.f32.mrf.mxu1  ;;  %v6563_v24 = vld [vmem:[%s10130_s3 + $0x188] sm:$0xff]  ;;  %v3883_v32 = vrot.slane %v3881_v44, 4 }
 0x37d   : > { %v9256_v28 = vpack.c.b16 %v3915_v8, %v3914_v5  ;;  %v6575_v53 = vld [vmem:[%s10130_s3 + $0x1e8] sm:$0xff] }
 0x37e   : > { %4732 = vmatpush.bf16.msrb.mxu3 %v6563_v24  ;;  %4925 = vmatpush.bf16.msra.mxu0 %v6575_v53 }
 0x37f   : > { %v4197_v3 = vpop.f32.mrf.mxu0 }
 0x380   : > { %v4034_v54 = vpop.f32.mrf.mxu3  ;;  %v9244_v27 = vadd.f32 %v4197_v3, %v9129_v45  ;;  %v3885_v3 = vsel %vm7143_vm7, %v3883_v32, %v3884_v61  ;;  %v10283_v61 = vld [vmem:[#allocation27_spill] sm:$0xff] }
 0x381   : > { %v9250_v26 = vadd.f32 %v4034_v54, %v9106_v43  ;;  %v3917_v8 = vunpack.c.l.b16 %v3885_v3 }
 0x382   : > { %4236 = vmatmul.bf16.gmra.mxu0 %v8971_v59  ;;  %4733 = vmatpush.bf16.msrb.mxu3 %v6562_v58 }
 0x383   : > { %v3720_v16 = vpop.f32.mrf.mxu2 }
 0x384   : > { %v9258_v45 = vadd.f32 %v3720_v16, %v3487_v4  ;;  %v3495_v17 = vpop.f32.mrf.mxu1 }
 0x385   : > { %4076 = vmatmul.bf16.gmra.mxu3 %v9256_v28 }
 0x387   : > { %v4199_v43 = vpop.f32.mrf.mxu0  ;;  %4388 = vmatmul.bf16.gmra.mxu1 %v10281_v63 }
 0x388   : > { %v4037_v52 = vpop.f32.mrf.mxu3  ;;  %v9263_v30 = vadd.f32 %v4199_v43, %v9163_v50  ;;  %4564 = vmatmul.bf16.gmra.mxu2 %v10280_v51  ;;  %v6583_v50 = vld [vmem:[%s10130_s3 + $0x228] sm:$0xff] }
 0x389   : > { %v4099_v4 = vadd.f32 %v4037_v52, %v9142_v9  ;;  %5106 = vmatpush.bf16.msra.mxu1 %v6583_v50  ;;  %v3882_v9 = vsel %vm7143_vm7, %v6124_v7, %v3881_v44 }
 0x38b   : > { %v3723_v12 = vpop.f32.mrf.mxu2 }
 0x38c   : > { %v9275_v60 = vadd.f32 %v3723_v12, %v3490_v39  ;;  %v3497_v54 = vpop.f32.mrf.mxu1  ;;  %v3916_v39 = vunpack.c.l.b16 %v3882_v9 }
 0x38e   : > { %v9287_v62 = vpack.c.b16 %v3917_v8, %v3916_v39 }
 0x38f   : > { %v4202_v42 = vpop.f32.mrf.mxu0 }
 0x390   : > { %v4039_v24 = vpop.f32.mrf.mxu3  ;;  %v9283_v5 = vadd.f32 %v4202_v42, %v9187_v18  ;;  %v10282_v18 = vld [vmem:[#allocation23_spill] sm:$0xff] }
 0x391   : > { %v4100_v58 = vadd.f32 %v4039_v24, %v9172_v6 }
 0x392   : > { %4241 = vmatmul.bf16.gmra.mxu0 %v9039_v48 }
 0x393   : > { %v3725_v16 = vpop.f32.mrf.mxu2 }
 0x394   : > { %v9289_v43 = vadd.f32 %v3725_v16, %v3492_v31  ;;  %v3500_v52 = vpop.f32.mrf.mxu1 }
 0x395   : > { %4081 = vmatmul.bf16.gmra.mxu3 %v9287_v62 }
 0x397   : > { %v4204_v44 = vpop.f32.mrf.mxu0  ;;  %4393 = vmatmul.bf16.gmra.mxu1 %v10283_v61 }
 0x398   : > { %v4042_v32 = vpop.f32.mrf.mxu3  ;;  %v9293_v53 = vadd.f32 %v4204_v44, %v9209_v22  ;;  %4569 = vmatmul.bf16.gmra.mxu2 %v10282_v18  ;;  %v6574_v22 = vld [vmem:[%s10130_s3 + $0x1e0] sm:$0xff]  ;;  %v4122_v18 = vunpack.c.l.b16 %v9113_v19 }
 0x399   : > { %v4101_v6 = vadd.f32 %v4042_v32, %v9195_v0  ;;  %4926 = vmatpush.bf16.msra.mxu0 %v6574_v22  ;;  %v10285_v44 = vld [vmem:[#allocation17_spill] sm:$0xff] }
 0x39b   : > { %v3728_v12 = vpop.f32.mrf.mxu2 }
 0x39c   : > { %v9298_v50 = vadd.f32 %v3728_v12, %v3495_v17  ;;  %v3502_v31 = vpop.f32.mrf.mxu1  ;;  %v10284_v17 = vld [vmem:[#allocation12_spill] sm:$0xff]  ;;  %v10286_v12 = vld [vmem:[#allocation10_spill] sm:$0xff] }
 0x39f   : > { %v4207_v7 = vpop.f32.mrf.mxu0 }
 0x3a0   : > { %v4044_v3 = vpop.f32.mrf.mxu3  ;;  %v9301_v9 = vadd.f32 %v4207_v7, %v9229_v35  ;;  %v6582_v7 = vld [vmem:[%s10130_s3 + $0x220] sm:$0xff] }
 0x3a1   : > { %v4102_v42 = vadd.f32 %v4044_v3, %v9217_v23  ;;  %v6573_v23 = vld [vmem:[%s10130_s3 + $0x1d8] sm:$0xff]  ;;  %5107 = vmatpush.bf16.msra.mxu1 %v6582_v7  ;;  %v10287_v7 = vld [vmem:[#allocation14_spill] sm:$0xff] }
 0x3a2   : > { %4246 = vmatmul.bf16.gmra.mxu0 %v9111_v34 }
 0x3a3   : > { %v3730_v0 = vpop.f32.mrf.mxu2  ;;  %4927 = vmatpush.bf16.msra.mxu0 %v6573_v23 }
 0x3a4   : > { %v9308_v8 = vadd.f32 %v3730_v0, %v3497_v54  ;;  %v3505_v39 = vpop.f32.mrf.mxu1 }
 0x3a5   : > { %4734 = vmatmul.bf16.vlgmr.msrb.gmra.mxu3 %v10284_v17 }
 0x3a7   : > { %v4209_v24 = vpop.f32.mrf.mxu0  ;;  %4398 = vmatmul.bf16.gmra.mxu1 %v10286_v12 }
 0x3a8   : > { %v4047_v16 = vpop.f32.mrf.mxu3  ;;  %v9312_v35 = vadd.f32 %v4209_v24, %v9250_v26  ;;  %4574 = vmatmul.bf16.gmra.mxu2 %v10285_v44  ;;  %v6572_v26 = vld [vmem:[%s10130_s3 + $0x1d0] sm:$0xff] }
 0x3a9   : > { %v4103_v32 = vadd.f32 %v4047_v16, %v9236_v2  ;;  %4928 = vmatpush.bf16.msra.mxu0 %v6572_v26  ;;  %v6571_v2 = vld [vmem:[%s10130_s3 + $0x1c8] sm:$0xff] }
 0x3ab   : > { %v3733_v54 = vpop.f32.mrf.mxu2 }
 0x3ac   : > { %v3734_v3 = vadd.f32 %v3733_v54, %v3500_v52  ;;  %v3507_v0 = vpop.f32.mrf.mxu1  ;;  %v6570_v52 = vld [vmem:[%s10130_s3 + $0x1c0] sm:$0xff] }
 0x3ad   : > { %4929 = vmatpush.bf16.msra.mxu0 %v6571_v2 }
 0x3af   : > { %v4212_v22 = vpop.f32.mrf.mxu0 }
 0x3b0   : > { %v4049_v17 = vpop.f32.mrf.mxu3  ;;  %v9326_v24 = vadd.f32 %v4212_v22, %v4099_v4 }
 0x3b1   : > { %v4104_v16 = vadd.f32 %v4049_v17, %v9258_v45  ;;  %4930 = vmatpush.bf16.msra.mxu0 %v6570_v52  ;;  %v10289_v17 = vld [vmem:[#allocation15_spill] sm:$0xff] }
 0x3b2   : > { %4251 = vmatmul.bf16.gmra.mxu0 %v9177_v13 }
 0x3b3   : > { %v3735_v23 = vpop.f32.mrf.mxu2 }
 0x3b4   : > { %v3736_v54 = vadd.f32 %v3735_v23, %v3502_v31  ;;  %v3510_v4 = vpop.f32.mrf.mxu1  ;;  %v4121_v31 = vunpack.c.l.b16 %v9079_v55  ;;  %v10292_v55 = vld [vmem:[#allocation21_spill] sm:$0xff] }
 0x3b5   : > { %4739 = vmatmul.bf16.gmra.mxu3 %v10287_v7 }
 0x3b6   : > { %v9346_v51 = vpack.c.b16 %v4122_v18, %v4121_v31 }
 0x3b7   : > { %v4214_v26 = vpop.f32.mrf.mxu0  ;;  %4403 = vmatmul.bf16.gmra.mxu1 %v10289_v17 }
 0x3b8   : > { %v4052_v22 = vpop.f32.mrf.mxu3  ;;  %v9337_v49 = vadd.f32 %v4214_v26, %v4100_v58  ;;  %4579 = vmatmul.bf16.gmra.mxu2 %v10288_v20  ;;  %10290 = vst [vmem:[#allocation36_spill] sm:$0xff] %v9346_v51 }
 0x3b9   : > { %v4105_v45 = vadd.f32 %v4052_v22, %v9275_v60  ;;  %v10291_v22 = vld [vmem:[#allocation18_spill] sm:$0xff] }
 0x3bb   : > { %v3738_v2 = vpop.f32.mrf.mxu2 }
 0x3bc   : > { %v3739_v44 = vadd.f32 %v3738_v2, %v3505_v39  ;;  %v3512_v7 = vpop.f32.mrf.mxu1 }
 0x3bf   : > { %v4217_v23 = vpop.f32.mrf.mxu0 }
 0x3c0   : > { %v4054_v13 = vpop.f32.mrf.mxu3  ;;  %v9344_v52 = vadd.f32 %v4217_v23, %v4101_v6  ;;  %v10293_v23 = vld [vmem:[#allocation32_spill] sm:$0xff] }
 0x3c1   : > { %v4106_v58 = vadd.f32 %v4054_v13, %v9289_v43  ;;  %v6581_v13 = vld [vmem:[%s10130_s3 + $0x218] sm:$0xff] }
 0x3c2   : > { %4256 = vmatmul.bf16.gmra.mxu0 %v9346_v51  ;;  %5108 = vmatpush.bf16.msra.mxu1 %v6581_v13  ;;  %v10298_v13 = vld [vmem:[#allocation20_spill] sm:$0xff] }
 0x3c3   : > { %v3740_v60 = vpop.f32.mrf.mxu2 }
 0x3c4   : > { %v3741_v26 = vadd.f32 %v3740_v60, %v3507_v0  ;;  %v3515_v2 = vpop.f32.mrf.mxu1 }
 0x3c5   : > { %4744 = vmatmul.bf16.gmra.mxu3 %v10291_v22 }
 0x3c7   : > { %v4219_v39 = vpop.f32.mrf.mxu0  ;;  %4408 = vmatmul.bf16.gmra.mxu1 %v10293_v23 }
 0x3c8   : > { %v4057_v19 = vpop.f32.mrf.mxu3  ;;  %v9351_v20 = vadd.f32 %v4219_v39, %v4102_v42  ;;  %4584 = vmatmul.bf16.gmra.mxu2 %v10292_v55 }
 0x3c9   : > { %v4107_v6 = vadd.f32 %v4057_v19, %v9298_v50  ;;  %v10295_v19 = vld [vmem:[#allocation11_spill] sm:$0xff] }
 0x3cb   : > { %v3743_v18 = vpop.f32.mrf.mxu2 }
 0x3cc   : > { %v3744_v43 = vadd.f32 %v3743_v18, %v3510_v4  ;;  %v3517_v31 = vpop.f32.mrf.mxu1  ;;  %v10297_v4 = vld [vmem:[#allocation44_spill] sm:$0xff] }
 0x3cf   : > { %v4222_v0 = vpop.f32.mrf.mxu0 }
 0x3d0   : > { %v4059_v60 = vpop.f32.mrf.mxu3  ;;  %v9359_v22 = vadd.f32 %v4222_v0, %v4103_v32 }
 0x3d1   : > { %v4108_v42 = vadd.f32 %v4059_v60, %v9308_v8 }
 0x3d2   : > { %10294 = vst [vmem:[#allocation37_spill] sm:$0xff] %v9359_v22  ;;  %4931 = vmatmul.bf16.vlgmr.msra.gmra.mxu0 %v10279_v46 }
 0x3d3   : > { %v3745_v39 = vpop.f32.mrf.mxu2 }
 0x3d4   : > { %v3746_v50 = vadd.f32 %v3745_v39, %v3512_v7  ;;  %v3520_v51 = vpop.f32.mrf.mxu1 }
 0x3d5   : > { %4749 = vmatmul.bf16.gmra.mxu3 %v10295_v19 }
 0x3d7   : > { %v4224_v55 = vpop.f32.mrf.mxu0  ;;  %4413 = vmatmul.bf16.gmra.mxu1 %v10298_v13 }
 0x3d8   : > { %v4062_v36 = vpop.f32.mrf.mxu3  ;;  %v9364_v34 = vadd.f32 %v4224_v55, %v4104_v16  ;;  %4589 = vmatmul.bf16.gmra.mxu2 %v10297_v4 }
 0x3d9   : > { %v4109_v18 = vadd.f32 %v4062_v36, %v3734_v3  ;;  %v10299_v3 = vld [vmem:[#allocation25_spill] sm:$0xff] }
 0x3da   : > { %10296 = vst [vmem:[#allocation9_spill] sm:$0xff] %v9364_v34  ;;  %v10300_v34 = vld [vmem:[#allocation22_spill] sm:$0xff] }
 0x3db   : > { %v3748_v32 = vpop.f32.mrf.mxu2 }
 0x3dc   : > { %v3749_v0 = vadd.f32 %v3748_v32, %v3515_v2  ;;  %v3522_v8 = vpop.f32.mrf.mxu1 }
 0x3df   : > { %v4227_v22 = vpop.f32.mrf.mxu0 }
 0x3e0   : > { %v4064_v60 = vpop.f32.mrf.mxu3  ;;  %v9368_v46 = vadd.f32 %v4227_v22, %v4105_v45 }
 0x3e1   : > { %v4110_v7 = vadd.f32 %v4064_v60, %v3736_v54 }
 0x3e2   : > { %4936 = vmatmul.bf16.gmra.mxu0 %v10281_v63  ;;  %v6580_v63 = vld [vmem:[%s10130_s3 + $0x210] sm:$0xff] }
 0x3e3   : > { %v3750_v39 = vpop.f32.mrf.mxu2  ;;  %5109 = vmatpush.bf16.msra.mxu1 %v6580_v63 }
 0x3e4   : > { %v3751_v19 = vadd.f32 %v3750_v39, %v3517_v31  ;;  %v4379_v55 = vpop.f32.mrf.mxu1 }
 0x3e5   : > { %4754 = vmatmul.bf16.gmra.mxu3 %v8619_v38  ;;  %v4459_v2 = vadd.f32 %v4379_v55, %v9084_v40 }
 0x3e7   : > { %v4229_v16 = vpop.f32.mrf.mxu0  ;;  %4418 = vmatmul.bf16.gmra.mxu1 %v10300_v34 }
 0x3e8   : > { %v4067_v4 = vpop.f32.mrf.mxu3  ;;  %v9372_v36 = vadd.f32 %v4229_v16, %v4106_v58  ;;  %4594 = vmatmul.bf16.gmra.mxu2 %v10299_v3 }
 0x3e9   : > { %v4111_v32 = vadd.f32 %v4067_v4, %v3739_v44 }
 0x3eb   : > { %v3753_v45 = vpop.f32.mrf.mxu2 }
 0x3ec   : > { %v3754_v54 = vadd.f32 %v3753_v45, %v3520_v51  ;;  %v4381_v31 = vpop.f32.mrf.mxu1  ;;  %v10301_v45 = vld [vmem:[#allocation28_spill] sm:$0xff] }
 0x3ed   : > { %v4460_v58 = vadd.f32 %v4381_v31, %v9120_v29 }
 0x3ef   : > { %v4232_v38 = vpop.f32.mrf.mxu0 }
 0x3f0   : > { %v4069_v22 = vpop.f32.mrf.mxu3  ;;  %v9380_v60 = vadd.f32 %v4232_v38, %v4107_v6 }
 0x3f1   : > { %v4112_v39 = vadd.f32 %v4069_v22, %v3741_v26 }
 0x3f2   : > { %4941 = vmatmul.bf16.gmra.mxu0 %v10283_v61 }
 0x3f3   : > { %v3755_v40 = vpop.f32.mrf.mxu2 }
 0x3f4   : > { %v3756_v44 = vadd.f32 %v3755_v40, %v3522_v8  ;;  %v4384_v16 = vpop.f32.mrf.mxu1 }
 0x3f5   : > { %4759 = vmatmul.bf16.gmra.mxu3 %v8679_v1  ;;  %v4461_v51 = vadd.f32 %v4384_v16, %v9153_v11  ;;  %v10302_v16 = vld [vmem:[#allocation39_spill] sm:$0xff] }
 0x3f7   : > { %v4234_v4 = vpop.f32.mrf.mxu0  ;;  %4423 = vmatmul.bf16.gmra.mxu1 %v10301_v45 }
 0x3f8   : > { %v4072_v55 = vpop.f32.mrf.mxu3  ;;  %v9385_v3 = vadd.f32 %v4234_v4, %v4108_v42  ;;  %4599 = vmatmul.bf16.gmra.mxu2 %v8960_v56 }
 0x3f9   : > { %v4113_v6 = vadd.f32 %v4072_v55, %v3744_v43 }
 0x3fb   : > { %v4560_v29 = vpop.f32.mrf.mxu2 }
 0x3fc   : > { %v4640_v26 = vadd.f32 %v4560_v29, %v4459_v2  ;;  %v4386_v61 = vpop.f32.mrf.mxu1 }
 0x3fd   : > { %v4462_v1 = vadd.f32 %v4386_v61, %v9180_v10  ;;  %v10303_v61 = vld [vmem:[#allocation30_spill] sm:$0xff] }
 0x3ff   : > { %v4237_v63 = vpop.f32.mrf.mxu0 }
 0x400   : > { %v4074_v38 = vpop.f32.mrf.mxu3  ;;  %v9390_v8 = vadd.f32 %v4237_v63, %v4109_v18 }
 0x401   : > { %v4114_v31 = vadd.f32 %v4074_v38, %v3746_v50 }
 0x402   : > { %4946 = vmatmul.bf16.gmra.mxu0 %v10286_v12  ;;  %v6579_v12 = vld [vmem:[%s10130_s3 + $0x208] sm:$0xff] }
 0x403   : > { %v4562_v42 = vpop.f32.mrf.mxu2  ;;  %5110 = vmatpush.bf16.msra.mxu1 %v6579_v12 }
 0x404   : > { %v4641_v22 = vadd.f32 %v4562_v42, %v4460_v58  ;;  %v4389_v43 = vpop.f32.mrf.mxu1 }
 0x405   : > { %4764 = vmatmul.bf16.gmra.mxu3 %v8735_v21  ;;  %v4463_v2 = vadd.f32 %v4389_v43, %v9203_v41 }
 0x407   : > { %v4239_v11 = vpop.f32.mrf.mxu0  ;;  %4428 = vmatmul.bf16.gmra.mxu1 %v10302_v16 }
 0x408   : > { %v4077_v40 = vpop.f32.mrf.mxu3  ;;  %v9395_v4 = vadd.f32 %v4239_v11, %v4110_v7  ;;  %4604 = vmatmul.bf16.gmra.mxu2 %v9028_v47 }
 0x409   : > { %v4115_v18 = vadd.f32 %v4077_v40, %v3749_v0 }
 0x40b   : > { %v4565_v10 = vpop.f32.mrf.mxu2 }
 0x40c   : > { %v4642_v50 = vadd.f32 %v4565_v10, %v4461_v51  ;;  %v4391_v58 = vpop.f32.mrf.mxu1  ;;  %v10304_v51 = vld [vmem:[#allocation43_spill] sm:$0xff] }
 0x40d   : > { %v4464_v7 = vadd.f32 %v4391_v58, %v9222_v37  ;;  %v10305_v10 = vld [vmem:[#allocation31_spill] sm:$0xff] }
 0x40f   : > { %v4242_v21 = vpop.f32.mrf.mxu0 }
 0x410   : > { %v4079_v55 = vpop.f32.mrf.mxu3  ;;  %v9403_v29 = vadd.f32 %v4242_v21, %v4111_v32 }
 0x411   : > { %v4116_v63 = vadd.f32 %v4079_v55, %v3751_v19 }
 0x412   : > { %4951 = vmatmul.bf16.gmra.mxu0 %v10289_v17 }
 0x413   : > { %v4567_v41 = vpop.f32.mrf.mxu2 }
 0x414   : > { %v4643_v0 = vadd.f32 %v4567_v41, %v4462_v1  ;;  %v4394_v42 = vpop.f32.mrf.mxu1 }
 0x415   : > { %4769 = vmatmul.bf16.gmra.mxu3 %v10303_v61  ;;  %v4465_v40 = vadd.f32 %v4394_v42, %v9244_v27  ;;  %v10306_v42 = vld [vmem:[#allocation29_spill] sm:$0xff] }
 0x417   : > { %v4244_v38 = vpop.f32.mrf.mxu0  ;;  %4433 = vmatmul.bf16.gmra.mxu1 %v10305_v10 }
 0x418   : > { %v4082_v11 = vpop.f32.mrf.mxu3  ;;  %v9408_v43 = vadd.f32 %v4244_v38, %v4112_v39  ;;  %4609 = vmatmul.bf16.gmra.mxu2 %v10304_v51 }
 0x419   : > { %v4117_v32 = vadd.f32 %v4082_v11, %v3754_v54 }
 0x41b   : > { %v4570_v37 = vpop.f32.mrf.mxu2 }
 0x41c   : > { %v4644_v19 = vadd.f32 %v4570_v37, %v4463_v2  ;;  %v4396_v17 = vpop.f32.mrf.mxu1 }
 0x41d   : > { %v4466_v58 = vadd.f32 %v4396_v17, %v9263_v30 }
 0x41f   : > { %v4247_v12 = vpop.f32.mrf.mxu0 }
 0x420   : > { %v4084_v21 = vpop.f32.mrf.mxu3  ;;  %v9413_v1 = vadd.f32 %v4247_v12, %v4113_v6 }
 0x421   : > { %v4118_v55 = vadd.f32 %v4084_v21, %v3756_v44 }
 0x422   : > { %4956 = vmatmul.bf16.gmra.mxu0 %v10293_v23  ;;  %v6578_v23 = vld [vmem:[%s10130_s3 + $0x200] sm:$0xff] }
 0x423   : > { %v4572_v39 = vpop.f32.mrf.mxu2  ;;  %5111 = vmatpush.bf16.msra.mxu1 %v6578_v23 }
 0x424   : > { %v4645_v41 = vadd.f32 %v4572_v39, %v4464_v7  ;;  %v4399_v54 = vpop.f32.mrf.mxu1 }
 0x425   : > { %4774 = vmatmul.bf16.gmra.mxu3 %v8852_v14  ;;  %v4467_v2 = vadd.f32 %v4399_v54, %v9283_v5  ;;  %v10307_v54 = vld [vmem:[#allocation42_spill] sm:$0xff] }
 0x427   : > { %v4249_v27 = vpop.f32.mrf.mxu0  ;;  %4438 = vmatmul.bf16.gmra.mxu1 %v10306_v42 }
 0x428   : > { %v4735_v61 = vpop.f32.mrf.mxu3  ;;  %v9418_v38 = vadd.f32 %v4249_v27, %v4114_v31  ;;  %4614 = vmatmul.bf16.gmra.mxu2 %v9167_v15 }
 0x429   : > { %v4815_v6 = vadd.f32 %v4735_v61, %v4640_v26 }
 0x42b   : > { %v4575_v30 = vpop.f32.mrf.mxu2 }
 0x42c   : > { %v4646_v44 = vadd.f32 %v4575_v30, %v4465_v40  ;;  %v4401_v7 = vpop.f32.mrf.mxu1 }
 0x42d   : > { %v9429_v31 = vadd.f32 %v4401_v7, %v9293_v53 }
 0x42f   : > { %v4252_v14 = vpop.f32.mrf.mxu0 }
 0x430   : > { %v4737_v11 = vpop.f32.mrf.mxu3  ;;  %v9426_v37 = vadd.f32 %v4252_v14, %v4115_v18 }
 0x431   : > { %v4816_v12 = vadd.f32 %v4737_v11, %v4641_v22  ;;  %v10308_v11 = vld [vmem:[#allocation34_spill] sm:$0xff] }
 0x432   : > { %4961 = vmatmul.bf16.gmra.mxu0 %v10298_v13 }
 0x433   : > { %v4577_v5 = vpop.f32.mrf.mxu2 }
 0x434   : > { %v4647_v26 = vadd.f32 %v4577_v5, %v4466_v58  ;;  %v4404_v21 = vpop.f32.mrf.mxu1 }
 0x435   : > { %4779 = vmatmul.bf16.gmra.mxu3 %v8909_v57  ;;  %v4469_v18 = vadd.f32 %v4404_v21, %v9301_v9 }
 0x437   : > { %v4254_v17 = vpop.f32.mrf.mxu0  ;;  %4443 = vmatmul.bf16.gmra.mxu1 %v10307_v54 }
 0x438   : > { %v4740_v39 = vpop.f32.mrf.mxu3  ;;  %v9433_v40 = vadd.f32 %v4254_v17, %v4116_v63  ;;  %4619 = vmatmul.bf16.gmra.mxu2 %v9215_v25 }
 0x439   : > { %v4817_v27 = vadd.f32 %v4740_v39, %v4642_v50 }
 0x43b   : > { %v4580_v53 = vpop.f32.mrf.mxu2 }
 0x43c   : > { %v4648_v22 = vadd.f32 %v4580_v53, %v4467_v2  ;;  %v4406_v13 = vpop.f32.mrf.mxu1 }
 0x43d   : > { %v9441_v57 = vadd.f32 %v4406_v13, %v9312_v35 }
 0x43f   : > { %v4257_v61 = vpop.f32.mrf.mxu0 }
 0x440   : > { %v4742_v30 = vpop.f32.mrf.mxu3  ;;  %v9438_v58 = vadd.f32 %v4257_v61, %v4117_v32 }
 0x441   : > { %v4818_v23 = vadd.f32 %v4742_v30, %v4643_v0 }
 0x442   : > { %4966 = vmatmul.bf16.gmra.mxu0 %v10300_v34 }
 0x443   : > { %v9444_v63 = vpop.f32.mrf.mxu2 }
 0x444   : > { %v4409_v50 = vpop.f32.mrf.mxu1 }
 0x445   : > { %4784 = vmatmul.bf16.gmra.mxu3 %v8971_v59  ;;  %v4471_v32 = vadd.f32 %v4409_v50, %v9326_v24 }
 0x447   : > { %v4259_v9 = vpop.f32.mrf.mxu0  ;;  %4448 = vmatmul.bf16.gmra.mxu1 %v10308_v11 }
 0x448   : > { %v4745_v14 = vpop.f32.mrf.mxu3  ;;  %v9447_v7 = vadd.f32 %v4259_v9, %v4118_v55  ;;  %4624 = vmatmul.bf16.gmra.mxu2 %v9256_v28 }
 0x449   : > { %v4819_v2 = vadd.f32 %v4745_v14, %v4644_v19  ;;  %v10309_v14 = vld [vmem:[#allocation33_spill] sm:$0xff] }
 0x44b   : > { %v4585_v35 = vpop.f32.mrf.mxu2 }
 0x44c   : > { %v4650_v0 = vadd.f32 %v4585_v35, %v4469_v18  ;;  %v4411_v34 = vpop.f32.mrf.mxu1 }
 0x44d   : > { %v9455_v59 = vadd.f32 %v4411_v34, %v9337_v49  ;;  %v10310_v34 = vld [vmem:[#allocation35_spill] sm:$0xff] }
 0x44f   : > { %v4932_v5 = vpop.f32.mrf.mxu0 }
 0x450   : > { %v4747_v17 = vpop.f32.mrf.mxu3  ;;  %v9452_v21 = vadd.f32 %v4932_v5, %v4815_v6 }
 0x451   : > { %v4820_v39 = vadd.f32 %v4747_v17, %v4645_v41 }
 0x452   : > { %4971 = vmatmul.bf16.gmra.mxu0 %v10301_v45 }
 0x453   : > { %v9458_v55 = vpop.f32.mrf.mxu2 }
 0x454   : > { %v4414_v19 = vpop.f32.mrf.mxu1 }
 0x455   : > { %4789 = vmatmul.bf16.gmra.mxu3 %v9039_v48  ;;  %v4473_v6 = vadd.f32 %v4414_v19, %v9344_v52 }
 0x457   : > { %v4934_v24 = vpop.f32.mrf.mxu0  ;;  %4453 = vmatmul.bf16.gmra.mxu1 %v9169_v33 }
 0x458   : > { %v4750_v53 = vpop.f32.mrf.mxu3  ;;  %v9461_v61 = vadd.f32 %v4934_v24, %v4816_v12  ;;  %4629 = vmatmul.bf16.gmra.mxu2 %v9287_v62 }
 0x459   : > { %v4821_v18 = vadd.f32 %v4750_v53, %v4646_v44 }
 0x45b   : > { %v4590_v49 = vpop.f32.mrf.mxu2 }
 0x45c   : > { %v4652_v41 = vadd.f32 %v4590_v49, %v4471_v32  ;;  %v4416_v45 = vpop.f32.mrf.mxu1  ;;  %v10311_v32 = vld [vmem:[#allocation37_spill] sm:$0xff] }
 0x45d   : > { %v4474_v48 = vadd.f32 %v4416_v45, %v9351_v20 }
 0x45f   : > { %v4937_v13 = vpop.f32.mrf.mxu0 }
 0x460   : > { %v4752_v30 = vpop.f32.mrf.mxu3  ;;  %v9466_v9 = vadd.f32 %v4937_v13, %v4817_v27  ;;  %v10312_v27 = vld [vmem:[#allocation16_spill] sm:$0xff]  ;;  %v10313_v13 = vld [vmem:[#allocation9_spill] sm:$0xff] }
 0x461   : > { %v4822_v50 = vadd.f32 %v4752_v30, %v4647_v26 }
 0x462   : > { %4976 = vmatmul.bf16.gmra.mxu0 %v10302_v16 }
 0x463   : > { %v4592_v12 = vpop.f32.mrf.mxu2 }
 0x464   : > { %v4419_v52 = vpop.f32.mrf.mxu1 }
 0x465   : > { %4794 = vmatmul.bf16.gmra.mxu3 %v10309_v14  ;;  %v4475_v17 = vadd.f32 %v4419_v52, %v10311_v32  ;;  %v10314_v14 = vld [vmem:[#allocation7_spill] sm:$0xff] }
 0x467   : > { %v4939_v35 = vpop.f32.mrf.mxu0  ;;  %5112 = vmatmul.bf16.vlgmr.msra.gmra.mxu1 %v10312_v27  ;;  %v10315_v27 = vld [vmem:[#allocation23_spill] sm:$0xff] }
 0x468   : > { %v4755_v44 = vpop.f32.mrf.mxu3  ;;  %v9471_v5 = vadd.f32 %v4939_v35, %v4818_v23  ;;  %4634 = vmatmul.bf16.gmra.mxu2 %v10310_v34 }
 0x469   : > { %v4823_v24 = vadd.f32 %v4755_v44, %v4648_v22 }
 0x46b   : > { %v4595_v19 = vpop.f32.mrf.mxu2 }
 0x46c   : > { %v4654_v20 = vadd.f32 %v4595_v19, %v4473_v6  ;;  %v4421_v53 = vpop.f32.mrf.mxu1 }
 0x46d   : > { %v4476_v45 = vadd.f32 %v4421_v53, %v10313_v13 }
 0x46f   : > { %v4942_v26 = vpop.f32.mrf.mxu0 }
 0x470   : > { %v4757_v16 = vpop.f32.mrf.mxu3  ;;  %v9476_v49 = vadd.f32 %v4942_v26, %v4819_v2 }
 0x472   : > { %4981 = vmatmul.bf16.gmra.mxu0 %v10305_v10 }
 0x473   : > { %v4597_v23 = vpop.f32.mrf.mxu2 }
 0x474   : > { %v4655_v30 = vadd.f32 %v4597_v23, %v4474_v48  ;;  %v4424_v52 = vpop.f32.mrf.mxu1 }
 0x475   : > { %4799 = vmatmul.bf16.gmra.mxu3 %v10314_v14  ;;  %v4477_v6 = vadd.f32 %v4424_v52, %v9368_v46 }
 0x477   : > { %v4944_v35 = vpop.f32.mrf.mxu0  ;;  %5117 = vmatmul.bf16.gmra.mxu1 %v10315_v27  ;;  %v6678_v27 = vld [vmem:[#allocation2] sm:$0xff] }
 0x478   : > { %v4760_v22 = vpop.f32.mrf.mxu3  ;;  %v9481_v44 = vadd.f32 %v4944_v35, %v4820_v39  ;;  %v10316_v39 = vld [vmem:[#allocation36_spill] sm:$0xff] }
 0x479   : > { %v4825_v32 = vadd.f32 %v4760_v22, %v4650_v0 }
 0x47b   : > { %v4600_v2 = vpop.f32.mrf.mxu2 }
 0x47c   : > { %v4656_v19 = vadd.f32 %v4600_v2, %v4475_v17  ;;  %v4426_v53 = vpop.f32.mrf.mxu1  ;;  %v10317_v2 = vld [vmem:[#allocation17_spill] sm:$0xff] }
 0x47d   : > { %v4478_v48 = vadd.f32 %v4426_v53, %v9372_v36 }
 0x47f   : > { %v4947_v26 = vpop.f32.mrf.mxu0 }
 0x480   : > { %v4762_v13 = vpop.f32.mrf.mxu3  ;;  %v9485_v10 = vadd.f32 %v4947_v26, %v4821_v18  ;;  %v9495_v18 = vpack.c.bf16 %v6678_v27, %v6678_v27  ;;  %v4653_v26 = vadd.f32 %v4592_v12, %v9455_v59 }
 0x482   : > { %4986 = vmatmul.bf16.gmra.mxu0 %v10306_v42 }
 0x483   : > { %v4602_v23 = vpop.f32.mrf.mxu2 }
 0x484   : > { %v9489_v14 = vadd.f32 %v4602_v23, %v4476_v45  ;;  %v4429_v0 = vpop.f32.mrf.mxu1  ;;  %v4674_v45 = vunpack.c.l.b16 %v9495_v18 }
 0x485   : > { %4804 = vmatmul.bf16.gmra.mxu3 %v10316_v39  ;;  %v4479_v17 = vadd.f32 %v4429_v0, %v9380_v60 }
 0x487   : > { %v4949_v46 = vpop.f32.mrf.mxu0  ;;  %5122 = vmatmul.bf16.gmra.mxu1 %v10317_v2 }
 0x488   : > { %v4765_v35 = vpop.f32.mrf.mxu3  ;;  %v9492_v52 = vadd.f32 %v4949_v46, %v4822_v50  ;;  %v4676_v46 = vpack.c.b16 %v4674_v45, %v4674_v45  ;;  %v10318_v45 = vld [vmem:[#allocation41_spill] sm:$0xff] }
 0x489   : > { %v4827_v22 = vadd.f32 %v4765_v35, %v4652_v41 }
 0x48b   : > { %v4605_v36 = vpop.f32.mrf.mxu2 }
 0x48c   : > { %v9498_v42 = vadd.f32 %v4605_v36, %v4477_v6  ;;  %v4431_v23 = vpop.f32.mrf.mxu1  ;;  %v4649_v6 = vadd.f32 %v9444_v63, %v9429_v31 }
 0x48d   : > { %v4480_v60 = vadd.f32 %v4431_v23, %v9385_v3 }
 0x48e   : > { %v4824_v27 = vadd.f32 %v4757_v16, %v4649_v6 }
 0x48f   : > { %v4952_v53 = vpop.f32.mrf.mxu0 }
 0x490   : > { %v4767_v39 = vpop.f32.mrf.mxu3  ;;  %v9502_v50 = vadd.f32 %v4952_v53, %v4823_v24 }
 0x491   : > { %v4828_v41 = vadd.f32 %v4767_v39, %v4653_v26 }
 0x492   : > { %4991 = vmatmul.bf16.gmra.mxu0 %v10307_v54 }
 0x493   : > { %v4607_v0 = vpop.f32.mrf.mxu2 }
 0x494   : > { %v9508_v35 = vadd.f32 %v4607_v0, %v4478_v48  ;;  %v4434_v12 = vpop.f32.mrf.mxu1 }
 0x495   : > { %4809 = vmatmul.bf16.gmra.mxu3 %v4676_v46  ;;  %v9513_v24 = vadd.f32 %v4434_v12, %v9390_v8  ;;  %v4651_v8 = vadd.f32 %v9458_v55, %v9441_v57  ;;  %v10319_v12 = vld [vmem:[#allocation21_spill] sm:$0xff] }
 0x497   : > { %v4954_v59 = vpop.f32.mrf.mxu0  ;;  %5127 = vmatmul.bf16.gmra.mxu1 %v10318_v45  ;;  %v4826_v46 = vadd.f32 %v4762_v13, %v4651_v8 }
 0x498   : > { %v4770_v2 = vpop.f32.mrf.mxu3  ;;  %v9510_v36 = vadd.f32 %v4954_v59, %v4824_v27 }
 0x499   : > { %v4829_v3 = vadd.f32 %v4770_v2, %v4654_v20 }
 0x49b   : > { %v4610_v54 = vpop.f32.mrf.mxu2 }
 0x49c   : > { %v4660_v26 = vadd.f32 %v4610_v54, %v4479_v17  ;;  %v4436_v23 = vpop.f32.mrf.mxu1 }
 0x49d   : > { %v9519_v16 = vadd.f32 %v4436_v23, %v9395_v4  ;;  %v2741_v4 = vld [vmem:[#allocation2 + $0x1a8] sm:$0x3] }
 0x49e   : > { %v9532_v2 = vpack.c.bf16 %v2741_v4, %v2741_v4 }
 0x49f   : > { %v4957_v53 = vpop.f32.mrf.mxu0 }
 0x4a0   : > { %v4772_v31 = vpop.f32.mrf.mxu3  ;;  %v9516_v63 = vadd.f32 %v4957_v53, %v4825_v32  ;;  %v4867_v45 = vshll.u32 %v9532_v2, 16 }
 0x4a1   : > { %v4830_v48 = vadd.f32 %v4772_v31, %v4655_v30  ;;  %v4848_v30 = vshrl.u32 %v9495_v18, 16 }
 0x4a2   : > { %4996 = vmatmul.bf16.gmra.mxu0 %v10308_v11  ;;  %v4851_v11 = vshll.u32 %v9495_v18, 16 }
 0x4a3   : > { %v4612_v39 = vpop.f32.mrf.mxu2  ;;  %v4850_v57 = vrot.slane %v4848_v30, 4 }
 0x4a4   : > { %v4661_v20 = vadd.f32 %v4612_v39, %v4480_v60  ;;  %v4439_v6 = vpop.f32.mrf.mxu1  ;;  %v4853_v55 = vrot.slane %v4851_v11, 5  ;;  %v4869_v39 = vrot.slane %v4867_v45, 5  ;;  %v10321_v11 = vld [vmem:[#allocation44_spill] sm:$0xff] }
 0x4a5   : > { %v9527_v32 = vadd.f32 %v4439_v6, %v9403_v29 }
 0x4a6   : > { %v4854_v60 = vor.u32 %v4853_v55, %v4850_v57 }
 0x4a7   : > { %v4959_v0 = vpop.f32.mrf.mxu0  ;;  %5132 = vmatmul.bf16.gmra.mxu1 %v10319_v12 }
 0x4a8   : > { %v4775_v17 = vpop.f32.mrf.mxu3  ;;  %v9524_v27 = vadd.f32 %v4959_v0, %v4826_v46  ;;  %v4855_v31 = vrot.slane %v4854_v60, 4 }
 0x4a9   : > { %v4831_v59 = vadd.f32 %v4775_v17, %v4656_v19 }
 0x4aa   : > { %v4860_v0 = vsel %vm6915_vm4, %v4855_v31, %v4853_v55  ;;  %v4870_v6 = vsel %vm6915_vm4, %v4855_v31, %v4869_v39 }
 0x4ab   : > { %v4871_v30 = vunpack.c.l.b16 %v4860_v0 }
 0x4ac   : > { %v4441_v54 = vpop.f32.mrf.mxu1 }
 0x4ad   : > { %v9538_v19 = vadd.f32 %v4441_v54, %v9408_v43 }
 0x4af   : > { %v4962_v13 = vpop.f32.mrf.mxu0 }
 0x4b0   : > { %v4777_v53 = vpop.f32.mrf.mxu3  ;;  %v9535_v29 = vadd.f32 %v4962_v13, %v4827_v22 }
 0x4b1   : > { %v4832_v23 = vadd.f32 %v4777_v53, %v9489_v14 }
 0x4b2   : > { %5001 = vmatmul.bf16.gmra.mxu0 %v9169_v33  ;;  %v4872_v33 = vunpack.c.l.b16 %v4870_v6 }
 0x4b4   : > { %v4444_v17 = vpop.f32.mrf.mxu1  ;;  %v4873_v12 = vpack.c.b16 %v4872_v33, %v4871_v30 }
 0x4b5   : > { %v9549_v43 = vadd.f32 %v4444_v17, %v9413_v1 }
 0x4b7   : > { %v4964_v8 = vpop.f32.mrf.mxu0  ;;  %5137 = vmatmul.bf16.gmra.mxu1 %v10321_v11 }
 0x4b8   : > { %v4780_v4 = vpop.f32.mrf.mxu3  ;;  %v9546_v22 = vadd.f32 %v4964_v8, %v4828_v41  ;;  %v10322_v8 = vld [vmem:[#allocation25_spill] sm:$0xff] }
 0x4b9   : > { %v4833_v14 = vadd.f32 %v4780_v4, %v9498_v42 }
 0x4bc   : > { %v4446_v13 = vpop.f32.mrf.mxu1 }
 0x4bd   : > { %v9556_v45 = vadd.f32 %v4446_v13, %v9418_v38  ;;  %v6439_v38 = vld [vmem:[%s9953_s5 + $0xb4] sm:$0xf0] }
 0x4bf   : > { %v4967_v57 = vpop.f32.mrf.mxu0 }
 0x4c0   : > { %v4782_v55 = vpop.f32.mrf.mxu3  ;;  %v9553_v60 = vadd.f32 %v4967_v57, %v4829_v3  ;;  %v6607_v3 = vld [vmem:[%s9953_s5 + $0xac] sm:$0xf] }
 0x4c1   : > { %v4834_v41 = vadd.f32 %v4782_v55, %v9508_v35  ;;  %v6442_v35 = vor.u32 %v6607_v3, %v6439_v38 }
 0x4c2   : > { %5006 = vmatmul.bf16.gmra.mxu0 %v4873_v12 }
 0x4c3   : > { %5551 = vmatpush.bf16.msra.mxu3 %v6442_v35 }
 0x4c4   : > { %v4449_v54 = vpop.f32.mrf.mxu1 }
 0x4c5   : > { %v9562_v31 = vadd.f32 %v4449_v54, %v9426_v37 }
 0x4c7   : > { %v4969_v1 = vpop.f32.mrf.mxu0  ;;  %5142 = vmatmul.bf16.gmra.mxu1 %v10322_v8 }
 0x4c8   : > { %v4785_v53 = vpop.f32.mrf.mxu3  ;;  %v9559_v42 = vadd.f32 %v4969_v1, %v4830_v48 }
 0x4c9   : > { %v4835_v39 = vadd.f32 %v4785_v53, %v4660_v26 }
 0x4cc   : > { %v4451_v0 = vpop.f32.mrf.mxu1 }
 0x4cd   : > { %v9574_v37 = vadd.f32 %v4451_v0, %v9433_v40 }
 0x4cf   : > { %v4972_v46 = vpop.f32.mrf.mxu0 }
 0x4d0   : > { %v4787_v6 = vpop.f32.mrf.mxu3  ;;  %v9571_v48 = vadd.f32 %v4972_v46, %v4831_v59 }
 0x4d1   : > { %v4836_v26 = vadd.f32 %v4787_v6, %v4661_v20 }
 0x4d4   : > { %v4454_v4 = vpop.f32.mrf.mxu1 }
 0x4d5   : > { %v9579_v33 = vadd.f32 %v4454_v4, %v9438_v58  ;;  %v9594_v58 = vld [vmem:[%s10323_s4] ss:$0 sm:$0xff] }
 0x4d7   : > { %v4974_v17 = vpop.f32.mrf.mxu0  ;;  %5147 = vmatmul.bf16.gmra.mxu1 %v8960_v56 }
 0x4d8   : > { %v9576_v30 = vadd.f32 %v4974_v17, %v4832_v23  ;;  %v6604_v23 = vld [vmem:[%s9953_s5 + $0x94] sm:$0xf] }
 0x4dc   : > { %v4456_v12 = vpop.f32.mrf.mxu1 }
 0x4dd   : > { %v9585_v59 = vadd.f32 %v4456_v12, %v9447_v7  ;;  %v6427_v7 = vld [vmem:[%s9953_s5 + $0x9c] sm:$0xf0] }
 0x4df   : > { %v4977_v11 = vpop.f32.mrf.mxu0 }
 0x4e0   : > { %v9582_v57 = vadd.f32 %v4977_v11, %v4833_v14 }
 0x4e4   : > { %v5113_v40 = vpop.f32.mrf.mxu1 }
 0x4e5   : > { %v5193_v20 = vadd.f32 %v5113_v40, %v9452_v21  ;;  %v6430_v21 = vor.u32 %v6604_v23, %v6427_v7 }
 0x4e7   : > { %v4979_v13 = vpop.f32.mrf.mxu0  ;;  %5152 = vmatmul.bf16.gmra.mxu1 %v9028_v47  ;;  %v5229_v47 = vadd.f32 %v9594_v58, %v5193_v20  ;;  %5552 = vmatpush.bf16.msra.mxu3 %v6430_v21 }
 0x4e8   : > { %v9587_v55 = vadd.f32 %v4979_v13, %v4834_v41 }
 0x4e9   : > { %v5261_v53 = vmax.f32 %v5229_v47, 0.0 }
 0x4ec   : > { %v5115_v14 = vpop.f32.mrf.mxu1 }
 0x4ed   : > { %v5194_v1 = vadd.f32 %v5115_v14, %v9461_v61 }
 0x4ef   : > { %v4982_v56 = vpop.f32.mrf.mxu0  ;;  %v5230_v54 = vadd.f32 %v9594_v58, %v5194_v1 }
 0x4f0   : > { %v9602_v41 = vadd.f32 %v4982_v56, %v4835_v39 }
 0x4f1   : > { %v5262_v8 = vmax.f32 %v5230_v54, 0.0 }
 0x4f3   : > { %v5323_v3 = vadd.f32 %v5262_v8, %v5261_v53 }
 0x4f4   : > { %v5118_v35 = vpop.f32.mrf.mxu1 }
 0x4f5   : > { %v5195_v0 = vadd.f32 %v5118_v35, %v9466_v9 }
 0x4f7   : > { %v4984_v38 = vpop.f32.mrf.mxu0  ;;  %v5231_v39 = vadd.f32 %v9594_v58, %v5195_v0  ;;  %5157 = vmatmul.bf16.gmra.mxu1 %v10304_v51  ;;  %v6601_v51 = vld [vmem:[%s9953_s5 + $0x7c] sm:$0xf] }
 0x4f8   : > { %v9607_v46 = vadd.f32 %v4984_v38, %v4836_v26 }
 0x4f9   : > { %v5263_v6 = vmax.f32 %v5231_v39, 0.0 }
 0x4fb   : > { %v5324_v17 = vadd.f32 %v5323_v3, %v5263_v6 }
 0x4fc   : > { %v5120_v4 = vpop.f32.mrf.mxu1 }
 0x4fd   : > { %v5196_v61 = vadd.f32 %v5120_v4, %v9471_v5  ;;  %v6415_v5 = vld [vmem:[%s9953_s5 + $0x84] sm:$0xf0] }
 0x4fe   : > { %v6418_v14 = vor.u32 %v6601_v51, %v6415_v5 }
 0x4ff   : > { %v5232_v11 = vadd.f32 %v9594_v58, %v5196_v61 }
 0x500   : > { %5553 = vmatpush.bf16.msra.mxu3 %v6418_v14 }
 0x501   : > { %v5264_v12 = vmax.f32 %v5232_v11, 0.0 }
 0x503   : > { %v5325_v13 = vadd.f32 %v5324_v17, %v5264_v12 }
 0x504   : > { %v5123_v40 = vpop.f32.mrf.mxu1 }
 0x505   : > { %v5197_v20 = vadd.f32 %v5123_v40, %v9476_v49 }
 0x507   : > { %v5233_v26 = vadd.f32 %v9594_v58, %v5197_v20  ;;  %5162 = vmatmul.bf16.gmra.mxu1 %v9167_v15 }
 0x509   : > { %v5265_v9 = vmax.f32 %v5233_v26, 0.0 }
 0x50b   : > { %v5293_v56 = vmax.f32 %v5261_v53, %v5265_v9  ;;  %v5326_v23 = vadd.f32 %v5325_v13, %v5265_v9 }
 0x50c   : > { %v5125_v7 = vpop.f32.mrf.mxu1 }
 0x50d   : > { %v5198_v21 = vadd.f32 %v5125_v7, %v9481_v44 }
 0x50f   : > { %v5234_v49 = vadd.f32 %v9594_v58, %v5198_v21 }
 0x511   : > { %v5266_v47 = vmax.f32 %v5234_v49, 0.0 }
 0x513   : > { %v5308_v15 = vmax.f32 %v5262_v8, %v5266_v47  ;;  %v5327_v1 = vadd.f32 %v5326_v23, %v5266_v47 }
 0x514   : > { %v5128_v54 = vpop.f32.mrf.mxu1 }
 0x515   : > { %v5199_v53 = vadd.f32 %v5128_v54, %v9485_v10 }
 0x517   : > { %v5235_v3 = vadd.f32 %v9594_v58, %v5199_v53  ;;  %5167 = vmatmul.bf16.gmra.mxu1 %v9215_v25 }
 0x519   : > { %v5267_v38 = vmax.f32 %v5235_v3, 0.0 }
 0x51b   : > { %v5294_v35 = vmax.f32 %v5263_v6, %v5267_v38  ;;  %v5328_v0 = vadd.f32 %v5327_v1, %v5267_v38  ;;  %v6598_v6 = vld [vmem:[%s9953_s5 + $0x64] sm:$0xf]  ;;  %v5047_v38 = vrot.slane %v9495_v18, 5 }
 0x51c   : > { %v5130_v39 = vpop.f32.mrf.mxu1 }
 0x51d   : > { %v5200_v17 = vadd.f32 %v5130_v39, %v9492_v52  ;;  %v6403_v52 = vld [vmem:[%s9953_s5 + $0x6c] sm:$0xf0]  ;;  %v6318_v39 = vrot.slane %v9495_v18, 9 }
 0x51e   : > { %v6406_v26 = vor.u32 %v6598_v6, %v6403_v52 }
 0x51f   : > { %v5236_v44 = vadd.f32 %v9594_v58, %v5200_v17  ;;  %v5049_v17 = vrot.slane %v5047_v38, 4 }
 0x520   : > { %5554 = vmatpush.bf16.msra.mxu3 %v6406_v26 }
 0x521   : > { %v5268_v4 = vmax.f32 %v5236_v44, 0.0  ;;  %v5050_v44 = vrot.slane %v9532_v2, 5 }
 0x523   : > { %v5309_v61 = vmax.f32 %v5264_v12, %v5268_v4  ;;  %v5329_v11 = vadd.f32 %v5328_v0, %v5268_v4  ;;  %v5051_v18 = vsel %vm7143_vm7, %v5049_v17, %v5050_v44 }
 0x524   : > { %v5133_v8 = vpop.f32.mrf.mxu1  ;;  %v5053_v6 = vunpack.c.l.b16 %v5051_v18 }
 0x525   : > { %v5201_v13 = vadd.f32 %v5133_v8, %v9502_v50  ;;  %v6595_v8 = vld [vmem:[%s9953_s5 + $0x4c] sm:$0xf] }
 0x527   : > { %v5237_v10 = vadd.f32 %v9594_v58, %v5201_v13  ;;  %5172 = vmatmul.bf16.gmra.mxu1 %v9256_v28 }
 0x529   : > { %v5269_v40 = vmax.f32 %v5237_v10, 0.0 }
 0x52b   : > { %v5295_v25 = vmax.f32 %v5293_v56, %v5269_v40  ;;  %v5330_v20 = vadd.f32 %v5329_v11, %v5269_v40 }
 0x52c   : > { %v5135_v12 = vpop.f32.mrf.mxu1 }
 0x52d   : > { %v5202_v9 = vadd.f32 %v5135_v12, %v9510_v36 }
 0x52f   : > { %v5238_v50 = vadd.f32 %v9594_v58, %v5202_v9 }
 0x531   : > { %v5270_v23 = vmax.f32 %v5238_v50, 0.0 }
 0x533   : > { %v5310_v28 = vmax.f32 %v5308_v15, %v5270_v23  ;;  %v5331_v51 = vadd.f32 %v5330_v20, %v5270_v23  ;;  %v6437_v15 = vld [vmem:[%s9953_s5 + $0xa8] sm:$0xf] }
 0x534   : > { %v5138_v56 = vpop.f32.mrf.mxu1 }
 0x535   : > { %v5203_v5 = vadd.f32 %v5138_v56, %v9516_v63  ;;  %v6608_v63 = vld [vmem:[%s9953_s5 + $0xb0] sm:$0xf0] }
 0x537   : > { %v5239_v7 = vadd.f32 %v9594_v58, %v5203_v5  ;;  %5177 = vmatmul.bf16.gmra.mxu1 %v9287_v62 }
 0x539   : > { %v5271_v14 = vmax.f32 %v5239_v7, 0.0 }
 0x53b   : > { %v5296_v21 = vmax.f32 %v5294_v35, %v5271_v14  ;;  %v5332_v49 = vadd.f32 %v5331_v51, %v5271_v14  ;;  %v6438_v35 = vor.u32 %v6608_v63, %v6437_v15 }
 0x53c   : > { %v5140_v47 = vpop.f32.mrf.mxu1 }
 0x53d   : > { %v5204_v1 = vadd.f32 %v5140_v47, %v9524_v27  ;;  %5537 = vmatpush.bf16.msrb.mxu2 %v6438_v35 }
 0x53f   : > { %v5240_v36 = vadd.f32 %v9594_v58, %v5204_v1 }
 0x541   : > { %v5272_v54 = vmax.f32 %v5240_v36, 0.0 }
 0x543   : > { %v5311_v53 = vmax.f32 %v5309_v61, %v5272_v54  ;;  %v5333_v3 = vadd.f32 %v5332_v49, %v5272_v54 }
 0x544   : > { %v5143_v62 = vpop.f32.mrf.mxu1 }
 0x545   : > { %v5205_v0 = vadd.f32 %v5143_v62, %v9535_v29  ;;  %v6391_v29 = vld [vmem:[%s9953_s5 + $0x54] sm:$0xf0] }
 0x546   : > { %v6394_v40 = vor.u32 %v6595_v8, %v6391_v29  ;;  %v4615_v29 = vpop.f32.mrf.mxu2 }
 0x547   : > { %v5241_v27 = vadd.f32 %v9594_v58, %v5205_v0  ;;  %5182 = vmatmul.bf16.gmra.mxu1 %v10310_v34  ;;  %v5048_v34 = vsel %vm7143_vm7, %v6318_v39, %v5047_v38  ;;  %v6379_v38 = vld [vmem:[%s9953_s5 + $0x3c] sm:$0xf0] }
 0x548   : > { %5555 = vmatpush.bf16.msra.mxu3 %v6394_v40  ;;  %v5052_v20 = vunpack.c.l.b16 %v5048_v34  ;;  %v4790_v34 = vpop.f32.mrf.mxu3 }
 0x549   : > { %v5273_v4 = vmax.f32 %v5241_v27, 0.0 }
 0x54a   : > { %v5054_v9 = vpack.c.b16 %v5053_v6, %v5052_v20 }
 0x54b   : > { %v5297_v61 = vmax.f32 %v5295_v25, %v5273_v4  ;;  %v5334_v11 = vadd.f32 %v5333_v3, %v5273_v4 }
 0x54c   : > { %v5145_v13 = vpop.f32.mrf.mxu1 }
 0x54d   : > { %v5206_v2 = vadd.f32 %v5145_v13, %v9546_v22 }
 0x54f   : > { %v5242_v25 = vadd.f32 %v9594_v58, %v5206_v2 }
 0x551   : > { %v5274_v52 = vmax.f32 %v5242_v25, 0.0 }
 0x553   : > { %v5312_v12 = vmax.f32 %v5310_v28, %v5274_v52  ;;  %v5335_v26 = vadd.f32 %v5334_v11, %v5274_v52  ;;  %v6425_v28 = vld [vmem:[%s9953_s5 + $0x90] sm:$0xf]  ;;  %v6602_v52 = vld [vmem:[%s9953_s5 + $0x80] sm:$0xf0] }
 0x554   : > { %v5148_v50 = vpop.f32.mrf.mxu1 }
 0x555   : > { %v5207_v23 = vadd.f32 %v5148_v50, %v9553_v60  ;;  %v6605_v60 = vld [vmem:[%s9953_s5 + $0x98] sm:$0xf0] }
 0x556   : > { %v6426_v3 = vor.u32 %v6605_v60, %v6425_v28 }
 0x557   : > { %v5243_v51 = vadd.f32 %v9594_v58, %v5207_v23  ;;  %5187 = vmatmul.bf16.gmra.mxu1 %v5054_v9 }
 0x558   : > { %5538 = vmatpush.bf16.msrb.mxu2 %v6426_v3 }
 0x559   : > { %v5275_v56 = vmax.f32 %v5243_v51, 0.0 }
 0x55b   : > { %v5298_v5 = vmax.f32 %v5296_v21, %v5275_v56  ;;  %v5336_v7 = vadd.f32 %v5335_v26, %v5275_v56 }
 0x55c   : > { %v5150_v14 = vpop.f32.mrf.mxu1 }
 0x55d   : > { %v5208_v22 = vadd.f32 %v5150_v14, %v9559_v42  ;;  %v6589_v14 = vld [vmem:[%s9953_s5 + $0x1c] sm:$0xf] }
 0x55f   : > { %v5244_v49 = vadd.f32 %v9594_v58, %v5208_v22  ;;  %v6367_v22 = vld [vmem:[%s9953_s5 + $0x24] sm:$0xf0] }
 0x561   : > { %v5276_v47 = vmax.f32 %v5244_v49, 0.0 }
 0x563   : > { %v5313_v1 = vmax.f32 %v5311_v53, %v5276_v47  ;;  %v5337_v36 = vadd.f32 %v5336_v7, %v5276_v47  ;;  %v6592_v53 = vld [vmem:[%s9953_s5 + $0x34] sm:$0xf]  ;;  %v6370_v47 = vor.u32 %v6589_v14, %v6367_v22 }
 0x564   : > { %v5153_v54 = vpop.f32.mrf.mxu1  ;;  %v6382_v0 = vor.u32 %v6592_v53, %v6379_v38 }
 0x565   : > { %v5209_v21 = vadd.f32 %v5153_v54, %v9571_v48 }
 0x566   : > { %5556 = vmatpush.bf16.msra.mxu3 %v6382_v0 }
 0x567   : > { %v5245_v42 = vadd.f32 %v9594_v58, %v5209_v21 }
 0x569   : > { %v5277_v15 = vmax.f32 %v5245_v42, 0.0 }
 0x56a   : > { %5557 = vmatpush.bf16.msra.mxu3 %v6370_v47 }
 0x56b   : > { %v5299_v63 = vmax.f32 %v5297_v61, %v5277_v15  ;;  %v5338_v62 = vadd.f32 %v5337_v36, %v5277_v15  ;;  %v4662_v36 = vadd.f32 %v4615_v29, %v9513_v24 }
 0x56c   : > { %v5155_v35 = vpop.f32.mrf.mxu1 }
 0x56d   : > { %v5210_v27 = vadd.f32 %v5155_v35, %v9576_v30  ;;  %v4987_v30 = vpop.f32.mrf.mxu0  ;;  %v4837_v54 = vadd.f32 %v4790_v34, %v4662_v36 }
 0x56f   : > { %v5246_v48 = vadd.f32 %v9594_v58, %v5210_v27  ;;  %v5034_v42 = vadd.f32 %v4987_v30, %v4837_v54  ;;  %v6401_v30 = vld [vmem:[%s9953_s5 + $0x60] sm:$0xf]  ;;  %v6389_v54 = vld [vmem:[%s9953_s5 + $0x48] sm:$0xf] }
 0x571   : > { %v5278_v39 = vmax.f32 %v5246_v48, 0.0 }
 0x573   : > { %v5314_v17 = vmax.f32 %v5312_v12, %v5278_v39  ;;  %v5339_v44 = vadd.f32 %v5338_v62, %v5278_v39  ;;  %v4617_v12 = vpop.f32.mrf.mxu2 }
 0x574   : > { %v5158_v4 = vpop.f32.mrf.mxu1  ;;  %v4663_v38 = vadd.f32 %v4617_v12, %v9519_v16 }
 0x575   : > { %v5211_v61 = vadd.f32 %v5158_v4, %v9582_v57  ;;  %v6413_v57 = vld [vmem:[%s9953_s5 + $0x78] sm:$0xf]  ;;  %v4989_v51 = vpop.f32.mrf.mxu0 }
 0x576   : > { %v6414_v9 = vor.u32 %v6602_v52, %v6413_v57 }
 0x577   : > { %v5247_v11 = vadd.f32 %v9594_v58, %v5211_v61 }
 0x578   : > { %5539 = vmatpush.bf16.msrb.mxu2 %v6414_v9 }
 0x579   : > { %v5279_v8 = vmax.f32 %v5247_v11, 0.0 }
 0x57b   : > { %v5300_v13 = vmax.f32 %v5298_v5, %v5279_v8  ;;  %v5340_v10 = vadd.f32 %v5339_v44, %v5279_v8 }
 0x57c   : > { %v5160_v18 = vpop.f32.mrf.mxu1 }
 0x57d   : > { %v5212_v40 = vadd.f32 %v5160_v18, %v9587_v55  ;;  %v4792_v55 = vpop.f32.mrf.mxu3  ;;  %v4992_v21 = vpop.f32.mrf.mxu0 }
 0x57e   : > { %v4838_v0 = vadd.f32 %v4792_v55, %v4663_v38 }
 0x57f   : > { %v5248_v2 = vadd.f32 %v9594_v58, %v5212_v40 }
 0x580   : > { %v5035_v24 = vadd.f32 %v4989_v51, %v4838_v0  ;;  %v6355_v51 = vld [vmem:[%s9953_s5 + $0xc] sm:$0xf0] }
 0x581   : > { %v5280_v25 = vmax.f32 %v5248_v2, 0.0 }
 0x583   : > { %v5315_v20 = vmax.f32 %v5313_v1, %v5280_v25  ;;  %v5341_v6 = vadd.f32 %v5340_v10, %v5280_v25  ;;  %v4620_v1 = vpop.f32.mrf.mxu2 }
 0x584   : > { %v5163_v26 = vpop.f32.mrf.mxu1  ;;  %v4664_v8 = vadd.f32 %v4620_v1, %v9527_v32 }
 0x585   : > { %v5213_v50 = vadd.f32 %v5163_v26, %v9602_v41  ;;  %v4795_v60 = vpop.f32.mrf.mxu3  ;;  %v4994_v4 = vpop.f32.mrf.mxu0 }
 0x586   : > { %v4839_v29 = vadd.f32 %v4795_v60, %v4664_v8  ;;  %v6365_v8 = vld [vmem:[%s9953_s5 + $0x18] sm:$0xf] }
 0x587   : > { %v5249_v23 = vadd.f32 %v9594_v58, %v5213_v50 }
 0x588   : > { %v5036_v16 = vadd.f32 %v4992_v21, %v4839_v29 }
 0x589   : > { %v5281_v56 = vmax.f32 %v5249_v23, 0.0  ;;  %v6586_v23 = vld [vmem:[%s9953_s5 + $0x4] sm:$0xf] }
 0x58a   : > { %v6358_v14 = vor.u32 %v6586_v23, %v6355_v51 }
 0x58b   : > { %v5301_v5 = vmax.f32 %v5299_v63, %v5281_v56  ;;  %v5342_v7 = vadd.f32 %v5341_v6, %v5281_v56 }
 0x58c   : > { %v5165_v49 = vpop.f32.mrf.mxu1  ;;  %5558 = vmatpush.bf16.msra.mxu3 %v6358_v14 }
 0x58d   : > { %v5214_v41 = vadd.f32 %v5165_v49, %v9607_v46  ;;  %v4622_v46 = vpop.f32.mrf.mxu2  ;;  %v4797_v48 = vpop.f32.mrf.mxu3 }
 0x58e   : > { %v4997_v57 = vpop.f32.mrf.mxu0  ;;  %v4665_v52 = vadd.f32 %v4622_v46, %v9538_v19 }
 0x58f   : > { %v5250_v28 = vadd.f32 %v9594_v58, %v5214_v41 }
 0x590   : > { %v4840_v12 = vadd.f32 %v4797_v48, %v4665_v52 }
 0x591   : > { %v5282_v3 = vmax.f32 %v5250_v28, 0.0 }
 0x592   : > { %v5037_v9 = vadd.f32 %v4994_v4, %v4840_v12 }
 0x593   : > { %v5316_v15 = vmax.f32 %v5314_v17, %v5282_v3  ;;  %v5343_v63 = vadd.f32 %v5342_v7, %v5282_v3  ;;  %v6596_v3 = vld [vmem:[%s9953_s5 + $0x50] sm:$0xf0] }
 0x594   : > { %v5168_v62 = vpop.f32.mrf.mxu1 }
 0x595   : > { %v5215_v53 = vadd.f32 %v5168_v62, %v5034_v42  ;;  %v4625_v34 = vpop.f32.mrf.mxu2  ;;  %v4800_v2 = vpop.f32.mrf.mxu3  ;;  %v6390_v42 = vor.u32 %v6596_v3, %v6389_v54  ;;  %v6421_v54 = vld [vmem:[%s9953_s5 + $0x80] sm:$0xf]  ;;  %v6603_v3 = vld [vmem:[%s9953_s5 + $0x88] sm:$0xf0] }
 0x596   : > { %v4666_v49 = vadd.f32 %v4625_v34, %v9549_v43  ;;  %v4999_v47 = vpop.f32.mrf.mxu0  ;;  %v6377_v43 = vld [vmem:[%s9953_s5 + $0x30] sm:$0xf]  ;;  %v6609_v34 = vld [vmem:[%s9953_s5 + $0xb8] sm:$0xf0] }
 0x597   : > { %v5251_v35 = vadd.f32 %v9594_v58, %v5215_v53 }
 0x598   : > { %v4841_v41 = vadd.f32 %v4800_v2, %v4666_v49 }
 0x599   : > { %v5283_v27 = vmax.f32 %v5251_v35, 0.0 }
 0x59a   : > { %v5038_v36 = vadd.f32 %v4997_v57, %v4841_v41 }
 0x59b   : > { %v5302_v39 = vmax.f32 %v5300_v13, %v5283_v27  ;;  %v5344_v44 = vadd.f32 %v5343_v63, %v5283_v27  ;;  %v6599_v13 = vld [vmem:[%s9953_s5 + $0x68] sm:$0xf0] }
 0x59c   : > { %v5170_v61 = vpop.f32.mrf.mxu1  ;;  %v6402_v32 = vor.u32 %v6599_v13, %v6401_v30  ;;  %v6617_v30 = vld [vmem:[%s9955_s7 + $0x38] sm:$0xff] }
 0x59d   : > { %v5216_v11 = vadd.f32 %v5170_v61, %v5035_v24  ;;  %v4627_v56 = vpop.f32.mrf.mxu2  ;;  %v4802_v22 = vpop.f32.mrf.mxu3  ;;  %5651 = vmatpush.bf16.msrb.mxu3 %v6617_v30 }
 0x59e   : > { %5540 = vmatpush.bf16.msrb.mxu2 %v6402_v32  ;;  %v4667_v38 = vadd.f32 %v4627_v56, %v9556_v45  ;;  %v5002_v48 = vpop.f32.mrf.mxu0  ;;  %v6590_v45 = vld [vmem:[%s9953_s5 + $0x20] sm:$0xf0] }
 0x59f   : > { %v5252_v17 = vadd.f32 %v9594_v58, %v5216_v11  ;;  %v6366_v29 = vor.u32 %v6590_v45, %v6365_v8  ;;  %v6746_v8 = vmov 256.0  }
 0x5a0   : > { %v4842_v0 = vadd.f32 %v4802_v22, %v4667_v38  ;;  %6675 = vrcp.f32 %v6746_v8  ;;  %v5602_v8 = vld [vmem:[%s9956_s8] sm:$0x1] }
 0x5a1   : > { %v5284_v10 = vmax.f32 %v5252_v17, 0.0  ;;  %v6353_v17 = vld [vmem:[%s9953_s5] sm:$0xf] }
 0x5a2   : > { %5541 = vmatpush.bf16.msrb.mxu2 %v6390_v42  ;;  %v5039_v24 = vadd.f32 %v4999_v47, %v4842_v0  ;;  %v6433_v47 = vld [vmem:[%s9953_s5 + $0x98] sm:$0xf] }
 0x5a3   : > { %v9715_v18 = vmax.f32 %v5315_v20, %v5284_v10  ;;  %v5345_v40 = vadd.f32 %v5344_v44, %v5284_v10  ;;  %v6445_v10 = vld [vmem:[%s9953_s5 + $0xb0] sm:$0xf] }
 0x5a4   : > { %v5173_v25 = vpop.f32.mrf.mxu1 }
 0x5a5   : > { %v5217_v6 = vadd.f32 %v5173_v25, %v5036_v16  ;;  %v4630_v62 = vpop.f32.mrf.mxu2  ;;  %v4805_v46 = vpop.f32.mrf.mxu3 }
 0x5a6   : > { %v4668_v16 = vadd.f32 %v4630_v62, %v9562_v31  ;;  %v5004_v31 = vpop.f32.mrf.mxu0 }
 0x5a7   : > { %v5253_v20 = vadd.f32 %v9594_v58, %v5217_v6  ;;  %v6446_v6 = vor.u32 %v6609_v34, %v6445_v10  ;;  %v6385_v34 = vld [vmem:[%s9953_s5 + $0x38] sm:$0xf] }
 0x5a8   : > { %v4843_v25 = vadd.f32 %v4805_v46, %v4668_v16 }
 0x5a9   : > { %v5285_v26 = vmax.f32 %v5253_v20, 0.0 }
 0x5aa   : > { %v5040_v52 = vadd.f32 %v5002_v48, %v4843_v25  ;;  %v6612_v25 = vld [vmem:[%s9955_s7 + $0x10] sm:$0xff] }
 0x5ab   : > { %v9725_v50 = vmax.f32 %v5301_v5, %v5285_v26  ;;  %v5346_v55 = vadd.f32 %v5345_v40, %v5285_v26 }
 0x5ac   : > { %v5175_v7 = vpop.f32.mrf.mxu1 }
 0x5ad   : > { %v5218_v19 = vadd.f32 %v5175_v7, %v5037_v9  ;;  %v4632_v13 = vpop.f32.mrf.mxu2  ;;  %v4807_v57 = vpop.f32.mrf.mxu3 }
 0x5ae   : > { %v5007_v41 = vpop.f32.mrf.mxu0 }
 0x5af   : > { %v5254_v5 = vadd.f32 %v9594_v58, %v5218_v19 }
 0x5b1   : > { %v5286_v1 = vmax.f32 %v5254_v5, 0.0 }
 0x5b3   : > { %v9735_v28 = vmax.f32 %v5316_v15, %v5286_v1  ;;  %v5347_v60 = vadd.f32 %v5346_v55, %v5286_v1  ;;  %v6593_v15 = vld [vmem:[%s9953_s5 + $0x38] sm:$0xf0]  ;;  %v4669_v55 = vadd.f32 %v4632_v13, %v9574_v37  ;;  %v6606_v37 = vld [vmem:[%s9953_s5 + $0xa0] sm:$0xf0] }
 0x5b4   : > { %v5178_v21 = vpop.f32.mrf.mxu1  ;;  %v6378_v53 = vor.u32 %v6593_v15, %v6377_v43  ;;  %v6434_v1 = vor.u32 %v6606_v37, %v6433_v47  ;;  %v6422_v43 = vor.u32 %v6603_v3, %v6421_v54 }
 0x5b5   : > { %v5219_v63 = vadd.f32 %v5178_v21, %v5038_v36  ;;  %v4844_v51 = vadd.f32 %v4807_v57, %v4669_v55  ;;  %v4635_v7 = vpop.f32.mrf.mxu2  ;;  %v6616_v36 = vld [vmem:[%s9955_s7 + $0x30] sm:$0xff]  ;;  %v6615_v21 = vld [vmem:[%s9955_s7 + $0x28] sm:$0xff] }
 0x5b6   : > { %5542 = vmatpush.bf16.msrb.mxu2 %v6378_v53  ;;  %5652 = vmatpush.bf16.msrb.mxu3 %v6616_v36  ;;  %v5009_v45 = vpop.f32.mrf.mxu0 }
 0x5b7   : > { %v5255_v35 = vadd.f32 %v9594_v58, %v5219_v63  ;;  %v5041_v14 = vadd.f32 %v5004_v31, %v4844_v51  ;;  %v6600_v63 = vld [vmem:[%s9953_s5 + $0x70] sm:$0xf0] }
 0x5b8   : > { %v6588_v51 = vld [vmem:[%s9953_s5 + $0x10] sm:$0xf0] }
 0x5b9   : > { %v5287_v27 = vmax.f32 %v5255_v35, 0.0 }
 0x5ba   : > { %5543 = vmatpush.bf16.msrb.mxu2 %v6366_v29  ;;  %5653 = vmatpush.bf16.msrb.mxu3 %v6615_v21  ;;  %v6613_v29 = vld [vmem:[%s9955_s7 + $0x18] sm:$0xff]  ;;  %v6623_v21 = vld [vmem:[%s9957_s9 + $0x28] sm:$0xff] }
 0x5bb   : > { %v9751_v44 = vmax.f32 %v5302_v39, %v5287_v27  ;;  %v5348_v4 = vadd.f32 %v5347_v60, %v5287_v27  ;;  %v6587_v39 = vld [vmem:[%s9953_s5 + $0x8] sm:$0xf0]  ;;  %v6614_v27 = vld [vmem:[%s9955_s7 + $0x20] sm:$0xff] }
 0x5bc   : > { %v5180_v61 = vpop.f32.mrf.mxu1  ;;  %v6354_v2 = vor.u32 %v6587_v39, %v6353_v17 }
 0x5bd   : > { %v5220_v11 = vadd.f32 %v5180_v61, %v5039_v24  ;;  %v4637_v35 = vpop.f32.mrf.mxu2  ;;  %v6397_v24 = vld [vmem:[%s9953_s5 + $0x50] sm:$0xf] }
 0x5be   : > { %5544 = vmatpush.bf16.msrb.mxu2 %v6354_v2  ;;  %v4671_v61 = vadd.f32 %v4637_v35, %v9585_v59  ;;  %5654 = vmatpush.bf16.msrb.mxu3 %v6614_v27  ;;  %v6594_v59 = vld [vmem:[%s9953_s5 + $0x40] sm:$0xf0] }
 0x5bf   : > { %v5256_v40 = vadd.f32 %v9594_v58, %v5220_v11  ;;  %v6386_v2 = vor.u32 %v6594_v59, %v6385_v34 }
 0x5c1   : > { %v5288_v32 = vmax.f32 %v5256_v40, 0.0 }
 0x5c2   : > { %5565 = vmatpush.bf16.msra.mxu2 %v6446_v6  ;;  %5655 = vmatpush.bf16.msrb.mxu3 %v6613_v29 }
 0x5c3   : > { %v9777_v20 = vmax.f32 %v9715_v18, %v5288_v32  ;;  %v5349_v12 = vadd.f32 %v5348_v4, %v5288_v32  ;;  %v4810_v18 = vpop.f32.mrf.mxu3  ;;  %v6597_v4 = vld [vmem:[%s9953_s5 + $0x58] sm:$0xf0]  ;;  %v6676_v32 = vpop.eup %6675 }
 0x5c4   : > { %v5183_v26 = vpop.f32.mrf.mxu1  ;;  %v6398_v17 = vor.u32 %v6597_v4, %v6397_v24  ;;  %vm5365_vm8 = vweird.f32 %v6676_v32 }
 0x5c5   : > { %v5221_v9 = vadd.f32 %v5183_v26, %v5040_v52  ;;  %v6373_v52 = vld [vmem:[%s9953_s5 + $0x20] sm:$0xf]  ;;  %v6611_v26 = vld [vmem:[%s9955_s7 + $0x8] sm:$0xff] }
 0x5c6   : > { %5566 = vmatpush.bf16.msra.mxu2 %v6434_v1  ;;  %5656 = vmatpush.bf16.msrb.mxu3 %v6612_v25 }
 0x5c7   : > { %v5257_v23 = vadd.f32 %v9594_v58, %v5221_v9  ;;  %v5361_v9 = vmul.f32 256.0, %v6676_v32 }
 0x5c9   : > { %v5289_v56 = vmax.f32 %v5257_v23, 0.0  ;;  %v6361_v23 = vld [vmem:[%s9953_s5 + $0x8] sm:$0xf] }
 0x5ca   : > { %5567 = vmatpush.bf16.msra.mxu2 %v6422_v43  ;;  %5657 = vmatpush.bf16.msrb.mxu3 %v6611_v26 }
 0x5cb   : > { %v9782_v19 = vmax.f32 %v9725_v50, %v5289_v56  ;;  %v5350_v22 = vadd.f32 %v5349_v12, %v5289_v56  ;;  %v4670_v50 = vadd.f32 %v4635_v7, %v9579_v33  ;;  %v6409_v33 = vld [vmem:[%s9953_s5 + $0x68] sm:$0xf]  ;;  %v6362_v7 = vor.u32 %v6588_v51, %v6361_v23 }
 0x5cc   : > { %v5185_v49 = vpop.f32.mrf.mxu1  ;;  %v6410_v0 = vor.u32 %v6600_v63, %v6409_v33  ;;  %v6620_v33 = vld [vmem:[%s9957_s9 + $0x10] sm:$0xff]  ;;  %v6619_v63 = vld [vmem:[%s9957_s9 + $0x8] sm:$0xff] }
 0x5cd   : > { %v5222_v5 = vadd.f32 %v5185_v49, %v5041_v14  ;;  %v4845_v42 = vadd.f32 %v4810_v18, %v4670_v50  ;;  %v6610_v14 = vld [vmem:[%s9955_s7] sm:$0xff]  ;;  %v6625_v49 = vld [vmem:[%s9957_s9 + $0x38] sm:$0xff] }
 0x5ce   : > { %5568 = vmatpush.bf16.msra.mxu2 %v6410_v0  ;;  %5658 = vmatpush.bf16.msrb.mxu3 %v6610_v14 }
 0x5cf   : > { %v5258_v60 = vadd.f32 %v9594_v58, %v5222_v5  ;;  %v5042_v62 = vadd.f32 %v5007_v41, %v4845_v42  ;;  %v6624_v41 = vld [vmem:[%s9957_s9 + $0x30] sm:$0xff]  ;;  %v6622_v42 = vld [vmem:[%s9957_s9 + $0x20] sm:$0xff] }
 0x5d1   : > { %v5290_v15 = vmax.f32 %v5258_v60, 0.0 }
 0x5d2   : > { %5569 = vmatpush.bf16.msra.mxu2 %v6398_v17 }
 0x5d3   : > { %v5320_v53 = vmax.f32 %v9735_v28, %v5290_v15  ;;  %v5351_v38 = vadd.f32 %v5350_v22, %v5290_v15  ;;  %v4812_v28 = vpop.f32.mrf.mxu3  ;;  %v6621_v15 = vld [vmem:[%s9957_s9 + $0x18] sm:$0xff] }
 0x5d4   : > { %v5188_v46 = vpop.f32.mrf.mxu1  ;;  %v4846_v39 = vadd.f32 %v4812_v28, %v4671_v61 }
 0x5d5   : > { %v5223_v48 = vadd.f32 %v5188_v46, %v5042_v62  ;;  %v6618_v62 = vld [vmem:[%s9957_s9] sm:$0xff] }
 0x5d6   : > { %v5043_v16 = vadd.f32 %v5009_v45, %v4846_v39  ;;  %5570 = vmatpush.bf16.msra.mxu2 %v6386_v2 }
 0x5d7   : > { %v5259_v11 = vadd.f32 %v9594_v58, %v5223_v48 }
 0x5d9   : > { %v5291_v10 = vmax.f32 %v5259_v11, 0.0 }
 0x5db   : > { %v5306_v40 = vmax.f32 %v9751_v44, %v5291_v10  ;;  %v5352_v30 = vadd.f32 %v5351_v38, %v5291_v10  ;;  %v6591_v44 = vld [vmem:[%s9953_s5 + $0x28] sm:$0xf0] }
 0x5dc   : > { %v5190_v13 = vpop.f32.mrf.mxu1  ;;  %v6374_v31 = vor.u32 %v6591_v44, %v6373_v52 }
 0x5dd   : > { %v5307_v6 = vmax.f32 %v9782_v19, %v5306_v40  ;;  %v5224_v57 = vadd.f32 %v5190_v13, %v5043_v16  ;;  %v5362_v19 = vsub.f32 1.0, %v5361_v9 }
 0x5de   : > { %5571 = vmatpush.bf16.msra.mxu2 %v6374_v31 }
 0x5df   : > { %v5260_v12 = vadd.f32 %v9594_v58, %v5224_v57 }
 0x5e1   : > { %v5292_v55 = vmax.f32 %v5260_v12, 0.0 }
 0x5e2   : > { %5572 = vmatpush.bf16.msra.mxu2 %v6362_v7 }
 0x5e3   : > { %v5321_v56 = vmax.f32 %v9777_v20, %v5292_v55  ;;  %v5353_v58 = vadd.f32 %v5352_v30, %v5292_v55  ;;  %v5363_v20 = vmul.f32 %v6676_v32, %v5362_v19  ;;  %v5682_v30 = vld [vmem:[%s9958_s10] sm:$0x1] }
 0x5e5   : > { %v5322_v22 = vmax.f32 %v5320_v53, %v5321_v56  ;;  %v5354_v18 = vrot.slane %v5353_v58, 4  ;;  %v5364_v36 = vadd.f32 %v6676_v32, %v5363_v20  ;;  %v5401_v53 = vld [vmem:[%s9954_s6] sm:$0x7] }
 0x5e6   : > { %v5403_v38 = vperm.slane %v5401_v53, 0  ;;  %v5404_v35 = vperm.slane %v5401_v53, 1  ;;  %v5405_v11 = vperm.slane %v5401_v53, 2 }
 0x5e7   : > { %v5355_v5 = vadd.f32 %v5354_v18, %v5353_v58  ;;  %v5368_v47 = vpack.c.bf16 %v5322_v22, %v5307_v6  ;;  %v5366_v54 = vsel %vm5365_vm8, %v6676_v32, %v5364_v36 }
 0x5e9   : > { %v5356_v37 = vrot.slane %v5355_v5, 2  ;;  %5545 = vmatmul.bf16.vlgmr.msrb.gmra.mxu2 %v5368_v47  ;;  %5559 = vmatmul.bf16.vlgmr.msra.gmra.mxu3 %v5368_v47 }
 0x5ea   : > { %5731 = vmatpush.bf16.msrb.mxu2 %v6625_v49 }
 0x5eb   : > { %v5357_v1 = vadd.f32 %v5356_v37, %v5355_v5 }
 0x5ed   : > { %v5358_v50 = vrot.slane %v5357_v1, 1 }
 0x5ee   : > { %5732 = vmatpush.bf16.msrb.mxu2 %v6624_v41 }
 0x5ef   : > { %v5359_v60 = vadd.f32 %v5358_v50, %v5357_v1 }
 0x5f1   : > { %v5367_v3 = vmul.f32 %v5366_v54, %v5359_v60 }
 0x5f2   : > { %5733 = vmatpush.bf16.msrb.mxu2 %v6623_v21 }
 0x5f3   : > { %v5585_v43 = vpack.c.bf16 %v5367_v3, %v5367_v3 }
 0x5f6   : > { %5734 = vmatpush.bf16.msrb.mxu2 %v6622_v42 }
 0x5f9   : > { %5573 = vmatmul.bf16.vlgmr.msra.gmra.mxu2 %v5368_v47  ;;  %5659 = vmatmul.bf16.vlgmr.msrb.gmra.mxu3 %v5585_v43 }
 0x5fa   : > { %5735 = vmatpush.bf16.msrb.mxu2 %v6621_v15 }
 0x5fe   : > { %5736 = vmatpush.bf16.msrb.mxu2 %v6620_v33 }
 0x602   : > { %5737 = vmatpush.bf16.msrb.mxu2 %v6619_v63 }
 0x606   : > { %5738 = vmatpush.bf16.msrb.mxu2 %v6618_v62 }
 0x66c   : > { %v5546_v46 = vpop.f32.mrf.mxu2  ;;  %v5560_v0 = vpop.f32.mrf.mxu3 }
 0x66d   : > { %v5547_v27 = vadd.f32 %v5546_v46, %v5403_v38  ;;  %v5561_v48 = vadd.f32 %v5560_v0, %v5404_v35 }
 0x66f   : > { %5579 = vst [vmem:[%s9887_s17] sm:$0xff] %v5547_v27 }
 0x670   : > { %5580 = vst [vmem:[%s9887_s17 + $0x8] sm:$0xff] %v5561_v48 }
 0x674   : > { %v5548_v24 = vpop.f32.mrf.mxu2  ;;  %v5562_v4 = vpop.f32.mrf.mxu3 }
 0x675   : > { %v5549_v28 = vadd.f32 %v5548_v24, %v5403_v38  ;;  %v5563_v61 = vadd.f32 %v5562_v4, %v5404_v35 }
 0x676   : > { %v5771_v32 = vld [vmem:[%s9887_s17] sm:$0xff] (%p6850_p5) }
 0x677   : > { %5582 = vst [vmem:[%s9887_s17 + $0x18] sm:$0xff] %v5549_v28  ;;  %v5773_v6 = vld [vmem:[%s9887_s17 + $0x8] sm:$0xff] (%p6850_p5) }
 0x678   : > { %5583 = vst [vmem:[%s9887_s17 + $0x20] sm:$0xff] %v5563_v61 }
 0x679   : > { %5772 = vst [vmem:[%s5758_s18] sm:$0xff] (%p6850_p5), %v5771_v32 }
 0x67a   : > { %5774 = vst [vmem:[%s5758_s18 + $0x8] sm:$0xff] (%p6850_p5), %v5773_v6 }
 0x67c   : > { %v5574_v45 = vpop.f32.mrf.mxu2  ;;  %v5660_v17 = vpop.f32.mrf.mxu3 }
 0x67d   : > { %v5575_v29 = vadd.f32 %v5574_v45, %v5405_v11  ;;  %v5661_v39 = vadd.f32 %v5660_v17, %v5602_v8 }
 0x67e   : > { %v5777_v52 = vld [vmem:[%s9887_s17 + $0x18] sm:$0xff] (%p6850_p5) }
 0x67f   : > { %5581 = vst [vmem:[%s9887_s17 + $0x10] sm:$0xff] %v5575_v29  ;;  %v5664_v10 = vmax.f32 %v5661_v39, 0.0  ;;  %v5779_v44 = vld [vmem:[%s9887_s17 + $0x20] sm:$0xff] (%p6850_p5) }
 0x680   : > { %5778 = vst [vmem:[%s5758_s18 + $0x30] sm:$0xff] (%p6850_p5), %v5777_v52 }
 0x681   : > { %v5665_v34 = vpack.c.bf16 %v5664_v10, %v5664_v10  ;;  %5780 = vst [vmem:[%s5758_s18 + $0x38] sm:$0xff] (%p6850_p5), %v5779_v44 }
 0x683   : > { %5739 = vmatmul.bf16.vlgmr.msrb.gmra.mxu2 %v5665_v34 }
 0x684   : > { %v5576_v59 = vpop.f32.mrf.mxu2  ;;  %v5662_v16 = vpop.f32.mrf.mxu3 }
 0x685   : > { %v5577_v40 = vadd.f32 %v5576_v59, %v5405_v11 }
 0x686   : > { %v5775_v57 = vld [vmem:[%s9887_s17 + $0x10] sm:$0xff] (%p6850_p5) }
 0x687   : > { %5584 = vst [vmem:[%s9887_s17 + $0x28] sm:$0xff] %v5577_v40 }
 0x688   : > { %5776 = vst [vmem:[%s5758_s18 + $0x10] sm:$0xff] (%p6850_p5), %v5775_v57 }
 0x68e   : > { %v5781_v12 = vld [vmem:[%s9887_s17 + $0x28] sm:$0xff] (%p6850_p5) }
 0x68f   : > { %5782 = vst [vmem:[%s5758_s18 + $0x40] sm:$0xff] (%p6850_p5), %v5781_v12 }
 0x706   : > { %v5740_v13 = vpop.f32.mrf.mxu2 }
 0x707   : > { %v5741_v2 = vadd.f32 %v5740_v13, %v5682_v30 }
 0x709   : > { %5744 = vst [vmem:[%s412_s26] sm:$0x1] %v5741_v2 }
 0x70a   : > { %5755 = sbr.rel (!%p6850_p5) target bundleno = 1807 (0x70f), region = 68 }
 0x70e   : > { %v5742_v25 = vpop.f32.mrf.mxu2 }
 0x70f PF: > { %s5791_s1 = scalar_lea.hbm %s9960_s12, %s6833_s25  ;;  %s5793_s28 = sshll.u32 %s412_s26, 4  ;;  %s5794_s28 = int_to_ptr.vmem [resolvable:$true] %s5793_s28 }
 0x710   : > { %s5795_s29 = sshll.u32 %s5791_s1, 4  ;;  %s6699_s2 = scalar_lea.hbm %s9960_s12, 2  ;;  %s5796_s29 = int_to_ptr.hbm [resolvable:$true] %s5795_s29 }
 0x711   : > { %s6693_s15 = sshra.s32 %s5796_s29, 4  ;;  %s6694_s15 = int_to_ptr.hbm [resolvable:$true] %s6693_s15 }
 0x712   : > { %s6695_s16 = scalar_lea.hbm %s6694_s15, 1  ;;  %p6700_p0 = scmp.lt.s32.totalorder %s6694_s15, %s9960_s12 }
 0x713   : > { %p6696_p11 = scmp.ne.s32.totalorder %s6694_s15, %s6695_s16  ;;  %p6701_p1 = scmp.lt.s32.totalorder %s6699_s2, %s6695_s16 }
 0x715   : > { %p6697_p12 = pnand %p6696_p11, %p6850_p5  ;;  %p6702_p2 = por %p6701_p1, %p6700_p0 }
 0x717   : > { %p6698_p13 = pneg %p6697_p12 }
 0x719   : > { %p6703_p3 = pnand %p6702_p2, %p6698_p13 }
 0x71b   : > { %6706 = shalt.err (!%p6703_p3)
}
 0x71c   : > { %s10325_s25 = scalar_lea.sflag [#allocation5], %s9863_s20 }
 0x71d   : > { %6632 = dma.vmem_to_hbm [thread:$0]  (%p6850_p5), %s5794_s28, 16, %s5796_s29, %s10325_s25  }
 0x71e PF: > { %p6638_p4 = scmp.ge.s32.totalorder %s6741_s24, 2  ;;  %s5814_s26 = sand.u32 1, %s6729_s21  }
 0x71f   : > { %s5815_s3 = scalar_lea.sflag [#allocation5], %s5814_s26 }
 0x720   : > { %p6635_p7 = pnand %p6638_p4, %p6854_p6 }
 0x722   : > { %p6636_p8 = pneg %p6635_p7 }
 0x724   : > { %6724 = dma.done.wait (%p6636_p8), %s5815_s3, 16  }
 0x725   : > { %6726 = vsyncadd (%p6636_p8), %s5815_s3, 4294967280  ;;  %p23_p9 = scmp.ge.s32.totalorder %s6837_s27, 4   ;;  %s10326_s21 = smov %s6733_s22 }
 0x726   : > { %s10327_s22 = smov %s6737_s23  ;;  %s10328_s23 = smov %s6848_s30 }
 0x727   : > { %s10329_s24 = smov %s6837_s27  ;;  %25 = sbr.rel (!%p23_p9) target bundleno = 9 (0x9), region = 135 }
 0x72c   :  { %5820 = vsyncpa [#allocation5], 1 }
 0x72d   :  { %5822 = vsyncpa [#allocation5 + $0x1], 1 }

</bundles_post_ra>
